<compile_context>
chip_gen: v7x
topology: tpu7x:2x2x1
jax: 0.10.0
libtpu: 0.0.40
codegen_flags: <defaults>
</compile_context>

<pallas_src>
import functools

import jax
import jax.numpy as jnp
from jax.experimental import pallas as pl
from jax.experimental.pallas import tpu as pltpu

EPS = 1e-5

_COMPILER_PARAMS = pltpu.CompilerParams(
    dimension_semantics=("parallel",),
    vmem_limit_bytes=32 * 1024 * 1024,
)


def _sigmoid(x):
    # numerically stable; tanh runs on the (otherwise idle) EUP slot
    return 0.5 * (jnp.tanh(0.5 * x) + 1.0)


# ------------------------------------------------------------------ pallas glue
def _batched_spec(shape):
    nd = len(shape)
    return pl.BlockSpec((1,) + tuple(shape[1:]),
                        lambda n, _nd=nd: (n,) + (0,) * (_nd - 1))


def _full_spec(shape):
    nd = len(shape)
    return pl.BlockSpec(tuple(shape), lambda n, _nd=nd: (0,) * _nd)


def _run_batched(kernel, n, inputs, out_shapes):
    """Run `kernel` on a grid over the batch axis.

    inputs:     list of (array, is_batched).  Batched arrays get a (1, ...)
                block over axis 0; un-batched arrays (weights) a full block.
    out_shapes: list of output shapes (all batched over axis 0, float32).
    """
    in_specs = [(_batched_spec(a.shape) if b else _full_spec(a.shape))
                for a, b in inputs]
    out_specs = [_batched_spec(s) for s in out_shapes]
    out_shape = [jax.ShapeDtypeStruct(tuple(s), jnp.float32) for s in out_shapes]
    if len(out_shapes) == 1:
        out_specs, out_shape = out_specs[0], out_shape[0]
    return pl.pallas_call(
        kernel,
        grid=(n,),
        in_specs=in_specs,
        out_specs=out_specs,
        out_shape=out_shape,
        compiler_params=_COMPILER_PARAMS,
    )(*[a for a, _ in inputs])


# ------------------------------------------------------------------ kernels
def _channelwise_kernel(x_ref, w1_ref, w2_ref, o_ref):
    """ChannelWise: global avg pool -> MLP (no bias) -> sigmoid -> scale."""
    x = x_ref[0]                                      # (HW, C)
    pooled = jnp.mean(x, axis=0, keepdims=True)       # (1, C)
    h = jnp.maximum(
        jnp.dot(pooled, w1_ref[...], preferred_element_type=jnp.float32), 0.0)
    s = _sigmoid(jnp.dot(h, w2_ref[...], preferred_element_type=jnp.float32))
    o_ref[0] = x * s


def _conv_stats_kernel(x_ref, w_ref, y_ref, st_ref, *, k):
    """k x k stride-1 conv (input pre-padded) as k*k shifted-window matmuls,
    fused with per-sample per-channel sum / sum-of-squares for MixtureNorm."""
    _, hp, wp, cin = x_ref.shape
    ho, wo = hp - k + 1, wp - k + 1
    acc = None
    for i in range(k):
        for j in range(k):
            patch = x_ref[0, i:i + ho, j:j + wo, :].reshape(ho * wo, cin)
            part = jnp.dot(patch, w_ref[i * k + j],
                           preferred_element_type=jnp.float32)
            acc = part if acc is None else acc + part
    y_ref[0] = acc                                    # (HW, Cout)
    st_ref[0] = jnp.concatenate(
        [jnp.sum(acc, axis=0, keepdims=True),
         jnp.sum(acc * acc, axis=0, keepdims=True)], axis=0)


def _affine_kernel(y_ref, sc_ref, sh_ref, o_ref):
    """Per-(sample, channel) scale/shift (MixtureNorm apply pass)."""
    o_ref[0] = y_ref[0] * sc_ref[0] + sh_ref[0]


def _matmul_bias_sigmoid_kernel(p_ref, w_ref, b_ref, o_ref):
    """conv_last: strided-im2col matmul + bias + sigmoid, fully fused."""
    z = jnp.dot(p_ref[0], w_ref[...], preferred_element_type=jnp.float32)
    o_ref[0] = _sigmoid(z + b_ref[...])


# ------------------------------------------------------------------ op wrappers
def upsample2x_bilinear(x):
    """F.interpolate(scale_factor=2, mode='bilinear', align_corners=False),
    gather-free: constant 0.25/0.75 lerp of shifted slices (NHWC)."""
    n, h, w, c = x.shape
    xm = jnp.concatenate([x[:, :1], x[:, :-1]], axis=1)
    xp = jnp.concatenate([x[:, 1:], x[:, -1:]], axis=1)
    x2 = jnp.stack([0.75 * x + 0.25 * xm, 0.75 * x + 0.25 * xp],
                   axis=2).reshape(n, 2 * h, w, c)
    xm = jnp.concatenate([x2[:, :, :1], x2[:, :, :-1]], axis=2)
    xp = jnp.concatenate([x2[:, :, 1:], x2[:, :, -1:]], axis=2)
    return jnp.stack([0.75 * x2 + 0.25 * xm, 0.75 * x2 + 0.25 * xp],
                     axis=3).reshape(n, 2 * h, 2 * w, c)


def channelwise_fwd(p, x):
    n, h, w, c = x.shape
    out = _run_batched(
        _channelwise_kernel, n,
        [(x.reshape(n, h * w, c), True), (p['w1'], False), (p['w2'], False)],
        [(n, h * w, c)])
    return out.reshape(n, h, w, c)


def convbatch_mixture_fwd(p, x, k, pad):
    """ConvBatch = Conv2d(k x k, stride 1, no bias) + MixtureNorm."""
    n, hh, ww, cin = x.shape
    cout = p['w'].shape[-1]
    hw = hh * ww
    xp = jnp.pad(x, ((0, 0), (pad, pad), (pad, pad), (0, 0)))
    wr = p['w'].reshape(k * k, cin, cout)

    y, st = _run_batched(
        functools.partial(_conv_stats_kernel, k=k), n,
        [(xp, True), (wr, False)],
        [(n, hw, cout), (n, 2, cout)])

    # MixtureNorm statistics -> per-(sample, channel) scale & shift (tiny glue)
    cb = cout // 2
    s, ss = st[:, 0, :], st[:, 1, :]
    # batch-norm half: batch statistics over (N, H, W), affine
    bm = jnp.sum(s[:, :cb], axis=0) / (n * hw)
    bv = jnp.maximum(jnp.sum(ss[:, :cb], axis=0) / (n * hw) - bm * bm, 0.0)
    bscale = p['gamma'] * jax.lax.rsqrt(bv + EPS)
    bshift = p['beta'] - bm * bscale
    bscale = jnp.broadcast_to(bscale[None, :], (n, cb))
    bshift = jnp.broadcast_to(bshift[None, :], (n, cb))
    # instance-norm half: per-sample statistics over (H, W), no affine
    im = s[:, cb:] / hw
    iv = jnp.maximum(ss[:, cb:] / hw - im * im, 0.0)
    iscale = jax.lax.rsqrt(iv + EPS)
    ishift = -im * iscale
    scale = jnp.concatenate([bscale, iscale], axis=1)[:, None, :]
    shift = jnp.concatenate([bshift, ishift], axis=1)[:, None, :]

    out = _run_batched(
        _affine_kernel, n,
        [(y, True), (scale, True), (shift, True)],
        [(n, hw, cout)])
    return out.reshape(n, hh, ww, cout)


def conv_last_fwd(p, x):
    """Conv2d(cin, 1, 3, stride=2, padding=1, bias=True) + sigmoid (fused)."""
    n, hh, ww, cin = x.shape
    ho, wo = hh // 2, ww // 2
    xp = jnp.pad(x, ((0, 0), (1, 1), (1, 1), (0, 0)))
    # stride applied in the im2col slicing (no wasted output pixels)
    cols = [xp[:, i:i + 2 * ho:2, j:j + 2 * wo:2, :]
            for i in range(3) for j in range(3)]
    patches = jnp.concatenate(cols, axis=-1).reshape(n, ho * wo, 9 * cin)
    # TODO(synk): Cout=1 output is lane-sparse (masked stores); tiny layer.
    out = _run_batched(
        _matmul_bias_sigmoid_kernel, n,
        [(patches, True),
         (p['last_w'].reshape(9 * cin, 1), False),
         (p['last_b'].reshape(1, 1), False)],
        [(n, ho * wo, 1)])
    return out.reshape(n, ho, wo, 1)


# ------------------------------------------------------------------ module forward
def segmentnet_fwd(params, feature_2, feature_4, feature_32):
    # TODO(synk): the backbone is an external module; its outputs
    # (feature_2, feature_4, feature_32) are taken directly as inputs.
    to_nhwc = lambda t: jnp.transpose(t, (0, 2, 3, 1)).astype(jnp.float32)
    to_nchw = lambda t: jnp.transpose(t, (0, 3, 1, 2))

    f32 = to_nhwc(feature_32)
    f32 = channelwise_fwd(params['c_wise'], f32)

    f16 = upsample2x_bilinear(f32)
    f16 = convbatch_mixture_fwd(params['conv_16'], f16, k=5, pad=2)

    f8 = upsample2x_bilinear(f16)
    f8 = convbatch_mixture_fwd(params['conv_8'], f8, k=5, pad=2)

    segment = conv_last_fwd(params, f8)
    return to_nchw(segment), to_nchw(f8), [feature_2, feature_4]


# ------------------------------------------------------------------ parameter init
def init_params(key, channels):
    c4, c3, c2 = channels[4], channels[3], channels[2]
    ks = jax.random.split(key, 10)
    return {
        'c_wise': dict(
            w1=0.2 * jax.random.normal(ks[0], (c4, c4 // 4), jnp.float32),
            w2=0.2 * jax.random.normal(ks[1], (c4 // 4, c4), jnp.float32)),
        'conv_16': dict(
            w=0.1 * jax.random.normal(ks[2], (5, 5, c4, c3), jnp.float32),
            gamma=1.0 + 0.1 * jax.random.normal(ks[3], (c3 // 2,), jnp.float32),
            beta=0.05 * jax.random.normal(ks[4], (c3 // 2,), jnp.float32)),
        'conv_8': dict(
            w=0.1 * jax.random.normal(ks[5], (5, 5, c3, c2), jnp.float32),
            gamma=1.0 + 0.1 * jax.random.normal(ks[6], (c2 // 2,), jnp.float32),
            beta=0.05 * jax.random.normal(ks[7], (c2 // 2,), jnp.float32)),
        'last_w': 0.1 * jax.random.normal(ks[8], (3, 3, c2, 1), jnp.float32),
        'last_b': 0.05 * jax.random.normal(ks[9], (1,), jnp.float32),
    }


# ------------------------------------------------------------------ main
if __name__ == "__main__":
    key = jax.random.PRNGKey(0)
    channels = [4, 8, 16, 24, 32]          # backbone channel plan (toy)
    N = 2
    Himg = Wimg = 128                      # conceptual input resolution

    k1, k2, k3, kp = jax.random.split(key, 4)
    # backbone features follow the PyTorch NCHW convention
    feature_2 = jax.random.normal(k1, (N, channels[0], Himg // 2, Wimg // 2),
                                  jnp.float32)
    feature_4 = jax.random.normal(k2, (N, channels[1], Himg // 4, Wimg // 4),
                                  jnp.float32)
    feature_32 = jax.random.normal(k3, (N, channels[4], Himg // 32, Wimg // 32),
                                   jnp.float32)

    params = init_params(kp, channels)

    fwd = jax.jit(lambda a, b, c: segmentnet_fwd(params, a, b, c))
    segment, feature_8, feats = fwd(feature_2, feature_4, feature_32)
    jax.block_until_ready((segment, feature_8))

    assert segment.shape == (N, 1, Himg // 16, Wimg // 16), segment.shape
    assert feature_8.shape == (N, channels[2], Himg // 8, Wimg // 8), feature_8.shape
    assert feats[0].shape == feature_2.shape and feats[1].shape == feature_4.shape
    assert bool(jnp.all(jnp.isfinite(segment)))
    assert bool(jnp.all(jnp.isfinite(feature_8)))
    print("KERNEL_OK")
</pallas_src>

<mosaic_0001>
module attributes {stable_mosaic.version = 11 : i64} {
  func.func @_channelwise_kernel(%arg0: i32, %arg1: memref<1x16x32xf32, #tpu.memory_space<vmem>>, %arg2: memref<32x8xf32, #tpu.memory_space<vmem>>, %arg3: memref<8x32xf32, #tpu.memory_space<vmem>>, %arg4: memref<1x16x32xf32, #tpu.memory_space<vmem>>) attributes {dimension_semantics = [#tpu.dimension_semantics<parallel>], iteration_bounds = array<i64: 2>, scalar_prefetch = 0 : i64, scratch_operands = 0 : i64, tpu.core_type = #tpu.core_type<tc>, window_params = [{transform_indices = @transform_0, window_bounds = array<i64: 1, 16, 32>}, {pipeline_mode = #tpu.pipeline_mode<synchronous>, transform_indices = @transform_1, window_bounds = array<i64: 32, 8>}, {pipeline_mode = #tpu.pipeline_mode<synchronous>, transform_indices = @transform_2, window_bounds = array<i64: 8, 32>}, {transform_indices = @transform_3, window_bounds = array<i64: 1, 16, 32>}]} {
    %c0 = arith.constant 0 : index
    %c0_0 = arith.constant 0 : index
    %c0_1 = arith.constant 0 : index
    %0 = vector.load %arg1[%c0, %c0_0, %c0_1] : memref<1x16x32xf32, #tpu.memory_space<vmem>>, vector<1x16x32xf32>
    %1 = vector.shape_cast %0 : vector<1x16x32xf32> to vector<16x32xf32>
    %cst = arith.constant dense<0.000000e+00> : vector<32xf32>
    %2 = vector.multi_reduction <add>, %1, %cst [0] : vector<16x32xf32> to vector<32xf32>
    %3 = vector.shape_cast %2 : vector<32xf32> to vector<1x32xf32>
    %cst_2 = arith.constant 1.600000e+01 : f32
    %4 = vector.broadcast %cst_2 : f32 to vector<1x32xf32>
    %5 = arith.divf %3, %4 : vector<1x32xf32>
    %c0_3 = arith.constant 0 : index
    %c0_4 = arith.constant 0 : index
    %6 = vector.load %arg2[%c0_3, %c0_4] : memref<32x8xf32, #tpu.memory_space<vmem>>, vector<32x8xf32>
    %cst_5 = arith.constant dense<0.000000e+00> : vector<1x8xf32>
    %7 = tpu.matmul %5, %6, %cst_5 {dimension_numbers = #tpu.dot_dimension_numbers<[1], [0], [0], [1], [0, 0, 1, 1], [], []>} : vector<1x32xf32>, vector<32x8xf32>, vector<1x8xf32> -> vector<1x8xf32>
    %cst_6 = arith.constant 0.000000e+00 : f32
    %8 = vector.broadcast %cst_6 : f32 to vector<1x8xf32>
    %9 = arith.maximumf %7, %8 : vector<1x8xf32>
    %c0_7 = arith.constant 0 : index
    %c0_8 = arith.constant 0 : index
    %10 = vector.load %arg3[%c0_7, %c0_8] : memref<8x32xf32, #tpu.memory_space<vmem>>, vector<8x32xf32>
    %cst_9 = arith.constant dense<0.000000e+00> : vector<1x32xf32>
    %11 = tpu.matmul %9, %10, %cst_9 {dimension_numbers = #tpu.dot_dimension_numbers<[1], [0], [0], [1], [0, 0, 1, 1], [], []>} : vector<1x8xf32>, vector<8x32xf32>, vector<1x32xf32> -> vector<1x32xf32>
    %cst_10 = arith.constant 5.000000e-01 : f32
    %12 = vector.broadcast %cst_10 : f32 to vector<1x32xf32>
    %13 = arith.mulf %12, %11 : vector<1x32xf32>
    %14 = math.tanh %13 : vector<1x32xf32>
    %cst_11 = arith.constant 1.000000e+00 : f32
    %15 = vector.broadcast %cst_11 : f32 to vector<1x32xf32>
    %16 = arith.addf %14, %15 : vector<1x32xf32>
    %cst_12 = arith.constant 5.000000e-01 : f32
    %17 = vector.broadcast %cst_12 : f32 to vector<1x32xf32>
    %18 = arith.mulf %17, %16 : vector<1x32xf32>
    %19 = vector.broadcast %18 : vector<1x32xf32> to vector<16x32xf32>
    %20 = arith.mulf %1, %19 : vector<16x32xf32>
    %c0_13 = arith.constant 0 : index
    %c0_14 = arith.constant 0 : index
    %c0_15 = arith.constant 0 : index
    %21 = vector.load %arg4[%c0_13, %c0_14, %c0_15] : memref<1x16x32xf32, #tpu.memory_space<vmem>>, vector<1x16x32xf32>
    %22 = vector.shape_cast %21 : vector<1x16x32xf32> to vector<16x32xf32>
    %23 = vector.shape_cast %20 : vector<16x32xf32> to vector<1x16x32xf32>
    tpu.vector_store %arg4[%c0_13, %c0_14, %c0_15], %23 {strides = array<i32>} : memref<1x16x32xf32, #tpu.memory_space<vmem>>, vector<1x16x32xf32>,
    return
  }
  func.func @transform_0(%arg0: i32) -> (i32, i32, i32) {
    %c0_i32 = arith.constant 0 : i32
    %c0_i32_0 = arith.constant 0 : i32
    %c0_i32_1 = arith.constant 0 : i32
    return %arg0, %c0_i32, %c0_i32_0 : i32, i32, i32
  }
  func.func @transform_1(%arg0: i32) -> (i32, i32) {
    %c0_i32 = arith.constant 0 : i32
    %c0_i32_0 = arith.constant 0 : i32
    %c0_i32_1 = arith.constant 0 : i32
    return %c0_i32, %c0_i32_0 : i32, i32
  }
  func.func @transform_2(%arg0: i32) -> (i32, i32) {
    %c0_i32 = arith.constant 0 : i32
    %c0_i32_0 = arith.constant 0 : i32
    %c0_i32_1 = arith.constant 0 : i32
    return %c0_i32, %c0_i32_0 : i32, i32
  }
  func.func @transform_3(%arg0: i32) -> (i32, i32, i32) {
    %c0_i32 = arith.constant 0 : i32
    %c0_i32_0 = arith.constant 0 : i32
    %c0_i32_1 = arith.constant 0 : i32
    return %arg0, %c0_i32, %c0_i32_0 : i32, i32, i32
  }
}

module attributes {stable_mosaic.version = 11 : i64} {
  func.func @_affine_kernel(%arg0: i32, %arg1: memref<1x64x24xf32, #tpu.memory_space<vmem>>, %arg2: memref<1x1x24xf32, #tpu.memory_space<vmem>>, %arg3: memref<1x1x24xf32, #tpu.memory_space<vmem>>, %arg4: memref<1x64x24xf32, #tpu.memory_space<vmem>>) attributes {dimension_semantics = [#tpu.dimension_semantics<parallel>], iteration_bounds = array<i64: 2>, scalar_prefetch = 0 : i64, scratch_operands = 0 : i64, tpu.core_type = #tpu.core_type<tc>, window_params = [{transform_indices = @transform_0, window_bounds = array<i64: 1, 64, 24>}, {transform_indices = @transform_1, window_bounds = array<i64: 1, 1, 24>}, {transform_indices = @transform_2, window_bounds = array<i64: 1, 1, 24>}, {transform_indices = @transform_3, window_bounds = array<i64: 1, 64, 24>}]} {
    %c0 = arith.constant 0 : index
    %c0_0 = arith.constant 0 : index
    %c0_1 = arith.constant 0 : index
    %0 = vector.load %arg1[%c0, %c0_0, %c0_1] : memref<1x64x24xf32, #tpu.memory_space<vmem>>, vector<1x64x24xf32>
    %1 = vector.shape_cast %0 : vector<1x64x24xf32> to vector<64x24xf32>
    %c0_2 = arith.constant 0 : index
    %c0_3 = arith.constant 0 : index
    %c0_4 = arith.constant 0 : index
    %2 = vector.load %arg2[%c0_2, %c0_3, %c0_4] : memref<1x1x24xf32, #tpu.memory_space<vmem>>, vector<1x1x24xf32>
    %3 = vector.shape_cast %2 : vector<1x1x24xf32> to vector<1x24xf32>
    %4 = vector.broadcast %3 : vector<1x24xf32> to vector<64x24xf32>
    %5 = arith.mulf %1, %4 : vector<64x24xf32>
    %c0_5 = arith.constant 0 : index
    %c0_6 = arith.constant 0 : index
    %c0_7 = arith.constant 0 : index
    %6 = vector.load %arg3[%c0_5, %c0_6, %c0_7] : memref<1x1x24xf32, #tpu.memory_space<vmem>>, vector<1x1x24xf32>
    %7 = vector.shape_cast %6 : vector<1x1x24xf32> to vector<1x24xf32>
    %8 = vector.broadcast %7 : vector<1x24xf32> to vector<64x24xf32>
    %9 = arith.addf %5, %8 : vector<64x24xf32>
    %c0_8 = arith.constant 0 : index
    %c0_9 = arith.constant 0 : index
    %c0_10 = arith.constant 0 : index
    %10 = vector.load %arg4[%c0_8, %c0_9, %c0_10] : memref<1x64x24xf32, #tpu.memory_space<vmem>>, vector<1x64x24xf32>
    %11 = vector.shape_cast %10 : vector<1x64x24xf32> to vector<64x24xf32>
    %12 = vector.shape_cast %9 : vector<64x24xf32> to vector<1x64x24xf32>
    tpu.vector_store %arg4[%c0_8, %c0_9, %c0_10], %12 {strides = array<i32>} : memref<1x64x24xf32, #tpu.memory_space<vmem>>, vector<1x64x24xf32>,
    return
  }
  func.func @transform_0(%arg0: i32) -> (i32, i32, i32) {
    %c0_i32 = arith.constant 0 : i32
    %c0_i32_0 = arith.constant 0 : i32
    %c0_i32_1 = arith.constant 0 : i32
    return %arg0, %c0_i32, %c0_i32_0 : i32, i32, i32
  }
  func.func @transform_1(%arg0: i32) -> (i32, i32, i32) {
    %c0_i32 = arith.constant 0 : i32
    %c0_i32_0 = arith.constant 0 : i32
    %c0_i32_1 = arith.constant 0 : i32
    return %arg0, %c0_i32, %c0_i32_0 : i32, i32, i32
  }
  func.func @transform_2(%arg0: i32) -> (i32, i32, i32) {
    %c0_i32 = arith.constant 0 : i32
    %c0_i32_0 = arith.constant 0 : i32
    %c0_i32_1 = arith.constant 0 : i32
    return %arg0, %c0_i32, %c0_i32_0 : i32, i32, i32
  }
  func.func @transform_3(%arg0: i32) -> (i32, i32, i32) {
    %c0_i32 = arith.constant 0 : i32
    %c0_i32_0 = arith.constant 0 : i32
    %c0_i32_1 = arith.constant 0 : i32
    return %arg0, %c0_i32, %c0_i32_0 : i32, i32, i32
  }
}

module attributes {stable_mosaic.version = 11 : i64} {
  func.func @_conv_stats_kernel(%arg0: i32, %arg1: memref<1x12x12x32xf32, #tpu.memory_space<vmem>>, %arg2: memref<25x32x24xf32, #tpu.memory_space<vmem>>, %arg3: memref<1x64x24xf32, #tpu.memory_space<vmem>>, %arg4: memref<1x2x24xf32, #tpu.memory_space<vmem>>) attributes {dimension_semantics = [#tpu.dimension_semantics<parallel>], iteration_bounds = array<i64: 2>, scalar_prefetch = 0 : i64, scratch_operands = 0 : i64, tpu.core_type = #tpu.core_type<tc>, window_params = [{transform_indices = @transform_0, window_bounds = array<i64: 1, 12, 12, 32>}, {pipeline_mode = #tpu.pipeline_mode<synchronous>, transform_indices = @transform_1, window_bounds = array<i64: 25, 32, 24>}, {transform_indices = @transform_2, window_bounds = array<i64: 1, 64, 24>}, {transform_indices = @transform_3, window_bounds = array<i64: 1, 2, 24>}]} {
    %c0 = arith.constant 0 : index
    %c0_0 = arith.constant 0 : index
    %c0_1 = arith.constant 0 : index
    %c0_2 = arith.constant 0 : index
    %0 = vector.load %arg1[%c0, %c0_0, %c0_1, %c0_2] : memref<1x12x12x32xf32, #tpu.memory_space<vmem>>, vector<1x8x8x32xf32>
    %1 = vector.shape_cast %0 : vector<1x8x8x32xf32> to vector<8x8x32xf32>
    %2 = vector.shape_cast %1 : vector<8x8x32xf32> to vector<64x32xf32>
    %c0_3 = arith.constant 0 : index
    %c0_4 = arith.constant 0 : index
    %c0_5 = arith.constant 0 : index
    %3 = vector.load %arg2[%c0_3, %c0_4, %c0_5] : memref<25x32x24xf32, #tpu.memory_space<vmem>>, vector<1x32x24xf32>
    %4 = vector.shape_cast %3 : vector<1x32x24xf32> to vector<32x24xf32>
    %cst = arith.constant dense<0.000000e+00> : vector<64x24xf32>
    %5 = tpu.matmul %2, %4, %cst {dimension_numbers = #tpu.dot_dimension_numbers<[1], [0], [0], [1], [0, 0, 1, 1], [], []>} : vector<64x32xf32>, vector<32x24xf32>, vector<64x24xf32> -> vector<64x24xf32>
    %c0_6 = arith.constant 0 : index
    %c0_7 = arith.constant 0 : index
    %c1 = arith.constant 1 : index
    %c0_8 = arith.constant 0 : index
    %6 = vector.load %arg1[%c0_6, %c0_7, %c1, %c0_8] : memref<1x12x12x32xf32, #tpu.memory_space<vmem>>, vector<1x8x8x32xf32>
    %7 = vector.shape_cast %6 : vector<1x8x8x32xf32> to vector<8x8x32xf32>
    %8 = vector.shape_cast %7 : vector<8x8x32xf32> to vector<64x32xf32>
    %c1_9 = arith.constant 1 : index
    %c0_10 = arith.constant 0 : index
    %c0_11 = arith.constant 0 : index
    %9 = vector.load %arg2[%c1_9, %c0_10, %c0_11] : memref<25x32x24xf32, #tpu.memory_space<vmem>>, vector<1x32x24xf32>
    %10 = vector.shape_cast %9 : vector<1x32x24xf32> to vector<32x24xf32>
    %cst_12 = arith.constant dense<0.000000e+00> : vector<64x24xf32>
    %11 = tpu.matmul %8, %10, %cst_12 {dimension_numbers = #tpu.dot_dimension_numbers<[1], [0], [0], [1], [0, 0, 1, 1], [], []>} : vector<64x32xf32>, vector<32x24xf32>, vector<64x24xf32> -> vector<64x24xf32>
    %12 = arith.addf %5, %11 : vector<64x24xf32>
    %c0_13 = arith.constant 0 : index
    %c0_14 = arith.constant 0 : index
    %c2 = arith.constant 2 : index
    %c0_15 = arith.constant 0 : index
    %13 = vector.load %arg1[%c0_13, %c0_14, %c2, %c0_15] : memref<1x12x12x32xf32, #tpu.memory_space<vmem>>, vector<1x8x8x32xf32>
    %14 = vector.shape_cast %13 : vector<1x8x8x32xf32> to vector<8x8x32xf32>
    %15 = vector.shape_cast %14 : vector<8x8x32xf32> to vector<64x32xf32>
    %c2_16 = arith.constant 2 : index
    %c0_17 = arith.constant 0 : index
    %c0_18 = arith.constant 0 : index
    %16 = vector.load %arg2[%c2_16, %c0_17, %c0_18] : memref<25x32x24xf32, #tpu.memory_space<vmem>>, vector<1x32x24xf32>
    %17 = vector.shape_cast %16 : vector<1x32x24xf32> to vector<32x24xf32>
    %cst_19 = arith.constant dense<0.000000e+00> : vector<64x24xf32>
    %18 = tpu.matmul %15, %17, %cst_19 {dimension_numbers = #tpu.dot_dimension_numbers<[1], [0], [0], [1], [0, 0, 1, 1], [], []>} : vector<64x32xf32>, vector<32x24xf32>, vector<64x24xf32> -> vector<64x24xf32>
    %19 = arith.addf %12, %18 : vector<64x24xf32>
    %c0_20 = arith.constant 0 : index
    %c0_21 = arith.constant 0 : index
    %c3 = arith.constant 3 : index
    %c0_22 = arith.constant 0 : index
    %20 = vector.load %arg1[%c0_20, %c0_21, %c3, %c0_22] : memref<1x12x12x32xf32, #tpu.memory_space<vmem>>, vector<1x8x8x32xf32>
    %21 = vector.shape_cast %20 : vector<1x8x8x32xf32> to vector<8x8x32xf32>
    %22 = vector.shape_cast %21 : vector<8x8x32xf32> to vector<64x32xf32>
    %c3_23 = arith.constant 3 : index
    %c0_24 = arith.constant 0 : index
    %c0_25 = arith.constant 0 : index
    %23 = vector.load %arg2[%c3_23, %c0_24, %c0_25] : memref<25x32x24xf32, #tpu.memory_space<vmem>>, vector<1x32x24xf32>
    %24 = vector.shape_cast %23 : vector<1x32x24xf32> to vector<32x24xf32>
    %cst_26 = arith.constant dense<0.000000e+00> : vector<64x24xf32>
    %25 = tpu.matmul %22, %24, %cst_26 {dimension_numbers = #tpu.dot_dimension_numbers<[1], [0], [0], [1], [0, 0, 1, 1], [], []>} : vector<64x32xf32>, vector<32x24xf32>, vector<64x24xf32> -> vector<64x24xf32>
    %26 = arith.addf %19, %25 : vector<64x24xf32>
    %c0_27 = arith.constant 0 : index
    %c0_28 = arith.constant 0 : index
    %c4 = arith.constant 4 : index
    %c0_29 = arith.constant 0 : index
    %27 = vector.load %arg1[%c0_27, %c0_28, %c4, %c0_29] : memref<1x12x12x32xf32, #tpu.memory_space<vmem>>, vector<1x8x8x32xf32>
    %28 = vector.shape_cast %27 : vector<1x8x8x32xf32> to vector<8x8x32xf32>
    %29 = vector.shape_cast %28 : vector<8x8x32xf32> to vector<64x32xf32>
    %c4_30 = arith.constant 4 : index
    %c0_31 = arith.constant 0 : index
    %c0_32 = arith.constant 0 : index
    %30 = vector.load %arg2[%c4_30, %c0_31, %c0_32] : memref<25x32x24xf32, #tpu.memory_space<vmem>>, vector<1x32x24xf32>
    %31 = vector.shape_cast %30 : vector<1x32x24xf32> to vector<32x24xf32>
    %cst_33 = arith.constant dense<0.000000e+00> : vector<64x24xf32>
    %32 = tpu.matmul %29, %31, %cst_33 {dimension_numbers = #tpu.dot_dimension_numbers<[1], [0], [0], [1], [0, 0, 1, 1], [], []>} : vector<64x32xf32>, vector<32x24xf32>, vector<64x24xf32> -> vector<64x24xf32>
    %33 = arith.addf %26, %32 : vector<64x24xf32>
    %c0_34 = arith.constant 0 : index
    %c1_35 = arith.constant 1 : index
    %c0_36 = arith.constant 0 : index
    %c0_37 = arith.constant 0 : index
    %34 = vector.load %arg1[%c0_34, %c1_35, %c0_36, %c0_37] : memref<1x12x12x32xf32, #tpu.memory_space<vmem>>, vector<1x8x8x32xf32>
    %35 = vector.shape_cast %34 : vector<1x8x8x32xf32> to vector<8x8x32xf32>
    %36 = vector.shape_cast %35 : vector<8x8x32xf32> to vector<64x32xf32>
    %c5 = arith.constant 5 : index
    %c0_38 = arith.constant 0 : index
    %c0_39 = arith.constant 0 : index
    %37 = vector.load %arg2[%c5, %c0_38, %c0_39] : memref<25x32x24xf32, #tpu.memory_space<vmem>>, vector<1x32x24xf32>
    %38 = vector.shape_cast %37 : vector<1x32x24xf32> to vector<32x24xf32>
    %cst_40 = arith.constant dense<0.000000e+00> : vector<64x24xf32>
    %39 = tpu.matmul %36, %38, %cst_40 {dimension_numbers = #tpu.dot_dimension_numbers<[1], [0], [0], [1], [0, 0, 1, 1], [], []>} : vector<64x32xf32>, vector<32x24xf32>, vector<64x24xf32> -> vector<64x24xf32>
    %40 = arith.addf %33, %39 : vector<64x24xf32>
    %c0_41 = arith.constant 0 : index
    %c1_42 = arith.constant 1 : index
    %c1_43 = arith.constant 1 : index
    %c0_44 = arith.constant 0 : index
    %41 = vector.load %arg1[%c0_41, %c1_42, %c1_43, %c0_44] : memref<1x12x12x32xf32, #tpu.memory_space<vmem>>, vector<1x8x8x32xf32>
    %42 = vector.shape_cast %41 : vector<1x8x8x32xf32> to vector<8x8x32xf32>
    %43 = vector.shape_cast %42 : vector<8x8x32xf32> to vector<64x32xf32>
    %c6 = arith.constant 6 : index
    %c0_45 = arith.constant 0 : index
    %c0_46 = arith.constant 0 : index
    %44 = vector.load %arg2[%c6, %c0_45, %c0_46] : memref<25x32x24xf32, #tpu.memory_space<vmem>>, vector<1x32x24xf32>
    %45 = vector.shape_cast %44 : vector<1x32x24xf32> to vector<32x24xf32>
    %cst_47 = arith.constant dense<0.000000e+00> : vector<64x24xf32>
    %46 = tpu.matmul %43, %45, %cst_47 {dimension_numbers = #tpu.dot_dimension_numbers<[1], [0], [0], [1], [0, 0, 1, 1], [], []>} : vector<64x32xf32>, vector<32x24xf32>, vector<64x24xf32> -> vector<64x24xf32>
    %47 = arith.addf %40, %46 : vector<64x24xf32>
    %c0_48 = arith.constant 0 : index
    %c1_49 = arith.constant 1 : index
    %c2_50 = arith.constant 2 : index
    %c0_51 = arith.constant 0 : index
    %48 = vector.load %arg1[%c0_48, %c1_49, %c2_50, %c0_51] : memref<1x12x12x32xf32, #tpu.memory_space<vmem>>, vector<1x8x8x32xf32>
    %49 = vector.shape_cast %48 : vector<1x8x8x32xf32> to vector<8x8x32xf32>
    %50 = vector.shape_cast %49 : vector<8x8x32xf32> to vector<64x32xf32>
    %c7 = arith.constant 7 : index
    %c0_52 = arith.constant 0 : index
    %c0_53 = arith.constant 0 : index
    %51 = vector.load %arg2[%c7, %c0_52, %c0_53] : memref<25x32x24xf32, #tpu.memory_space<vmem>>, vector<1x32x24xf32>
    %52 = vector.shape_cast %51 : vector<1x32x24xf32> to vector<32x24xf32>
    %cst_54 = arith.constant dense<0.000000e+00> : vector<64x24xf32>
    %53 = tpu.matmul %50, %52, %cst_54 {dimension_numbers = #tpu.dot_dimension_numbers<[1], [0], [0], [1], [0, 0, 1, 1], [], []>} : vector<64x32xf32>, vector<32x24xf32>, vector<64x24xf32> -> vector<64x24xf32>
    %54 = arith.addf %47, %53 : vector<64x24xf32>
    %c0_55 = arith.constant 0 : index
    %c1_56 = arith.constant 1 : index
    %c3_57 = arith.constant 3 : index
    %c0_58 = arith.constant 0 : index
    %55 = vector.load %arg1[%c0_55, %c1_56, %c3_57, %c0_58] : memref<1x12x12x32xf32, #tpu.memory_space<vmem>>, vector<1x8x8x32xf32>
    %56 = vector.shape_cast %55 : vector<1x8x8x32xf32> to vector<8x8x32xf32>
    %57 = vector.shape_cast %56 : vector<8x8x32xf32> to vector<64x32xf32>
    %c8 = arith.constant 8 : index
    %c0_59 = arith.constant 0 : index
    %c0_60 = arith.constant 0 : index
    %58 = vector.load %arg2[%c8, %c0_59, %c0_60] : memref<25x32x24xf32, #tpu.memory_space<vmem>>, vector<1x32x24xf32>
    %59 = vector.shape_cast %58 : vector<1x32x24xf32> to vector<32x24xf32>
    %cst_61 = arith.constant dense<0.000000e+00> : vector<64x24xf32>
    %60 = tpu.matmul %57, %59, %cst_61 {dimension_numbers = #tpu.dot_dimension_numbers<[1], [0], [0], [1], [0, 0, 1, 1], [], []>} : vector<64x32xf32>, vector<32x24xf32>, vector<64x24xf32> -> vector<64x24xf32>
    %61 = arith.addf %54, %60 : vector<64x24xf32>
    %c0_62 = arith.constant 0 : index
    %c1_63 = arith.constant 1 : index
    %c4_64 = arith.constant 4 : index
    %c0_65 = arith.constant 0 : index
    %62 = vector.load %arg1[%c0_62, %c1_63, %c4_64, %c0_65] : memref<1x12x12x32xf32, #tpu.memory_space<vmem>>, vector<1x8x8x32xf32>
    %63 = vector.shape_cast %62 : vector<1x8x8x32xf32> to vector<8x8x32xf32>
    %64 = vector.shape_cast %63 : vector<8x8x32xf32> to vector<64x32xf32>
    %c9 = arith.constant 9 : index
    %c0_66 = arith.constant 0 : index
    %c0_67 = arith.constant 0 : index
    %65 = vector.load %arg2[%c9, %c0_66, %c0_67] : memref<25x32x24xf32, #tpu.memory_space<vmem>>, vector<1x32x24xf32>
    %66 = vector.shape_cast %65 : vector<1x32x24xf32> to vector<32x24xf32>
    %cst_68 = arith.constant dense<0.000000e+00> : vector<64x24xf32>
    %67 = tpu.matmul %64, %66, %cst_68 {dimension_numbers = #tpu.dot_dimension_numbers<[1], [0], [0], [1], [0, 0, 1, 1], [], []>} : vector<64x32xf32>, vector<32x24xf32>, vector<64x24xf32> -> vector<64x24xf32>
    %68 = arith.addf %61, %67 : vector<64x24xf32>
    %c0_69 = arith.constant 0 : index
    %c2_70 = arith.constant 2 : index
    %c0_71 = arith.constant 0 : index
    %c0_72 = arith.constant 0 : index
    %69 = vector.load %arg1[%c0_69, %c2_70, %c0_71, %c0_72] : memref<1x12x12x32xf32, #tpu.memory_space<vmem>>, vector<1x8x8x32xf32>
    %70 = vector.shape_cast %69 : vector<1x8x8x32xf32> to vector<8x8x32xf32>
    %71 = vector.shape_cast %70 : vector<8x8x32xf32> to vector<64x32xf32>
    %c10 = arith.constant 10 : index
    %c0_73 = arith.constant 0 : index
    %c0_74 = arith.constant 0 : index
    %72 = vector.load %arg2[%c10, %c0_73, %c0_74] : memref<25x32x24xf32, #tpu.memory_space<vmem>>, vector<1x32x24xf32>
    %73 = vector.shape_cast %72 : vector<1x32x24xf32> to vector<32x24xf32>
    %cst_75 = arith.constant dense<0.000000e+00> : vector<64x24xf32>
    %74 = tpu.matmul %71, %73, %cst_75 {dimension_numbers = #tpu.dot_dimension_numbers<[1], [0], [0], [1], [0, 0, 1, 1], [], []>} : vector<64x32xf32>, vector<32x24xf32>, vector<64x24xf32> -> vector<64x24xf32>
    %75 = arith.addf %68, %74 : vector<64x24xf32>
    %c0_76 = arith.constant 0 : index
    %c2_77 = arith.constant 2 : index
    %c1_78 = arith.constant 1 : index
    %c0_79 = arith.constant 0 : index
    %76 = vector.load %arg1[%c0_76, %c2_77, %c1_78, %c0_79] : memref<1x12x12x32xf32, #tpu.memory_space<vmem>>, vector<1x8x8x32xf32>
    %77 = vector.shape_cast %76 : vector<1x8x8x32xf32> to vector<8x8x32xf32>
    %78 = vector.shape_cast %77 : vector<8x8x32xf32> to vector<64x32xf32>
    %c11 = arith.constant 11 : index
    %c0_80 = arith.constant 0 : index
    %c0_81 = arith.constant 0 : index
    %79 = vector.load %arg2[%c11, %c0_80, %c0_81] : memref<25x32x24xf32, #tpu.memory_space<vmem>>, vector<1x32x24xf32>
    %80 = vector.shape_cast %79 : vector<1x32x24xf32> to vector<32x24xf32>
    %cst_82 = arith.constant dense<0.000000e+00> : vector<64x24xf32>
    %81 = tpu.matmul %78, %80, %cst_82 {dimension_numbers = #tpu.dot_dimension_numbers<[1], [0], [0], [1], [0, 0, 1, 1], [], []>} : vector<64x32xf32>, vector<32x24xf32>, vector<64x24xf32> -> vector<64x24xf32>
    %82 = arith.addf %75, %81 : vector<64x24xf32>
    %c0_83 = arith.constant 0 : index
    %c2_84 = arith.constant 2 : index
    %c2_85 = arith.constant 2 : index
    %c0_86 = arith.constant 0 : index
    %83 = vector.load %arg1[%c0_83, %c2_84, %c2_85, %c0_86] : memref<1x12x12x32xf32, #tpu.memory_space<vmem>>, vector<1x8x8x32xf32>
    %84 = vector.shape_cast %83 : vector<1x8x8x32xf32> to vector<8x8x32xf32>
    %85 = vector.shape_cast %84 : vector<8x8x32xf32> to vector<64x32xf32>
    %c12 = arith.constant 12 : index
    %c0_87 = arith.constant 0 : index
    %c0_88 = arith.constant 0 : index
    %86 = vector.load %arg2[%c12, %c0_87, %c0_88] : memref<25x32x24xf32, #tpu.memory_space<vmem>>, vector<1x32x24xf32>
    %87 = vector.shape_cast %86 : vector<1x32x24xf32> to vector<32x24xf32>
    %cst_89 = arith.constant dense<0.000000e+00> : vector<64x24xf32>
    %88 = tpu.matmul %85, %87, %cst_89 {dimension_numbers = #tpu.dot_dimension_numbers<[1], [0], [0], [1], [0, 0, 1, 1], [], []>} : vector<64x32xf32>, vector<32x24xf32>, vector<64x24xf32> -> vector<64x24xf32>
    %89 = arith.addf %82, %88 : vector<64x24xf32>
    %c0_90 = arith.constant 0 : index
    %c2_91 = arith.constant 2 : index
    %c3_92 = arith.constant 3 : index
    %c0_93 = arith.constant 0 : index
    %90 = vector.load %arg1[%c0_90, %c2_91, %c3_92, %c0_93] : memref<1x12x12x32xf32, #tpu.memory_space<vmem>>, vector<1x8x8x32xf32>
    %91 = vector.shape_cast %90 : vector<1x8x8x32xf32> to vector<8x8x32xf32>
    %92 = vector.shape_cast %91 : vector<8x8x32xf32> to vector<64x32xf32>
    %c13 = arith.constant 13 : index
    %c0_94 = arith.constant 0 : index
    %c0_95 = arith.constant 0 : index
    %93 = vector.load %arg2[%c13, %c0_94, %c0_95] : memref<25x32x24xf32, #tpu.memory_space<vmem>>, vector<1x32x24xf32>
    %94 = vector.shape_cast %93 : vector<1x32x24xf32> to vector<32x24xf32>
    %cst_96 = arith.constant dense<0.000000e+00> : vector<64x24xf32>
    %95 = tpu.matmul %92, %94, %cst_96 {dimension_numbers = #tpu.dot_dimension_numbers<[1], [0], [0], [1], [0, 0, 1, 1], [], []>} : vector<64x32xf32>, vector<32x24xf32>, vector<64x24xf32> -> vector<64x24xf32>
    %96 = arith.addf %89, %95 : vector<64x24xf32>
    %c0_97 = arith.constant 0 : index
    %c2_98 = arith.constant 2 : index
    %c4_99 = arith.constant 4 : index
    %c0_100 = arith.constant 0 : index
    %97 = vector.load %arg1[%c0_97, %c2_98, %c4_99, %c0_100] : memref<1x12x12x32xf32, #tpu.memory_space<vmem>>, vector<1x8x8x32xf32>
    %98 = vector.shape_cast %97 : vector<1x8x8x32xf32> to vector<8x8x32xf32>
    %99 = vector.shape_cast %98 : vector<8x8x32xf32> to vector<64x32xf32>
    %c14 = arith.constant 14 : index
    %c0_101 = arith.constant 0 : index
    %c0_102 = arith.constant 0 : index
    %100 = vector.load %arg2[%c14, %c0_101, %c0_102] : memref<25x32x24xf32, #tpu.memory_space<vmem>>, vector<1x32x24xf32>
    %101 = vector.shape_cast %100 : vector<1x32x24xf32> to vector<32x24xf32>
    %cst_103 = arith.constant dense<0.000000e+00> : vector<64x24xf32>
    %102 = tpu.matmul %99, %101, %cst_103 {dimension_numbers = #tpu.dot_dimension_numbers<[1], [0], [0], [1], [0, 0, 1, 1], [], []>} : vector<64x32xf32>, vector<32x24xf32>, vector<64x24xf32> -> vector<64x24xf32>
    %103 = arith.addf %96, %102 : vector<64x24xf32>
    %c0_104 = arith.constant 0 : index
    %c3_105 = arith.constant 3 : index
    %c0_106 = arith.constant 0 : index
    %c0_107 = arith.constant 0 : index
    %104 = vector.load %arg1[%c0_104, %c3_105, %c0_106, %c0_107] : memref<1x12x12x32xf32, #tpu.memory_space<vmem>>, vector<1x8x8x32xf32>
    %105 = vector.shape_cast %104 : vector<1x8x8x32xf32> to vector<8x8x32xf32>
    %106 = vector.shape_cast %105 : vector<8x8x32xf32> to vector<64x32xf32>
    %c15 = arith.constant 15 : index
    %c0_108 = arith.constant 0 : index
    %c0_109 = arith.constant 0 : index
    %107 = vector.load %arg2[%c15, %c0_108, %c0_109] : memref<25x32x24xf32, #tpu.memory_space<vmem>>, vector<1x32x24xf32>
    %108 = vector.shape_cast %107 : vector<1x32x24xf32> to vector<32x24xf32>
    %cst_110 = arith.constant dense<0.000000e+00> : vector<64x24xf32>
    %109 = tpu.matmul %106, %108, %cst_110 {dimension_numbers = #tpu.dot_dimension_numbers<[1], [0], [0], [1], [0, 0, 1, 1], [], []>} : vector<64x32xf32>, vector<32x24xf32>, vector<64x24xf32> -> vector<64x24xf32>
    %110 = arith.addf %103, %109 : vector<64x24xf32>
    %c0_111 = arith.constant 0 : index
    %c3_112 = arith.constant 3 : index
    %c1_113 = arith.constant 1 : index
    %c0_114 = arith.constant 0 : index
    %111 = vector.load %arg1[%c0_111, %c3_112, %c1_113, %c0_114] : memref<1x12x12x32xf32, #tpu.memory_space<vmem>>, vector<1x8x8x32xf32>
    %112 = vector.shape_cast %111 : vector<1x8x8x32xf32> to vector<8x8x32xf32>
    %113 = vector.shape_cast %112 : vector<8x8x32xf32> to vector<64x32xf32>
    %c16 = arith.constant 16 : index
    %c0_115 = arith.constant 0 : index
    %c0_116 = arith.constant 0 : index
    %114 = vector.load %arg2[%c16, %c0_115, %c0_116] : memref<25x32x24xf32, #tpu.memory_space<vmem>>, vector<1x32x24xf32>
    %115 = vector.shape_cast %114 : vector<1x32x24xf32> to vector<32x24xf32>
    %cst_117 = arith.constant dense<0.000000e+00> : vector<64x24xf32>
    %116 = tpu.matmul %113, %115, %cst_117 {dimension_numbers = #tpu.dot_dimension_numbers<[1], [0], [0], [1], [0, 0, 1, 1], [], []>} : vector<64x32xf32>, vector<32x24xf32>, vector<64x24xf32> -> vector<64x24xf32>
    %117 = arith.addf %110, %116 : vector<64x24xf32>
    %c0_118 = arith.constant 0 : index
    %c3_119 = arith.constant 3 : index
    %c2_120 = arith.constant 2 : index
    %c0_121 = arith.constant 0 : index
    %118 = vector.load %arg1[%c0_118, %c3_119, %c2_120, %c0_121] : memref<1x12x12x32xf32, #tpu.memory_space<vmem>>, vector<1x8x8x32xf32>
    %119 = vector.shape_cast %118 : vector<1x8x8x32xf32> to vector<8x8x32xf32>
    %120 = vector.shape_cast %119 : vector<8x8x32xf32> to vector<64x32xf32>
    %c17 = arith.constant 17 : index
    %c0_122 = arith.constant 0 : index
    %c0_123 = arith.constant 0 : index
    %121 = vector.load %arg2[%c17, %c0_122, %c0_123] : memref<25x32x24xf32, #tpu.memory_space<vmem>>, vector<1x32x24xf32>
    %122 = vector.shape_cast %121 : vector<1x32x24xf32> to vector<32x24xf32>
    %cst_124 = arith.constant dense<0.000000e+00> : vector<64x24xf32>
    %123 = tpu.matmul %120, %122, %cst_124 {dimension_numbers = #tpu.dot_dimension_numbers<[1], [0], [0], [1], [0, 0, 1, 1], [], []>} : vector<64x32xf32>, vector<32x24xf32>, vector<64x24xf32> -> vector<64x24xf32>
    %124 = arith.addf %117, %123 : vector<64x24xf32>
    %c0_125 = arith.constant 0 : index
    %c3_126 = arith.constant 3 : index
    %c3_127 = arith.constant 3 : index
    %c0_128 = arith.constant 0 : index
    %125 = vector.load %arg1[%c0_125, %c3_126, %c3_127, %c0_128] : memref<1x12x12x32xf32, #tpu.memory_space<vmem>>, vector<1x8x8x32xf32>
    %126 = vector.shape_cast %125 : vector<1x8x8x32xf32> to vector<8x8x32xf32>
    %127 = vector.shape_cast %126 : vector<8x8x32xf32> to vector<64x32xf32>
    %c18 = arith.constant 18 : index
    %c0_129 = arith.constant 0 : index
    %c0_130 = arith.constant 0 : index
    %128 = vector.load %arg2[%c18, %c0_129, %c0_130] : memref<25x32x24xf32, #tpu.memory_space<vmem>>, vector<1x32x24xf32>
    %129 = vector.shape_cast %128 : vector<1x32x24xf32> to vector<32x24xf32>
    %cst_131 = arith.constant dense<0.000000e+00> : vector<64x24xf32>
    %130 = tpu.matmul %127, %129, %cst_131 {dimension_numbers = #tpu.dot_dimension_numbers<[1], [0], [0], [1], [0, 0, 1, 1], [], []>} : vector<64x32xf32>, vector<32x24xf32>, vector<64x24xf32> -> vector<64x24xf32>
    %131 = arith.addf %124, %130 : vector<64x24xf32>
    %c0_132 = arith.constant 0 : index
    %c3_133 = arith.constant 3 : index
    %c4_134 = arith.constant 4 : index
    %c0_135 = arith.constant 0 : index
    %132 = vector.load %arg1[%c0_132, %c3_133, %c4_134, %c0_135] : memref<1x12x12x32xf32, #tpu.memory_space<vmem>>, vector<1x8x8x32xf32>
    %133 = vector.shape_cast %132 : vector<1x8x8x32xf32> to vector<8x8x32xf32>
    %134 = vector.shape_cast %133 : vector<8x8x32xf32> to vector<64x32xf32>
    %c19 = arith.constant 19 : index
    %c0_136 = arith.constant 0 : index
    %c0_137 = arith.constant 0 : index
    %135 = vector.load %arg2[%c19, %c0_136, %c0_137] : memref<25x32x24xf32, #tpu.memory_space<vmem>>, vector<1x32x24xf32>
    %136 = vector.shape_cast %135 : vector<1x32x24xf32> to vector<32x24xf32>
    %cst_138 = arith.constant dense<0.000000e+00> : vector<64x24xf32>
    %137 = tpu.matmul %134, %136, %cst_138 {dimension_numbers = #tpu.dot_dimension_numbers<[1], [0], [0], [1], [0, 0, 1, 1], [], []>} : vector<64x32xf32>, vector<32x24xf32>, vector<64x24xf32> -> vector<64x24xf32>
    %138 = arith.addf %131, %137 : vector<64x24xf32>
    %c0_139 = arith.constant 0 : index
    %c4_140 = arith.constant 4 : index
    %c0_141 = arith.constant 0 : index
    %c0_142 = arith.constant 0 : index
    %139 = vector.load %arg1[%c0_139, %c4_140, %c0_141, %c0_142] : memref<1x12x12x32xf32, #tpu.memory_space<vmem>>, vector<1x8x8x32xf32>
    %140 = vector.shape_cast %139 : vector<1x8x8x32xf32> to vector<8x8x32xf32>
    %141 = vector.shape_cast %140 : vector<8x8x32xf32> to vector<64x32xf32>
    %c20 = arith.constant 20 : index
    %c0_143 = arith.constant 0 : index
    %c0_144 = arith.constant 0 : index
    %142 = vector.load %arg2[%c20, %c0_143, %c0_144] : memref<25x32x24xf32, #tpu.memory_space<vmem>>, vector<1x32x24xf32>
    %143 = vector.shape_cast %142 : vector<1x32x24xf32> to vector<32x24xf32>
    %cst_145 = arith.constant dense<0.000000e+00> : vector<64x24xf32>
    %144 = tpu.matmul %141, %143, %cst_145 {dimension_numbers = #tpu.dot_dimension_numbers<[1], [0], [0], [1], [0, 0, 1, 1], [], []>} : vector<64x32xf32>, vector<32x24xf32>, vector<64x24xf32> -> vector<64x24xf32>
    %145 = arith.addf %138, %144 : vector<64x24xf32>
    %c0_146 = arith.constant 0 : index
    %c4_147 = arith.constant 4 : index
    %c1_148 = arith.constant 1 : index
    %c0_149 = arith.constant 0 : index
    %146 = vector.load %arg1[%c0_146, %c4_147, %c1_148, %c0_149] : memref<1x12x12x32xf32, #tpu.memory_space<vmem>>, vector<1x8x8x32xf32>
    %147 = vector.shape_cast %146 : vector<1x8x8x32xf32> to vector<8x8x32xf32>
    %148 = vector.shape_cast %147 : vector<8x8x32xf32> to vector<64x32xf32>
    %c21 = arith.constant 21 : index
    %c0_150 = arith.constant 0 : index
    %c0_151 = arith.constant 0 : index
    %149 = vector.load %arg2[%c21, %c0_150, %c0_151] : memref<25x32x24xf32, #tpu.memory_space<vmem>>, vector<1x32x24xf32>
    %150 = vector.shape_cast %149 : vector<1x32x24xf32> to vector<32x24xf32>
    %cst_152 = arith.constant dense<0.000000e+00> : vector<64x24xf32>
    %151 = tpu.matmul %148, %150, %cst_152 {dimension_numbers = #tpu.dot_dimension_numbers<[1], [0], [0], [1], [0, 0, 1, 1], [], []>} : vector<64x32xf32>, vector<32x24xf32>, vector<64x24xf32> -> vector<64x24xf32>
    %152 = arith.addf %145, %151 : vector<64x24xf32>
    %c0_153 = arith.constant 0 : index
    %c4_154 = arith.constant 4 : index
    %c2_155 = arith.constant 2 : index
    %c0_156 = arith.constant 0 : index
    %153 = vector.load %arg1[%c0_153, %c4_154, %c2_155, %c0_156] : memref<1x12x12x32xf32, #tpu.memory_space<vmem>>, vector<1x8x8x32xf32>
    %154 = vector.shape_cast %153 : vector<1x8x8x32xf32> to vector<8x8x32xf32>
    %155 = vector.shape_cast %154 : vector<8x8x32xf32> to vector<64x32xf32>
    %c22 = arith.constant 22 : index
    %c0_157 = arith.constant 0 : index
    %c0_158 = arith.constant 0 : index
    %156 = vector.load %arg2[%c22, %c0_157, %c0_158] : memref<25x32x24xf32, #tpu.memory_space<vmem>>, vector<1x32x24xf32>
    %157 = vector.shape_cast %156 : vector<1x32x24xf32> to vector<32x24xf32>
    %cst_159 = arith.constant dense<0.000000e+00> : vector<64x24xf32>
    %158 = tpu.matmul %155, %157, %cst_159 {dimension_numbers = #tpu.dot_dimension_numbers<[1], [0], [0], [1], [0, 0, 1, 1], [], []>} : vector<64x32xf32>, vector<32x24xf32>, vector<64x24xf32> -> vector<64x24xf32>
    %159 = arith.addf %152, %158 : vector<64x24xf32>
    %c0_160 = arith.constant 0 : index
    %c4_161 = arith.constant 4 : index
    %c3_162 = arith.constant 3 : index
    %c0_163 = arith.constant 0 : index
    %160 = vector.load %arg1[%c0_160, %c4_161, %c3_162, %c0_163] : memref<1x12x12x32xf32, #tpu.memory_space<vmem>>, vector<1x8x8x32xf32>
    %161 = vector.shape_cast %160 : vector<1x8x8x32xf32> to vector<8x8x32xf32>
    %162 = vector.shape_cast %161 : vector<8x8x32xf32> to vector<64x32xf32>
    %c23 = arith.constant 23 : index
    %c0_164 = arith.constant 0 : index
    %c0_165 = arith.constant 0 : index
    %163 = vector.load %arg2[%c23, %c0_164, %c0_165] : memref<25x32x24xf32, #tpu.memory_space<vmem>>, vector<1x32x24xf32>
    %164 = vector.shape_cast %163 : vector<1x32x24xf32> to vector<32x24xf32>
    %cst_166 = arith.constant dense<0.000000e+00> : vector<64x24xf32>
    %165 = tpu.matmul %162, %164, %cst_166 {dimension_numbers = #tpu.dot_dimension_numbers<[1], [0], [0], [1], [0, 0, 1, 1], [], []>} : vector<64x32xf32>, vector<32x24xf32>, vector<64x24xf32> -> vector<64x24xf32>
    %166 = arith.addf %159, %165 : vector<64x24xf32>
    %c0_167 = arith.constant 0 : index
    %c4_168 = arith.constant 4 : index
    %c4_169 = arith.constant 4 : index
    %c0_170 = arith.constant 0 : index
    %167 = vector.load %arg1[%c0_167, %c4_168, %c4_169, %c0_170] : memref<1x12x12x32xf32, #tpu.memory_space<vmem>>, vector<1x8x8x32xf32>
    %168 = vector.shape_cast %167 : vector<1x8x8x32xf32> to vector<8x8x32xf32>
    %169 = vector.shape_cast %168 : vector<8x8x32xf32> to vector<64x32xf32>
    %c24 = arith.constant 24 : index
    %c0_171 = arith.constant 0 : index
    %c0_172 = arith.constant 0 : index
    %170 = vector.load %arg2[%c24, %c0_171, %c0_172] : memref<25x32x24xf32, #tpu.memory_space<vmem>>, vector<1x32x24xf32>
    %171 = vector.shape_cast %170 : vector<1x32x24xf32> to vector<32x24xf32>
    %cst_173 = arith.constant dense<0.000000e+00> : vector<64x24xf32>
    %172 = tpu.matmul %169, %171, %cst_173 {dimension_numbers = #tpu.dot_dimension_numbers<[1], [0], [0], [1], [0, 0, 1, 1], [], []>} : vector<64x32xf32>, vector<32x24xf32>, vector<64x24xf32> -> vector<64x24xf32>
    %173 = arith.addf %166, %172 : vector<64x24xf32>
    %c0_174 = arith.constant 0 : index
    %c0_175 = arith.constant 0 : index
    %c0_176 = arith.constant 0 : index
    %174 = vector.load %arg3[%c0_174, %c0_175, %c0_176] : memref<1x64x24xf32, #tpu.memory_space<vmem>>, vector<1x64x24xf32>
    %175 = vector.shape_cast %174 : vector<1x64x24xf32> to vector<64x24xf32>
    %176 = vector.shape_cast %173 : vector<64x24xf32> to vector<1x64x24xf32>
    tpu.vector_store %arg3[%c0_174, %c0_175, %c0_176], %176 {strides = array<i32>} : memref<1x64x24xf32, #tpu.memory_space<vmem>>, vector<1x64x24xf32>,
    %cst_177 = arith.constant dense<0.000000e+00> : vector<24xf32>
    %177 = vector.multi_reduction <add>, %173, %cst_177 [0] : vector<64x24xf32> to vector<24xf32>
    %178 = vector.shape_cast %177 : vector<24xf32> to vector<1x24xf32>
    %179 = arith.mulf %173, %173 : vector<64x24xf32>
    %cst_178 = arith.constant dense<0.000000e+00> : vector<24xf32>
    %180 = vector.multi_reduction <add>, %179, %cst_178 [0] : vector<64x24xf32> to vector<24xf32>
    %181 = vector.shape_cast %180 : vector<24xf32> to vector<1x24xf32>
    %182 = tpu.concatenate %178, %181 in 0 : vector<1x24xf32>, vector<1x24xf32> -> vector<2x24xf32>
    %c0_179 = arith.constant 0 : index
    %c0_180 = arith.constant 0 : index
    %c0_181 = arith.constant 0 : index
    %183 = vector.load %arg4[%c0_179, %c0_180, %c0_181] : memref<1x2x24xf32, #tpu.memory_space<vmem>>, vector<1x2x24xf32>
    %184 = vector.shape_cast %183 : vector<1x2x24xf32> to vector<2x24xf32>
    %185 = vector.shape_cast %182 : vector<2x24xf32> to vector<1x2x24xf32>
    tpu.vector_store %arg4[%c0_179, %c0_180, %c0_181], %185 {strides = array<i32>} : memref<1x2x24xf32, #tpu.memory_space<vmem>>, vector<1x2x24xf32>,
    return
  }
  func.func @transform_0(%arg0: i32) -> (i32, i32, i32, i32) {
    %c0_i32 = arith.constant 0 : i32
    %c0_i32_0 = arith.constant 0 : i32
    %c0_i32_1 = arith.constant 0 : i32
    %c0_i32_2 = arith.constant 0 : i32
    return %arg0, %c0_i32, %c0_i32_0, %c0_i32_1 : i32, i32, i32, i32
  }
  func.func @transform_1(%arg0: i32) -> (i32, i32, i32) {
    %c0_i32 = arith.constant 0 : i32
    %c0_i32_0 = arith.constant 0 : i32
    %c0_i32_1 = arith.constant 0 : i32
    %c0_i32_2 = arith.constant 0 : i32
    return %c0_i32, %c0_i32_0, %c0_i32_1 : i32, i32, i32
  }
  func.func @transform_2(%arg0: i32) -> (i32, i32, i32) {
    %c0_i32 = arith.constant 0 : i32
    %c0_i32_0 = arith.constant 0 : i32
    %c0_i32_1 = arith.constant 0 : i32
    return %arg0, %c0_i32, %c0_i32_0 : i32, i32, i32
  }
  func.func @transform_3(%arg0: i32) -> (i32, i32, i32) {
    %c0_i32 = arith.constant 0 : i32
    %c0_i32_0 = arith.constant 0 : i32
    %c0_i32_1 = arith.constant 0 : i32
    return %arg0, %c0_i32, %c0_i32_0 : i32, i32, i32
  }
}

module attributes {stable_mosaic.version = 11 : i64} {
  func.func @_conv_stats_kernel(%arg0: i32, %arg1: memref<1x20x20x24xf32, #tpu.memory_space<vmem>>, %arg2: memref<25x24x16xf32, #tpu.memory_space<vmem>>, %arg3: memref<1x256x16xf32, #tpu.memory_space<vmem>>, %arg4: memref<1x2x16xf32, #tpu.memory_space<vmem>>) attributes {dimension_semantics = [#tpu.dimension_semantics<parallel>], iteration_bounds = array<i64: 2>, scalar_prefetch = 0 : i64, scratch_operands = 0 : i64, tpu.core_type = #tpu.core_type<tc>, window_params = [{transform_indices = @transform_0, window_bounds = array<i64: 1, 20, 20, 24>}, {pipeline_mode = #tpu.pipeline_mode<synchronous>, transform_indices = @transform_1, window_bounds = array<i64: 25, 24, 16>}, {transform_indices = @transform_2, window_bounds = array<i64: 1, 256, 16>}, {transform_indices = @transform_3, window_bounds = array<i64: 1, 2, 16>}]} {
    %c0 = arith.constant 0 : index
    %c0_0 = arith.constant 0 : index
    %c0_1 = arith.constant 0 : index
    %c0_2 = arith.constant 0 : index
    %0 = vector.load %arg1[%c0, %c0_0, %c0_1, %c0_2] : memref<1x20x20x24xf32, #tpu.memory_space<vmem>>, vector<1x16x16x24xf32>
    %1 = vector.shape_cast %0 : vector<1x16x16x24xf32> to vector<16x16x24xf32>
    %2 = vector.shape_cast %1 : vector<16x16x24xf32> to vector<256x24xf32>
    %c0_3 = arith.constant 0 : index
    %c0_4 = arith.constant 0 : index
    %c0_5 = arith.constant 0 : index
    %3 = vector.load %arg2[%c0_3, %c0_4, %c0_5] : memref<25x24x16xf32, #tpu.memory_space<vmem>>, vector<1x24x16xf32>
    %4 = vector.shape_cast %3 : vector<1x24x16xf32> to vector<24x16xf32>
    %cst = arith.constant dense<0.000000e+00> : vector<256x16xf32>
    %5 = tpu.matmul %2, %4, %cst {dimension_numbers = #tpu.dot_dimension_numbers<[1], [0], [0], [1], [0, 0, 1, 1], [], []>} : vector<256x24xf32>, vector<24x16xf32>, vector<256x16xf32> -> vector<256x16xf32>
    %c0_6 = arith.constant 0 : index
    %c0_7 = arith.constant 0 : index
    %c1 = arith.constant 1 : index
    %c0_8 = arith.constant 0 : index
    %6 = vector.load %arg1[%c0_6, %c0_7, %c1, %c0_8] : memref<1x20x20x24xf32, #tpu.memory_space<vmem>>, vector<1x16x16x24xf32>
    %7 = vector.shape_cast %6 : vector<1x16x16x24xf32> to vector<16x16x24xf32>
    %8 = vector.shape_cast %7 : vector<16x16x24xf32> to vector<256x24xf32>
    %c1_9 = arith.constant 1 : index
    %c0_10 = arith.constant 0 : index
    %c0_11 = arith.constant 0 : index
    %9 = vector.load %arg2[%c1_9, %c0_10, %c0_11] : memref<25x24x16xf32, #tpu.memory_space<vmem>>, vector<1x24x16xf32>
    %10 = vector.shape_cast %9 : vector<1x24x16xf32> to vector<24x16xf32>
    %cst_12 = arith.constant dense<0.000000e+00> : vector<256x16xf32>
    %11 = tpu.matmul %8, %10, %cst_12 {dimension_numbers = #tpu.dot_dimension_numbers<[1], [0], [0], [1], [0, 0, 1, 1], [], []>} : vector<256x24xf32>, vector<24x16xf32>, vector<256x16xf32> -> vector<256x16xf32>
    %12 = arith.addf %5, %11 : vector<256x16xf32>
    %c0_13 = arith.constant 0 : index
    %c0_14 = arith.constant 0 : index
    %c2 = arith.constant 2 : index
    %c0_15 = arith.constant 0 : index
    %13 = vector.load %arg1[%c0_13, %c0_14, %c2, %c0_15] : memref<1x20x20x24xf32, #tpu.memory_space<vmem>>, vector<1x16x16x24xf32>
    %14 = vector.shape_cast %13 : vector<1x16x16x24xf32> to vector<16x16x24xf32>
    %15 = vector.shape_cast %14 : vector<16x16x24xf32> to vector<256x24xf32>
    %c2_16 = arith.constant 2 : index
    %c0_17 = arith.constant 0 : index
    %c0_18 = arith.constant 0 : index
    %16 = vector.load %arg2[%c2_16, %c0_17, %c0_18] : memref<25x24x16xf32, #tpu.memory_space<vmem>>, vector<1x24x16xf32>
    %17 = vector.shape_cast %16 : vector<1x24x16xf32> to vector<24x16xf32>
    %cst_19 = arith.constant dense<0.000000e+00> : vector<256x16xf32>
    %18 = tpu.matmul %15, %17, %cst_19 {dimension_numbers = #tpu.dot_dimension_numbers<[1], [0], [0], [1], [0, 0, 1, 1], [], []>} : vector<256x24xf32>, vector<24x16xf32>, vector<256x16xf32> -> vector<256x16xf32>
    %19 = arith.addf %12, %18 : vector<256x16xf32>
    %c0_20 = arith.constant 0 : index
    %c0_21 = arith.constant 0 : index
    %c3 = arith.constant 3 : index
    %c0_22 = arith.constant 0 : index
    %20 = vector.load %arg1[%c0_20, %c0_21, %c3, %c0_22] : memref<1x20x20x24xf32, #tpu.memory_space<vmem>>, vector<1x16x16x24xf32>
    %21 = vector.shape_cast %20 : vector<1x16x16x24xf32> to vector<16x16x24xf32>
    %22 = vector.shape_cast %21 : vector<16x16x24xf32> to vector<256x24xf32>
    %c3_23 = arith.constant 3 : index
    %c0_24 = arith.constant 0 : index
    %c0_25 = arith.constant 0 : index
    %23 = vector.load %arg2[%c3_23, %c0_24, %c0_25] : memref<25x24x16xf32, #tpu.memory_space<vmem>>, vector<1x24x16xf32>
    %24 = vector.shape_cast %23 : vector<1x24x16xf32> to vector<24x16xf32>
    %cst_26 = arith.constant dense<0.000000e+00> : vector<256x16xf32>
    %25 = tpu.matmul %22, %24, %cst_26 {dimension_numbers = #tpu.dot_dimension_numbers<[1], [0], [0], [1], [0, 0, 1, 1], [], []>} : vector<256x24xf32>, vector<24x16xf32>, vector<256x16xf32> -> vector<256x16xf32>
    %26 = arith.addf %19, %25 : vector<256x16xf32>
    %c0_27 = arith.constant 0 : index
    %c0_28 = arith.constant 0 : index
    %c4 = arith.constant 4 : index
    %c0_29 = arith.constant 0 : index
    %27 = vector.load %arg1[%c0_27, %c0_28, %c4, %c0_29] : memref<1x20x20x24xf32, #tpu.memory_space<vmem>>, vector<1x16x16x24xf32>
    %28 = vector.shape_cast %27 : vector<1x16x16x24xf32> to vector<16x16x24xf32>
    %29 = vector.shape_cast %28 : vector<16x16x24xf32> to vector<256x24xf32>
    %c4_30 = arith.constant 4 : index
    %c0_31 = arith.constant 0 : index
    %c0_32 = arith.constant 0 : index
    %30 = vector.load %arg2[%c4_30, %c0_31, %c0_32] : memref<25x24x16xf32, #tpu.memory_space<vmem>>, vector<1x24x16xf32>
    %31 = vector.shape_cast %30 : vector<1x24x16xf32> to vector<24x16xf32>
    %cst_33 = arith.constant dense<0.000000e+00> : vector<256x16xf32>
    %32 = tpu.matmul %29, %31, %cst_33 {dimension_numbers = #tpu.dot_dimension_numbers<[1], [0], [0], [1], [0, 0, 1, 1], [], []>} : vector<256x24xf32>, vector<24x16xf32>, vector<256x16xf32> -> vector<256x16xf32>
    %33 = arith.addf %26, %32 : vector<256x16xf32>
    %c0_34 = arith.constant 0 : index
    %c1_35 = arith.constant 1 : index
    %c0_36 = arith.constant 0 : index
    %c0_37 = arith.constant 0 : index
    %34 = vector.load %arg1[%c0_34, %c1_35, %c0_36, %c0_37] : memref<1x20x20x24xf32, #tpu.memory_space<vmem>>, vector<1x16x16x24xf32>
    %35 = vector.shape_cast %34 : vector<1x16x16x24xf32> to vector<16x16x24xf32>
    %36 = vector.shape_cast %35 : vector<16x16x24xf32> to vector<256x24xf32>
    %c5 = arith.constant 5 : index
    %c0_38 = arith.constant 0 : index
    %c0_39 = arith.constant 0 : index
    %37 = vector.load %arg2[%c5, %c0_38, %c0_39] : memref<25x24x16xf32, #tpu.memory_space<vmem>>, vector<1x24x16xf32>
    %38 = vector.shape_cast %37 : vector<1x24x16xf32> to vector<24x16xf32>
    %cst_40 = arith.constant dense<0.000000e+00> : vector<256x16xf32>
    %39 = tpu.matmul %36, %38, %cst_40 {dimension_numbers = #tpu.dot_dimension_numbers<[1], [0], [0], [1], [0, 0, 1, 1], [], []>} : vector<256x24xf32>, vector<24x16xf32>, vector<256x16xf32> -> vector<256x16xf32>
    %40 = arith.addf %33, %39 : vector<256x16xf32>
    %c0_41 = arith.constant 0 : index
    %c1_42 = arith.constant 1 : index
    %c1_43 = arith.constant 1 : index
    %c0_44 = arith.constant 0 : index
    %41 = vector.load %arg1[%c0_41, %c1_42, %c1_43, %c0_44] : memref<1x20x20x24xf32, #tpu.memory_space<vmem>>, vector<1x16x16x24xf32>
    %42 = vector.shape_cast %41 : vector<1x16x16x24xf32> to vector<16x16x24xf32>
    %43 = vector.shape_cast %42 : vector<16x16x24xf32> to vector<256x24xf32>
    %c6 = arith.constant 6 : index
    %c0_45 = arith.constant 0 : index
    %c0_46 = arith.constant 0 : index
    %44 = vector.load %arg2[%c6, %c0_45, %c0_46] : memref<25x24x16xf32, #tpu.memory_space<vmem>>, vector<1x24x16xf32>
    %45 = vector.shape_cast %44 : vector<1x24x16xf32> to vector<24x16xf32>
    %cst_47 = arith.constant dense<0.000000e+00> : vector<256x16xf32>
    %46 = tpu.matmul %43, %45, %cst_47 {dimension_numbers = #tpu.dot_dimension_numbers<[1], [0], [0], [1], [0, 0, 1, 1], [], []>} : vector<256x24xf32>, vector<24x16xf32>, vector<256x16xf32> -> vector<256x16xf32>
    %47 = arith.addf %40, %46 : vector<256x16xf32>
    %c0_48 = arith.constant 0 : index
    %c1_49 = arith.constant 1 : index
    %c2_50 = arith.constant 2 : index
    %c0_51 = arith.constant 0 : index
    %48 = vector.load %arg1[%c0_48, %c1_49, %c2_50, %c0_51] : memref<1x20x20x24xf32, #tpu.memory_space<vmem>>, vector<1x16x16x24xf32>
    %49 = vector.shape_cast %48 : vector<1x16x16x24xf32> to vector<16x16x24xf32>
    %50 = vector.shape_cast %49 : vector<16x16x24xf32> to vector<256x24xf32>
    %c7 = arith.constant 7 : index
    %c0_52 = arith.constant 0 : index
    %c0_53 = arith.constant 0 : index
    %51 = vector.load %arg2[%c7, %c0_52, %c0_53] : memref<25x24x16xf32, #tpu.memory_space<vmem>>, vector<1x24x16xf32>
    %52 = vector.shape_cast %51 : vector<1x24x16xf32> to vector<24x16xf32>
    %cst_54 = arith.constant dense<0.000000e+00> : vector<256x16xf32>
    %53 = tpu.matmul %50, %52, %cst_54 {dimension_numbers = #tpu.dot_dimension_numbers<[1], [0], [0], [1], [0, 0, 1, 1], [], []>} : vector<256x24xf32>, vector<24x16xf32>, vector<256x16xf32> -> vector<256x16xf32>
    %54 = arith.addf %47, %53 : vector<256x16xf32>
    %c0_55 = arith.constant 0 : index
    %c1_56 = arith.constant 1 : index
    %c3_57 = arith.constant 3 : index
    %c0_58 = arith.constant 0 : index
    %55 = vector.load %arg1[%c0_55, %c1_56, %c3_57, %c0_58] : memref<1x20x20x24xf32, #tpu.memory_space<vmem>>, vector<1x16x16x24xf32>
    %56 = vector.shape_cast %55 : vector<1x16x16x24xf32> to vector<16x16x24xf32>
    %57 = vector.shape_cast %56 : vector<16x16x24xf32> to vector<256x24xf32>
    %c8 = arith.constant 8 : index
    %c0_59 = arith.constant 0 : index
    %c0_60 = arith.constant 0 : index
    %58 = vector.load %arg2[%c8, %c0_59, %c0_60] : memref<25x24x16xf32, #tpu.memory_space<vmem>>, vector<1x24x16xf32>
    %59 = vector.shape_cast %58 : vector<1x24x16xf32> to vector<24x16xf32>
    %cst_61 = arith.constant dense<0.000000e+00> : vector<256x16xf32>
    %60 = tpu.matmul %57, %59, %cst_61 {dimension_numbers = #tpu.dot_dimension_numbers<[1], [0], [0], [1], [0, 0, 1, 1], [], []>} : vector<256x24xf32>, vector<24x16xf32>, vector<256x16xf32> -> vector<256x16xf32>
    %61 = arith.addf %54, %60 : vector<256x16xf32>
    %c0_62 = arith.constant 0 : index
    %c1_63 = arith.constant 1 : index
    %c4_64 = arith.constant 4 : index
    %c0_65 = arith.constant 0 : index
    %62 = vector.load %arg1[%c0_62, %c1_63, %c4_64, %c0_65] : memref<1x20x20x24xf32, #tpu.memory_space<vmem>>, vector<1x16x16x24xf32>
    %63 = vector.shape_cast %62 : vector<1x16x16x24xf32> to vector<16x16x24xf32>
    %64 = vector.shape_cast %63 : vector<16x16x24xf32> to vector<256x24xf32>
    %c9 = arith.constant 9 : index
    %c0_66 = arith.constant 0 : index
    %c0_67 = arith.constant 0 : index
    %65 = vector.load %arg2[%c9, %c0_66, %c0_67] : memref<25x24x16xf32, #tpu.memory_space<vmem>>, vector<1x24x16xf32>
    %66 = vector.shape_cast %65 : vector<1x24x16xf32> to vector<24x16xf32>
    %cst_68 = arith.constant dense<0.000000e+00> : vector<256x16xf32>
    %67 = tpu.matmul %64, %66, %cst_68 {dimension_numbers = #tpu.dot_dimension_numbers<[1], [0], [0], [1], [0, 0, 1, 1], [], []>} : vector<256x24xf32>, vector<24x16xf32>, vector<256x16xf32> -> vector<256x16xf32>
    %68 = arith.addf %61, %67 : vector<256x16xf32>
    %c0_69 = arith.constant 0 : index
    %c2_70 = arith.constant 2 : index
    %c0_71 = arith.constant 0 : index
    %c0_72 = arith.constant 0 : index
    %69 = vector.load %arg1[%c0_69, %c2_70, %c0_71, %c0_72] : memref<1x20x20x24xf32, #tpu.memory_space<vmem>>, vector<1x16x16x24xf32>
    %70 = vector.shape_cast %69 : vector<1x16x16x24xf32> to vector<16x16x24xf32>
    %71 = vector.shape_cast %70 : vector<16x16x24xf32> to vector<256x24xf32>
    %c10 = arith.constant 10 : index
    %c0_73 = arith.constant 0 : index
    %c0_74 = arith.constant 0 : index
    %72 = vector.load %arg2[%c10, %c0_73, %c0_74] : memref<25x24x16xf32, #tpu.memory_space<vmem>>, vector<1x24x16xf32>
    %73 = vector.shape_cast %72 : vector<1x24x16xf32> to vector<24x16xf32>
    %cst_75 = arith.constant dense<0.000000e+00> : vector<256x16xf32>
    %74 = tpu.matmul %71, %73, %cst_75 {dimension_numbers = #tpu.dot_dimension_numbers<[1], [0], [0], [1], [0, 0, 1, 1], [], []>} : vector<256x24xf32>, vector<24x16xf32>, vector<256x16xf32> -> vector<256x16xf32>
    %75 = arith.addf %68, %74 : vector<256x16xf32>
    %c0_76 = arith.constant 0 : index
    %c2_77 = arith.constant 2 : index
    %c1_78 = arith.constant 1 : index
    %c0_79 = arith.constant 0 : index
    %76 = vector.load %arg1[%c0_76, %c2_77, %c1_78, %c0_79] : memref<1x20x20x24xf32, #tpu.memory_space<vmem>>, vector<1x16x16x24xf32>
    %77 = vector.shape_cast %76 : vector<1x16x16x24xf32> to vector<16x16x24xf32>
    %78 = vector.shape_cast %77 : vector<16x16x24xf32> to vector<256x24xf32>
    %c11 = arith.constant 11 : index
    %c0_80 = arith.constant 0 : index
    %c0_81 = arith.constant 0 : index
    %79 = vector.load %arg2[%c11, %c0_80, %c0_81] : memref<25x24x16xf32, #tpu.memory_space<vmem>>, vector<1x24x16xf32>
    %80 = vector.shape_cast %79 : vector<1x24x16xf32> to vector<24x16xf32>
    %cst_82 = arith.constant dense<0.000000e+00> : vector<256x16xf32>
    %81 = tpu.matmul %78, %80, %cst_82 {dimension_numbers = #tpu.dot_dimension_numbers<[1], [0], [0], [1], [0, 0, 1, 1], [], []>} : vector<256x24xf32>, vector<24x16xf32>, vector<256x16xf32> -> vector<256x16xf32>
    %82 = arith.addf %75, %81 : vector<256x16xf32>
    %c0_83 = arith.constant 0 : index
    %c2_84 = arith.constant 2 : index
    %c2_85 = arith.constant 2 : index
    %c0_86 = arith.constant 0 : index
    %83 = vector.load %arg1[%c0_83, %c2_84, %c2_85, %c0_86] : memref<1x20x20x24xf32, #tpu.memory_space<vmem>>, vector<1x16x16x24xf32>
    %84 = vector.shape_cast %83 : vector<1x16x16x24xf32> to vector<16x16x24xf32>
    %85 = vector.shape_cast %84 : vector<16x16x24xf32> to vector<256x24xf32>
    %c12 = arith.constant 12 : index
    %c0_87 = arith.constant 0 : index
    %c0_88 = arith.constant 0 : index
    %86 = vector.load %arg2[%c12, %c0_87, %c0_88] : memref<25x24x16xf32, #tpu.memory_space<vmem>>, vector<1x24x16xf32>
    %87 = vector.shape_cast %86 : vector<1x24x16xf32> to vector<24x16xf32>
    %cst_89 = arith.constant dense<0.000000e+00> : vector<256x16xf32>
    %88 = tpu.matmul %85, %87, %cst_89 {dimension_numbers = #tpu.dot_dimension_numbers<[1], [0], [0], [1], [0, 0, 1, 1], [], []>} : vector<256x24xf32>, vector<24x16xf32>, vector<256x16xf32> -> vector<256x16xf32>
    %89 = arith.addf %82, %88 : vector<256x16xf32>
    %c0_90 = arith.constant 0 : index
    %c2_91 = arith.constant 2 : index
    %c3_92 = arith.constant 3 : index
    %c0_93 = arith.constant 0 : index
    %90 = vector.load %arg1[%c0_90, %c2_91, %c3_92, %c0_93] : memref<1x20x20x24xf32, #tpu.memory_space<vmem>>, vector<1x16x16x24xf32>
    %91 = vector.shape_cast %90 : vector<1x16x16x24xf32> to vector<16x16x24xf32>
    %92 = vector.shape_cast %91 : vector<16x16x24xf32> to vector<256x24xf32>
    %c13 = arith.constant 13 : index
    %c0_94 = arith.constant 0 : index
    %c0_95 = arith.constant 0 : index
    %93 = vector.load %arg2[%c13, %c0_94, %c0_95] : memref<25x24x16xf32, #tpu.memory_space<vmem>>, vector<1x24x16xf32>
    %94 = vector.shape_cast %93 : vector<1x24x16xf32> to vector<24x16xf32>
    %cst_96 = arith.constant dense<0.000000e+00> : vector<256x16xf32>
    %95 = tpu.matmul %92, %94, %cst_96 {dimension_numbers = #tpu.dot_dimension_numbers<[1], [0], [0], [1], [0, 0, 1, 1], [], []>} : vector<256x24xf32>, vector<24x16xf32>, vector<256x16xf32> -> vector<256x16xf32>
    %96 = arith.addf %89, %95 : vector<256x16xf32>
    %c0_97 = arith.constant 0 : index
    %c2_98 = arith.constant 2 : index
    %c4_99 = arith.constant 4 : index
    %c0_100 = arith.constant 0 : index
    %97 = vector.load %arg1[%c0_97, %c2_98, %c4_99, %c0_100] : memref<1x20x20x24xf32, #tpu.memory_space<vmem>>, vector<1x16x16x24xf32>
    %98 = vector.shape_cast %97 : vector<1x16x16x24xf32> to vector<16x16x24xf32>
    %99 = vector.shape_cast %98 : vector<16x16x24xf32> to vector<256x24xf32>
    %c14 = arith.constant 14 : index
    %c0_101 = arith.constant 0 : index
    %c0_102 = arith.constant 0 : index
    %100 = vector.load %arg2[%c14, %c0_101, %c0_102] : memref<25x24x16xf32, #tpu.memory_space<vmem>>, vector<1x24x16xf32>
    %101 = vector.shape_cast %100 : vector<1x24x16xf32> to vector<24x16xf32>
    %cst_103 = arith.constant dense<0.000000e+00> : vector<256x16xf32>
    %102 = tpu.matmul %99, %101, %cst_103 {dimension_numbers = #tpu.dot_dimension_numbers<[1], [0], [0], [1], [0, 0, 1, 1], [], []>} : vector<256x24xf32>, vector<24x16xf32>, vector<256x16xf32> -> vector<256x16xf32>
    %103 = arith.addf %96, %102 : vector<256x16xf32>
    %c0_104 = arith.constant 0 : index
    %c3_105 = arith.constant 3 : index
    %c0_106 = arith.constant 0 : index
    %c0_107 = arith.constant 0 : index
    %104 = vector.load %arg1[%c0_104, %c3_105, %c0_106, %c0_107] : memref<1x20x20x24xf32, #tpu.memory_space<vmem>>, vector<1x16x16x24xf32>
    %105 = vector.shape_cast %104 : vector<1x16x16x24xf32> to vector<16x16x24xf32>
    %106 = vector.shape_cast %105 : vector<16x16x24xf32> to vector<256x24xf32>
    %c15 = arith.constant 15 : index
    %c0_108 = arith.constant 0 : index
    %c0_109 = arith.constant 0 : index
    %107 = vector.load %arg2[%c15, %c0_108, %c0_109] : memref<25x24x16xf32, #tpu.memory_space<vmem>>, vector<1x24x16xf32>
    %108 = vector.shape_cast %107 : vector<1x24x16xf32> to vector<24x16xf32>
    %cst_110 = arith.constant dense<0.000000e+00> : vector<256x16xf32>
    %109 = tpu.matmul %106, %108, %cst_110 {dimension_numbers = #tpu.dot_dimension_numbers<[1], [0], [0], [1], [0, 0, 1, 1], [], []>} : vector<256x24xf32>, vector<24x16xf32>, vector<256x16xf32> -> vector<256x16xf32>
    %110 = arith.addf %103, %109 : vector<256x16xf32>
    %c0_111 = arith.constant 0 : index
    %c3_112 = arith.constant 3 : index
    %c1_113 = arith.constant 1 : index
    %c0_114 = arith.constant 0 : index
    %111 = vector.load %arg1[%c0_111, %c3_112, %c1_113, %c0_114] : memref<1x20x20x24xf32, #tpu.memory_space<vmem>>, vector<1x16x16x24xf32>
    %112 = vector.shape_cast %111 : vector<1x16x16x24xf32> to vector<16x16x24xf32>
    %113 = vector.shape_cast %112 : vector<16x16x24xf32> to vector<256x24xf32>
    %c16 = arith.constant 16 : index
    %c0_115 = arith.constant 0 : index
    %c0_116 = arith.constant 0 : index
    %114 = vector.load %arg2[%c16, %c0_115, %c0_116] : memref<25x24x16xf32, #tpu.memory_space<vmem>>, vector<1x24x16xf32>
    %115 = vector.shape_cast %114 : vector<1x24x16xf32> to vector<24x16xf32>
    %cst_117 = arith.constant dense<0.000000e+00> : vector<256x16xf32>
    %116 = tpu.matmul %113, %115, %cst_117 {dimension_numbers = #tpu.dot_dimension_numbers<[1], [0], [0], [1], [0, 0, 1, 1], [], []>} : vector<256x24xf32>, vector<24x16xf32>, vector<256x16xf32> -> vector<256x16xf32>
    %117 = arith.addf %110, %116 : vector<256x16xf32>
    %c0_118 = arith.constant 0 : index
    %c3_119 = arith.constant 3 : index
    %c2_120 = arith.constant 2 : index
    %c0_121 = arith.constant 0 : index
    %118 = vector.load %arg1[%c0_118, %c3_119, %c2_120, %c0_121] : memref<1x20x20x24xf32, #tpu.memory_space<vmem>>, vector<1x16x16x24xf32>
    %119 = vector.shape_cast %118 : vector<1x16x16x24xf32> to vector<16x16x24xf32>
    %120 = vector.shape_cast %119 : vector<16x16x24xf32> to vector<256x24xf32>
    %c17 = arith.constant 17 : index
    %c0_122 = arith.constant 0 : index
    %c0_123 = arith.constant 0 : index
    %121 = vector.load %arg2[%c17, %c0_122, %c0_123] : memref<25x24x16xf32, #tpu.memory_space<vmem>>, vector<1x24x16xf32>
    %122 = vector.shape_cast %121 : vector<1x24x16xf32> to vector<24x16xf32>
    %cst_124 = arith.constant dense<0.000000e+00> : vector<256x16xf32>
    %123 = tpu.matmul %120, %122, %cst_124 {dimension_numbers = #tpu.dot_dimension_numbers<[1], [0], [0], [1], [0, 0, 1, 1], [], []>} : vector<256x24xf32>, vector<24x16xf32>, vector<256x16xf32> -> vector<256x16xf32>
    %124 = arith.addf %117, %123 : vector<256x16xf32>
    %c0_125 = arith.constant 0 : index
    %c3_126 = arith.constant 3 : index
    %c3_127 = arith.constant 3 : index
    %c0_128 = arith.constant 0 : index
    %125 = vector.load %arg1[%c0_125, %c3_126, %c3_127, %c0_128] : memref<1x20x20x24xf32, #tpu.memory_space<vmem>>, vector<1x16x16x24xf32>
    %126 = vector.shape_cast %125 : vector<1x16x16x24xf32> to vector<16x16x24xf32>
    %127 = vector.shape_cast %126 : vector<16x16x24xf32> to vector<256x24xf32>
    %c18 = arith.constant 18 : index
    %c0_129 = arith.constant 0 : index
    %c0_130 = arith.constant 0 : index
    %128 = vector.load %arg2[%c18, %c0_129, %c0_130] : memref<25x24x16xf32, #tpu.memory_space<vmem>>, vector<1x24x16xf32>
    %129 = vector.shape_cast %128 : vector<1x24x16xf32> to vector<24x16xf32>
    %cst_131 = arith.constant dense<0.000000e+00> : vector<256x16xf32>
    %130 = tpu.matmul %127, %129, %cst_131 {dimension_numbers = #tpu.dot_dimension_numbers<[1], [0], [0], [1], [0, 0, 1, 1], [], []>} : vector<256x24xf32>, vector<24x16xf32>, vector<256x16xf32> -> vector<256x16xf32>
    %131 = arith.addf %124, %130 : vector<256x16xf32>
    %c0_132 = arith.constant 0 : index
    %c3_133 = arith.constant 3 : index
    %c4_134 = arith.constant 4 : index
    %c0_135 = arith.constant 0 : index
    %132 = vector.load %arg1[%c0_132, %c3_133, %c4_134, %c0_135] : memref<1x20x20x24xf32, #tpu.memory_space<vmem>>, vector<1x16x16x24xf32>
    %133 = vector.shape_cast %132 : vector<1x16x16x24xf32> to vector<16x16x24xf32>
    %134 = vector.shape_cast %133 : vector<16x16x24xf32> to vector<256x24xf32>
    %c19 = arith.constant 19 : index
    %c0_136 = arith.constant 0 : index
    %c0_137 = arith.constant 0 : index
    %135 = vector.load %arg2[%c19, %c0_136, %c0_137] : memref<25x24x16xf32, #tpu.memory_space<vmem>>, vector<1x24x16xf32>
    %136 = vector.shape_cast %135 : vector<1x24x16xf32> to vector<24x16xf32>
    %cst_138 = arith.constant dense<0.000000e+00> : vector<256x16xf32>
    %137 = tpu.matmul %134, %136, %cst_138 {dimension_numbers = #tpu.dot_dimension_numbers<[1], [0], [0], [1], [0, 0, 1, 1], [], []>} : vector<256x24xf32>, vector<24x16xf32>, vector<256x16xf32> -> vector<256x16xf32>
    %138 = arith.addf %131, %137 : vector<256x16xf32>
    %c0_139 = arith.constant 0 : index
    %c4_140 = arith.constant 4 : index
    %c0_141 = arith.constant 0 : index
    %c0_142 = arith.constant 0 : index
    %139 = vector.load %arg1[%c0_139, %c4_140, %c0_141, %c0_142] : memref<1x20x20x24xf32, #tpu.memory_space<vmem>>, vector<1x16x16x24xf32>
    %140 = vector.shape_cast %139 : vector<1x16x16x24xf32> to vector<16x16x24xf32>
    %141 = vector.shape_cast %140 : vector<16x16x24xf32> to vector<256x24xf32>
    %c20 = arith.constant 20 : index
    %c0_143 = arith.constant 0 : index
    %c0_144 = arith.constant 0 : index
    %142 = vector.load %arg2[%c20, %c0_143, %c0_144] : memref<25x24x16xf32, #tpu.memory_space<vmem>>, vector<1x24x16xf32>
    %143 = vector.shape_cast %142 : vector<1x24x16xf32> to vector<24x16xf32>
    %cst_145 = arith.constant dense<0.000000e+00> : vector<256x16xf32>
    %144 = tpu.matmul %141, %143, %cst_145 {dimension_numbers = #tpu.dot_dimension_numbers<[1], [0], [0], [1], [0, 0, 1, 1], [], []>} : vector<256x24xf32>, vector<24x16xf32>, vector<256x16xf32> -> vector<256x16xf32>
    %145 = arith.addf %138, %144 : vector<256x16xf32>
    %c0_146 = arith.constant 0 : index
    %c4_147 = arith.constant 4 : index
    %c1_148 = arith.constant 1 : index
    %c0_149 = arith.constant 0 : index
    %146 = vector.load %arg1[%c0_146, %c4_147, %c1_148, %c0_149] : memref<1x20x20x24xf32, #tpu.memory_space<vmem>>, vector<1x16x16x24xf32>
    %147 = vector.shape_cast %146 : vector<1x16x16x24xf32> to vector<16x16x24xf32>
    %148 = vector.shape_cast %147 : vector<16x16x24xf32> to vector<256x24xf32>
    %c21 = arith.constant 21 : index
    %c0_150 = arith.constant 0 : index
    %c0_151 = arith.constant 0 : index
    %149 = vector.load %arg2[%c21, %c0_150, %c0_151] : memref<25x24x16xf32, #tpu.memory_space<vmem>>, vector<1x24x16xf32>
    %150 = vector.shape_cast %149 : vector<1x24x16xf32> to vector<24x16xf32>
    %cst_152 = arith.constant dense<0.000000e+00> : vector<256x16xf32>
    %151 = tpu.matmul %148, %150, %cst_152 {dimension_numbers = #tpu.dot_dimension_numbers<[1], [0], [0], [1], [0, 0, 1, 1], [], []>} : vector<256x24xf32>, vector<24x16xf32>, vector<256x16xf32> -> vector<256x16xf32>
    %152 = arith.addf %145, %151 : vector<256x16xf32>
    %c0_153 = arith.constant 0 : index
    %c4_154 = arith.constant 4 : index
    %c2_155 = arith.constant 2 : index
    %c0_156 = arith.constant 0 : index
    %153 = vector.load %arg1[%c0_153, %c4_154, %c2_155, %c0_156] : memref<1x20x20x24xf32, #tpu.memory_space<vmem>>, vector<1x16x16x24xf32>
    %154 = vector.shape_cast %153 : vector<1x16x16x24xf32> to vector<16x16x24xf32>
    %155 = vector.shape_cast %154 : vector<16x16x24xf32> to vector<256x24xf32>
    %c22 = arith.constant 22 : index
    %c0_157 = arith.constant 0 : index
    %c0_158 = arith.constant 0 : index
    %156 = vector.load %arg2[%c22, %c0_157, %c0_158] : memref<25x24x16xf32, #tpu.memory_space<vmem>>, vector<1x24x16xf32>
    %157 = vector.shape_cast %156 : vector<1x24x16xf32> to vector<24x16xf32>
    %cst_159 = arith.constant dense<0.000000e+00> : vector<256x16xf32>
    %158 = tpu.matmul %155, %157, %cst_159 {dimension_numbers = #tpu.dot_dimension_numbers<[1], [0], [0], [1], [0, 0, 1, 1], [], []>} : vector<256x24xf32>, vector<24x16xf32>, vector<256x16xf32> -> vector<256x16xf32>
    %159 = arith.addf %152, %158 : vector<256x16xf32>
    %c0_160 = arith.constant 0 : index
    %c4_161 = arith.constant 4 : index
    %c3_162 = arith.constant 3 : index
    %c0_163 = arith.constant 0 : index
    %160 = vector.load %arg1[%c0_160, %c4_161, %c3_162, %c0_163] : memref<1x20x20x24xf32, #tpu.memory_space<vmem>>, vector<1x16x16x24xf32>
    %161 = vector.shape_cast %160 : vector<1x16x16x24xf32> to vector<16x16x24xf32>
    %162 = vector.shape_cast %161 : vector<16x16x24xf32> to vector<256x24xf32>
    %c23 = arith.constant 23 : index
    %c0_164 = arith.constant 0 : index
    %c0_165 = arith.constant 0 : index
    %163 = vector.load %arg2[%c23, %c0_164, %c0_165] : memref<25x24x16xf32, #tpu.memory_space<vmem>>, vector<1x24x16xf32>
    %164 = vector.shape_cast %163 : vector<1x24x16xf32> to vector<24x16xf32>
    %cst_166 = arith.constant dense<0.000000e+00> : vector<256x16xf32>
    %165 = tpu.matmul %162, %164, %cst_166 {dimension_numbers = #tpu.dot_dimension_numbers<[1], [0], [0], [1], [0, 0, 1, 1], [], []>} : vector<256x24xf32>, vector<24x16xf32>, vector<256x16xf32> -> vector<256x16xf32>
    %166 = arith.addf %159, %165 : vector<256x16xf32>
    %c0_167 = arith.constant 0 : index
    %c4_168 = arith.constant 4 : index
    %c4_169 = arith.constant 4 : index
    %c0_170 = arith.constant 0 : index
    %167 = vector.load %arg1[%c0_167, %c4_168, %c4_169, %c0_170] : memref<1x20x20x24xf32, #tpu.memory_space<vmem>>, vector<1x16x16x24xf32>
    %168 = vector.shape_cast %167 : vector<1x16x16x24xf32> to vector<16x16x24xf32>
    %169 = vector.shape_cast %168 : vector<16x16x24xf32> to vector<256x24xf32>
    %c24 = arith.constant 24 : index
    %c0_171 = arith.constant 0 : index
    %c0_172 = arith.constant 0 : index
    %170 = vector.load %arg2[%c24, %c0_171, %c0_172] : memref<25x24x16xf32, #tpu.memory_space<vmem>>, vector<1x24x16xf32>
    %171 = vector.shape_cast %170 : vector<1x24x16xf32> to vector<24x16xf32>
    %cst_173 = arith.constant dense<0.000000e+00> : vector<256x16xf32>
    %172 = tpu.matmul %169, %171, %cst_173 {dimension_numbers = #tpu.dot_dimension_numbers<[1], [0], [0], [1], [0, 0, 1, 1], [], []>} : vector<256x24xf32>, vector<24x16xf32>, vector<256x16xf32> -> vector<256x16xf32>
    %173 = arith.addf %166, %172 : vector<256x16xf32>
    %c0_174 = arith.constant 0 : index
    %c0_175 = arith.constant 0 : index
    %c0_176 = arith.constant 0 : index
    %174 = vector.load %arg3[%c0_174, %c0_175, %c0_176] : memref<1x256x16xf32, #tpu.memory_space<vmem>>, vector<1x256x16xf32>
    %175 = vector.shape_cast %174 : vector<1x256x16xf32> to vector<256x16xf32>
    %176 = vector.shape_cast %173 : vector<256x16xf32> to vector<1x256x16xf32>
    tpu.vector_store %arg3[%c0_174, %c0_175, %c0_176], %176 {strides = array<i32>} : memref<1x256x16xf32, #tpu.memory_space<vmem>>, vector<1x256x16xf32>,
    %cst_177 = arith.constant dense<0.000000e+00> : vector<16xf32>
    %177 = vector.multi_reduction <add>, %173, %cst_177 [0] : vector<256x16xf32> to vector<16xf32>
    %178 = vector.shape_cast %177 : vector<16xf32> to vector<1x16xf32>
    %179 = arith.mulf %173, %173 : vector<256x16xf32>
    %cst_178 = arith.constant dense<0.000000e+00> : vector<16xf32>
    %180 = vector.multi_reduction <add>, %179, %cst_178 [0] : vector<256x16xf32> to vector<16xf32>
    %181 = vector.shape_cast %180 : vector<16xf32> to vector<1x16xf32>
    %182 = tpu.concatenate %178, %181 in 0 : vector<1x16xf32>, vector<1x16xf32> -> vector<2x16xf32>
    %c0_179 = arith.constant 0 : index
    %c0_180 = arith.constant 0 : index
    %c0_181 = arith.constant 0 : index
    %183 = vector.load %arg4[%c0_179, %c0_180, %c0_181] : memref<1x2x16xf32, #tpu.memory_space<vmem>>, vector<1x2x16xf32>
    %184 = vector.shape_cast %183 : vector<1x2x16xf32> to vector<2x16xf32>
    %185 = vector.shape_cast %182 : vector<2x16xf32> to vector<1x2x16xf32>
    tpu.vector_store %arg4[%c0_179, %c0_180, %c0_181], %185 {strides = array<i32>} : memref<1x2x16xf32, #tpu.memory_space<vmem>>, vector<1x2x16xf32>,
    return
  }
  func.func @transform_0(%arg0: i32) -> (i32, i32, i32, i32) {
    %c0_i32 = arith.constant 0 : i32
    %c0_i32_0 = arith.constant 0 : i32
    %c0_i32_1 = arith.constant 0 : i32
    %c0_i32_2 = arith.constant 0 : i32
    return %arg0, %c0_i32, %c0_i32_0, %c0_i32_1 : i32, i32, i32, i32
  }
  func.func @transform_1(%arg0: i32) -> (i32, i32, i32) {
    %c0_i32 = arith.constant 0 : i32
    %c0_i32_0 = arith.constant 0 : i32
    %c0_i32_1 = arith.constant 0 : i32
    %c0_i32_2 = arith.constant 0 : i32
    return %c0_i32, %c0_i32_0, %c0_i32_1 : i32, i32, i32
  }
  func.func @transform_2(%arg0: i32) -> (i32, i32, i32) {
    %c0_i32 = arith.constant 0 : i32
    %c0_i32_0 = arith.constant 0 : i32
    %c0_i32_1 = arith.constant 0 : i32
    return %arg0, %c0_i32, %c0_i32_0 : i32, i32, i32
  }
  func.func @transform_3(%arg0: i32) -> (i32, i32, i32) {
    %c0_i32 = arith.constant 0 : i32
    %c0_i32_0 = arith.constant 0 : i32
    %c0_i32_1 = arith.constant 0 : i32
    return %arg0, %c0_i32, %c0_i32_0 : i32, i32, i32
  }
}

module attributes {stable_mosaic.version = 11 : i64} {
  func.func @_affine_kernel(%arg0: i32, %arg1: memref<1x256x16xf32, #tpu.memory_space<vmem>>, %arg2: memref<1x1x16xf32, #tpu.memory_space<vmem>>, %arg3: memref<1x1x16xf32, #tpu.memory_space<vmem>>, %arg4: memref<1x256x16xf32, #tpu.memory_space<vmem>>) attributes {dimension_semantics = [#tpu.dimension_semantics<parallel>], iteration_bounds = array<i64: 2>, scalar_prefetch = 0 : i64, scratch_operands = 0 : i64, tpu.core_type = #tpu.core_type<tc>, window_params = [{transform_indices = @transform_0, window_bounds = array<i64: 1, 256, 16>}, {transform_indices = @transform_1, window_bounds = array<i64: 1, 1, 16>}, {transform_indices = @transform_2, window_bounds = array<i64: 1, 1, 16>}, {transform_indices = @transform_3, window_bounds = array<i64: 1, 256, 16>}]} {
    %c0 = arith.constant 0 : index
    %c0_0 = arith.constant 0 : index
    %c0_1 = arith.constant 0 : index
    %0 = vector.load %arg1[%c0, %c0_0, %c0_1] : memref<1x256x16xf32, #tpu.memory_space<vmem>>, vector<1x256x16xf32>
    %1 = vector.shape_cast %0 : vector<1x256x16xf32> to vector<256x16xf32>
    %c0_2 = arith.constant 0 : index
    %c0_3 = arith.constant 0 : index
    %c0_4 = arith.constant 0 : index
    %2 = vector.load %arg2[%c0_2, %c0_3, %c0_4] : memref<1x1x16xf32, #tpu.memory_space<vmem>>, vector<1x1x16xf32>
    %3 = vector.shape_cast %2 : vector<1x1x16xf32> to vector<1x16xf32>
    %4 = vector.broadcast %3 : vector<1x16xf32> to vector<256x16xf32>
    %5 = arith.mulf %1, %4 : vector<256x16xf32>
    %c0_5 = arith.constant 0 : index
    %c0_6 = arith.constant 0 : index
    %c0_7 = arith.constant 0 : index
    %6 = vector.load %arg3[%c0_5, %c0_6, %c0_7] : memref<1x1x16xf32, #tpu.memory_space<vmem>>, vector<1x1x16xf32>
    %7 = vector.shape_cast %6 : vector<1x1x16xf32> to vector<1x16xf32>
    %8 = vector.broadcast %7 : vector<1x16xf32> to vector<256x16xf32>
    %9 = arith.addf %5, %8 : vector<256x16xf32>
    %c0_8 = arith.constant 0 : index
    %c0_9 = arith.constant 0 : index
    %c0_10 = arith.constant 0 : index
    %10 = vector.load %arg4[%c0_8, %c0_9, %c0_10] : memref<1x256x16xf32, #tpu.memory_space<vmem>>, vector<1x256x16xf32>
    %11 = vector.shape_cast %10 : vector<1x256x16xf32> to vector<256x16xf32>
    %12 = vector.shape_cast %9 : vector<256x16xf32> to vector<1x256x16xf32>
    tpu.vector_store %arg4[%c0_8, %c0_9, %c0_10], %12 {strides = array<i32>} : memref<1x256x16xf32, #tpu.memory_space<vmem>>, vector<1x256x16xf32>,
    return
  }
  func.func @transform_0(%arg0: i32) -> (i32, i32, i32) {
    %c0_i32 = arith.constant 0 : i32
    %c0_i32_0 = arith.constant 0 : i32
    %c0_i32_1 = arith.constant 0 : i32
    return %arg0, %c0_i32, %c0_i32_0 : i32, i32, i32
  }
  func.func @transform_1(%arg0: i32) -> (i32, i32, i32) {
    %c0_i32 = arith.constant 0 : i32
    %c0_i32_0 = arith.constant 0 : i32
    %c0_i32_1 = arith.constant 0 : i32
    return %arg0, %c0_i32, %c0_i32_0 : i32, i32, i32
  }
  func.func @transform_2(%arg0: i32) -> (i32, i32, i32) {
    %c0_i32 = arith.constant 0 : i32
    %c0_i32_0 = arith.constant 0 : i32
    %c0_i32_1 = arith.constant 0 : i32
    return %arg0, %c0_i32, %c0_i32_0 : i32, i32, i32
  }
  func.func @transform_3(%arg0: i32) -> (i32, i32, i32) {
    %c0_i32 = arith.constant 0 : i32
    %c0_i32_0 = arith.constant 0 : i32
    %c0_i32_1 = arith.constant 0 : i32
    return %arg0, %c0_i32, %c0_i32_0 : i32, i32, i32
  }
}

module attributes {stable_mosaic.version = 11 : i64} {
  func.func @_matmul_bias_sigmoid_kernel(%arg0: i32, %arg1: memref<1x64x144xf32, #tpu.memory_space<vmem>>, %arg2: memref<144x1xf32, #tpu.memory_space<vmem>>, %arg3: memref<1x1xf32, #tpu.memory_space<vmem>>, %arg4: memref<1x64x1xf32, #tpu.memory_space<vmem>>) attributes {dimension_semantics = [#tpu.dimension_semantics<parallel>], iteration_bounds = array<i64: 2>, scalar_prefetch = 0 : i64, scratch_operands = 0 : i64, tpu.core_type = #tpu.core_type<tc>, window_params = [{transform_indices = @transform_0, window_bounds = array<i64: 1, 64, 144>}, {pipeline_mode = #tpu.pipeline_mode<synchronous>, transform_indices = @transform_1, window_bounds = array<i64: 144, 1>}, {pipeline_mode = #tpu.pipeline_mode<synchronous>, transform_indices = @transform_2, window_bounds = array<i64: 1, 1>}, {transform_indices = @transform_3, window_bounds = array<i64: 1, 64, 1>}]} {
    %c0 = arith.constant 0 : index
    %c0_0 = arith.constant 0 : index
    %c0_1 = arith.constant 0 : index
    %0 = vector.load %arg1[%c0, %c0_0, %c0_1] : memref<1x64x144xf32, #tpu.memory_space<vmem>>, vector<1x64x144xf32>
    %1 = vector.shape_cast %0 : vector<1x64x144xf32> to vector<64x144xf32>
    %c0_2 = arith.constant 0 : index
    %c0_3 = arith.constant 0 : index
    %2 = vector.load %arg2[%c0_2, %c0_3] : memref<144x1xf32, #tpu.memory_space<vmem>>, vector<144x1xf32>
    %cst = arith.constant dense<0.000000e+00> : vector<64x1xf32>
    %3 = tpu.matmul %1, %2, %cst {dimension_numbers = #tpu.dot_dimension_numbers<[1], [0], [0], [1], [0, 0, 1, 1], [], []>} : vector<64x144xf32>, vector<144x1xf32>, vector<64x1xf32> -> vector<64x1xf32>
    %c0_4 = arith.constant 0 : index
    %c0_5 = arith.constant 0 : index
    %4 = vector.load %arg3[%c0_4, %c0_5] : memref<1x1xf32, #tpu.memory_space<vmem>>, vector<1x1xf32>
    %5 = vector.broadcast %4 : vector<1x1xf32> to vector<64x1xf32>
    %6 = arith.addf %3, %5 : vector<64x1xf32>
    %cst_6 = arith.constant 5.000000e-01 : f32
    %7 = vector.broadcast %cst_6 : f32 to vector<64x1xf32>
    %8 = arith.mulf %7, %6 : vector<64x1xf32>
    %9 = math.tanh %8 : vector<64x1xf32>
    %cst_7 = arith.constant 1.000000e+00 : f32
    %10 = vector.broadcast %cst_7 : f32 to vector<64x1xf32>
    %11 = arith.addf %9, %10 : vector<64x1xf32>
    %cst_8 = arith.constant 5.000000e-01 : f32
    %12 = vector.broadcast %cst_8 : f32 to vector<64x1xf32>
    %13 = arith.mulf %12, %11 : vector<64x1xf32>
    %c0_9 = arith.constant 0 : index
    %c0_10 = arith.constant 0 : index
    %c0_11 = arith.constant 0 : index
    %14 = vector.load %arg4[%c0_9, %c0_10, %c0_11] : memref<1x64x1xf32, #tpu.memory_space<vmem>>, vector<1x64x1xf32>
    %15 = vector.shape_cast %14 : vector<1x64x1xf32> to vector<64x1xf32>
    %16 = vector.shape_cast %13 : vector<64x1xf32> to vector<1x64x1xf32>
    tpu.vector_store %arg4[%c0_9, %c0_10, %c0_11], %16 {strides = array<i32>} : memref<1x64x1xf32, #tpu.memory_space<vmem>>, vector<1x64x1xf32>,
    return
  }
  func.func @transform_0(%arg0: i32) -> (i32, i32, i32) {
    %c0_i32 = arith.constant 0 : i32
    %c0_i32_0 = arith.constant 0 : i32
    %c0_i32_1 = arith.constant 0 : i32
    return %arg0, %c0_i32, %c0_i32_0 : i32, i32, i32
  }
  func.func @transform_1(%arg0: i32) -> (i32, i32) {
    %c0_i32 = arith.constant 0 : i32
    %c0_i32_0 = arith.constant 0 : i32
    %c0_i32_1 = arith.constant 0 : i32
    return %c0_i32, %c0_i32_0 : i32, i32
  }
  func.func @transform_2(%arg0: i32) -> (i32, i32) {
    %c0_i32 = arith.constant 0 : i32
    %c0_i32_0 = arith.constant 0 : i32
    %c0_i32_1 = arith.constant 0 : i32
    return %c0_i32, %c0_i32_0 : i32, i32
  }
  func.func @transform_3(%arg0: i32) -> (i32, i32, i32) {
    %c0_i32 = arith.constant 0 : i32
    %c0_i32_0 = arith.constant 0 : i32
    %c0_i32_1 = arith.constant 0 : i32
    return %arg0, %c0_i32, %c0_i32_0 : i32, i32, i32
  }
}

</mosaic_0001>

<bundles_post_ra>
// kernel: _lambda_.6
= control target key start
LH: loop header
LB: loop body
LE: loop exit
PB: predicated region body
PF: predicated region fallthrough
CT: control target
= control target key end

     0   :  { %8 = vsyncpa [#allocation3], 0  ;;  %s748_s0 = inlined_call_operand.hbm [shape: f32[2,16,32], index: 0, kind: input, shape index: {}]   ;;  %s749_s1 = inlined_call_operand.vmem [shape: f32[32,8], index: 1, kind: input, shape index: {}]   ;;  %s750_s2 = inlined_call_operand.vmem [shape: f32[8,32], index: 2, kind: input, shape index: {}]   ;;  %s751_s3 = inlined_call_operand.vmem [shape: f32[2,16,32], index: 3, kind: output, shape index: {}]  }
   0x1   :  { %10 = vsyncpa [#allocation3 + $0x1], 0  ;;  %s620_s12 = smov 0   ;;  %s622_s13 = smov 0  }
   0x2   :  { %s624_s14 = smov 0   ;;  %s626_s15 = smov 0  }
   0x3 LB: > { %s639_s16 = sadd.s32 4294967295, %s592_s15   ;;  %s642_s17 = sadd.s32 1, %s592_s15   ;;  %s592_s15 = sphi %s626_s15, %s758_s15   ;;  %s588_s14 = sphi %s624_s14, %s757_s14   ;;  %s584_s13 = sphi %s622_s13, %s756_s13   ;;  %s580_s12 = sphi %s620_s12, %s755_s12  }
   0x4   : > { %s20_s18 = ssub.s32 %s592_s15, %s642_s17  ;;  %s23_s19 = sadd.s32 1, %s588_s14 }
   0x5   : > { %p21_p0 = scmp.eq.s32.totalorder %s20_s18, 0  ;;  %p30_p1 = scmp.ne.s32.totalorder %s588_s14, %s584_s13 }
   0x6   : > { %p31_p2 = scmp.eq.s32.totalorder %s592_s15, 0  ;;  %p36_p3 = scmp.ne.s32.totalorder %s584_s13, %s580_s12 }
   0x7   : > { %s652_s20 = scalar_select %p21_p0, %s588_s14, %s23_s19  }
   0x8   : > { %p32_p4 = por %p31_p2, %p30_p1  ;;  %p37_p5 = scmp.eq.s32.totalorder %s639_s16, 0 }
   0x9   : > { %p488_p6 = scmp.lt.s32.totalorder %s592_s15, 2  ;;  %s134_s22 = sand.u32 1, %s588_s14  }
   0xa   : > { %p656_p7 = por %p37_p5, %p36_p3  ;;  %s440_s23 = sshll.u32 %s134_s22, 4 }
   0xb   : > { %s451_s24 = sshll.u32 %s592_s15, 8  ;;  %s138_s28 = scalar_lea.vmem [#allocation2], %s440_s23 }
   0xc   : > { %s665_s27 = scalar_lea.hbm %s748_s0, %s451_s24  ;;  %s145_s29 = sshll.u32 %s138_s28, 4  ;;  %s667_s29 = int_to_ptr.vmem [resolvable:$true] %s145_s29 }
   0xd   : > { %p669_p8 = pnand %p488_p6, %p32_p4  ;;  %s674_s4 = scalar_lea.sflag [#allocation3], %s134_s22 }
   0xe   : > { %s528_s5 = scalar_lea.hbm %s665_s27, 256  ;;  %s533_s8 = scalar_lea.hbm %s748_s0, 512 }
   0xf   : > { %p529_p10 = scmp.ne.s32.totalorder %s665_s27, %s528_s5  ;;  %p530_p11 = pneg %p669_p8 }
  0x10   : > { %p534_p0 = scmp.lt.u32.totalorder %s665_s27, %s748_s0  ;;  %p535_p1 = scmp.lt.u32.totalorder %s533_s8, %s528_s5 }
  0x11   : > { %p531_p12 = pnand %p530_p11, %p529_p10  ;;  %p537_p3 = scmp.lt.u32.totalorder %s528_s5, %s665_s27 }
  0x12   : > { %p536_p2 = por %p535_p1, %p534_p0 }
  0x13   : > { %p532_p13 = pneg %p531_p12 }
  0x14   : > { %p538_p4 = por %p537_p3, %p536_p2 }
  0x16   : > { %p539_p5 = pnand %p538_p4, %p532_p13 }
  0x18   : > { %542 = shalt.err (!%p539_p5)
}
  0x19   : > { %s543_s11 = scalar_lea.vmem %s667_s29, 256  ;;  %s594_s12 = smov [#allocation2]  }
  0x1a   : > { %p544_p6 = scmp.ne.s32.totalorder %s667_s29, %s543_s11  ;;  %s548_s18 = sshll.u32 %s594_s12, 4  ;;  %s549_s18 = int_to_ptr.vmem [resolvable:$false] %s548_s18 }
  0x1b   : > { %s550_s19 = scalar_lea.vmem %s549_s18, 512  ;;  %p551_p9 = scmp.lt.s32.totalorder %s667_s29, %s549_s18 }
  0x1c   : > { %p546_p10 = pnand %p544_p6, %p530_p11  ;;  %p552_p0 = scmp.lt.s32.totalorder %s550_s19, %s543_s11 }
  0x1e   : > { %p547_p12 = pneg %p546_p10  ;;  %p553_p1 = por %p552_p0, %p551_p9 }
  0x20   : > { %p554_p2 = pnand %p553_p1, %p547_p12 }
  0x22   : > { %557 = shalt.err (!%p554_p2)
}
  0x23   : > { %s595_s22 = smov 128   ;;  %s596_s23 = smov 8  }
  0x24   : > { %487 = dma.hbm_to_vmem [thread:$0]  (!%p669_p8), %s665_s27, 256, %s667_s29, %s674_s4, %s595_s22, %s595_s22, %s596_s23  }
  0x25   : > { %p153_p11 = scmp.lt.s32.totalorder %s592_s15, 3  ;;  %p754_p13 = scmp.ge.s32.totalorder %s592_s15, 1 }
  0x27   : > { %p154_p3 = pnand %p754_p13, %p153_p11 }
  0x28   : > { %s159_s24 = sand.u32 (!%p154_p3), 1, %s584_s13  }
  0x29   : > { %157 = sbr.rel (%p154_p3) target bundleno = 517 (0x205), region = 32  ;;  %s444_s25 = sshll.u32 (!%p154_p3), %s159_s24, 4 }
  0x2a   : > { %s160_s26 = scalar_lea.sflag (!%p154_p3), [#allocation3], %s159_s24  ;;  %s163_s28 = scalar_lea.vmem (!%p154_p3), [#allocation2], %s444_s25 }
  0x30   : > { %575 = dma.done.wait (%p656_p7), %s160_s26, 256  }
  0x31   : > { %577 = vsyncadd (%p656_p7), %s160_s26, 4294967040  ;;  %v597_v0 = vmov 0.0|0.0   ;;  %vm598_vm0 = vmmov 0   ;;  %v599_v1 = vmov 0.0   ;;  %vm193_vm1 = vcmask 261120   ;;  %v205_v2 = vld [vmem:[%s749_s1] sm:$0xff] }
  0x32   : > { %476 = vmatprep.subr.bf16.mxu0 %v597_v0  ;;  %468 = vmatprep.mubr.msk.f32.mxu0 %vm598_vm0, %v599_v1  ;;  %v206_v3 = vld [vmem:[%s749_s1 + $0x8] sm:$0xff]  ;;  %v207_v4 = vld [vmem:[%s749_s1 + $0x10] sm:$0xff]  ;;  %v208_v6 = vld [vmem:[%s749_s1 + $0x18] sm:$0xff]  ;;  %vm284_vm2 = vcmask 64512   ;;  %v362_v27 = vlaneseq  ;;  %p186_p7 = scmp.lt.s32.totalorder %s639_s16, 1 }
  0x33   : > { %471 = vmatprep.subr.mxu1 %v599_v1  ;;  %473 = vmatprep.mubr.msk.f32.mxu1 %vm598_vm0, %v599_v1  ;;  %v477_v5 = vpack.c.bf16 %v206_v3, %v205_v2  ;;  %v191_v7 = vld [vmem:[%s163_s28] sm:$0xff]  ;;  %v192_v8 = vld [vmem:[%s163_s28 + $0x8] sm:$0xff]  ;;  %v480_v11 = vpack.c.bf16 %v208_v6, %v207_v4 }
  0x34   : > { %v194_v9 = vsel %vm193_vm1, %v191_v7, 0.0  ;;  %v195_v10 = vsel %vm193_vm1, %v192_v8, 0.0  ;;  %v283_v20 = vld [vmem:[%s750_s2] sm:$0xff]  ;;  %v363_v28 = vshrl.u32 %v362_v27, 7  ;;  %s760_s16 = smov (!%p186_p7, %s639_s16), 1 }
  0x35   : > { %478 = vmatpush3.bf16.msra.mxu0 %v477_v5  ;;  %v196_v12 = vadd.f32 %v195_v10, %v194_v9  ;;  %472 = vmatpush3.msra.mxu1 %v283_v20  ;;  %s452_s9 = sshll.u32 %s760_s16, 4 }
  0x36   : > { %479 = vmatprep.subr.bf16.mxu0 %v597_v0  ;;  %v364_v31 = vsub.s32 0, %v363_v28  ;;  %s190_s12 = scalar_lea.vmem %s751_s3, %s452_s9 }
  0x37   : > { %v197_v13 = vrot.slane %v196_v12, 4 }
  0x39   : > { %481 = vmatpush3.bf16.msra.mxu0 %v480_v11  ;;  %v198_v14 = vadd.f32 %v197_v13, %v196_v12 }
  0x3b   : > { %v199_v15 = vrot.slane %v198_v14, 2 }
  0x3d   : > { %v200_v16 = vadd.f32 %v199_v15, %v198_v14 }
  0x3f   : > { %v201_v17 = vrot.slane %v200_v16, 1 }
  0x41   : > { %v202_v18 = vadd.f32 %v201_v17, %v200_v16 }
  0x43   : > { %v204_v19 = vmul.f32 0.0625, %v202_v18 }
  0x45   : > { %469 = vmatmul.mubr.msk.f32.vlgmr.msra.gmra.mrb[0].mxu0 %vm193_vm1, %v204_v19 }
 0x118   : > { %v278_v21 = vpop.f32.mrb[0].mxu0 }
 0x119   : > { %v282_v22 = vmax.f32 %v278_v21, 0.0  ;;  %v470_v23 = vpop.f32.mrb[1].mxu0 }
 0x11b   : > { %474 = vmatmul.mubr.msk.f32.vlgmr.msra.gmra.mrb[0].mxu1 %vm284_vm2, %v282_v22 }
 0x1ee   : > { %v354_v24 = vpop.f32.mrb[0].mxu1 }
 0x1ef   : > { %v358_v25 = vmul.f32 0.5, %v354_v24  ;;  %v475_v26 = vpop.f32.mrb[1].mxu1 }
 0x1f1   : > { %526 = vtanh.f32 %v358_v25 }
 0x1fb   : > { %v527_v29 = vpop.eup %526 }
 0x1fc   : > { %v360_v30 = vadd.f32 1.0, %v527_v29 }
 0x1fe   : > { %v361_v32 = vmul.f32 0.5, %v360_v30 }
 0x200   : > { %v365_v33 = vrot.slane %v361_v32, %v364_v31 }
 0x202   : > { %v366_v34 = vmul.f32 %v365_v33, %v191_v7  ;;  %v367_v35 = vmul.f32 %v365_v33, %v192_v8 }
 0x204   : > { %368 = vst.msk [vmem:[%s190_s12] sm:$0xff] %vm193_vm1, %v366_v34  ;;  %369 = vst.msk [vmem:[%s190_s12 + $0x8] sm:$0xff] %vm193_vm1, %v367_v35 }
 0x205 PF: > { %p13_p8 = scmp.ge.s32.totalorder %s642_s17, 4   ;;  %s755_s12 = smov %s584_s13 }
 0x206   : > { %s756_s13 = smov %s588_s14  ;;  %s757_s14 = smov %s652_s20 }
 0x207   : > { %s758_s15 = smov %s642_s17  ;;  %15 = sbr.rel (!%p13_p8) target bundleno = 3 (0x3), region = 72 }
 0x20e   :  { %391 = vsyncpa [#allocation3], 1 }
 0x20f   :  { %393 = vsyncpa [#allocation3 + $0x1], 1 }

// kernel: _lambda_.8
= control target key start
LH: loop header
LB: loop body
LE: loop exit
PB: predicated region body
PF: predicated region fallthrough
CT: control target
= control target key end

     0   :  { %s370_s12 = smov 0   ;;  %s401_s0 = inlined_call_operand.vmem [shape: f32[2,64,24], index: 0, kind: input, shape index: {}]   ;;  %s402_s1 = inlined_call_operand.vmem [shape: f32[2,1,24], index: 1, kind: input, shape index: {}]   ;;  %s403_s2 = inlined_call_operand.vmem [shape: f32[2,1,24], index: 2, kind: input, shape index: {}]   ;;  %s404_s3 = inlined_call_operand.vmem [shape: f32[2,64,24], index: 3, kind: output, shape index: {}]  }
   0x1 LB: > { %s319_s13 = sadd.s32 4294967295, %s348_s12   ;;  %p323_p0 = scmp.ge.s32.totalorder %s348_s12, 1  ;;  %s348_s12 = sphi %s370_s12, %s13_s12  }
   0x2   : > { %p153_p1 = scmp.lt.s32.totalorder %s348_s12, 3 }
   0x4   : > { %p154_p2 = pnand %p323_p0, %p153_p1 }
   0x5   : > { %p183_p3 = scmp.lt.s32.totalorder (!%p154_p2), %s319_s13, 1  ;;  %vm237_vm0 = vcmask (!%p154_p2), 195584  }
   0x6   : > { %157 = sbr.rel (%p154_p2) target bundleno = 25 (0x19), region = 32 }
   0xd   : > { %s406_s13 = smov (!%p183_p3, %s319_s13), 1 }
   0xe   : > { %s332_s14 = sshll.u32 %s406_s13, 6  ;;  %s190_s17 = scalar_lea.vmem %s402_s1, %s406_s13 }
   0xf   : > { %s187_s20 = scalar_lea.vmem %s401_s0, %s332_s14  ;;  %s193_s23 = scalar_lea.vmem %s403_s2, %s406_s13  ;;  %v328_v0 = vld [vmem:[%s190_s17] ss:$0 sm:$0xff] }
  0x10   : > { %v199_v1 = vld [vmem:[%s187_s20] sm:$0xff]  ;;  %v200_v3 = vld [vmem:[%s187_s20 + $0x8] sm:$0xff]  ;;  %v201_v6 = vld [vmem:[%s187_s20 + $0x10] sm:$0xff]  ;;  %s198_s26 = scalar_lea.vmem %s404_s3, %s332_s14 }
  0x11   : > { %v329_v2 = vld [vmem:[%s193_s23] ss:$0 sm:$0xff]  ;;  %v214_v4 = vmul.f32 %v328_v0, %v199_v1  ;;  %v215_v5 = vmul.f32 %v328_v0, %v200_v3  ;;  %v202_v7 = vld [vmem:[%s187_s20 + $0x18] sm:$0xff]  ;;  %v216_v9 = vmul.f32 %v328_v0, %v201_v6  ;;  %v204_v12 = vld [vmem:[%s187_s20 + $0x28] sm:$0xff] }
  0x12   : > { %v203_v8 = vld [vmem:[%s187_s20 + $0x20] sm:$0xff]  ;;  %v217_v10 = vmul.f32 %v328_v0, %v202_v7  ;;  %v205_v13 = vld [vmem:[%s187_s20 + $0x30] sm:$0xff]  ;;  %v206_v14 = vld [vmem:[%s187_s20 + $0x38] sm:$0xff]  ;;  %v219_v17 = vmul.f32 %v328_v0, %v204_v12 }
  0x13   : > { %v218_v11 = vmul.f32 %v328_v0, %v203_v8  ;;  %v229_v15 = vadd.f32 %v329_v2, %v214_v4  ;;  %v230_v16 = vadd.f32 %v329_v2, %v215_v5  ;;  %v220_v18 = vmul.f32 %v328_v0, %v205_v13 }
  0x14   : > { %v231_v19 = vadd.f32 %v329_v2, %v216_v9  ;;  %v232_v20 = vadd.f32 %v329_v2, %v217_v10  ;;  %v221_v22 = vmul.f32 %v328_v0, %v206_v14  ;;  %v234_v23 = vadd.f32 %v329_v2, %v219_v17 }
  0x15   : > { %v233_v21 = vadd.f32 %v329_v2, %v218_v11  ;;  %238 = vst.msk [vmem:[%s198_s26] sm:$0xff] %vm237_vm0, %v229_v15  ;;  %239 = vst.msk [vmem:[%s198_s26 + $0x8] sm:$0xff] %vm237_vm0, %v230_v16  ;;  %v235_v24 = vadd.f32 %v329_v2, %v220_v18 }
  0x16   : > { %240 = vst.msk [vmem:[%s198_s26 + $0x10] sm:$0xff] %vm237_vm0, %v231_v19  ;;  %241 = vst.msk [vmem:[%s198_s26 + $0x18] sm:$0xff] %vm237_vm0, %v232_v20  ;;  %v236_v25 = vadd.f32 %v329_v2, %v221_v22 }
  0x17   : > { %242 = vst.msk [vmem:[%s198_s26 + $0x20] sm:$0xff] %vm237_vm0, %v233_v21  ;;  %243 = vst.msk [vmem:[%s198_s26 + $0x28] sm:$0xff] %vm237_vm0, %v234_v23 }
  0x18   : > { %244 = vst.msk [vmem:[%s198_s26 + $0x30] sm:$0xff] %vm237_vm0, %v235_v24  ;;  %245 = vst.msk [vmem:[%s198_s26 + $0x38] sm:$0xff] %vm237_vm0, %v236_v25 }
  0x19 PF: > { %s13_s12 = sadd.s32 1, %s348_s12  }
  0x1a   : > { %p10_p4 = scmp.ge.s32.totalorder %s13_s12, 4  }
  0x1c   :  { %12 = sbr.rel (!%p10_p4) target bundleno = 1 (0x1), region = 68 }

// kernel: _lambda_.10
= control target key start
LH: loop header
LB: loop body
LE: loop exit
PB: predicated region body
PF: predicated region fallthrough
CT: control target
= control target key end

     0   :  { %s466_s12 = smov 0   ;;  %s657_s0 = inlined_call_operand.vmem [shape: f32[2,256,16], index: 0, kind: input, shape index: {}]   ;;  %s658_s1 = inlined_call_operand.vmem [shape: f32[2,1,16], index: 1, kind: input, shape index: {}]   ;;  %s659_s2 = inlined_call_operand.vmem [shape: f32[2,1,16], index: 2, kind: input, shape index: {}]   ;;  %s660_s3 = inlined_call_operand.vmem [shape: f32[2,256,16], index: 3, kind: output, shape index: {}]  }
   0x1 LB: > { %s415_s13 = sadd.s32 4294967295, %s444_s12   ;;  %p419_p0 = scmp.ge.s32.totalorder %s444_s12, 1  ;;  %s444_s12 = sphi %s466_s12, %s13_s12  }
   0x2   : > { %p153_p1 = scmp.lt.s32.totalorder %s444_s12, 3 }
   0x4   : > { %p154_p2 = pnand %p419_p0, %p153_p1 }
   0x5   : > { %p183_p3 = scmp.lt.s32.totalorder (!%p154_p2), %s415_s13, 1  ;;  %vm309_vm0 = vcmask (!%p154_p2), 130048  }
   0x6   : > { %157 = sbr.rel (%p154_p2) target bundleno = 40 (0x28), region = 32 }
   0xd   : > { %s662_s13 = smov (!%p183_p3, %s415_s13), 1 }
   0xe   : > { %s428_s14 = sshll.u32 %s662_s13, 8  ;;  %s190_s17 = scalar_lea.vmem %s658_s1, %s662_s13 }
   0xf   : > { %s480_s20 = scalar_lea.vmem %s657_s0, %s428_s14  ;;  %s193_s23 = scalar_lea.vmem %s659_s2, %s662_s13  ;;  %v485_v0 = vld [vmem:[%s190_s17] ss:$0 sm:$0xff] }
  0x10   : > { %v199_v1 = vld [vmem:[%s480_s20] sm:$0xff]  ;;  %v200_v3 = vld [vmem:[%s480_s20 + $0x8] sm:$0xff]  ;;  %v201_v6 = vld [vmem:[%s480_s20 + $0x10] sm:$0xff]  ;;  %s499_s26 = scalar_lea.vmem %s660_s3, %s428_s14 }
  0x11   : > { %v488_v2 = vld [vmem:[%s193_s23] ss:$0 sm:$0xff]  ;;  %v238_v4 = vmul.f32 %v485_v0, %v199_v1  ;;  %v239_v5 = vmul.f32 %v485_v0, %v200_v3  ;;  %v202_v7 = vld [vmem:[%s480_s20 + $0x18] sm:$0xff]  ;;  %v240_v9 = vmul.f32 %v485_v0, %v201_v6  ;;  %v204_v12 = vld [vmem:[%s480_s20 + $0x28] sm:$0xff] }
  0x12   : > { %v203_v8 = vld [vmem:[%s480_s20 + $0x20] sm:$0xff]  ;;  %v241_v10 = vmul.f32 %v485_v0, %v202_v7  ;;  %v205_v13 = vld [vmem:[%s480_s20 + $0x30] sm:$0xff]  ;;  %v206_v14 = vld [vmem:[%s480_s20 + $0x38] sm:$0xff]  ;;  %v243_v17 = vmul.f32 %v485_v0, %v204_v12 }
  0x13   : > { %v242_v11 = vmul.f32 %v485_v0, %v203_v8  ;;  %v277_v15 = vadd.f32 %v488_v2, %v238_v4  ;;  %v278_v16 = vadd.f32 %v488_v2, %v239_v5  ;;  %v244_v18 = vmul.f32 %v485_v0, %v205_v13  ;;  %v207_v19 = vld [vmem:[%s480_s20 + $0x40] sm:$0xff]  ;;  %v208_v20 = vld [vmem:[%s480_s20 + $0x48] sm:$0xff]  ;;  %v209_v21 = vld [vmem:[%s480_s20 + $0x50] sm:$0xff] }
  0x14   : > { %v279_v22 = vadd.f32 %v488_v2, %v240_v9  ;;  %v280_v23 = vadd.f32 %v488_v2, %v241_v10  ;;  %v245_v25 = vmul.f32 %v485_v0, %v206_v14  ;;  %v210_v26 = vld [vmem:[%s480_s20 + $0x58] sm:$0xff]  ;;  %v211_v27 = vld [vmem:[%s480_s20 + $0x60] sm:$0xff]  ;;  %v212_v28 = vld [vmem:[%s480_s20 + $0x68] sm:$0xff]  ;;  %v282_v29 = vadd.f32 %v488_v2, %v243_v17 }
  0x15   : > { %v281_v24 = vadd.f32 %v488_v2, %v242_v11  ;;  %310 = vst.msk [vmem:[%s499_s26] sm:$0xff] %vm309_vm0, %v277_v15  ;;  %311 = vst.msk [vmem:[%s499_s26 + $0x8] sm:$0xff] %vm309_vm0, %v278_v16  ;;  %v283_v30 = vadd.f32 %v488_v2, %v244_v18  ;;  %v246_v31 = vmul.f32 %v485_v0, %v207_v19  ;;  %v213_v33 = vld [vmem:[%s480_s20 + $0x70] sm:$0xff]  ;;  %v214_v34 = vld [vmem:[%s480_s20 + $0x78] sm:$0xff] }
  0x16   : > { %v247_v32 = vmul.f32 %v485_v0, %v208_v20  ;;  %312 = vst.msk [vmem:[%s499_s26 + $0x10] sm:$0xff] %vm309_vm0, %v279_v22  ;;  %313 = vst.msk [vmem:[%s499_s26 + $0x18] sm:$0xff] %vm309_vm0, %v280_v23  ;;  %v284_v35 = vadd.f32 %v488_v2, %v245_v25  ;;  %v248_v36 = vmul.f32 %v485_v0, %v209_v21  ;;  %v215_v39 = vld [vmem:[%s480_s20 + $0x80] sm:$0xff]  ;;  %v216_v40 = vld [vmem:[%s480_s20 + $0x88] sm:$0xff] }
  0x17   : > { %314 = vst.msk [vmem:[%s499_s26 + $0x20] sm:$0xff] %vm309_vm0, %v281_v24  ;;  %v249_v37 = vmul.f32 %v485_v0, %v210_v26  ;;  %v250_v38 = vmul.f32 %v485_v0, %v211_v27  ;;  %315 = vst.msk [vmem:[%s499_s26 + $0x28] sm:$0xff] %vm309_vm0, %v282_v29  ;;  %v285_v41 = vadd.f32 %v488_v2, %v246_v31  ;;  %v217_v45 = vld [vmem:[%s480_s20 + $0x90] sm:$0xff]  ;;  %v218_v46 = vld [vmem:[%s480_s20 + $0x98] sm:$0xff] }
  0x18   : > { %316 = vst.msk [vmem:[%s499_s26 + $0x30] sm:$0xff] %vm309_vm0, %v283_v30  ;;  %v286_v42 = vadd.f32 %v488_v2, %v247_v32  ;;  %v251_v43 = vmul.f32 %v485_v0, %v212_v28  ;;  %v252_v44 = vmul.f32 %v485_v0, %v213_v33  ;;  %v219_v47 = vld [vmem:[%s480_s20 + $0xa0] sm:$0xff]  ;;  %317 = vst.msk [vmem:[%s499_s26 + $0x38] sm:$0xff] %vm309_vm0, %v284_v35  ;;  %v220_v52 = vld [vmem:[%s480_s20 + $0xa8] sm:$0xff] }
  0x19   : > { %v287_v48 = vadd.f32 %v488_v2, %v248_v36  ;;  %v288_v49 = vadd.f32 %v488_v2, %v249_v37  ;;  %v289_v50 = vadd.f32 %v488_v2, %v250_v38  ;;  %v253_v51 = vmul.f32 %v485_v0, %v214_v34  ;;  %v221_v53 = vld [vmem:[%s480_s20 + $0xb0] sm:$0xff]  ;;  %318 = vst.msk [vmem:[%s499_s26 + $0x40] sm:$0xff] %vm309_vm0, %v285_v41  ;;  %v222_v58 = vld [vmem:[%s480_s20 + $0xb8] sm:$0xff]  ;;  %v223_v63 = vld [vmem:[%s480_s20 + $0xc0] sm:$0xff] }
  0x1a   : > { %319 = vst.msk [vmem:[%s499_s26 + $0x48] sm:$0xff] %vm309_vm0, %v286_v42  ;;  %v290_v54 = vadd.f32 %v488_v2, %v251_v43  ;;  %v291_v55 = vadd.f32 %v488_v2, %v252_v44  ;;  %v254_v56 = vmul.f32 %v485_v0, %v215_v39  ;;  %v255_v57 = vmul.f32 %v485_v0, %v216_v40  ;;  %v224_v1 = vld [vmem:[%s480_s20 + $0xc8] sm:$0xff]  ;;  %v225_v7 = vld [vmem:[%s480_s20 + $0xd0] sm:$0xff]  ;;  %v226_v8 = vld [vmem:[%s480_s20 + $0xd8] sm:$0xff] }
  0x1b   : > { %320 = vst.msk [vmem:[%s499_s26 + $0x50] sm:$0xff] %vm309_vm0, %v287_v48  ;;  %321 = vst.msk [vmem:[%s499_s26 + $0x58] sm:$0xff] %vm309_vm0, %v288_v49  ;;  %v292_v59 = vadd.f32 %v488_v2, %v253_v51  ;;  %v256_v60 = vmul.f32 %v485_v0, %v217_v45  ;;  %v257_v61 = vmul.f32 %v485_v0, %v218_v46  ;;  %v227_v9 = vld [vmem:[%s480_s20 + $0xe0] sm:$0xff]  ;;  %v228_v14 = vld [vmem:[%s480_s20 + $0xe8] sm:$0xff] }
  0x1c   : > { %322 = vst.msk [vmem:[%s499_s26 + $0x60] sm:$0xff] %vm309_vm0, %v289_v50  ;;  %v258_v62 = vmul.f32 %v485_v0, %v219_v47  ;;  %323 = vst.msk [vmem:[%s499_s26 + $0x68] sm:$0xff] %vm309_vm0, %v290_v54  ;;  %v293_v3 = vadd.f32 %v488_v2, %v254_v56  ;;  %v294_v4 = vadd.f32 %v488_v2, %v255_v57  ;;  %v229_v15 = vld [vmem:[%s480_s20 + $0xf0] sm:$0xff]  ;;  %v230_v20 = vld [vmem:[%s480_s20 + $0xf8] sm:$0xff] }
  0x1d   : > { %324 = vst.msk [vmem:[%s499_s26 + $0x70] sm:$0xff] %vm309_vm0, %v291_v55  ;;  %v259_v5 = vmul.f32 %v485_v0, %v220_v52  ;;  %v260_v6 = vmul.f32 %v485_v0, %v221_v53  ;;  %325 = vst.msk [vmem:[%s499_s26 + $0x78] sm:$0xff] %vm309_vm0, %v292_v59  ;;  %v295_v10 = vadd.f32 %v488_v2, %v256_v60 }
  0x1e   : > { %v296_v11 = vadd.f32 %v488_v2, %v257_v61  ;;  %v297_v12 = vadd.f32 %v488_v2, %v258_v62  ;;  %v261_v13 = vmul.f32 %v485_v0, %v222_v58  ;;  %326 = vst.msk [vmem:[%s499_s26 + $0x80] sm:$0xff] %vm309_vm0, %v293_v3  ;;  %327 = vst.msk [vmem:[%s499_s26 + $0x88] sm:$0xff] %vm309_vm0, %v294_v4 }
  0x1f   : > { %v298_v16 = vadd.f32 %v488_v2, %v259_v5  ;;  %v299_v17 = vadd.f32 %v488_v2, %v260_v6  ;;  %v262_v18 = vmul.f32 %v485_v0, %v223_v63  ;;  %v263_v19 = vmul.f32 %v485_v0, %v224_v1  ;;  %328 = vst.msk [vmem:[%s499_s26 + $0x90] sm:$0xff] %vm309_vm0, %v295_v10 }
  0x20   : > { %329 = vst.msk [vmem:[%s499_s26 + $0x98] sm:$0xff] %vm309_vm0, %v296_v11  ;;  %330 = vst.msk [vmem:[%s499_s26 + $0xa0] sm:$0xff] %vm309_vm0, %v297_v12  ;;  %v300_v21 = vadd.f32 %v488_v2, %v261_v13  ;;  %v264_v22 = vmul.f32 %v485_v0, %v225_v7  ;;  %v265_v23 = vmul.f32 %v485_v0, %v226_v8 }
  0x21   : > { %v266_v24 = vmul.f32 %v485_v0, %v227_v9  ;;  %331 = vst.msk [vmem:[%s499_s26 + $0xa8] sm:$0xff] %vm309_vm0, %v298_v16  ;;  %332 = vst.msk [vmem:[%s499_s26 + $0xb0] sm:$0xff] %vm309_vm0, %v299_v17  ;;  %v301_v25 = vadd.f32 %v488_v2, %v262_v18  ;;  %v302_v26 = vadd.f32 %v488_v2, %v263_v19 }
  0x22   : > { %v267_v27 = vmul.f32 %v485_v0, %v228_v14  ;;  %v268_v28 = vmul.f32 %v485_v0, %v229_v15  ;;  %333 = vst.msk [vmem:[%s499_s26 + $0xb8] sm:$0xff] %vm309_vm0, %v300_v21  ;;  %v303_v29 = vadd.f32 %v488_v2, %v264_v22  ;;  %v304_v30 = vadd.f32 %v488_v2, %v265_v23 }
  0x23   : > { %v305_v31 = vadd.f32 %v488_v2, %v266_v24  ;;  %v269_v32 = vmul.f32 %v485_v0, %v230_v20  ;;  %334 = vst.msk [vmem:[%s499_s26 + $0xc0] sm:$0xff] %vm309_vm0, %v301_v25  ;;  %335 = vst.msk [vmem:[%s499_s26 + $0xc8] sm:$0xff] %vm309_vm0, %v302_v26 }
  0x24   : > { %v306_v33 = vadd.f32 %v488_v2, %v267_v27  ;;  %v307_v34 = vadd.f32 %v488_v2, %v268_v28  ;;  %336 = vst.msk [vmem:[%s499_s26 + $0xd0] sm:$0xff] %vm309_vm0, %v303_v29  ;;  %337 = vst.msk [vmem:[%s499_s26 + $0xd8] sm:$0xff] %vm309_vm0, %v304_v30 }
  0x25   : > { %338 = vst.msk [vmem:[%s499_s26 + $0xe0] sm:$0xff] %vm309_vm0, %v305_v31  ;;  %v308_v35 = vadd.f32 %v488_v2, %v269_v32 }
  0x26   : > { %339 = vst.msk [vmem:[%s499_s26 + $0xe8] sm:$0xff] %vm309_vm0, %v306_v33  ;;  %340 = vst.msk [vmem:[%s499_s26 + $0xf0] sm:$0xff] %vm309_vm0, %v307_v34 }
  0x27   : > { %341 = vst.msk [vmem:[%s499_s26 + $0xf8] sm:$0xff] %vm309_vm0, %v308_v35 }
  0x28 PF: > { %s13_s12 = sadd.s32 1, %s444_s12  }
  0x29   : > { %p10_p4 = scmp.ge.s32.totalorder %s13_s12, 4  }
  0x2b   :  { %12 = sbr.rel (!%p10_p4) target bundleno = 1 (0x1), region = 68 }

// kernel: _lambda_.7
= control target key start
LH: loop header
LB: loop body
LE: loop exit
PB: predicated region body
PF: predicated region fallthrough
CT: control target
= control target key end

     0   :  { %s5770_s12 = smov 0   ;;  %s6693_s0 = inlined_call_operand.vmem [shape: f32[2,12,12,32], index: 0, kind: input, shape index: {}]   ;;  %s6694_s1 = inlined_call_operand.vmem [shape: f32[25,32,24], index: 1, kind: input, shape index: {}]   ;;  %s6695_s2 = inlined_call_operand.vmem [shape: f32[2,64,24], index: 2, kind: output, shape index: {0}]   ;;  %s6696_s3 = inlined_call_operand.vmem [shape: f32[2,2,24], index: 3, kind: output, shape index: {1}]  }
   0x1 LB: > { %s4069_s13 = sadd.s32 4294967295, %s5748_s12   ;;  %p4073_p0 = scmp.ge.s32.totalorder %s5748_s12, 1  ;;  %s5748_s12 = sphi %s5770_s12, %s14_s12  }
   0x2   : > { %p140_p1 = scmp.lt.s32.totalorder %s5748_s12, 3 }
   0x4   : > { %p141_p2 = pnand %p4073_p0, %p140_p1 }
   0x5   : > { %v4078_v0 = vld [vmem:[%s6694_s1 + $0x20] sm:$0xff] (!%p141_p2)  ;;  %v4079_v1 = vld [vmem:[%s6694_s1 + $0x28] sm:$0xff] (!%p141_p2)  ;;  %p168_p3 = scmp.lt.s32.totalorder (!%p141_p2), %s4069_s13, 1  ;;  %v4080_v5 = vld [vmem:[%s6694_s1 + $0x30] sm:$0xff] (!%p141_p2)  ;;  %vm207_vm0 = vcmask (!%p141_p2), 261120   ;;  %vm3920_vm1 = vcmask (!%p141_p2), 195584  }
   0x6   : > { %144 = sbr.rel (%p141_p2) target bundleno = 452 (0x1c4), region = 28  ;;  %v4282_v2 = vld [vmem:[%s6694_s1 + $0x180] sm:$0xff] (!%p141_p2)  ;;  %v5337_v3 = vpack.c.bf16 (!%p141_p2), %v4079_v1, %v4078_v0  ;;  %v4283_v4 = vld [vmem:[%s6694_s1 + $0x188] sm:$0xff] (!%p141_p2)  ;;  %v4081_v6 = vld [vmem:[%s6694_s1 + $0x38] sm:$0xff] (!%p141_p2)  ;;  %vm3979_vm2 = vcmask (!%p141_p2), 1040384   ;;  %vm3981_vm3 = vcmask (!%p141_p2), 189440  }
   0x7   : > { %v5796_v7 = vpack.c.bf16 (!%p141_p2), %v4283_v4, %v4282_v2  ;;  %v5341_v8 = vpack.c.bf16 (!%p141_p2), %v4081_v6, %v4080_v5  ;;  %v4284_v9 = vld [vmem:[%s6694_s1 + $0x190] sm:$0xff] (!%p141_p2)  ;;  %v4285_v10 = vld [vmem:[%s6694_s1 + $0x198] sm:$0xff] (!%p141_p2)  ;;  %v190_v11 = vld [vmem:[%s6694_s1] sm:$0xff] (!%p141_p2) }
   0x8   : > { %5338 = vmatprep.subr.bf16.mxu1 (!%p141_p2), %v5337_v3  ;;  %v5809_v12 = vpack.c.bf16 (!%p141_p2), %v4285_v10, %v4284_v9  ;;  %v191_v13 = vld [vmem:[%s6694_s1 + $0x8] sm:$0xff] (!%p141_p2)  ;;  %v4302_v14 = vld [vmem:[%s6694_s1 + $0x1a0] sm:$0xff] (!%p141_p2)  ;;  %v4304_v18 = vld [vmem:[%s6694_s1 + $0x1b0] sm:$0xff] (!%p141_p2) }
   0x9   : > { %v4303_v15 = vld [vmem:[%s6694_s1 + $0x1a8] sm:$0xff] (!%p141_p2)  ;;  %5434 = vmatprep.subr.bf16.mxu0 (!%p141_p2), %v5796_v7  ;;  %5340 = vmatpush3.bf16.msra.mxu1 (!%p141_p2), %v5337_v3  ;;  %v5345_v16 = vpack.c.bf16 (!%p141_p2), %v191_v13, %v190_v11  ;;  %v4305_v21 = vld [vmem:[%s6694_s1 + $0x1b8] sm:$0xff] (!%p141_p2)  ;;  %v192_v23 = vld [vmem:[%s6694_s1 + $0x10] sm:$0xff] (!%p141_p2) }
   0xa   : > { %5436 = vmatpush3.bf16.msra.mxu0 (!%p141_p2), %v5796_v7  ;;  %5342 = vmatprep.subr.bf16.mxu1 (!%p141_p2), %v5341_v8  ;;  %v5441_v17 = vpack.c.bf16 (!%p141_p2), %v4303_v15, %v4302_v14  ;;  %v193_v24 = vld [vmem:[%s6694_s1 + $0x18] sm:$0xff] (!%p141_p2)  ;;  %v5445_v27 = vpack.c.bf16 (!%p141_p2), %v4305_v21, %v4304_v18  ;;  %v4322_v30 = vld [vmem:[%s6694_s1 + $0x1c0] sm:$0xff] (!%p141_p2)  ;;  %v4323_v31 = vld [vmem:[%s6694_s1 + $0x1c8] sm:$0xff] (!%p141_p2) }
   0xb   : > { %5438 = vmatprep.subr.bf16.mxu0 (!%p141_p2), %v5809_v12  ;;  %v5349_v29 = vpack.c.bf16 (!%p141_p2), %v193_v24, %v192_v23  ;;  %v4098_v33 = vld [vmem:[%s6694_s1 + $0x40] sm:$0xff] (!%p141_p2)  ;;  %v4099_v34 = vld [vmem:[%s6694_s1 + $0x48] sm:$0xff] (!%p141_p2)  ;;  %v5449_v38 = vpack.c.bf16 (!%p141_p2), %v4323_v31, %v4322_v30  ;;  %v4324_v40 = vld [vmem:[%s6694_s1 + $0x1d0] sm:$0xff] (!%p141_p2) }
   0xc   : > { %v5353_v39 = vpack.c.bf16 (!%p141_p2), %v4099_v34, %v4098_v33  ;;  %v4325_v41 = vld [vmem:[%s6694_s1 + $0x1d8] sm:$0xff] (!%p141_p2)  ;;  %v4342_v47 = vld [vmem:[%s6694_s1 + $0x1e0] sm:$0xff] (!%p141_p2)  ;;  %v4343_v48 = vld [vmem:[%s6694_s1 + $0x1e8] sm:$0xff] (!%p141_p2) }
   0xd   : > { %s6698_s13 = smov (!%p168_p3, %s4069_s13), 1  ;;  %5344 = vmatpush3.bf16.msra.mxu1 %v5341_v8  ;;  %v5453_v46 = vpack.c.bf16 %v4325_v41, %v4324_v40  ;;  %v5457_v53 = vpack.c.bf16 %v4343_v48, %v4342_v47  ;;  %v4100_v54 = vld [vmem:[%s6694_s1 + $0x50] sm:$0xff]  ;;  %v4101_v55 = vld [vmem:[%s6694_s1 + $0x58] sm:$0xff]  ;;  %v4110_v61 = vld [vmem:[%s6694_s1 + $0x60] sm:$0xff] }
   0xe   : > { %s5733_s11 = smul.u32 192, %s6698_s13  ;;  %5440 = vmatpush3.bf16.msra.mxu0 %v5809_v12  ;;  %5346 = vmatprep.subr.bf16.mxu1 %v5345_v16  ;;  %v5357_v60 = vpack.c.bf16 %v4101_v55, %v4100_v54  ;;  %v4111_v62 = vld [vmem:[%s6694_s1 + $0x68] sm:$0xff]  ;;  %v4344_v4 = vld [vmem:[%s6694_s1 + $0x1f0] sm:$0xff]  ;;  %v4345_v5 = vld [vmem:[%s6694_s1 + $0x1f8] sm:$0xff]  ;;  %s4536_s25 = sshll.u32 %s6698_s13, 6 }
   0xf   : > { %5442 = vmatprep.subr.bf16.mxu0 %v5441_v17  ;;  %v5361_v3 = vpack.c.bf16 %v4111_v62, %v4110_v61  ;;  %v5461_v11 = vpack.c.bf16 %v4345_v5, %v4344_v4  ;;  %v4362_v13 = vld [vmem:[%s6694_s1 + $0x200] sm:$0xff]  ;;  %v4363_v14 = vld [vmem:[%s6694_s1 + $0x208] sm:$0xff]  ;;  %v4112_v21 = vld [vmem:[%s6694_s1 + $0x70] sm:$0xff]  ;;  %s6652_s28 = scalar_lea.vmem %s6695_s2, %s4536_s25 }
  0x10   : > { %s5827_s16 = scalar_lea.vmem %s6693_s0, %s5733_s11  ;;  %v4113_v23 = vld [vmem:[%s6694_s1 + $0x78] sm:$0xff]  ;;  %v4122_v31 = vld [vmem:[%s6694_s1 + $0x80] sm:$0xff]  ;;  %v4123_v33 = vld [vmem:[%s6694_s1 + $0x88] sm:$0xff] }
  0x11   : > { %v194_v19 = vld [vmem:[%s5827_s16 + $0x1] sm:$0xff]  ;;  %v5841_v22 = vld [vmem:[%s5827_s16 + $0x11] sm:$0xff]  ;;  %v5365_v30 = vpack.c.bf16 %v4113_v23, %v4112_v21 }
  0x12   : > { %v5834_v20 = vld [vmem:[%s5827_s16 + $0x22] sm:$0xff]  ;;  %4845 = vmatprep.mubr.msk.f32.mxu1 %vm207_vm0, %v194_v19  ;;  %v5853_v25 = vld [vmem:[%s5827_s16 + $0x32] sm:$0xff]  ;;  %v5465_v19 = vpack.c.bf16 %v4363_v14, %v4362_v13 }
  0x13   : > { %5085 = vmatprep.mubr.msk.f32.mxu0 %vm207_vm0, %v5834_v20  ;;  %v5856_v26 = vld [vmem:[%s5827_s16 + $0x21] sm:$0xff]  ;;  %4846 = vmatmul.mubr.msk.f32.vlgmr.msra.gmra.mrb[0].mxu1 %vm207_vm0, %v5841_v22  ;;  %v5872_v32 = vld [vmem:[%s5827_s16 + $0x31] sm:$0xff] }
  0x14   : > { %v5861_v28 = vld [vmem:[%s5827_s16 + $0x42] sm:$0xff]  ;;  %5086 = vmatmul.mubr.msk.f32.vlgmr.msra.gmra.mrb[0].mxu0 %vm207_vm0, %v5853_v25  ;;  %5348 = vmatpush3.bf16.msra.mxu1 %v5345_v16  ;;  %v5883_v35 = vld [vmem:[%s5827_s16 + $0x52] sm:$0xff] }
  0x15   : > { %5444 = vmatpush3.bf16.msra.mxu0 %v5441_v17  ;;  %4848 = vmatprep.mubr.msk.f32.mxu1 %vm207_vm0, %v5856_v26  ;;  %v5886_v36 = vld [vmem:[%s5827_s16 + $0x41] sm:$0xff]  ;;  %v5906_v42 = vld [vmem:[%s5827_s16 + $0x51] sm:$0xff] }
  0x16   : > { %5088 = vmatprep.mubr.msk.f32.mxu0 %vm207_vm0, %v5861_v28  ;;  %5446 = vmatprep.subr.bf16.mxu0 %v5445_v27  ;;  %v5891_v37 = vld [vmem:[%s5827_s16 + $0x23] sm:$0xff]  ;;  %v5911_v43 = vld [vmem:[%s5827_s16 + $0x33] sm:$0xff] }
  0x17   : > { %4849 = vmatmul.mubr.msk.f32.gmra.mrb[2].mxu1 %vm207_vm0, %v5872_v32  ;;  %5350 = vmatprep.subr.bf16.mxu1 %v5349_v29  ;;  %v5914_v44 = vld [vmem:[%s5827_s16 + $0x61] sm:$0xff]  ;;  %v5932_v49 = vld [vmem:[%s5827_s16 + $0x71] sm:$0xff] }
  0x18   : > { %5089 = vmatmul.mubr.msk.f32.gmra.mrb[2].mxu0 %vm207_vm0, %v5883_v35  ;;  %4851 = vmatprep.mubr.msk.f32.mxu1 %vm207_vm0, %v5886_v36  ;;  %v5917_v45 = vld [vmem:[%s5827_s16 + $0x43] sm:$0xff]  ;;  %v5937_v50 = vld [vmem:[%s5827_s16 + $0x53] sm:$0xff] }
  0x19   : > { %5448 = vmatpush3.bf16.msra.mxu0 %v5445_v27  ;;  %5105 = vmatprep.mubr.msk.f32.mxu0 %vm207_vm0, %v5891_v37  ;;  %v182_v51 = vld [vmem:[%s5827_s16] sm:$0xff]  ;;  %v5955_v56 = vld [vmem:[%s5827_s16 + $0x10] sm:$0xff]  ;;  %v4365_v40 = vld [vmem:[%s6694_s1 + $0x218] sm:$0xff] }
  0x1a   : > { %5450 = vmatprep.subr.bf16.mxu0 %v5449_v38  ;;  %5352 = vmatpush3.bf16.msra.mxu1 %v5349_v29  ;;  %v5941_v52 = vld [vmem:[%s5827_s16 + $0x63] sm:$0xff]  ;;  %v5960_v57 = vld [vmem:[%s5827_s16 + $0x73] sm:$0xff] }
  0x1b   : > { %4852 = vmatmul.mubr.msk.f32.gmra.mrb[4].mxu1 %vm207_vm0, %v5906_v42  ;;  %5354 = vmatprep.subr.bf16.mxu1 %v5353_v39  ;;  %v5963_v58 = vld [vmem:[%s5827_s16 + $0x20] sm:$0xff]  ;;  %v5979_v63 = vld [vmem:[%s5827_s16 + $0x30] sm:$0xff]  ;;  %v4383_v48 = vld [vmem:[%s6694_s1 + $0x228] sm:$0xff] }
  0x1c   : > { %5106 = vmatmul.mubr.msk.f32.vlgmr.msra.gmra.mrb[0].mxu0 %vm207_vm0, %v5911_v43  ;;  %4854 = vmatprep.mubr.msk.f32.mxu1 %vm207_vm0, %v5914_v44  ;;  %v5966_v59 = vld [vmem:[%s5827_s16 + $0x83] sm:$0xff]  ;;  %v5986_v0 = vld [vmem:[%s5827_s16 + $0x93] sm:$0xff] }
  0x1d   : > { %5452 = vmatpush3.bf16.msra.mxu0 %v5449_v38  ;;  %5108 = vmatprep.mubr.msk.f32.mxu0 %vm207_vm0, %v5917_v45  ;;  %v5989_v1 = vld [vmem:[%s5827_s16 + $0x40] sm:$0xff]  ;;  %v6007_v6 = vld [vmem:[%s5827_s16 + $0x50] sm:$0xff]  ;;  %v5369_v38 = vpack.c.bf16 %v4123_v33, %v4122_v31 }
  0x1e   : > { %5454 = vmatprep.subr.bf16.mxu0 %v5453_v46  ;;  %v5992_v2 = vld [vmem:[%s5827_s16 + $0x24] sm:$0xff]  ;;  %v6012_v8 = vld [vmem:[%s5827_s16 + $0x34] sm:$0xff] }
  0x1f   : > { %4855 = vmatmul.mubr.msk.f32.gmra.mrb[6].mxu1 %vm207_vm0, %v5932_v49  ;;  %v6015_v9 = vld [vmem:[%s5827_s16 + $0x60] sm:$0xff]  ;;  %v6033_v15 = vld [vmem:[%s5827_s16 + $0x70] sm:$0xff] }
  0x20   : > { %5109 = vmatmul.mubr.msk.f32.gmra.mrb[2].mxu0 %vm207_vm0, %v5937_v50  ;;  %4865 = vmatprep.mubr.msk.f32.mxu1 %vm207_vm0, %v182_v51  ;;  %v6018_v10 = vld [vmem:[%s5827_s16 + $0x44] sm:$0xff]  ;;  %v6038_v16 = vld [vmem:[%s5827_s16 + $0x54] sm:$0xff] }
  0x21   : > { %5111 = vmatprep.mubr.msk.f32.mxu0 %vm207_vm0, %v5941_v52  ;;  %5456 = vmatpush3.bf16.msra.mxu0 %v5453_v46  ;;  %v466_v17 = vld [vmem:[%s5827_s16 + $0x2] sm:$0xff]  ;;  %v6056_v24 = vld [vmem:[%s5827_s16 + $0x12] sm:$0xff] }
  0x22   : > { %5458 = vmatprep.subr.bf16.mxu0 %v5457_v53  ;;  %v6042_v18 = vld [vmem:[%s5827_s16 + $0x64] sm:$0xff]  ;;  %v6061_v27 = vld [vmem:[%s5827_s16 + $0x74] sm:$0xff] }
  0x23   : > { %4866 = vmatmul.mubr.msk.f32.vlgmr.msra.gmra.mrb[0].mxu1 %vm207_vm0, %v5955_v56  ;;  %v6064_v29 = vld [vmem:[%s5827_s16 + $0x84] sm:$0xff]  ;;  %v6081_v34 = vld [vmem:[%s5827_s16 + $0x94] sm:$0xff] }
  0x24   : > { %5112 = vmatmul.mubr.msk.f32.gmra.mrb[4].mxu0 %vm207_vm0, %v5960_v57  ;;  %5356 = vmatpush3.bf16.msra.mxu1 %v5353_v39  ;;  %v4364_v39 = vld [vmem:[%s6694_s1 + $0x210] sm:$0xff]  ;;  %v6098_v41 = vld [vmem:[%s5827_s16 + $0x62] sm:$0xff] }
  0x25   : > { %4868 = vmatprep.mubr.msk.f32.mxu1 %vm207_vm0, %v5963_v58  ;;  %5114 = vmatprep.mubr.msk.f32.mxu0 %vm207_vm0, %v5966_v59  ;;  %v5469_v46 = vpack.c.bf16 %v4365_v40, %v4364_v39  ;;  %v4382_v47 = vld [vmem:[%s6694_s1 + $0x220] sm:$0xff]  ;;  %v6113_v51 = vld [vmem:[%s5827_s16 + $0x72] sm:$0xff] }
  0x26   : > { %5358 = vmatprep.subr.bf16.mxu1 %v5357_v60  ;;  %v5473_v54 = vpack.c.bf16 %v4383_v48, %v4382_v47  ;;  %v4124_v55 = vld [vmem:[%s6694_s1 + $0x90] sm:$0xff]  ;;  %v6135_v62 = vld [vmem:[%s5827_s16 + $0x80] sm:$0xff]  ;;  %v4145_v39 = vld [vmem:[%s6694_s1 + $0xb8] sm:$0xff] }
  0x27   : > { %4869 = vmatmul.mubr.msk.f32.gmra.mrb[2].mxu1 %vm207_vm0, %v5979_v63  ;;  %v6130_v61 = vld [vmem:[%s5827_s16 + $0x13] sm:$0xff]  ;;  %v4142_v5 = vld [vmem:[%s6694_s1 + $0xa0] sm:$0xff] }
  0x28   : > { %5115 = vmatmul.mubr.msk.f32.gmra.mrb[6].mxu0 %vm207_vm0, %v5986_v0  ;;  %4871 = vmatprep.mubr.msk.f32.mxu1 %vm207_vm0, %v5989_v1  ;;  %v6155_v13 = vld [vmem:[%s5827_s16 + $0xa0] sm:$0xff]  ;;  %v6198_v40 = vld [vmem:[%s5827_s16 + $0x14] sm:$0xff] }
  0x29   : > { %5125 = vmatprep.mubr.msk.f32.mxu0 %vm207_vm0, %v5992_v2  ;;  %5360 = vmatpush3.bf16.msra.mxu1 %v5357_v60  ;;  %v4125_v60 = vld [vmem:[%s6694_s1 + $0x98] sm:$0xff]  ;;  %v4402_v23 = vld [vmem:[%s6694_s1 + $0x240] sm:$0xff] }
  0x2a   : > { %5362 = vmatprep.subr.bf16.mxu1 %v5361_v3  ;;  %v5373_v4 = vpack.c.bf16 %v4125_v60, %v4124_v55  ;;  %v766_v31 = vld [vmem:[%s5827_s16 + $0x4] sm:$0xff]  ;;  %v6206_v47 = vld [vmem:[%s5827_s16 + $0x91] sm:$0xff] }
  0x2b   : > { %4872 = vmatmul.mubr.msk.f32.gmra.mrb[4].mxu1 %vm207_vm0, %v6007_v6  ;;  %v6223_v55 = vld [vmem:[%s5827_s16 + $0xa1] sm:$0xff] }
  0x2c   : > { %5126 = vmatmul.mubr.msk.f32.vlgmr.msra.gmra.mrb[0].mxu0 %vm207_vm0, %v6012_v8  ;;  %4874 = vmatprep.mubr.msk.f32.mxu1 %vm207_vm0, %v6015_v9 }
  0x2d   : > { %5460 = vmatpush3.bf16.msra.mxu0 %v5457_v53  ;;  %5128 = vmatprep.mubr.msk.f32.mxu0 %vm207_vm0, %v6018_v10  ;;  %v616_v53 = vld [vmem:[%s5827_s16 + $0x3] sm:$0xff] }
  0x2e   : > { %5462 = vmatprep.subr.bf16.mxu0 %v5461_v11 }
  0x2f   : > { %4875 = vmatmul.mubr.msk.f32.gmra.mrb[6].mxu1 %vm207_vm0, %v6033_v15 }
  0x30   : > { %5129 = vmatmul.mubr.msk.f32.gmra.mrb[2].mxu0 %vm207_vm0, %v6038_v16  ;;  %4885 = vmatprep.mubr.msk.f32.mxu1 %vm207_vm0, %v466_v17  ;;  %v4384_v17 = vld [vmem:[%s6694_s1 + $0x230] sm:$0xff] }
  0x31   : > { %5131 = vmatprep.mubr.msk.f32.mxu0 %vm207_vm0, %v6042_v18  ;;  %5464 = vmatpush3.bf16.msra.mxu0 %v5461_v11  ;;  %v4143_v11 = vld [vmem:[%s6694_s1 + $0xa8] sm:$0xff] }
  0x32   : > { %5466 = vmatprep.subr.bf16.mxu0 %v5465_v19  ;;  %v5377_v14 = vpack.c.bf16 %v4143_v11, %v4142_v5  ;;  %v4405_v5 = vld [vmem:[%s6694_s1 + $0x258] sm:$0xff] }
  0x33   : > { %4886 = vmatmul.mubr.msk.f32.vlgmr.msra.gmra.mrb[0].mxu1 %vm207_vm0, %v6056_v24 }
  0x34   : > { %5132 = vmatmul.mubr.msk.f32.gmra.mrb[4].mxu0 %vm207_vm0, %v6061_v27  ;;  %5364 = vmatpush3.bf16.msra.mxu1 %v5361_v3  ;;  %v6138_v3 = vld [vmem:[%s5827_s16 + $0x90] sm:$0xff] }
  0x35   : > { %4888 = vmatprep.mubr.msk.f32.mxu1 %vm207_vm0, %v5834_v20  ;;  %5134 = vmatprep.mubr.msk.f32.mxu0 %vm207_vm0, %v6064_v29 }
  0x36   : > { %5366 = vmatprep.subr.bf16.mxu1 %v5365_v30 }
  0x37   : > { %4889 = vmatmul.mubr.msk.f32.gmra.mrb[2].mxu1 %vm207_vm0, %v5853_v25 }
  0x38   : > { %5135 = vmatmul.mubr.msk.f32.gmra.mrb[6].mxu0 %vm207_vm0, %v6081_v34  ;;  %4891 = vmatprep.mubr.msk.f32.mxu1 %vm207_vm0, %v5861_v28 }
  0x39   : > { %5145 = vmatprep.mubr.msk.f32.mxu0 %vm207_vm0, %v5979_v63  ;;  %5368 = vmatpush3.bf16.msra.mxu1 %v5365_v30  ;;  %v4403_v30 = vld [vmem:[%s6694_s1 + $0x248] sm:$0xff] }
  0x3a   : > { %5370 = vmatprep.subr.bf16.mxu1 %v5369_v38  ;;  %v5481_v33 = vpack.c.bf16 %v4403_v30, %v4402_v23  ;;  %v4165_v23 = vld [vmem:[%s6694_s1 + $0xd8] sm:$0xff]  ;;  %v6268_v30 = vld [vmem:[%s5827_s16 + $0x82] sm:$0xff] }
  0x3b   : > { %4892 = vmatmul.mubr.msk.f32.gmra.mrb[4].mxu1 %vm207_vm0, %v5883_v35 }
  0x3c   : > { %5146 = vmatmul.mubr.msk.f32.vlgmr.msra.gmra.mrb[0].mxu0 %vm207_vm0, %v5989_v1  ;;  %4894 = vmatprep.mubr.msk.f32.mxu1 %vm207_vm0, %v6098_v41 }
  0x3d   : > { %5468 = vmatpush3.bf16.msra.mxu0 %v5465_v19  ;;  %5148 = vmatprep.mubr.msk.f32.mxu0 %vm207_vm0, %v6007_v6  ;;  %v4385_v19 = vld [vmem:[%s6694_s1 + $0x238] sm:$0xff] }
  0x3e   : > { %5470 = vmatprep.subr.bf16.mxu0 %v5469_v46  ;;  %v5477_v21 = vpack.c.bf16 %v4385_v19, %v4384_v17  ;;  %v4423_v17 = vld [vmem:[%s6694_s1 + $0x268] sm:$0xff] }
  0x3f   : > { %4895 = vmatmul.mubr.msk.f32.gmra.mrb[6].mxu1 %vm207_vm0, %v6113_v51 }
  0x40   : > { %5149 = vmatmul.mubr.msk.f32.gmra.mrb[2].mxu0 %vm207_vm0, %v6015_v9  ;;  %4905 = vmatprep.mubr.msk.f32.mxu1 %vm207_vm0, %v616_v53  ;;  %v4162_v53 = vld [vmem:[%s6694_s1 + $0xc0] sm:$0xff] }
  0x41   : > { %5151 = vmatprep.mubr.msk.f32.mxu0 %vm207_vm0, %v6033_v15  ;;  %5472 = vmatpush3.bf16.msra.mxu0 %v5469_v46  ;;  %v6203_v46 = vld [vmem:[%s5827_s16 + $0x81] sm:$0xff] }
  0x42   : > { %5474 = vmatprep.subr.bf16.mxu0 %v5473_v54 }
  0x43   : > { %4906 = vmatmul.mubr.msk.f32.vlgmr.msra.gmra.mrb[0].mxu1 %vm207_vm0, %v6130_v61 }
  0x44   : > { %5152 = vmatmul.mubr.msk.f32.gmra.mrb[4].mxu0 %vm207_vm0, %v6135_v62  ;;  %5372 = vmatpush3.bf16.msra.mxu1 %v5369_v38  ;;  %v4144_v38 = vld [vmem:[%s6694_s1 + $0xb0] sm:$0xff] }
  0x45   : > { %4908 = vmatprep.mubr.msk.f32.mxu1 %vm207_vm0, %v5891_v37  ;;  %5154 = vmatprep.mubr.msk.f32.mxu0 %vm207_vm0, %v6138_v3  ;;  %v5381_v48 = vpack.c.bf16 %v4145_v39, %v4144_v38  ;;  %v4182_v38 = vld [vmem:[%s6694_s1 + $0xe0] sm:$0xff] }
  0x46   : > { %5374 = vmatprep.subr.bf16.mxu1 %v5373_v4  ;;  %v6288_v39 = vld [vmem:[%s5827_s16 + $0xa2] sm:$0xff] }
  0x47   : > { %4909 = vmatmul.mubr.msk.f32.gmra.mrb[2].mxu1 %vm207_vm0, %v5911_v43 }
  0x48   : > { %5155 = vmatmul.mubr.msk.f32.gmra.mrb[6].mxu0 %vm207_vm0, %v6155_v13  ;;  %4911 = vmatprep.mubr.msk.f32.mxu1 %vm207_vm0, %v5917_v45 }
  0x49   : > { %5165 = vmatprep.mubr.msk.f32.mxu0 %vm207_vm0, %v5872_v32  ;;  %5376 = vmatpush3.bf16.msra.mxu1 %v5373_v4  ;;  %v4404_v4 = vld [vmem:[%s6694_s1 + $0x250] sm:$0xff] }
  0x4a   : > { %5378 = vmatprep.subr.bf16.mxu1 %v5377_v14  ;;  %v5485_v11 = vpack.c.bf16 %v4405_v5, %v4404_v4  ;;  %v4442_v4 = vld [vmem:[%s6694_s1 + $0x280] sm:$0xff]  ;;  %v4443_v5 = vld [vmem:[%s6694_s1 + $0x288] sm:$0xff] }
  0x4b   : > { %4912 = vmatmul.mubr.msk.f32.gmra.mrb[4].mxu1 %vm207_vm0, %v5937_v50 }
  0x4c   : > { %5166 = vmatmul.mubr.msk.f32.vlgmr.msra.gmra.mrb[0].mxu0 %vm207_vm0, %v5886_v36  ;;  %4914 = vmatprep.mubr.msk.f32.mxu1 %vm207_vm0, %v5941_v52 }
  0x4d   : > { %5476 = vmatpush3.bf16.msra.mxu0 %v5473_v54  ;;  %5168 = vmatprep.mubr.msk.f32.mxu0 %vm207_vm0, %v5906_v42  ;;  %v4163_v54 = vld [vmem:[%s6694_s1 + $0xc8] sm:$0xff] }
  0x4e   : > { %5478 = vmatprep.subr.bf16.mxu0 %v5477_v21  ;;  %v5385_v60 = vpack.c.bf16 %v4163_v54, %v4162_v53  ;;  %v4424_v53 = vld [vmem:[%s6694_s1 + $0x270] sm:$0xff]  ;;  %v4425_v54 = vld [vmem:[%s6694_s1 + $0x278] sm:$0xff] }
  0x4f   : > { %4915 = vmatmul.mubr.msk.f32.gmra.mrb[6].mxu1 %vm207_vm0, %v5960_v57 }
  0x50   : > { %5169 = vmatmul.mubr.msk.f32.gmra.mrb[2].mxu0 %vm207_vm0, %v5914_v44  ;;  %4925 = vmatprep.mubr.msk.f32.mxu1 %vm207_vm0, %v766_v31  ;;  %v6271_v31 = vld [vmem:[%s5827_s16 + $0x92] sm:$0xff] }
  0x51   : > { %5171 = vmatprep.mubr.msk.f32.mxu0 %vm207_vm0, %v5932_v49  ;;  %5480 = vmatpush3.bf16.msra.mxu0 %v5477_v21  ;;  %v4164_v21 = vld [vmem:[%s6694_s1 + $0xd0] sm:$0xff] }
  0x52   : > { %5482 = vmatprep.subr.bf16.mxu0 %v5481_v33 }
  0x53   : > { %4926 = vmatmul.mubr.msk.f32.vlgmr.msra.gmra.mrb[0].mxu1 %vm207_vm0, %v6198_v40 }
  0x54   : > { %5172 = vmatmul.mubr.msk.f32.gmra.mrb[4].mxu0 %vm207_vm0, %v6203_v46  ;;  %5380 = vmatpush3.bf16.msra.mxu1 %v5377_v14  ;;  %v4422_v14 = vld [vmem:[%s6694_s1 + $0x260] sm:$0xff] }
  0x55   : > { %4928 = vmatprep.mubr.msk.f32.mxu1 %vm207_vm0, %v5992_v2  ;;  %5174 = vmatprep.mubr.msk.f32.mxu0 %vm207_vm0, %v6206_v47  ;;  %v5489_v19 = vpack.c.bf16 %v4423_v17, %v4422_v14  ;;  %v4184_v14 = vld [vmem:[%s6694_s1 + $0xf0] sm:$0xff]  ;;  %v4185_v17 = vld [vmem:[%s6694_s1 + $0xf8] sm:$0xff] }
  0x56   : > { %5382 = vmatprep.subr.bf16.mxu1 %v5381_v48 }
  0x57   : > { %4929 = vmatmul.mubr.msk.f32.gmra.mrb[2].mxu1 %vm207_vm0, %v6012_v8 }
  0x58   : > { %5175 = vmatmul.mubr.msk.f32.gmra.mrb[6].mxu0 %vm207_vm0, %v6223_v55  ;;  %4931 = vmatprep.mubr.msk.f32.mxu1 %vm207_vm0, %v6018_v10 }
  0x59   : > { %5185 = vmatprep.mubr.msk.f32.mxu0 %vm207_vm0, %v5853_v25  ;;  %5384 = vmatpush3.bf16.msra.mxu1 %v5381_v48 }
  0x5a   : > { %5386 = vmatprep.subr.bf16.mxu1 %v5385_v60 }
  0x5b   : > { %4932 = vmatmul.mubr.msk.f32.gmra.mrb[4].mxu1 %vm207_vm0, %v6038_v16 }
  0x5c   : > { %5186 = vmatmul.mubr.msk.f32.vlgmr.msra.gmra.mrb[0].mxu0 %vm207_vm0, %v5861_v28  ;;  %4934 = vmatprep.mubr.msk.f32.mxu1 %vm207_vm0, %v6042_v18 }
  0x5d   : > { %5484 = vmatpush3.bf16.msra.mxu0 %v5481_v33  ;;  %5188 = vmatprep.mubr.msk.f32.mxu0 %vm207_vm0, %v5883_v35  ;;  %v5389_v33 = vpack.c.bf16 %v4165_v23, %v4164_v21  ;;  %v4202_v21 = vld [vmem:[%s6694_s1 + $0x100] sm:$0xff]  ;;  %v4203_v23 = vld [vmem:[%s6694_s1 + $0x108] sm:$0xff] }
  0x5e   : > { %5486 = vmatprep.subr.bf16.mxu0 %v5485_v11 }
  0x5f   : > { %4935 = vmatmul.mubr.msk.f32.gmra.mrb[6].mxu1 %vm207_vm0, %v6061_v27 }
  0x60   : > { %5189 = vmatmul.mubr.msk.f32.gmra.mrb[2].mxu0 %vm207_vm0, %v6098_v41  ;;  %4945 = vmatprep.mubr.msk.f32.mxu1 %vm207_vm0, %v5955_v56  ;;  %v4183_v56 = vld [vmem:[%s6694_s1 + $0xe8] sm:$0xff] }
  0x61   : > { %5191 = vmatprep.mubr.msk.f32.mxu0 %vm207_vm0, %v6113_v51  ;;  %5488 = vmatpush3.bf16.msra.mxu0 %v5485_v11  ;;  %v5393_v48 = vpack.c.bf16 %v4183_v56, %v4182_v38  ;;  %v5497_v11 = vpack.c.bf16 %v4443_v5, %v4442_v4  ;;  %v4445_v38 = vld [vmem:[%s6694_s1 + $0x298] sm:$0xff]  ;;  %v4462_v56 = vld [vmem:[%s6694_s1 + $0x2a0] sm:$0xff] }
  0x62   : > { %5490 = vmatprep.subr.bf16.mxu0 %v5489_v19  ;;  %v4222_v5 = vld [vmem:[%s6694_s1 + $0x120] sm:$0xff] }
  0x63   : > { %4946 = vmatmul.mubr.msk.f32.vlgmr.msra.gmra.mrb[0].mxu1 %vm207_vm0, %v5963_v58 }
  0x64   : > { %5192 = vmatmul.mubr.msk.f32.gmra.mrb[4].mxu0 %vm207_vm0, %v6268_v30  ;;  %5388 = vmatpush3.bf16.msra.mxu1 %v5385_v60  ;;  %v5493_v60 = vpack.c.bf16 %v4425_v54, %v4424_v53  ;;  %v4204_v54 = vld [vmem:[%s6694_s1 + $0x110] sm:$0xff] }
  0x65   : > { %4948 = vmatprep.mubr.msk.f32.mxu1 %vm207_vm0, %v5979_v63  ;;  %5194 = vmatprep.mubr.msk.f32.mxu0 %vm207_vm0, %v6271_v31 }
  0x66   : > { %5390 = vmatprep.subr.bf16.mxu1 %v5389_v33 }
  0x67   : > { %4949 = vmatmul.mubr.msk.f32.gmra.mrb[2].mxu1 %vm207_vm0, %v5989_v1 }
  0x68   : > { %5195 = vmatmul.mubr.msk.f32.gmra.mrb[6].mxu0 %vm207_vm0, %v6288_v39  ;;  %4951 = vmatprep.mubr.msk.f32.mxu1 %vm207_vm0, %v6007_v6 }
  0x69   : > { %5205 = vmatprep.mubr.msk.f32.mxu0 %vm207_vm0, %v5911_v43  ;;  %5392 = vmatpush3.bf16.msra.mxu1 %v5389_v33  ;;  %v4444_v33 = vld [vmem:[%s6694_s1 + $0x290] sm:$0xff] }
  0x6a   : > { %5394 = vmatprep.subr.bf16.mxu1 %v5393_v48 }
  0x6b   : > { %4952 = vmatmul.mubr.msk.f32.gmra.mrb[4].mxu1 %vm207_vm0, %v6015_v9 }
  0x6c   : > { %5206 = vmatmul.mubr.msk.f32.vlgmr.msra.gmra.mrb[0].mxu0 %vm207_vm0, %v5917_v45  ;;  %4954 = vmatprep.mubr.msk.f32.mxu1 %vm207_vm0, %v6033_v15 }
  0x6d   : > { %5492 = vmatpush3.bf16.msra.mxu0 %v5489_v19  ;;  %5208 = vmatprep.mubr.msk.f32.mxu0 %vm207_vm0, %v5937_v50  ;;  %v5397_v19 = vpack.c.bf16 %v4185_v17, %v4184_v14  ;;  %v4464_v14 = vld [vmem:[%s6694_s1 + $0x2b0] sm:$0xff]  ;;  %v4465_v17 = vld [vmem:[%s6694_s1 + $0x2b8] sm:$0xff] }
  0x6e   : > { %5494 = vmatprep.subr.bf16.mxu0 %v5493_v60 }
  0x6f   : > { %4955 = vmatmul.mubr.msk.f32.gmra.mrb[6].mxu1 %vm207_vm0, %v6135_v62 }
  0x70   : > { %5209 = vmatmul.mubr.msk.f32.gmra.mrb[2].mxu0 %vm207_vm0, %v5941_v52  ;;  %4965 = vmatprep.mubr.msk.f32.mxu1 %vm207_vm0, %v5841_v22  ;;  %v6347_v22 = vld [vmem:[%s5827_s16 + $0xa3] sm:$0xff] }
  0x71   : > { %5211 = vmatprep.mubr.msk.f32.mxu0 %vm207_vm0, %v5960_v57  ;;  %5496 = vmatpush3.bf16.msra.mxu0 %v5493_v60  ;;  %v4205_v60 = vld [vmem:[%s6694_s1 + $0x118] sm:$0xff] }
  0x72   : > { %5498 = vmatprep.subr.bf16.mxu0 %v5497_v11  ;;  %v5405_v4 = vpack.c.bf16 %v4205_v60, %v4204_v54  ;;  %v4503_v54 = vld [vmem:[%s6694_s1 + $0x2e8] sm:$0xff]  ;;  %v4244_v60 = vld [vmem:[%s6694_s1 + $0x150] sm:$0xff] }
  0x73   : > { %4966 = vmatmul.mubr.msk.f32.vlgmr.msra.gmra.mrb[0].mxu1 %vm207_vm0, %v5856_v26  ;;  %v5401_v26 = vpack.c.bf16 %v4203_v23, %v4202_v21  ;;  %v4483_v21 = vld [vmem:[%s6694_s1 + $0x2c8] sm:$0xff] }
  0x74   : > { %5212 = vmatmul.mubr.msk.f32.gmra.mrb[4].mxu0 %vm207_vm0, %v5966_v59  ;;  %5396 = vmatpush3.bf16.msra.mxu1 %v5393_v48  ;;  %v4463_v48 = vld [vmem:[%s6694_s1 + $0x2a8] sm:$0xff] }
  0x75   : > { %4968 = vmatprep.mubr.msk.f32.mxu1 %vm207_vm0, %v5872_v32  ;;  %5214 = vmatprep.mubr.msk.f32.mxu0 %vm207_vm0, %v5986_v0  ;;  %v5501_v32 = vpack.c.bf16 %v4445_v38, %v4444_v33  ;;  %v5505_v53 = vpack.c.bf16 %v4463_v48, %v4462_v56  ;;  %v4225_v33 = vld [vmem:[%s6694_s1 + $0x138] sm:$0xff]  ;;  %v4243_v56 = vld [vmem:[%s6694_s1 + $0x148] sm:$0xff]  ;;  %v4484_v48 = vld [vmem:[%s6694_s1 + $0x2d0] sm:$0xff] }
  0x76   : > { %5398 = vmatprep.subr.bf16.mxu1 %v5397_v19 }
  0x77   : > { %4969 = vmatmul.mubr.msk.f32.gmra.mrb[2].mxu1 %vm207_vm0, %v5886_v36 }
  0x78   : > { %5215 = vmatmul.mubr.msk.f32.gmra.mrb[6].mxu0 %vm207_vm0, %v6347_v22  ;;  %4971 = vmatprep.mubr.msk.f32.mxu1 %vm207_vm0, %v5906_v42 }
  0x79   : > { %5225 = vmatprep.mubr.msk.f32.mxu0 %vm207_vm0, %v6012_v8  ;;  %5400 = vmatpush3.bf16.msra.mxu1 %v5397_v19  ;;  %v4482_v19 = vld [vmem:[%s6694_s1 + $0x2c0] sm:$0xff] }
  0x7a   : > { %5402 = vmatprep.subr.bf16.mxu1 %v5401_v26  ;;  %v5513_v23 = vpack.c.bf16 %v4483_v21, %v4482_v19 }
  0x7b   : > { %4972 = vmatmul.mubr.msk.f32.gmra.mrb[4].mxu1 %vm207_vm0, %v5914_v44 }
  0x7c   : > { %5226 = vmatmul.mubr.msk.f32.vlgmr.msra.gmra.mrb[0].mxu0 %vm207_vm0, %v6018_v10  ;;  %4974 = vmatprep.mubr.msk.f32.mxu1 %vm207_vm0, %v5932_v49 }
  0x7d   : > { %5500 = vmatpush3.bf16.msra.mxu0 %v5497_v11  ;;  %5228 = vmatprep.mubr.msk.f32.mxu0 %vm207_vm0, %v6038_v16  ;;  %v4223_v11 = vld [vmem:[%s6694_s1 + $0x128] sm:$0xff] }
  0x7e   : > { %5502 = vmatprep.subr.bf16.mxu0 %v5501_v32 }
  0x7f   : > { %4975 = vmatmul.mubr.msk.f32.gmra.mrb[6].mxu1 %vm207_vm0, %v6203_v46 }
  0x80   : > { %5229 = vmatmul.mubr.msk.f32.gmra.mrb[2].mxu0 %vm207_vm0, %v6042_v18  ;;  %4985 = vmatprep.mubr.msk.f32.mxu1 %vm207_vm0, %v6056_v24  ;;  %v6406_v24 = vld [vmem:[%s5827_s16 + $0xa4] sm:$0xff] }
  0x81   : > { %5231 = vmatprep.mubr.msk.f32.mxu0 %vm207_vm0, %v6061_v27  ;;  %5504 = vmatpush3.bf16.msra.mxu0 %v5501_v32  ;;  %v4242_v32 = vld [vmem:[%s6694_s1 + $0x140] sm:$0xff] }
  0x82   : > { %5506 = vmatprep.subr.bf16.mxu0 %v5505_v53 }
  0x83   : > { %4986 = vmatmul.mubr.msk.f32.vlgmr.msra.gmra.mrb[0].mxu1 %vm207_vm0, %v5834_v20  ;;  %v5409_v20 = vpack.c.bf16 %v4223_v11, %v4222_v5  ;;  %v4504_v5 = vld [vmem:[%s6694_s1 + $0x2f0] sm:$0xff]  ;;  %v4505_v11 = vld [vmem:[%s6694_s1 + $0x2f8] sm:$0xff] }
  0x84   : > { %5232 = vmatmul.mubr.msk.f32.gmra.mrb[4].mxu0 %vm207_vm0, %v6064_v29  ;;  %5404 = vmatpush3.bf16.msra.mxu1 %v5401_v26  ;;  %v4224_v26 = vld [vmem:[%s6694_s1 + $0x130] sm:$0xff] }
  0x85   : > { %4988 = vmatprep.mubr.msk.f32.mxu1 %vm207_vm0, %v5853_v25  ;;  %5234 = vmatprep.mubr.msk.f32.mxu0 %vm207_vm0, %v6081_v34  ;;  %v5509_v25 = vpack.c.bf16 %v4465_v17, %v4464_v14  ;;  %v5413_v38 = vpack.c.bf16 %v4225_v33, %v4224_v26  ;;  %v4264_v14 = vld [vmem:[%s6694_s1 + $0x170] sm:$0xff] }
  0x86   : > { %5406 = vmatprep.subr.bf16.mxu1 %v5405_v4 }
  0x87   : > { %4989 = vmatmul.mubr.msk.f32.gmra.mrb[2].mxu1 %vm207_vm0, %v5861_v28 }
  0x88   : > { %5235 = vmatmul.mubr.msk.f32.gmra.mrb[6].mxu0 %vm207_vm0, %v6406_v24  ;;  %4991 = vmatprep.mubr.msk.f32.mxu1 %vm207_vm0, %v5883_v35 }
  0x89   : > { %5245 = vmatprep.mubr.msk.f32.mxu0 %vm207_vm0, %v5989_v1  ;;  %5408 = vmatpush3.bf16.msra.mxu1 %v5405_v4  ;;  %v4262_v4 = vld [vmem:[%s6694_s1 + $0x160] sm:$0xff] }
  0x8a   : > { %5410 = vmatprep.subr.bf16.mxu1 %v5409_v20 }
  0x8b   : > { %4992 = vmatmul.mubr.msk.f32.gmra.mrb[4].mxu1 %vm207_vm0, %v6098_v41 }
  0x8c   : > { %5246 = vmatmul.mubr.msk.f32.vlgmr.msra.gmra.mrb[0].mxu0 %vm207_vm0, %v6007_v6  ;;  %4994 = vmatprep.mubr.msk.f32.mxu1 %vm207_vm0, %v6113_v51 }
  0x8d   : > { %5508 = vmatpush3.bf16.msra.mxu0 %v5505_v53  ;;  %5248 = vmatprep.mubr.msk.f32.mxu0 %vm207_vm0, %v6015_v9  ;;  %v4485_v53 = vld [vmem:[%s6694_s1 + $0x2d8] sm:$0xff] }
  0x8e   : > { %5510 = vmatprep.subr.bf16.mxu0 %v5509_v25 }
  0x8f   : > { %4995 = vmatmul.mubr.msk.f32.gmra.mrb[6].mxu1 %vm207_vm0, %v6268_v30 }
  0x90   : > { %5249 = vmatmul.mubr.msk.f32.gmra.mrb[2].mxu0 %vm207_vm0, %v6033_v15  ;;  %5005 = vmatprep.mubr.msk.f32.mxu1 %vm207_vm0, %v6130_v61  ;;  %v4441_v61 = vld [vmem:[%s5827_s16 + $0xb0] sm:$0xff] }
  0x91   : > { %5251 = vmatprep.mubr.msk.f32.mxu0 %vm207_vm0, %v6135_v62  ;;  %5512 = vmatpush3.bf16.msra.mxu0 %v5509_v25  ;;  %v4525_v25 = vld [vmem:[%s6694_s1 + $0x318] sm:$0xff] }
  0x92   : > { %5514 = vmatprep.subr.bf16.mxu0 %v5513_v23 }
  0x93   : > { %5006 = vmatmul.mubr.msk.f32.vlgmr.msra.gmra.mrb[0].mxu1 %vm207_vm0, %v5891_v37  ;;  %v5417_v37 = vpack.c.bf16 %v4243_v56, %v4242_v32 }
  0x94   : > { %5252 = vmatmul.mubr.msk.f32.gmra.mrb[4].mxu0 %vm207_vm0, %v6138_v3  ;;  %5412 = vmatpush3.bf16.msra.mxu1 %v5409_v20  ;;  %v4523_v20 = vld [vmem:[%s6694_s1 + $0x308] sm:$0xff] }
  0x95   : > { %5008 = vmatprep.mubr.msk.f32.mxu1 %vm207_vm0, %v5911_v43  ;;  %5254 = vmatprep.mubr.msk.f32.mxu0 %vm207_vm0, %v6155_v13  ;;  %v5517_v43 = vpack.c.bf16 %v4485_v53, %v4484_v48  ;;  %v4502_v13 = vld [vmem:[%s6694_s1 + $0x2e0] sm:$0xff] }
  0x96   : > { %5414 = vmatprep.subr.bf16.mxu1 %v5413_v38 }
  0x97   : > { %5009 = vmatmul.mubr.msk.f32.gmra.mrb[2].mxu1 %vm207_vm0, %v5917_v45 }
  0x98   : > { %5255 = vmatmul.mubr.msk.f32.gmra.mrb[6].mxu0 %vm207_vm0, %v4441_v61  ;;  %5011 = vmatprep.mubr.msk.f32.mxu1 %vm207_vm0, %v5937_v50 }
  0x99   : > { %5265 = vmatprep.mubr.msk.f32.mxu0 %vm207_vm0, %v5886_v36  ;;  %5416 = vmatpush3.bf16.msra.mxu1 %v5413_v38  ;;  %v5521_v36 = vpack.c.bf16 %v4503_v54, %v4502_v13 }
  0x9a   : > { %5418 = vmatprep.subr.bf16.mxu1 %v5417_v37 }
  0x9b   : > { %5012 = vmatmul.mubr.msk.f32.gmra.mrb[4].mxu1 %vm207_vm0, %v5941_v52 }
  0x9c   : > { %5266 = vmatmul.mubr.msk.f32.vlgmr.msra.gmra.mrb[0].mxu0 %vm207_vm0, %v5906_v42  ;;  %5014 = vmatprep.mubr.msk.f32.mxu1 %vm207_vm0, %v5960_v57  ;;  %v4245_v42 = vld [vmem:[%s6694_s1 + $0x158] sm:$0xff] }
  0x9d   : > { %5516 = vmatpush3.bf16.msra.mxu0 %v5513_v23  ;;  %5268 = vmatprep.mubr.msk.f32.mxu0 %vm207_vm0, %v5914_v44  ;;  %v5421_v44 = vpack.c.bf16 %v4245_v42, %v4244_v60 }
  0x9e   : > { %5518 = vmatprep.subr.bf16.mxu0 %v5517_v43 }
  0x9f   : > { %5015 = vmatmul.mubr.msk.f32.gmra.mrb[6].mxu1 %vm207_vm0, %v5966_v59 }
  0xa0   : > { %5269 = vmatmul.mubr.msk.f32.gmra.mrb[2].mxu0 %vm207_vm0, %v5932_v49  ;;  %5025 = vmatprep.mubr.msk.f32.mxu1 %vm207_vm0, %v6198_v40  ;;  %v4263_v49 = vld [vmem:[%s6694_s1 + $0x168] sm:$0xff]  ;;  %v4461_v40 = vld [vmem:[%s5827_s16 + $0xb1] sm:$0xff] }
  0xa1   : > { %5271 = vmatprep.mubr.msk.f32.mxu0 %vm207_vm0, %v6203_v46  ;;  %5520 = vmatpush3.bf16.msra.mxu0 %v5517_v43 }
  0xa2   : > { %5522 = vmatprep.subr.bf16.mxu0 %v5521_v36 }
  0xa3   : > { %5026 = vmatmul.mubr.msk.f32.vlgmr.msra.gmra.mrb[0].mxu1 %vm207_vm0, %v5992_v2  ;;  %v5425_v2 = vpack.c.bf16 %v4263_v49, %v4262_v4 }
  0xa4   : > { %5272 = vmatmul.mubr.msk.f32.gmra.mrb[4].mxu0 %vm207_vm0, %v6206_v47  ;;  %5420 = vmatpush3.bf16.msra.mxu1 %v5417_v37 }
  0xa5   : > { %5028 = vmatprep.mubr.msk.f32.mxu1 %vm207_vm0, %v6012_v8  ;;  %5274 = vmatprep.mubr.msk.f32.mxu0 %vm207_vm0, %v6223_v55  ;;  %v5525_v8 = vpack.c.bf16 %v4505_v11, %v4504_v5  ;;  %v4522_v55 = vld [vmem:[%s6694_s1 + $0x300] sm:$0xff] }
  0xa6   : > { %5422 = vmatprep.subr.bf16.mxu1 %v5421_v44 }
  0xa7   : > { %5029 = vmatmul.mubr.msk.f32.gmra.mrb[2].mxu1 %vm207_vm0, %v6018_v10 }
  0xa8   : > { %5275 = vmatmul.mubr.msk.f32.gmra.mrb[6].mxu0 %vm207_vm0, %v4461_v40  ;;  %5031 = vmatprep.mubr.msk.f32.mxu1 %vm207_vm0, %v6038_v16 }
  0xa9   : > { %5285 = vmatprep.mubr.msk.f32.mxu0 %vm207_vm0, %v5861_v28  ;;  %5424 = vmatpush3.bf16.msra.mxu1 %v5421_v44  ;;  %v5529_v28 = vpack.c.bf16 %v4523_v20, %v4522_v55 }
  0xaa   : > { %5426 = vmatprep.subr.bf16.mxu1 %v5425_v2 }
  0xab   : > { %5032 = vmatmul.mubr.msk.f32.gmra.mrb[4].mxu1 %vm207_vm0, %v6042_v18 }
  0xac   : > { %5286 = vmatmul.mubr.msk.f32.vlgmr.msra.gmra.mrb[0].mxu0 %vm207_vm0, %v5883_v35  ;;  %5034 = vmatprep.mubr.msk.f32.mxu1 %vm207_vm0, %v6061_v27  ;;  %v4265_v35 = vld [vmem:[%s6694_s1 + $0x178] sm:$0xff] }
  0xad   : > { %5524 = vmatpush3.bf16.msra.mxu0 %v5521_v36  ;;  %5288 = vmatprep.mubr.msk.f32.mxu0 %vm207_vm0, %v6098_v41  ;;  %v5429_v17 = vpack.c.bf16 %v4265_v35, %v4264_v14 }
  0xae   : > { %5526 = vmatprep.subr.bf16.mxu0 %v5525_v8 }
  0xaf   : > { %5035 = vmatmul.mubr.msk.f32.gmra.mrb[6].mxu1 %vm207_vm0, %v6064_v29 }
  0xb0   : > { %5289 = vmatmul.mubr.msk.f32.gmra.mrb[2].mxu0 %vm207_vm0, %v6113_v51  ;;  %5045 = vmatprep.mubr.msk.f32.mxu1 %vm207_vm0, %v5963_v58  ;;  %v4481_v58 = vld [vmem:[%s5827_s16 + $0xb2] sm:$0xff] }
  0xb1   : > { %5291 = vmatprep.mubr.msk.f32.mxu0 %vm207_vm0, %v6268_v30  ;;  %5528 = vmatpush3.bf16.msra.mxu0 %v5525_v8 }
  0xb2   : > { %5530 = vmatprep.subr.bf16.mxu0 %v5529_v28 }
  0xb3   : > { %5046 = vmatmul.mubr.msk.f32.vlgmr.msra.gmra.mrb[0].mxu1 %vm207_vm0, %v5979_v63  ;;  %v4524_v63 = vld [vmem:[%s6694_s1 + $0x310] sm:$0xff] }
  0xb4   : > { %5292 = vmatmul.mubr.msk.f32.gmra.mrb[4].mxu0 %vm207_vm0, %v6271_v31  ;;  %5428 = vmatpush3.bf16.msra.mxu1 %v5425_v2 }
  0xb5   : > { %5048 = vmatprep.mubr.msk.f32.mxu1 %vm207_vm0, %v5989_v1  ;;  %5294 = vmatprep.mubr.msk.f32.mxu0 %vm207_vm0, %v6288_v39  ;;  %v5533_v1 = vpack.c.bf16 %v4525_v25, %v4524_v63 }
  0xb6   : > { %5430 = vmatprep.subr.bf16.mxu1 %v5429_v17 }
  0xb7   : > { %5049 = vmatmul.mubr.msk.f32.gmra.mrb[2].mxu1 %vm207_vm0, %v6007_v6  ;;  %v4256_v6 = vld [vmem:[%s5827_s16 + $0x41] sm:$0xff] }
  0xb8   : > { %5295 = vmatmul.mubr.msk.f32.gmra.mrb[6].mxu0 %vm207_vm0, %v4481_v58  ;;  %5051 = vmatprep.mubr.msk.f32.mxu1 %vm207_vm0, %v6015_v9  ;;  %v4258_v9 = vld [vmem:[%s5827_s16 + $0x61] sm:$0xff] }
  0xb9   : > { %5305 = vmatprep.mubr.msk.f32.mxu0 %vm207_vm0, %v5917_v45  ;;  %5432 = vmatpush3.bf16.msra.mxu1 %v5429_v17  ;;  %v4254_v45 = vld [vmem:[%s5827_s16 + $0x21] sm:$0xff] }
  0xba   : > { %5537 = vmatprep.subr.bf16.mxu1 %v5796_v7 }
  0xbb   : > { %5052 = vmatmul.mubr.msk.f32.gmra.mrb[4].mxu1 %vm207_vm0, %v6033_v15 }
  0xbc   : > { %5306 = vmatmul.mubr.msk.f32.vlgmr.msra.gmra.mrb[0].mxu0 %vm207_vm0, %v5937_v50  ;;  %5054 = vmatprep.mubr.msk.f32.mxu1 %vm207_vm0, %v6135_v62  ;;  %v4255_v50 = vld [vmem:[%s5827_s16 + $0x31] sm:$0xff] }
  0xbd   : > { %5532 = vmatpush3.bf16.msra.mxu0 %v5529_v28  ;;  %5308 = vmatprep.mubr.msk.f32.mxu0 %vm207_vm0, %v5941_v52  ;;  %v4257_v52 = vld [vmem:[%s5827_s16 + $0x51] sm:$0xff] }
  0xbe   : > { %5534 = vmatprep.subr.bf16.mxu0 %v5533_v1 }
  0xbf   : > { %5055 = vmatmul.mubr.msk.f32.gmra.mrb[6].mxu1 %vm207_vm0, %v6138_v3 }
  0xc0   : > { %5309 = vmatmul.mubr.msk.f32.gmra.mrb[2].mxu0 %vm207_vm0, %v5960_v57  ;;  %5065 = vmatprep.mubr.msk.f32.mxu1 %vm207_vm0, %v4254_v45  ;;  %v4501_v57 = vld [vmem:[%s5827_s16 + $0xb3] sm:$0xff] }
  0xc1   : > { %5311 = vmatprep.mubr.msk.f32.mxu0 %vm207_vm0, %v5966_v59  ;;  %5536 = vmatpush3.bf16.msra.mxu0 %v5533_v1  ;;  %v4259_v59 = vld [vmem:[%s5827_s16 + $0x71] sm:$0xff] }
  0xc3   : > { %5066 = vmatmul.mubr.msk.f32.vlgmr.msra.gmra.mrb[0].mxu1 %vm207_vm0, %v4255_v50 }
  0xc4   : > { %5312 = vmatmul.mubr.msk.f32.gmra.mrb[4].mxu0 %vm207_vm0, %v5986_v0  ;;  %5539 = vmatpush3.bf16.msra.mxu1 %v5796_v7  ;;  %v4521_v7 = vld [vmem:[%s5827_s16 + $0xb4] sm:$0xff]  ;;  %s4077_s16 = sshll.u32 %s6698_s13, 1 }
  0xc5   : > { %5068 = vmatprep.mubr.msk.f32.mxu1 %vm207_vm0, %v4256_v6  ;;  %5314 = vmatprep.mubr.msk.f32.mxu0 %vm207_vm0, %v6347_v22  ;;  %s181_s4 = scalar_lea.vmem %s6696_s3, %s4077_s16 }
  0xc6   : > { %5538 = vmatprep.subr.bf16.mxu1 %v5809_v12 }
  0xc7   : > { %5069 = vmatmul.mubr.msk.f32.gmra.mrb[2].mxu1 %vm207_vm0, %v4257_v52 }
  0xc8   : > { %5315 = vmatmul.mubr.msk.f32.gmra.mrb[6].mxu0 %vm207_vm0, %v4501_v57  ;;  %5071 = vmatprep.mubr.msk.f32.mxu1 %vm207_vm0, %v4258_v9 }
  0xc9   : > { %5325 = vmatprep.mubr.msk.f32.mxu0 %vm207_vm0, %v6018_v10  ;;  %5540 = vmatpush3.bf16.msra.mxu1 %v5809_v12 }
  0xcb   : > { %5072 = vmatmul.mubr.msk.f32.gmra.mrb[4].mxu1 %vm207_vm0, %v4259_v59 }
  0xcc   : > { %5326 = vmatmul.mubr.msk.f32.vlgmr.msra.gmra.mrb[0].mxu0 %vm207_vm0, %v6038_v16  ;;  %5074 = vmatprep.mubr.msk.f32.mxu1 %vm207_vm0, %v6203_v46 }
  0xcd   : > { %5328 = vmatprep.mubr.msk.f32.mxu0 %vm207_vm0, %v6042_v18 }
  0xcf   : > { %5075 = vmatmul.mubr.msk.f32.gmra.mrb[6].mxu1 %vm207_vm0, %v6206_v47 }
  0xd0   : > { %5329 = vmatmul.mubr.msk.f32.gmra.mrb[2].mxu0 %vm207_vm0, %v6061_v27  ;;  %5091 = vmatprep.mubr.msk.f32.mxu1 %vm207_vm0, %v6098_v41 }
  0xd1   : > { %5331 = vmatprep.mubr.msk.f32.mxu0 %vm207_vm0, %v6064_v29 }
  0xd3   : > { %5092 = vmatmul.mubr.msk.f32.vlgmr.msra.gmra.mrb[4].mxu1 %vm207_vm0, %v6113_v51 }
  0xd4   : > { %5332 = vmatmul.mubr.msk.f32.gmra.mrb[4].mxu0 %vm207_vm0, %v6081_v34  ;;  %5094 = vmatprep.mubr.msk.f32.mxu1 %vm207_vm0, %v6268_v30 }
  0xd5   : > { %5334 = vmatprep.mubr.msk.f32.mxu0 %vm207_vm0, %v6406_v24 }
  0xd7   : > { %5095 = vmatmul.mubr.msk.f32.gmra.mrb[6].mxu1 %vm207_vm0, %v6271_v31 }
  0xd8   : > { %5335 = vmatmul.mubr.msk.f32.gmra.mrb[6].mxu0 %vm207_vm0, %v4521_v7 }
 0x196   : > { %v5067_v12 = vpop.f32.mrb[0].mxu1 }
 0x197   : > { %v1921_v0 = vpop.f32.mrb[1].mxu1 }
 0x19a   : > { %v5070_v10 = vpop.f32.mrb[2].mxu1 }
 0x19b   : > { %v1931_v15 = vpop.f32.mrb[3].mxu1 }
 0x19f   : > { %v5327_v16 = vpop.f32.mrb[0].mxu0 }
 0x1a0   : > { %v5541_v18 = vadd.f32 %v5327_v16, %v5067_v12  ;;  %v3873_v27 = vpop.f32.mrb[1].mxu0 }
 0x1a1   : > { %v5542_v29 = vadd.f32 %v3873_v27, %v1921_v0 }
 0x1a2   : > { %3922 = vst.msk [vmem:[%s6652_s28 + $0x8] sm:$0xff] %vm3920_vm1, %v5541_v18  ;;  %v3930_v34 = vsel %vm3920_vm1, %v5541_v18, 0.0  ;;  %v3951_v41 = vmul.f32 %v5541_v18, %v5541_v18 }
 0x1a3   : > { %3921 = vst.msk [vmem:[%s6652_s28] sm:$0xff] %vm3920_vm1, %v5542_v29  ;;  %v3929_v51 = vsel %vm3920_vm1, %v5542_v29, 0.0  ;;  %v3950_v62 = vmul.f32 %v5542_v29, %v5542_v29  ;;  %v5330_v3 = vpop.f32.mrb[2].mxu0 }
 0x1a4   : > { %v3959_v46 = vsel %vm3920_vm1, %v3951_v41, 0.0  ;;  %v3931_v47 = vadd.f32 %v3930_v34, %v3929_v51  ;;  %v5543_v30 = vadd.f32 %v5330_v3, %v5070_v10  ;;  %v3883_v31 = vpop.f32.mrb[3].mxu0 }
 0x1a5   : > { %v3958_v39 = vsel %vm3920_vm1, %v3950_v62, 0.0  ;;  %v5544_v22 = vadd.f32 %v3883_v31, %v1931_v15 }
 0x1a6   : > { %v3960_v24 = vadd.f32 %v3959_v46, %v3958_v39  ;;  %3924 = vst.msk [vmem:[%s6652_s28 + $0x18] sm:$0xff] %vm3920_vm1, %v5543_v30  ;;  %v5093_v19 = vpop.f32.mrb[4].mxu1  ;;  %v3953_v21 = vmul.f32 %v5543_v30, %v5543_v30  ;;  %v3934_v37 = vsel %vm3920_vm1, %v5543_v30, 0.0 }
 0x1a7   : > { %3923 = vst.msk [vmem:[%s6652_s28 + $0x10] sm:$0xff] %vm3920_vm1, %v5544_v22  ;;  %v3932_v23 = vsel %vm3920_vm1, %v5544_v22, 0.0  ;;  %v3952_v26 = vmul.f32 %v5544_v22, %v5544_v22  ;;  %v5333_v33 = vpop.f32.mrb[4].mxu0  ;;  %v2091_v38 = vpop.f32.mrb[5].mxu1 }
 0x1a8   : > { %v3933_v32 = vadd.f32 %v3932_v23, %v3931_v47  ;;  %v5545_v56 = vadd.f32 %v5333_v33, %v5093_v19  ;;  %v3893_v61 = vpop.f32.mrb[5].mxu0  ;;  %v3963_v36 = vsel %vm3920_vm1, %v3953_v21, 0.0 }
 0x1a9   : > { %v3961_v48 = vsel %vm3920_vm1, %v3952_v26, 0.0  ;;  %v5546_v53 = vadd.f32 %v3893_v61, %v2091_v38 }
 0x1aa   : > { %v3962_v43 = vadd.f32 %v3961_v48, %v3960_v24  ;;  %3926 = vst.msk [vmem:[%s6652_s28 + $0x28] sm:$0xff] %vm3920_vm1, %v5545_v56  ;;  %v3935_v13 = vadd.f32 %v3934_v37, %v3933_v32  ;;  %v5096_v54 = vpop.f32.mrb[6].mxu1  ;;  %v3955_v60 = vmul.f32 %v5545_v56, %v5545_v56  ;;  %v3938_v8 = vsel %vm3920_vm1, %v5545_v56, 0.0 }
 0x1ab   : > { %3925 = vst.msk [vmem:[%s6652_s28 + $0x20] sm:$0xff] %vm3920_vm1, %v5546_v53  ;;  %v3936_v42 = vsel %vm3920_vm1, %v5546_v53, 0.0  ;;  %v3954_v44 = vmul.f32 %v5546_v53, %v5546_v53  ;;  %v5336_v4 = vpop.f32.mrb[6].mxu0  ;;  %v2101_v49 = vpop.f32.mrb[7].mxu1 }
 0x1ac   : > { %v3937_v40 = vadd.f32 %v3936_v42, %v3935_v13  ;;  %v3964_v2 = vadd.f32 %v3963_v36, %v3962_v43  ;;  %v5547_v5 = vadd.f32 %v5336_v4, %v5096_v54  ;;  %v3903_v11 = vpop.f32.mrb[7].mxu0  ;;  %v3967_v35 = vsel %vm3920_vm1, %v3955_v60, 0.0 }
 0x1ad   : > { %v3965_v55 = vsel %vm3920_vm1, %v3954_v44, 0.0  ;;  %v5548_v20 = vadd.f32 %v3903_v11, %v2101_v49 }
 0x1ae   : > { %v3966_v28 = vadd.f32 %v3965_v55, %v3964_v2  ;;  %3928 = vst.msk [vmem:[%s6652_s28 + $0x38] sm:$0xff] %vm3920_vm1, %v5547_v5  ;;  %v3939_v14 = vadd.f32 %v3938_v8, %v3937_v40  ;;  %v3957_v17 = vmul.f32 %v5547_v5, %v5547_v5  ;;  %v3942_v45 = vsel %vm3920_vm1, %v5547_v5, 0.0 }
 0x1af   : > { %3927 = vst.msk [vmem:[%s6652_s28 + $0x30] sm:$0xff] %vm3920_vm1, %v5548_v20  ;;  %v3940_v58 = vsel %vm3920_vm1, %v5548_v20, 0.0  ;;  %v3956_v63 = vmul.f32 %v5548_v20, %v5548_v20 }
 0x1b0   : > { %v3941_v25 = vadd.f32 %v3940_v58, %v3939_v14  ;;  %v3968_v1 = vadd.f32 %v3967_v35, %v3966_v28  ;;  %v3971_v57 = vsel %vm3920_vm1, %v3957_v17, 0.0 }
 0x1b1   : > { %v3969_v50 = vsel %vm3920_vm1, %v3956_v63, 0.0 }
 0x1b2   : > { %v3943_v6 = vadd.f32 %v3942_v45, %v3941_v25  ;;  %v3970_v52 = vadd.f32 %v3969_v50, %v3968_v1 }
 0x1b4   : > { %v3944_v9 = vrot.slane %v3943_v6, 4  ;;  %v3972_v59 = vadd.f32 %v3971_v57, %v3970_v52 }
 0x1b6   : > { %v3945_v7 = vadd.f32 %v3944_v9, %v3943_v6  ;;  %v3973_v12 = vrot.slane %v3972_v59, 4 }
 0x1b8   : > { %v3946_v0 = vrot.slane %v3945_v7, 2  ;;  %v3974_v10 = vadd.f32 %v3973_v12, %v3972_v59 }
 0x1ba   : > { %v3947_v15 = vadd.f32 %v3946_v0, %v3945_v7  ;;  %v3975_v16 = vrot.slane %v3974_v10, 2 }
 0x1bc   : > { %v3948_v18 = vrot.slane %v3947_v15, 1  ;;  %v3976_v27 = vadd.f32 %v3975_v16, %v3974_v10 }
 0x1be   : > { %v3977_v29 = vrot.slane %v3976_v27, 1  ;;  %v3949_v34 = vadd.f32 %v3948_v18, %v3947_v15 }
 0x1c0   : > { %v3978_v41 = vadd.f32 %v3977_v29, %v3976_v27 }
 0x1c2   : > { %v3980_v51 = vsel %vm3979_vm2, %v3949_v34, %v3978_v41 }
 0x1c3   : > { %3982 = vst.msk [vmem:[%s181_s4] sm:$0x3] %vm3981_vm3, %v3980_v51 }
 0x1c4 PF: > { %s14_s12 = sadd.s32 1, %s5748_s12  }
 0x1c5   : > { %p11_p4 = scmp.ge.s32.totalorder %s14_s12, 4  }
 0x1c7   :  { %13 = sbr.rel (!%p11_p4) target bundleno = 1 (0x1), region = 98 }

// kernel: _lambda_.11
= control target key start
LH: loop header
LB: loop body
LE: loop exit
PB: predicated region body
PF: predicated region fallthrough
CT: control target
= control target key end

     0   :  { %s564_s14 = smov 0   ;;  %s701_s0 = inlined_call_operand.vmem [shape: f32[2,64,144], index: 0, kind: input, shape index: {}]   ;;  %s702_s1 = inlined_call_operand.vmem [shape: f32[144,1], index: 1, kind: input, shape index: {}]   ;;  %s703_s2 = inlined_call_operand.<no memory space> [shape: f32[1,1], index: 2, kind: input, shape index: {}]   ;;  %s704_s3 = inlined_call_operand.vmem [shape: f32[2,64,1], index: 3, kind: output, shape index: {}]  }
   0x1   :  { %v8_v0 = vstv %s703_s2 }
   0x2   :  { %9 = vst [vmem:[#allocation2] sm:$0x1] %v8_v0 }
   0x3 LB: > { %s440_s15 = sadd.s32 4294967295, %s538_s14   ;;  %p444_p0 = scmp.ge.s32.totalorder %s538_s14, 1  ;;  %s538_s14 = sphi %s564_s14, %s15_s14  }
   0x4   : > { %p139_p1 = scmp.lt.s32.totalorder %s538_s14, 3 }
   0x6   : > { %p140_p2 = pnand %p444_p0, %p139_p1 }
   0x7   : > { %v189_v1 = vld [vmem:[%s702_s1] sm:$0xff] (!%p140_p2)  ;;  %v190_v2 = vld [vmem:[%s702_s1 + $0x8] sm:$0xff] (!%p140_p2)  ;;  %v191_v3 = vld [vmem:[%s702_s1 + $0x10] sm:$0xff] (!%p140_p2)  ;;  %p163_p3 = scmp.lt.s32.totalorder (!%p140_p2), %s440_s15, 1  ;;  %v540_v4 = vmov (!%p140_p2), 0.0|0.0   ;;  %vm214_vm0 = vcmask (!%p140_p2), 130048  }
   0x8   : > { %143 = sbr.rel (%p140_p2) target bundleno = 290 (0x122), region = 32  ;;  %462 = vmatprep.subr.bf16.mxu0 (!%p140_p2), %v540_v4  ;;  %489 = vmatprep.subr.bf16.mxu1 (!%p140_p2), %v540_v4  ;;  %v463_v5 = vpack.c.bf16 (!%p140_p2), %v190_v2, %v189_v1  ;;  %v192_v6 = vld [vmem:[%s702_s1 + $0x18] sm:$0xff] (!%p140_p2)  ;;  %v193_v8 = vld [vmem:[%s702_s1 + $0x20] sm:$0xff] (!%p140_p2)  ;;  %v194_v9 = vld [vmem:[%s702_s1 + $0x28] sm:$0xff] (!%p140_p2)  ;;  %vm376_vm1 = vcmask (!%p140_p2), 7168  }
   0x9   : > { %v466_v7 = vpack.c.bf16 (!%p140_p2), %v192_v6, %v191_v3  ;;  %v469_v12 = vpack.c.bf16 (!%p140_p2), %v194_v9, %v193_v8  ;;  %v195_v13 = vld [vmem:[%s702_s1 + $0x30] sm:$0xff] (!%p140_p2)  ;;  %v196_v14 = vld [vmem:[%s702_s1 + $0x38] sm:$0xff] (!%p140_p2)  ;;  %v197_v16 = vld [vmem:[%s702_s1 + $0x40] sm:$0xff] (!%p140_p2) }
   0xa   : > { %464 = vmatpush1.bf16.msra.mxu0 (!%p140_p2), %v463_v5  ;;  %498 = vmatpush1.bf16.msra.mxu1 (!%p140_p2), %v463_v5  ;;  %v472_v15 = vpack.c.bf16 (!%p140_p2), %v196_v14, %v195_v13  ;;  %v198_v17 = vld [vmem:[%s702_s1 + $0x48] sm:$0xff] (!%p140_p2)  ;;  %v199_v19 = vld [vmem:[%s702_s1 + $0x50] sm:$0xff] (!%p140_p2)  ;;  %v200_v20 = vld [vmem:[%s702_s1 + $0x58] sm:$0xff] (!%p140_p2) }
   0xb   : > { %465 = vmatprep.subr.bf16.mxu0 (!%p140_p2), %v540_v4  ;;  %490 = vmatprep.subr.bf16.mxu1 (!%p140_p2), %v540_v4  ;;  %v475_v18 = vpack.c.bf16 (!%p140_p2), %v198_v17, %v197_v16  ;;  %v478_v21 = vpack.c.bf16 (!%p140_p2), %v200_v20, %v199_v19  ;;  %v201_v22 = vld [vmem:[%s702_s1 + $0x60] sm:$0xff] (!%p140_p2)  ;;  %v202_v23 = vld [vmem:[%s702_s1 + $0x68] sm:$0xff] (!%p140_p2)  ;;  %v203_v25 = vld [vmem:[%s702_s1 + $0x70] sm:$0xff] (!%p140_p2) }
   0xc   : > { %v481_v24 = vpack.c.bf16 (!%p140_p2), %v202_v23, %v201_v22  ;;  %v204_v26 = vld [vmem:[%s702_s1 + $0x78] sm:$0xff] (!%p140_p2)  ;;  %v205_v28 = vld [vmem:[%s702_s1 + $0x80] sm:$0xff] (!%p140_p2)  ;;  %v206_v29 = vld [vmem:[%s702_s1 + $0x88] sm:$0xff] (!%p140_p2) }
   0xd   : > { %v484_v27 = vpack.c.bf16 (!%p140_p2), %v204_v26, %v203_v25  ;;  %v487_v30 = vpack.c.bf16 (!%p140_p2), %v206_v29, %v205_v28  ;;  %v449_v45 = vld [vmem:[#allocation2] ss:$0 sm:$0xff] (!%p140_p2) }
   0xe   : > { %467 = vmatpush1.bf16.msra.mxu0 (!%p140_p2), %v466_v7  ;;  %499 = vmatpush1.bf16.msra.mxu1 (!%p140_p2), %v466_v7 }
   0xf   : > { %s706_s15 = smov (!%p163_p3, %s440_s15), 1  ;;  %468 = vmatprep.subr.bf16.mxu0 %v540_v4  ;;  %491 = vmatprep.subr.bf16.mxu1 %v540_v4 }
  0x10   : > { %s460_s27 = sshll.u32 %s706_s15, 7  ;;  %s461_s29 = sshll.u32 %s706_s15, 6 }
  0x11   : > { %s600_s30 = scalar_lea.vmem %s701_s0, %s460_s27  ;;  %s680_s5 = scalar_lea.vmem %s704_s3, %s461_s29 }
  0x12   : > { %v174_v10 = vld [vmem:[%s600_s30 + $0x8] sm:$0xff]  ;;  %470 = vmatpush1.bf16.msra.mxu0 %v469_v12  ;;  %500 = vmatpush1.bf16.msra.mxu1 %v469_v12  ;;  %v173_v31 = vld [vmem:[%s600_s30] sm:$0xff]  ;;  %v176_v33 = vld [vmem:[%s600_s30 + $0x18] sm:$0xff] }
  0x13   : > { %v182_v11 = vld [vmem:[%s600_s30 + $0x48] sm:$0xff]  ;;  %450 = vmatprep.mubr.msk.f32.mxu0 %vm214_vm0, %v174_v10  ;;  %471 = vmatprep.subr.bf16.mxu0 %v540_v4  ;;  %v181_v32 = vld [vmem:[%s600_s30 + $0x40] sm:$0xff]  ;;  %v184_v34 = vld [vmem:[%s600_s30 + $0x58] sm:$0xff] }
  0x14   : > { %454 = vmatprep.mubr.msk.f32.mxu1 %vm214_vm0, %v182_v11  ;;  %492 = vmatprep.subr.bf16.mxu1 %v540_v4  ;;  %v175_v35 = vld [vmem:[%s600_s30 + $0x10] sm:$0xff]  ;;  %v178_v37 = vld [vmem:[%s600_s30 + $0x28] sm:$0xff]  ;;  %v177_v39 = vld [vmem:[%s600_s30 + $0x20] sm:$0xff] }
  0x15   : > { %v183_v36 = vld [vmem:[%s600_s30 + $0x50] sm:$0xff]  ;;  %v186_v38 = vld [vmem:[%s600_s30 + $0x68] sm:$0xff]  ;;  %v185_v40 = vld [vmem:[%s600_s30 + $0x60] sm:$0xff] }
  0x16   : > { %473 = vmatpush1.bf16.msra.mxu0 %v472_v15  ;;  %501 = vmatpush1.bf16.msra.mxu1 %v472_v15  ;;  %v180_v41 = vld [vmem:[%s600_s30 + $0x38] sm:$0xff]  ;;  %v179_v43 = vld [vmem:[%s600_s30 + $0x30] sm:$0xff] }
  0x17   : > { %474 = vmatprep.subr.bf16.mxu0 %v540_v4  ;;  %493 = vmatprep.subr.bf16.mxu1 %v540_v4  ;;  %v188_v42 = vld [vmem:[%s600_s30 + $0x78] sm:$0xff]  ;;  %v187_v44 = vld [vmem:[%s600_s30 + $0x70] sm:$0xff] }
  0x1a   : > { %476 = vmatpush1.bf16.msra.mxu0 %v475_v18  ;;  %502 = vmatpush1.bf16.msra.mxu1 %v475_v18 }
  0x1b   : > { %477 = vmatprep.subr.bf16.mxu0 %v540_v4  ;;  %494 = vmatprep.subr.bf16.mxu1 %v540_v4 }
  0x1e   : > { %479 = vmatpush1.bf16.msra.mxu0 %v478_v21  ;;  %503 = vmatpush1.bf16.msra.mxu1 %v478_v21 }
  0x1f   : > { %480 = vmatprep.subr.bf16.mxu0 %v540_v4  ;;  %495 = vmatprep.subr.bf16.mxu1 %v540_v4 }
  0x22   : > { %482 = vmatpush1.bf16.msra.mxu0 %v481_v24  ;;  %504 = vmatpush1.bf16.msra.mxu1 %v481_v24 }
  0x23   : > { %483 = vmatprep.subr.bf16.mxu0 %v540_v4  ;;  %496 = vmatprep.subr.bf16.mxu1 %v540_v4 }
  0x26   : > { %485 = vmatpush1.bf16.msra.mxu0 %v484_v27  ;;  %505 = vmatpush1.bf16.msra.mxu1 %v484_v27 }
  0x27   : > { %486 = vmatprep.subr.bf16.mxu0 %v540_v4  ;;  %497 = vmatprep.subr.bf16.mxu1 %v540_v4 }
  0x2a   : > { %488 = vmatpush1.bf16.msra.mxu0 %v487_v30  ;;  %506 = vmatpush1.bf16.msra.mxu1 %v487_v30 }
  0x2d   : > { %304 = vmatmul.mubr.f32.vlgmr.msra.gmra.mrb[0].mxu0 %v173_v31  ;;  %324 = vmatmul.mubr.f32.vlgmr.msra.gmra.mrb[0].mxu1 %v181_v32 }
  0x2e   : > { %451 = vmatprep.mubr.msk.f32.mxu0 %vm214_vm0, %v176_v33  ;;  %455 = vmatprep.mubr.msk.f32.mxu1 %vm214_vm0, %v184_v34 }
  0x31   : > { %309 = vmatmul.mubr.f32.gmra.mrb[2].mxu0 %v175_v35  ;;  %329 = vmatmul.mubr.f32.gmra.mrb[2].mxu1 %v183_v36 }
  0x32   : > { %452 = vmatprep.mubr.msk.f32.mxu0 %vm214_vm0, %v178_v37  ;;  %456 = vmatprep.mubr.msk.f32.mxu1 %vm214_vm0, %v186_v38 }
  0x35   : > { %314 = vmatmul.mubr.f32.gmra.mrb[4].mxu0 %v177_v39  ;;  %334 = vmatmul.mubr.f32.gmra.mrb[4].mxu1 %v185_v40 }
  0x36   : > { %453 = vmatprep.mubr.msk.f32.mxu0 %vm214_vm0, %v180_v41  ;;  %457 = vmatprep.mubr.msk.f32.mxu1 %vm214_vm0, %v188_v42 }
  0x39   : > { %319 = vmatmul.mubr.f32.gmra.mrb[6].mxu0 %v179_v43  ;;  %339 = vmatmul.mubr.f32.gmra.mrb[6].mxu1 %v187_v44 }
 0x100   : > { %v305_v46 = vpop.f32.mrb[0].mxu0  ;;  %v325_v47 = vpop.f32.mrb[0].mxu1 }
 0x101   : > { %v306_v48 = vadd.f32 %v449_v45, %v305_v46  ;;  %v326_v49 = vadd.f32 %v449_v45, %v325_v47  ;;  %v307_v50 = vpop.f32.mrb[1].mxu0  ;;  %v327_v51 = vpop.f32.mrb[1].mxu1 }
 0x103   : > { %v344_v52 = vmul.f32 0.5, %v306_v48  ;;  %v348_v53 = vmul.f32 0.5, %v326_v49 }
 0x104   : > { %v310_v54 = vpop.f32.mrb[2].mxu0  ;;  %v330_v55 = vpop.f32.mrb[2].mxu1 }
 0x105   : > { %516 = vtanh.f32 %v344_v52  ;;  %v311_v56 = vadd.f32 %v449_v45, %v310_v54  ;;  %v331_v57 = vadd.f32 %v449_v45, %v330_v55  ;;  %v312_v58 = vpop.f32.mrb[3].mxu0  ;;  %v332_v59 = vpop.f32.mrb[3].mxu1 }
 0x106   : > { %518 = vtanh.f32 %v348_v53 }
 0x107   : > { %v345_v60 = vmul.f32 0.5, %v311_v56  ;;  %v349_v61 = vmul.f32 0.5, %v331_v57 }
 0x108   : > { %v315_v62 = vpop.f32.mrb[4].mxu0  ;;  %v335_v63 = vpop.f32.mrb[4].mxu1 }
 0x109   : > { %520 = vtanh.f32 %v345_v60  ;;  %v316_v0 = vadd.f32 %v449_v45, %v315_v62  ;;  %v336_v1 = vadd.f32 %v449_v45, %v335_v63  ;;  %v317_v2 = vpop.f32.mrb[5].mxu0  ;;  %v337_v3 = vpop.f32.mrb[5].mxu1 }
 0x10a   : > { %522 = vtanh.f32 %v349_v61 }
 0x10b   : > { %v346_v4 = vmul.f32 0.5, %v316_v0  ;;  %v350_v5 = vmul.f32 0.5, %v336_v1 }
 0x10c   : > { %v320_v6 = vpop.f32.mrb[6].mxu0  ;;  %v340_v7 = vpop.f32.mrb[6].mxu1 }
 0x10d   : > { %524 = vtanh.f32 %v346_v4  ;;  %v321_v8 = vadd.f32 %v449_v45, %v320_v6  ;;  %v341_v9 = vadd.f32 %v449_v45, %v340_v7  ;;  %v322_v10 = vpop.f32.mrb[7].mxu0  ;;  %v342_v11 = vpop.f32.mrb[7].mxu1 }
 0x10e   : > { %526 = vtanh.f32 %v350_v5 }
 0x10f   : > { %v517_v12 = vpop.eup %516  ;;  %v347_v13 = vmul.f32 0.5, %v321_v8  ;;  %v351_v14 = vmul.f32 0.5, %v341_v9 }
 0x110   : > { %v519_v15 = vpop.eup %518  ;;  %v360_v16 = vadd.f32 1.0, %v517_v12 }
 0x111   : > { %v364_v17 = vadd.f32 1.0, %v519_v15  ;;  %528 = vtanh.f32 %v347_v13 }
 0x112   : > { %v368_v18 = vmul.f32 0.5, %v360_v16  ;;  %530 = vtanh.f32 %v351_v14 }
 0x113   : > { %v521_v19 = vpop.eup %520  ;;  %v372_v20 = vmul.f32 0.5, %v364_v17 }
 0x114   : > { %v523_v21 = vpop.eup %522  ;;  %377 = vst.msk [vmem:[%s680_s5] sm:$0xff] %vm376_vm1, %v368_v18  ;;  %v361_v22 = vadd.f32 1.0, %v521_v19 }
 0x115   : > { %381 = vst.msk [vmem:[%s680_s5 + $0x20] sm:$0xff] %vm376_vm1, %v372_v20  ;;  %v365_v23 = vadd.f32 1.0, %v523_v21 }
 0x116   : > { %v369_v24 = vmul.f32 0.5, %v361_v22 }
 0x117   : > { %v525_v25 = vpop.eup %524  ;;  %v373_v26 = vmul.f32 0.5, %v365_v23 }
 0x118   : > { %v527_v27 = vpop.eup %526  ;;  %378 = vst.msk [vmem:[%s680_s5 + $0x8] sm:$0xff] %vm376_vm1, %v369_v24  ;;  %v362_v28 = vadd.f32 1.0, %v525_v25 }
 0x119   : > { %382 = vst.msk [vmem:[%s680_s5 + $0x28] sm:$0xff] %vm376_vm1, %v373_v26  ;;  %v366_v29 = vadd.f32 1.0, %v527_v27 }
 0x11a   : > { %v370_v30 = vmul.f32 0.5, %v362_v28 }
 0x11b   : > { %v529_v31 = vpop.eup %528  ;;  %v374_v32 = vmul.f32 0.5, %v366_v29 }
 0x11c   : > { %v531_v33 = vpop.eup %530  ;;  %379 = vst.msk [vmem:[%s680_s5 + $0x10] sm:$0xff] %vm376_vm1, %v370_v30  ;;  %v363_v34 = vadd.f32 1.0, %v529_v31 }
 0x11d   : > { %383 = vst.msk [vmem:[%s680_s5 + $0x30] sm:$0xff] %vm376_vm1, %v374_v32  ;;  %v367_v35 = vadd.f32 1.0, %v531_v33 }
 0x11e   : > { %v371_v36 = vmul.f32 0.5, %v363_v34 }
 0x11f   : > { %v375_v37 = vmul.f32 0.5, %v367_v35 }
 0x120   : > { %380 = vst.msk [vmem:[%s680_s5 + $0x18] sm:$0xff] %vm376_vm1, %v371_v36 }
 0x121   : > { %384 = vst.msk [vmem:[%s680_s5 + $0x38] sm:$0xff] %vm376_vm1, %v375_v37 }
 0x122 PF: > { %s15_s14 = sadd.s32 1, %s538_s14  }
 0x123   : > { %p12_p4 = scmp.ge.s32.totalorder %s15_s14, 4  }
 0x125   :  { %14 = sbr.rel (!%p12_p4) target bundleno = 3 (0x3), region = 62 }

// kernel: _lambda_.9
= control target key start
LH: loop header
LB: loop body
LE: loop exit
PB: predicated region body
PF: predicated region fallthrough
CT: control target
= control target key end

     0   :  { %s14799_s12 = smov 0   ;;  %s17750_s0 = inlined_call_operand.vmem [shape: f32[2,20,20,24], index: 0, kind: input, shape index: {}]   ;;  %s17751_s1 = inlined_call_operand.vmem [shape: f32[25,24,16], index: 1, kind: input, shape index: {}]   ;;  %s17752_s2 = inlined_call_operand.vmem [shape: f32[2,256,16], index: 2, kind: output, shape index: {0}]   ;;  %s17753_s3 = inlined_call_operand.vmem [shape: f32[2,2,16], index: 3, kind: output, shape index: {1}]  }
   0x1 LB: > { %s10140_s13 = sadd.s32 4294967295, %s14777_s12   ;;  %p10144_p0 = scmp.ge.s32.totalorder %s14777_s12, 1  ;;  %s14777_s12 = sphi %s14799_s12, %s14_s12  }
   0x2   : > { %p140_p1 = scmp.lt.s32.totalorder %s14777_s12, 3 }
   0x4   : > { %p141_p2 = pnand %p10144_p0, %p140_p1 }
   0x6   : > { %144 = sbr.rel (%p141_p2) target bundleno = 1055 (0x41f), region = 28 }
   0xd   : > { %v10149_v0 = vld [vmem:[%s17751_s1 + $0x18] sm:$0xff]  ;;  %v10150_v1 = vld [vmem:[%s17751_s1 + $0x20] sm:$0xff]  ;;  %p168_p3 = scmp.lt.s32.totalorder %s10140_s13, 1  ;;  %v10823_v4 = vld [vmem:[%s17751_s1 + $0x128] sm:$0xff]  ;;  %vm253_vm0 = vcmask 195584   ;;  %vm9847_vm1 = vcmask 130048  }
   0xe   : > { %v10822_v2 = vld [vmem:[%s17751_s1 + $0x120] sm:$0xff]  ;;  %v13889_v3 = vpack.c.bf16 %v10150_v1, %v10149_v0  ;;  %v10151_v6 = vld [vmem:[%s17751_s1 + $0x28] sm:$0xff]  ;;  %v10824_v7 = vld [vmem:[%s17751_s1 + $0x130] sm:$0xff]  ;;  %vm10050_vm2 = vcmask 1040384   ;;  %vm10052_vm3 = vcmask 123904  }
   0xf   : > { %v14819_v5 = vpack.c.bf16 %v10823_v4, %v10822_v2  ;;  %s18113_s13 = smov (!%p168_p3, %s10140_s13), 1  ;;  %v214_v8 = vld [vmem:[%s17751_s1] sm:$0xff]  ;;  %v215_v9 = vld [vmem:[%s17751_s1 + $0x8] sm:$0xff]  ;;  %v10889_v10 = vld [vmem:[%s17751_s1 + $0x138] sm:$0xff] }
  0x10   : > { %13890 = vmatprep.subr.bf16.mxu1 %v13889_v3  ;;  %s14761_s30 = smul.u32 480, %s18113_s13  ;;  %v10890_v11 = vld [vmem:[%s17751_s1 + $0x140] sm:$0xff]  ;;  %v13893_v12 = vpack.c.bf16 %v215_v9, %v214_v8  ;;  %v10956_v18 = vld [vmem:[%s17751_s1 + $0x150] sm:$0xff]  ;;  %v10957_v21 = vld [vmem:[%s17751_s1 + $0x158] sm:$0xff]  ;;  %s10148_s28 = sshll.u32 %s18113_s13, 1 }
  0x11   : > { %17874 = vst [vmem:[#allocation2_spill] sm:$0xff] %v14819_v5  ;;  %13938 = vmatprep.subr.bf16.mxu0 %v14819_v5  ;;  %13892 = vmatpush3.bf16.msra.mxu1 %v13889_v3  ;;  %v13941_v16 = vpack.c.bf16 %v10890_v11, %v10889_v10  ;;  %v10891_v23 = vld [vmem:[%s17751_s1 + $0x148] sm:$0xff]  ;;  %v14887_v27 = vpack.c.bf16 %v10957_v21, %v10956_v18  ;;  %v216_v28 = vld [vmem:[%s17751_s1 + $0x10] sm:$0xff]  ;;  %v10217_v30 = vld [vmem:[%s17751_s1 + $0x38] sm:$0xff]  ;;  %s181_s4 = scalar_lea.vmem %s17753_s3, %s10148_s28 }
  0x12   : > { %13940 = vmatpush3.bf16.msra.mxu0 %v14819_v5  ;;  %12543 = vmatprep.subr.mxu1 %v10151_v6  ;;  %s14847_s10 = scalar_lea.vmem %s17750_s0, %s14761_s30  ;;  %v10216_v29 = vld [vmem:[%s17751_s1 + $0x30] sm:$0xff]  ;;  %v10958_v60 = vld [vmem:[%s17751_s1 + $0x160] sm:$0xff]  ;;  %v11023_v61 = vld [vmem:[%s17751_s1 + $0x168] sm:$0xff] }
  0x13   : > { %13191 = vmatprep.subr.mxu0 %v10824_v7  ;;  %v217_v13 = vld [vmem:[%s14847_s10 + $0x1] sm:$0xff]  ;;  %v14851_v14 = vld [vmem:[%s14847_s10 + $0x32] sm:$0xff]  ;;  %v218_v15 = vld [vmem:[%s14847_s10 + $0x9] sm:$0xff]  ;;  %v14915_v35 = vpack.c.bf16 %v10217_v30, %v10216_v29 }
  0x14   : > { %12545 = vmatprep.mubr.msk.f32.mxu1 %vm253_vm0, %v217_v13  ;;  %v14856_v17 = vld [vmem:[%s14847_s10 + $0x3a] sm:$0xff]  ;;  %13193 = vmatprep.mubr.msk.f32.mxu0 %vm253_vm0, %v14851_v14  ;;  %v14866_v20 = vld [vmem:[%s14847_s10 + $0x4a] sm:$0xff]  ;;  %v14878_v24 = vld [vmem:[%s14847_s10 + $0x52] sm:$0xff] }
  0x15   : > { %12544 = vmatpush3.msra.mxu1 %v10151_v6  ;;  %v219_v19 = vld [vmem:[%s14847_s10 + $0x19] sm:$0xff]  ;;  %v220_v22 = vld [vmem:[%s14847_s10 + $0x21] sm:$0xff]  ;;  %v221_v25 = vld [vmem:[%s14847_s10 + $0x31] sm:$0xff] }
  0x16   : > { %13192 = vmatpush3.msra.mxu0 %v10824_v7  ;;  %12546 = vmatmul.mubr.msk.f32.vlgmr.msra.gmra.mrb[0].mxu1 %vm253_vm0, %v218_v15  ;;  %v14885_v26 = vld [vmem:[%s14847_s10 + $0x62] sm:$0xff]  ;;  %v222_v31 = vld [vmem:[%s14847_s10 + $0x39] sm:$0xff]  ;;  %v14906_v32 = vld [vmem:[%s14847_s10 + $0x6a] sm:$0xff] }
  0x17   : > { %13894 = vmatprep.subr.bf16.mxu1 %v13893_v12  ;;  %13194 = vmatmul.mubr.msk.f32.vlgmr.msra.gmra.mrb[0].mxu0 %vm253_vm0, %v14856_v17  ;;  %v14909_v33 = vld [vmem:[%s14847_s10 + $0x49] sm:$0xff]  ;;  %v14912_v34 = vld [vmem:[%s14847_s10 + $0x7a] sm:$0xff]  ;;  %v14923_v36 = vld [vmem:[%s14847_s10 + $0x51] sm:$0xff] }
  0x18   : > { %13942 = vmatprep.subr.bf16.mxu0 %v13941_v16  ;;  %13896 = vmatpush3.bf16.msra.mxu1 %v13893_v12  ;;  %17875 = vst [vmem:[#allocation3_spill] sm:$0xff] %v14909_v33  ;;  %17876 = vst [vmem:[#allocation4_spill] sm:$0xff] %v14923_v36  ;;  %v14928_v37 = vld [vmem:[%s14847_s10 + $0x82] sm:$0xff]  ;;  %v14934_v39 = vld [vmem:[%s14847_s10 + $0x92] sm:$0xff] }
  0x19   : > { %13944 = vmatpush3.bf16.msra.mxu0 %v13941_v16  ;;  %12548 = vmatprep.mubr.msk.f32.mxu1 %vm253_vm0, %v219_v19  ;;  %v14931_v38 = vld [vmem:[%s14847_s10 + $0x61] sm:$0xff]  ;;  %v14944_v40 = vld [vmem:[%s14847_s10 + $0x69] sm:$0xff]  ;;  %v14952_v42 = vld [vmem:[%s14847_s10 + $0x79] sm:$0xff] }
  0x1a   : > { %13196 = vmatprep.mubr.msk.f32.mxu0 %vm253_vm0, %v14866_v20  ;;  %12549 = vmatmul.mubr.msk.f32.gmra.mrb[2].mxu1 %vm253_vm0, %v220_v22  ;;  %17877 = vst [vmem:[#allocation5_spill] sm:$0xff] %v14931_v38  ;;  %17878 = vst [vmem:[#allocation6_spill] sm:$0xff] %v14944_v40  ;;  %v14949_v41 = vld [vmem:[%s14847_s10 + $0x9a] sm:$0xff]  ;;  %v14955_v43 = vld [vmem:[%s14847_s10 + $0xaa] sm:$0xff] }
  0x1b   : > { %13245 = vmatprep.subr.mxu0 %v10891_v23  ;;  %13197 = vmatmul.mubr.msk.f32.gmra.mrb[2].mxu0 %vm253_vm0, %v14878_v24  ;;  %17879 = vst [vmem:[#allocation7_spill] sm:$0xff] %v14952_v42  ;;  %v14964_v44 = vld [vmem:[%s14847_s10 + $0x81] sm:$0xff]  ;;  %v14969_v45 = vld [vmem:[%s14847_s10 + $0xb2] sm:$0xff]  ;;  %v14989_v49 = vld [vmem:[%s14847_s10 + $0xca] sm:$0xff] }
  0x1c   : > { %12551 = vmatprep.mubr.msk.f32.mxu1 %vm253_vm0, %v221_v25  ;;  %13199 = vmatprep.mubr.msk.f32.mxu0 %vm253_vm0, %v14885_v26  ;;  %17880 = vst [vmem:[#allocation8_spill] sm:$0xff] %v14964_v44  ;;  %v14972_v46 = vld [vmem:[%s14847_s10 + $0x91] sm:$0xff]  ;;  %v14975_v47 = vld [vmem:[%s14847_s10 + $0xc2] sm:$0xff]  ;;  %v14984_v48 = vld [vmem:[%s14847_s10 + $0x99] sm:$0xff] }
  0x1d   : > { %13246 = vmatpush3.msra.mxu0 %v10891_v23  ;;  %12597 = vmatprep.subr.mxu1 %v216_v28  ;;  %17881 = vst [vmem:[#allocation9_spill] sm:$0xff] %v14972_v46  ;;  %17882 = vst [vmem:[#allocation10_spill] sm:$0xff] %v14984_v48  ;;  %v14992_v50 = vld [vmem:[%s14847_s10 + $0xa9] sm:$0xff]  ;;  %v14995_v51 = vld [vmem:[%s14847_s10 + $0xda] sm:$0xff] }
  0x1e   : > { %13946 = vmatprep.subr.bf16.mxu0 %v14887_v27  ;;  %12552 = vmatmul.mubr.msk.f32.gmra.mrb[4].mxu1 %vm253_vm0, %v222_v31  ;;  %17883 = vst [vmem:[#allocation11_spill] sm:$0xff] %v14992_v50  ;;  %v15004_v52 = vld [vmem:[%s14847_s10 + $0xb1] sm:$0xff]  ;;  %v15009_v53 = vld [vmem:[%s14847_s10 + $0xe2] sm:$0xff]  ;;  %v15032_v58 = vld [vmem:[%s14847_s10 + $0xd9] sm:$0xff] }
  0x1f   : > { %13200 = vmatmul.mubr.msk.f32.gmra.mrb[4].mxu0 %vm253_vm0, %v14906_v32  ;;  %12554 = vmatprep.mubr.msk.f32.mxu1 %vm253_vm0, %v14909_v33  ;;  %17884 = vst [vmem:[#allocation12_spill] sm:$0xff] %v15004_v52  ;;  %v15012_v54 = vld [vmem:[%s14847_s10 + $0xc1] sm:$0xff]  ;;  %v15015_v55 = vld [vmem:[%s14847_s10 + $0x33] sm:$0xff]  ;;  %v15024_v56 = vld [vmem:[%s14847_s10 + $0xc9] sm:$0xff] }
  0x20   : > { %13202 = vmatprep.mubr.msk.f32.mxu0 %vm253_vm0, %v14912_v34  ;;  %12598 = vmatpush3.msra.mxu1 %v216_v28  ;;  %17885 = vst [vmem:[#allocation13_spill] sm:$0xff] %v15012_v54  ;;  %17886 = vst [vmem:[#allocation14_spill] sm:$0xff] %v15024_v56  ;;  %v15029_v57 = vld [vmem:[%s14847_s10 + $0x3b] sm:$0xff]  ;;  %v15035_v59 = vld [vmem:[%s14847_s10 + $0x4b] sm:$0xff] }
  0x21   : > { %13898 = vmatprep.subr.bf16.mxu1 %v14915_v35  ;;  %17887 = vst [vmem:[#allocation15_spill] sm:$0xff] %v15032_v58  ;;  %v11024_v62 = vld [vmem:[%s17751_s1 + $0x170] sm:$0xff]  ;;  %v15053_v63 = vld [vmem:[%s14847_s10 + $0xe1] sm:$0xff]  ;;  %v15076_v4 = vld [vmem:[%s14847_s10 + $0xf9] sm:$0xff] }
  0x22   : > { %12555 = vmatmul.mubr.msk.f32.gmra.mrb[6].mxu1 %vm253_vm0, %v14923_v36  ;;  %17888 = vst [vmem:[#allocation16_spill] sm:$0xff] %v15053_v63  ;;  %v15059_v0 = vld [vmem:[%s14847_s10 + $0x53] sm:$0xff]  ;;  %v15065_v2 = vld [vmem:[%s14847_s10 + $0x63] sm:$0xff]  ;;  %v15067_v3 = vpack.c.bf16 %v11024_v62, %v11023_v61  ;;  %17890 = vst [vmem:[#allocation18_spill] sm:$0xff] %v15076_v4 }
  0x23   : > { %13203 = vmatmul.mubr.msk.f32.gmra.mrb[6].mxu0 %vm253_vm0, %v14928_v37  ;;  %12557 = vmatprep.mubr.msk.f32.mxu1 %vm253_vm0, %v14931_v38  ;;  %v15062_v1 = vld [vmem:[%s14847_s10 + $0xf1] sm:$0xff]  ;;  %v15084_v7 = vld [vmem:[%s14847_s10 + $0x109] sm:$0xff]  ;;  %v15087_v8 = vld [vmem:[%s14847_s10 + $0x7b] sm:$0xff] }
  0x24   : > { %13205 = vmatprep.mubr.msk.f32.mxu0 %vm253_vm0, %v14934_v39  ;;  %17889 = vst [vmem:[#allocation17_spill] sm:$0xff] %v15062_v1  ;;  %v15081_v6 = vld [vmem:[%s14847_s10 + $0x6b] sm:$0xff]  ;;  %17891 = vst [vmem:[#allocation19_spill] sm:$0xff] %v15084_v7  ;;  %v15102_v10 = vld [vmem:[%s14847_s10 + $0x83] sm:$0xff] }
  0x25   : > { %v15097_v9 = vld [vmem:[%s14847_s10 + $0x111] sm:$0xff]  ;;  %v15105_v11 = vld [vmem:[%s14847_s10 + $0x121] sm:$0xff]  ;;  %v15117_v13 = vld [vmem:[%s14847_s10 + $0x129] sm:$0xff] }
  0x26   : > { %12558 = vmatmul.mubr.msk.f32.gmra.mrb[8].mxu1 %vm253_vm0, %v14944_v40  ;;  %17892 = vst [vmem:[#allocation20_spill] sm:$0xff] %v15097_v9  ;;  %17893 = vst [vmem:[#allocation21_spill] sm:$0xff] %v15105_v11  ;;  %v15108_v12 = vld [vmem:[%s14847_s10 + $0x93] sm:$0xff]  ;;  %v15122_v15 = vld [vmem:[%s14847_s10 + $0x9b] sm:$0xff] }
  0x27   : > { %13206 = vmatmul.mubr.msk.f32.gmra.mrb[8].mxu0 %vm253_vm0, %v14949_v41  ;;  %12560 = vmatprep.mubr.msk.f32.mxu1 %vm253_vm0, %v14952_v42  ;;  %17894 = vst [vmem:[#allocation22_spill] sm:$0xff] %v15117_v13  ;;  %v15125_v16 = vld [vmem:[%s14847_s10 + $0x139] sm:$0xff]  ;;  %v15128_v18 = vld [vmem:[%s14847_s10 + $0xab] sm:$0xff]  ;;  %v15137_v19 = vld [vmem:[%s14847_s10 + $0x141] sm:$0xff] }
  0x28   : > { %13208 = vmatprep.mubr.msk.f32.mxu0 %vm253_vm0, %v14955_v43  ;;  %17895 = vst [vmem:[#allocation23_spill] sm:$0xff] %v15125_v16  ;;  %17896 = vst [vmem:[#allocation24_spill] sm:$0xff] %v15128_v18  ;;  %v15142_v21 = vld [vmem:[%s14847_s10 + $0xb3] sm:$0xff]  ;;  %v15148_v23 = vld [vmem:[%s14847_s10 + $0xc3] sm:$0xff] }
  0x29   : > { %17897 = vst [vmem:[#allocation25_spill] sm:$0xff] %v15137_v19  ;;  %17898 = vst [vmem:[#allocation26_spill] sm:$0xff] %v15142_v21  ;;  %v15145_v22 = vld [vmem:[%s14847_s10 + $0x151] sm:$0xff]  ;;  %v15157_v25 = vld [vmem:[%s14847_s10 + $0x159] sm:$0xff] }
  0x2a   : > { %12561 = vmatmul.mubr.msk.f32.gmra.mrb[10].mxu1 %vm253_vm0, %v14964_v44  ;;  %17899 = vst [vmem:[#allocation27_spill] sm:$0xff] %v15145_v22  ;;  %17900 = vst [vmem:[#allocation28_spill] sm:$0xff] %v15148_v23  ;;  %v15165_v28 = vld [vmem:[%s14847_s10 + $0x169] sm:$0xff]  ;;  %v15168_v29 = vld [vmem:[%s14847_s10 + $0xdb] sm:$0xff] }
  0x2b   : > { %13209 = vmatmul.mubr.msk.f32.gmra.mrb[10].mxu0 %vm253_vm0, %v14969_v45  ;;  %12563 = vmatprep.mubr.msk.f32.mxu1 %vm253_vm0, %v14972_v46  ;;  %17901 = vst [vmem:[#allocation29_spill] sm:$0xff] %v15157_v25  ;;  %17903 = vst [vmem:[#allocation31_spill] sm:$0xff] %v15165_v28  ;;  %v15177_v30 = vld [vmem:[%s14847_s10 + $0x171] sm:$0xff]  ;;  %v15182_v31 = vld [vmem:[%s14847_s10 + $0xe3] sm:$0xff] }
  0x2c   : > { %13211 = vmatprep.mubr.msk.f32.mxu0 %vm253_vm0, %v14975_v47  ;;  %17904 = vst [vmem:[#allocation32_spill] sm:$0xff] %v15168_v29  ;;  %17905 = vst [vmem:[#allocation33_spill] sm:$0xff] %v15177_v30  ;;  %v15186_v61 = vld [vmem:[%s14847_s10 + $0xf3] sm:$0xff]  ;;  %v183_v62 = vld [vmem:[%s14847_s10 + $0x8] sm:$0xff] }
  0x2d   : > { %17906 = vst [vmem:[#allocation34_spill] sm:$0xff] %v15182_v31  ;;  %17907 = vst [vmem:[#allocation35_spill] sm:$0xff] %v15186_v61  ;;  %v15197_v5 = vld [vmem:[%s14847_s10 + $0xfb] sm:$0xff]  ;;  %v15378_v46 = vld [vmem:[%s14847_s10 + $0xf0] sm:$0xff] }
  0x2e   : > { %12564 = vmatmul.mubr.msk.f32.gmra.mrb[12].mxu1 %vm253_vm0, %v14984_v48  ;;  %17908 = vst [vmem:[#allocation36_spill] sm:$0xff] %v15197_v5  ;;  %v15369_v48 = vld [vmem:[%s14847_s10 + $0xe0] sm:$0xff]  ;;  %v15424_v44 = vld [vmem:[%s14847_s10 + $0x94] sm:$0xff]  ;;  %v15444_v42 = vld [vmem:[%s14847_s10 + $0xac] sm:$0xff] }
  0x2f   : > { %13212 = vmatmul.mubr.msk.f32.gmra.mrb[12].mxu0 %vm253_vm0, %v14989_v49  ;;  %12566 = vmatprep.mubr.msk.f32.mxu1 %vm253_vm0, %v14992_v50  ;;  %v15351_v50 = vld [vmem:[%s14847_s10 + $0x4c] sm:$0xff]  ;;  %17927 = vst [vmem:[#allocation55_spill] sm:$0xff] %v15424_v44  ;;  %17929 = vst [vmem:[#allocation57_spill] sm:$0xff] %v15444_v42  ;;  %v15464_v40 = vld [vmem:[%s14847_s10 + $0xc4] sm:$0xff] }
  0x30   : > { %13214 = vmatprep.mubr.msk.f32.mxu0 %vm253_vm0, %v14995_v51  ;;  %17921 = vst [vmem:[#allocation49_spill] sm:$0xff] %v15351_v50  ;;  %17931 = vst [vmem:[#allocation59_spill] sm:$0xff] %v15464_v40  ;;  %v15484_v38 = vld [vmem:[%s14847_s10 + $0xdc] sm:$0xff]  ;;  %v15502_v36 = vld [vmem:[%s14847_s10 + $0xf4] sm:$0xff] }
  0x31   : > { %17933 = vst [vmem:[#allocation61_spill] sm:$0xff] %v15484_v38  ;;  %17935 = vst [vmem:[#allocation63_spill] sm:$0xff] %v15502_v36  ;;  %v15517_v33 = vld [vmem:[%s14847_s10 + $0x10c] sm:$0xff] }
  0x32   : > { %12567 = vmatmul.mubr.msk.f32.gmra.mrb[14].mxu1 %vm253_vm0, %v15004_v52  ;;  %v15332_v52 = vld [vmem:[%s14847_s10 + $0x34] sm:$0xff] }
  0x33   : > { %13215 = vmatmul.mubr.msk.f32.gmra.mrb[14].mxu0 %vm253_vm0, %v15009_v53  ;;  %12569 = vmatprep.mubr.msk.f32.mxu1 %vm253_vm0, %v15012_v54  ;;  %v10887_v54 = vld [vmem:[%s14847_s10 + $0x19b] sm:$0xff]  ;;  %17919 = vst [vmem:[#allocation47_spill] sm:$0xff] %v15332_v52 }
  0x34   : > { %13247 = vmatprep.mubr.msk.f32.mxu0 %vm253_vm0, %v15015_v55 }
  0x36   : > { %12570 = vmatmul.mubr.msk.f32.gmra.mrb[16].mxu1 %vm253_vm0, %v15024_v56  ;;  %v10885_v56 = vld [vmem:[%s14847_s10 + $0x183] sm:$0xff] }
  0x37   : > { %13248 = vmatmul.mubr.msk.f32.vlgmr.msra.gmra.mrb[0].mxu0 %vm253_vm0, %v15029_v57  ;;  %12572 = vmatprep.mubr.msk.f32.mxu1 %vm253_vm0, %v15032_v58  ;;  %v15297_v58 = vld [vmem:[%s14847_s10 + $0x173] sm:$0xff] }
  0x38   : > { %13948 = vmatpush3.bf16.msra.mxu0 %v14887_v27  ;;  %13250 = vmatprep.mubr.msk.f32.mxu0 %vm253_vm0, %v15035_v59  ;;  %v15162_v27 = vld [vmem:[%s14847_s10 + $0xcb] sm:$0xff]  ;;  %17918 = vst [vmem:[#allocation46_spill] sm:$0xff] %v15297_v58 }
  0x39   : > { %13299 = vmatprep.subr.mxu0 %v10958_v60  ;;  %17902 = vst [vmem:[#allocation30_spill] sm:$0xff] %v15162_v27 }
  0x3a   : > { %12573 = vmatmul.mubr.msk.f32.gmra.mrb[18].mxu1 %vm253_vm0, %v15053_v63  ;;  %v15292_v63 = vld [vmem:[%s14847_s10 + $0x80] sm:$0xff] }
  0x3b   : > { %13251 = vmatmul.mubr.msk.f32.gmra.mrb[2].mxu0 %vm253_vm0, %v15059_v0  ;;  %12575 = vmatprep.mubr.msk.f32.mxu1 %vm253_vm0, %v15062_v1  ;;  %v15283_v1 = vld [vmem:[%s14847_s10 + $0x16b] sm:$0xff] }
  0x3c   : > { %13253 = vmatprep.mubr.msk.f32.mxu0 %vm253_vm0, %v15065_v2  ;;  %13300 = vmatpush3.msra.mxu0 %v10958_v60  ;;  %v182_v60 = vld [vmem:[%s14847_s10] sm:$0xff]  ;;  %17917 = vst [vmem:[#allocation45_spill] sm:$0xff] %v15283_v1 }
  0x3d   : > { %13950 = vmatprep.subr.bf16.mxu0 %v15067_v3 }
  0x3e   : > { %12576 = vmatmul.mubr.msk.f32.gmra.mrb[20].mxu1 %vm253_vm0, %v15076_v4  ;;  %v15280_v4 = vld [vmem:[%s14847_s10 + $0x78] sm:$0xff] }
  0x3f   : > { %13254 = vmatmul.mubr.msk.f32.gmra.mrb[4].mxu0 %vm253_vm0, %v15081_v6  ;;  %12578 = vmatprep.mubr.msk.f32.mxu1 %vm253_vm0, %v15084_v7  ;;  %v15277_v7 = vld [vmem:[%s14847_s10 + $0x15b] sm:$0xff] }
  0x40   : > { %13256 = vmatprep.mubr.msk.f32.mxu0 %vm253_vm0, %v15087_v8  ;;  %17916 = vst [vmem:[#allocation44_spill] sm:$0xff] %v15277_v7 }
  0x42   : > { %12579 = vmatmul.mubr.msk.f32.gmra.mrb[22].mxu1 %vm253_vm0, %v15097_v9  ;;  %v15240_v9 = vld [vmem:[%s14847_s10 + $0x48] sm:$0xff] }
  0x43   : > { %13257 = vmatmul.mubr.msk.f32.gmra.mrb[6].mxu0 %vm253_vm0, %v15102_v10  ;;  %12581 = vmatprep.mubr.msk.f32.mxu1 %vm253_vm0, %v15105_v11 }
  0x44   : > { %13259 = vmatprep.mubr.msk.f32.mxu0 %vm253_vm0, %v15108_v12 }
  0x46   : > { %12582 = vmatmul.mubr.msk.f32.gmra.mrb[24].mxu1 %vm253_vm0, %v15117_v13  ;;  %v15225_v13 = vld [vmem:[%s14847_s10 + $0x123] sm:$0xff] }
  0x47   : > { %13260 = vmatmul.mubr.msk.f32.gmra.mrb[8].mxu0 %vm253_vm0, %v15122_v15  ;;  %12584 = vmatprep.mubr.msk.f32.mxu1 %vm253_vm0, %v15125_v16  ;;  %v186_v16 = vld [vmem:[%s14847_s10 + $0x30] sm:$0xff]  ;;  %17911 = vst [vmem:[#allocation39_spill] sm:$0xff] %v15225_v13 }
  0x48   : > { %13262 = vmatprep.mubr.msk.f32.mxu0 %vm253_vm0, %v15128_v18 }
  0x4a   : > { %12585 = vmatmul.mubr.msk.f32.gmra.mrb[26].mxu1 %vm253_vm0, %v15137_v19  ;;  %v15221_v19 = vld [vmem:[%s14847_s10 + $0x113] sm:$0xff] }
  0x4b   : > { %13263 = vmatmul.mubr.msk.f32.gmra.mrb[10].mxu0 %vm253_vm0, %v15142_v21  ;;  %12587 = vmatprep.mubr.msk.f32.mxu1 %vm253_vm0, %v15145_v22  ;;  %v10252_v22 = vld [vmem:[%s17751_s1 + $0x50] sm:$0xff]  ;;  %17910 = vst [vmem:[#allocation38_spill] sm:$0xff] %v15221_v19  ;;  %v15540_v21 = vld [vmem:[%s14847_s10 + $0x124] sm:$0xff] }
  0x4c   : > { %13265 = vmatprep.mubr.msk.f32.mxu0 %vm253_vm0, %v15148_v23  ;;  %v10253_v23 = vld [vmem:[%s17751_s1 + $0x58] sm:$0xff] }
  0x4e   : > { %12588 = vmatmul.mubr.msk.f32.gmra.mrb[28].mxu1 %vm253_vm0, %v15157_v25  ;;  %v15201_v25 = vld [vmem:[%s14847_s10 + $0x10b] sm:$0xff] }
  0x4f   : > { %13266 = vmatmul.mubr.msk.f32.gmra.mrb[12].mxu0 %vm253_vm0, %v15162_v27  ;;  %12590 = vmatprep.mubr.msk.f32.mxu1 %vm253_vm0, %v15165_v28  ;;  %v184_v28 = vld [vmem:[%s14847_s10 + $0x18] sm:$0xff]  ;;  %17909 = vst [vmem:[#allocation37_spill] sm:$0xff] %v15201_v25 }
  0x50   : > { %13268 = vmatprep.mubr.msk.f32.mxu0 %vm253_vm0, %v15168_v29  ;;  %v896_v29 = vld [vmem:[%s14847_s10 + $0x2] sm:$0xff]  ;;  %v898_v27 = vld [vmem:[%s14847_s10 + $0x1a] sm:$0xff] }
  0x52   : > { %12591 = vmatmul.mubr.msk.f32.gmra.mrb[30].mxu1 %vm253_vm0, %v15177_v30  ;;  %v10218_v30 = vld [vmem:[%s17751_s1 + $0x40] sm:$0xff] }
  0x53   : > { %13269 = vmatmul.mubr.msk.f32.gmra.mrb[14].mxu0 %vm253_vm0, %v15182_v31  ;;  %12599 = vmatprep.mubr.msk.f32.mxu1 %vm253_vm0, %v182_v60  ;;  %v10251_v60 = vld [vmem:[%s17751_s1 + $0x48] sm:$0xff] }
  0x54   : > { %13271 = vmatprep.mubr.msk.f32.mxu0 %vm253_vm0, %v15186_v61  ;;  %v15227_v11 = vpack.c.bf16 %v10252_v22, %v10251_v60  ;;  %v15243_v22 = vld [vmem:[%s14847_s10 + $0x13b] sm:$0xff]  ;;  %v15461_v61 = vld [vmem:[%s14847_s10 + $0x150] sm:$0xff]  ;;  %v15481_v31 = vld [vmem:[%s14847_s10 + $0x168] sm:$0xff] }
  0x55   : > { %17913 = vst [vmem:[#allocation41_spill] sm:$0xff] %v15243_v22  ;;  %v15260_v60 = vld [vmem:[%s14847_s10 + $0x60] sm:$0xff] }
  0x56   : > { %12600 = vmatmul.mubr.msk.f32.vlgmr.msra.gmra.mrb[0].mxu1 %vm253_vm0, %v183_v62  ;;  %v185_v62 = vld [vmem:[%s14847_s10 + $0x20] sm:$0xff] }
  0x57   : > { %13272 = vmatmul.mubr.msk.f32.gmra.mrb[16].mxu0 %vm253_vm0, %v15197_v5  ;;  %13900 = vmatpush3.bf16.msra.mxu1 %v14915_v35  ;;  %v187_v35 = vld [vmem:[%s14847_s10 + $0x38] sm:$0xff] }
  0x58   : > { %12602 = vmatprep.mubr.msk.f32.mxu1 %vm253_vm0, %v184_v28  ;;  %13274 = vmatprep.mubr.msk.f32.mxu0 %vm253_vm0, %v15201_v25  ;;  %v15237_v28 = vld [vmem:[%s14847_s10 + $0x12b] sm:$0xff]  ;;  %v15441_v5 = vld [vmem:[%s14847_s10 + $0x138] sm:$0xff] }
  0x59   : > { %12651 = vmatprep.subr.mxu1 %v10218_v30  ;;  %17912 = vst [vmem:[#allocation40_spill] sm:$0xff] %v15237_v28  ;;  %v15381_v25 = vld [vmem:[%s14847_s10 + $0x64] sm:$0xff] }
  0x5a   : > { %12603 = vmatmul.mubr.msk.f32.gmra.mrb[2].mxu1 %vm253_vm0, %v185_v62  ;;  %v15263_v62 = vld [vmem:[%s14847_s10 + $0x153] sm:$0xff]  ;;  %17923 = vst [vmem:[#allocation51_spill] sm:$0xff] %v15381_v25 }
  0x5b   : > { %13275 = vmatmul.mubr.msk.f32.gmra.mrb[18].mxu0 %vm253_vm0, %v15221_v19  ;;  %12605 = vmatprep.mubr.msk.f32.mxu1 %vm253_vm0, %v186_v16  ;;  %v15252_v16 = vld [vmem:[%s14847_s10 + $0x50] sm:$0xff]  ;;  %17915 = vst [vmem:[#allocation43_spill] sm:$0xff] %v15263_v62 }
  0x5c   : > { %13277 = vmatprep.mubr.msk.f32.mxu0 %vm253_vm0, %v15225_v13  ;;  %12652 = vmatpush3.msra.mxu1 %v10218_v30  ;;  %v15257_v30 = vld [vmem:[%s14847_s10 + $0x143] sm:$0xff]  ;;  %v15375_v19 = vld [vmem:[%s14847_s10 + $0x54] sm:$0xff] }
  0x5d   : > { %13902 = vmatprep.subr.bf16.mxu1 %v15227_v11  ;;  %17914 = vst [vmem:[#allocation42_spill] sm:$0xff] %v15257_v30  ;;  %v11090_v13 = vld [vmem:[%s17751_s1 + $0x180] sm:$0xff]  ;;  %17922 = vst [vmem:[#allocation50_spill] sm:$0xff] %v15375_v19 }
  0x5e   : > { %12606 = vmatmul.mubr.msk.f32.gmra.mrb[4].mxu1 %vm253_vm0, %v187_v35  ;;  %v15272_v35 = vld [vmem:[%s14847_s10 + $0x68] sm:$0xff] }
  0x5f   : > { %13278 = vmatmul.mubr.msk.f32.gmra.mrb[20].mxu0 %vm253_vm0, %v15237_v28  ;;  %12608 = vmatprep.mubr.msk.f32.mxu1 %vm253_vm0, %v15240_v9  ;;  %v15348_v28 = vld [vmem:[%s14847_s10 + $0xd8] sm:$0xff] }
  0x60   : > { %13280 = vmatprep.mubr.msk.f32.mxu0 %vm253_vm0, %v15243_v22  ;;  %v15329_v22 = vld [vmem:[%s14847_s10 + $0xc0] sm:$0xff] }
  0x62   : > { %12609 = vmatmul.mubr.msk.f32.gmra.mrb[6].mxu1 %vm253_vm0, %v15252_v16 }
  0x63   : > { %13281 = vmatmul.mubr.msk.f32.gmra.mrb[22].mxu0 %vm253_vm0, %v15257_v30  ;;  %12611 = vmatprep.mubr.msk.f32.mxu1 %vm253_vm0, %v15260_v60  ;;  %v15315_v30 = vld [vmem:[%s14847_s10 + $0xa8] sm:$0xff] }
  0x64   : > { %13283 = vmatprep.mubr.msk.f32.mxu0 %vm253_vm0, %v15263_v62  ;;  %v15300_v62 = vld [vmem:[%s14847_s10 + $0x90] sm:$0xff] }
  0x66   : > { %12612 = vmatmul.mubr.msk.f32.gmra.mrb[8].mxu1 %vm253_vm0, %v15272_v35 }
  0x67   : > { %13284 = vmatmul.mubr.msk.f32.gmra.mrb[24].mxu0 %vm253_vm0, %v15277_v7  ;;  %12614 = vmatprep.mubr.msk.f32.mxu1 %vm253_vm0, %v15280_v4  ;;  %v15310_v7 = vld [vmem:[%s14847_s10 + $0x98] sm:$0xff] }
  0x68   : > { %13286 = vmatprep.mubr.msk.f32.mxu0 %vm253_vm0, %v15283_v1  ;;  %v10886_v1 = vld [vmem:[%s14847_s10 + $0x18b] sm:$0xff] }
  0x6a   : > { %12615 = vmatmul.mubr.msk.f32.gmra.mrb[10].mxu1 %vm253_vm0, %v15292_v63 }
  0x6b   : > { %13287 = vmatmul.mubr.msk.f32.gmra.mrb[26].mxu0 %vm253_vm0, %v15297_v58  ;;  %12617 = vmatprep.mubr.msk.f32.mxu1 %vm253_vm0, %v15300_v62  ;;  %v15324_v58 = vld [vmem:[%s14847_s10 + $0xb0] sm:$0xff] }
  0x6c   : > { %13289 = vmatprep.mubr.msk.f32.mxu0 %vm253_vm0, %v10885_v56  ;;  %v10888_v56 = vld [vmem:[%s14847_s10 + $0x1a3] sm:$0xff] }
  0x6e   : > { %12618 = vmatmul.mubr.msk.f32.gmra.mrb[12].mxu1 %vm253_vm0, %v15310_v7 }
  0x6f   : > { %13290 = vmatmul.mubr.msk.f32.gmra.mrb[28].mxu0 %vm253_vm0, %v10886_v1  ;;  %12620 = vmatprep.mubr.msk.f32.mxu1 %vm253_vm0, %v15315_v30  ;;  %v15340_v1 = vld [vmem:[%s14847_s10 + $0xc8] sm:$0xff] }
  0x70   : > { %13292 = vmatprep.mubr.msk.f32.mxu0 %vm253_vm0, %v10887_v54  ;;  %v15345_v54 = vld [vmem:[%s14847_s10 + $0x3c] sm:$0xff] }
  0x71   : > { %17920 = vst [vmem:[#allocation48_spill] sm:$0xff] %v15345_v54 }
  0x72   : > { %12621 = vmatmul.mubr.msk.f32.gmra.mrb[14].mxu1 %vm253_vm0, %v15324_v58 }
  0x73   : > { %13293 = vmatmul.mubr.msk.f32.gmra.mrb[30].mxu0 %vm253_vm0, %v10888_v56  ;;  %12623 = vmatprep.mubr.msk.f32.mxu1 %vm253_vm0, %v15329_v22  ;;  %v11025_v56 = vld [vmem:[%s17751_s1 + $0x178] sm:$0xff] }
  0x74   : > { %13301 = vmatprep.mubr.msk.f32.mxu0 %vm253_vm0, %v15332_v52  ;;  %v11091_v52 = vld [vmem:[%s17751_s1 + $0x188] sm:$0xff] }
  0x76   : > { %12624 = vmatmul.mubr.msk.f32.gmra.mrb[16].mxu1 %vm253_vm0, %v15340_v1 }
  0x77   : > { %13302 = vmatmul.mubr.msk.f32.vlgmr.msra.gmra.mrb[0].mxu0 %vm253_vm0, %v15345_v54  ;;  %12626 = vmatprep.mubr.msk.f32.mxu1 %vm253_vm0, %v15348_v28  ;;  %v15383_v54 = vpack.c.bf16 %v11091_v52, %v11090_v13  ;;  %v15400_v52 = vld [vmem:[%s14847_s10 + $0x108] sm:$0xff]  ;;  %v15403_v13 = vld [vmem:[%s14847_s10 + $0x7c] sm:$0xff] }
  0x78   : > { %13952 = vmatpush3.bf16.msra.mxu0 %v15067_v3  ;;  %13304 = vmatprep.mubr.msk.f32.mxu0 %vm253_vm0, %v15351_v50  ;;  %v15392_v3 = vld [vmem:[%s14847_s10 + $0xf8] sm:$0xff]  ;;  %v15397_v50 = vld [vmem:[%s14847_s10 + $0x6c] sm:$0xff]  ;;  %17925 = vst [vmem:[#allocation53_spill] sm:$0xff] %v15403_v13 }
  0x79   : > { %13353 = vmatprep.subr.mxu0 %v11025_v56  ;;  %17924 = vst [vmem:[#allocation52_spill] sm:$0xff] %v15397_v50 }
  0x7a   : > { %12627 = vmatmul.mubr.msk.f32.gmra.mrb[18].mxu1 %vm253_vm0, %v15369_v48 }
  0x7b   : > { %13305 = vmatmul.mubr.msk.f32.gmra.mrb[2].mxu0 %vm253_vm0, %v15375_v19  ;;  %12629 = vmatprep.mubr.msk.f32.mxu1 %vm253_vm0, %v15378_v46  ;;  %v15421_v19 = vld [vmem:[%s14847_s10 + $0x120] sm:$0xff] }
  0x7c   : > { %13307 = vmatprep.mubr.msk.f32.mxu0 %vm253_vm0, %v15381_v25  ;;  %13354 = vmatpush3.msra.mxu0 %v11025_v56  ;;  %v15413_v25 = vld [vmem:[%s14847_s10 + $0x110] sm:$0xff]  ;;  %v15418_v56 = vld [vmem:[%s14847_s10 + $0x84] sm:$0xff] }
  0x7d   : > { %13954 = vmatprep.subr.bf16.mxu0 %v15383_v54  ;;  %17926 = vst [vmem:[#allocation54_spill] sm:$0xff] %v15418_v56 }
  0x7e   : > { %12630 = vmatmul.mubr.msk.f32.gmra.mrb[20].mxu1 %vm253_vm0, %v15392_v3 }
  0x7f   : > { %13308 = vmatmul.mubr.msk.f32.gmra.mrb[4].mxu0 %vm253_vm0, %v15397_v50  ;;  %12632 = vmatprep.mubr.msk.f32.mxu1 %vm253_vm0, %v15400_v52  ;;  %v15433_v50 = vld [vmem:[%s14847_s10 + $0x128] sm:$0xff] }
  0x80   : > { %13310 = vmatprep.mubr.msk.f32.mxu0 %vm253_vm0, %v15403_v13  ;;  %v15438_v13 = vld [vmem:[%s14847_s10 + $0x9c] sm:$0xff] }
  0x81   : > { %17928 = vst [vmem:[#allocation56_spill] sm:$0xff] %v15438_v13 }
  0x82   : > { %12633 = vmatmul.mubr.msk.f32.gmra.mrb[22].mxu1 %vm253_vm0, %v15413_v25 }
  0x83   : > { %13311 = vmatmul.mubr.msk.f32.gmra.mrb[6].mxu0 %vm253_vm0, %v15418_v56  ;;  %12635 = vmatprep.mubr.msk.f32.mxu1 %vm253_vm0, %v15421_v19  ;;  %v15453_v56 = vld [vmem:[%s14847_s10 + $0x140] sm:$0xff] }
  0x84   : > { %13313 = vmatprep.mubr.msk.f32.mxu0 %vm253_vm0, %v15424_v44  ;;  %v15458_v44 = vld [vmem:[%s14847_s10 + $0xb4] sm:$0xff] }
  0x85   : > { %17930 = vst [vmem:[#allocation58_spill] sm:$0xff] %v15458_v44 }
  0x86   : > { %12636 = vmatmul.mubr.msk.f32.gmra.mrb[24].mxu1 %vm253_vm0, %v15433_v50 }
  0x87   : > { %13314 = vmatmul.mubr.msk.f32.gmra.mrb[8].mxu0 %vm253_vm0, %v15438_v13  ;;  %12638 = vmatprep.mubr.msk.f32.mxu1 %vm253_vm0, %v15441_v5  ;;  %v15473_v13 = vld [vmem:[%s14847_s10 + $0x158] sm:$0xff] }
  0x88   : > { %13316 = vmatprep.mubr.msk.f32.mxu0 %vm253_vm0, %v15444_v42  ;;  %v15478_v42 = vld [vmem:[%s14847_s10 + $0xcc] sm:$0xff] }
  0x89   : > { %17932 = vst [vmem:[#allocation60_spill] sm:$0xff] %v15478_v42 }
  0x8a   : > { %12639 = vmatmul.mubr.msk.f32.gmra.mrb[26].mxu1 %vm253_vm0, %v15453_v56 }
  0x8b   : > { %13317 = vmatmul.mubr.msk.f32.gmra.mrb[10].mxu0 %vm253_vm0, %v15458_v44  ;;  %12641 = vmatprep.mubr.msk.f32.mxu1 %vm253_vm0, %v15461_v61  ;;  %v15493_v44 = vld [vmem:[%s14847_s10 + $0x170] sm:$0xff] }
  0x8c   : > { %13319 = vmatprep.mubr.msk.f32.mxu0 %vm253_vm0, %v15464_v40  ;;  %v15498_v40 = vld [vmem:[%s14847_s10 + $0xe4] sm:$0xff] }
  0x8d   : > { %17934 = vst [vmem:[#allocation62_spill] sm:$0xff] %v15498_v40 }
  0x8e   : > { %12642 = vmatmul.mubr.msk.f32.gmra.mrb[28].mxu1 %vm253_vm0, %v15473_v13 }
  0x8f   : > { %13320 = vmatmul.mubr.msk.f32.gmra.mrb[12].mxu0 %vm253_vm0, %v15478_v42  ;;  %12644 = vmatprep.mubr.msk.f32.mxu1 %vm253_vm0, %v15481_v31  ;;  %v897_v42 = vld [vmem:[%s14847_s10 + $0xa] sm:$0xff] }
  0x90   : > { %13322 = vmatprep.mubr.msk.f32.mxu0 %vm253_vm0, %v15484_v38  ;;  %v15513_v38 = vld [vmem:[%s14847_s10 + $0xfc] sm:$0xff] }
  0x92   : > { %12645 = vmatmul.mubr.msk.f32.gmra.mrb[30].mxu1 %vm253_vm0, %v15493_v44 }
  0x93   : > { %13323 = vmatmul.mubr.msk.f32.gmra.mrb[14].mxu0 %vm253_vm0, %v15498_v40  ;;  %12653 = vmatprep.mubr.msk.f32.mxu1 %vm253_vm0, %v896_v29  ;;  %v10286_v29 = vld [vmem:[%s17751_s1 + $0x60] sm:$0xff]  ;;  %v15537_v40 = vld [vmem:[%s14847_s10 + $0x114] sm:$0xff] }
  0x94   : > { %13325 = vmatprep.mubr.msk.f32.mxu0 %vm253_vm0, %v15502_v36  ;;  %v10287_v36 = vld [vmem:[%s17751_s1 + $0x68] sm:$0xff] }
  0x95   : > { %v15542_v18 = vpack.c.bf16 %v10287_v36, %v10286_v29  ;;  %v15570_v36 = vld [vmem:[%s14847_s10 + $0x154] sm:$0xff] }
  0x96   : > { %12654 = vmatmul.mubr.msk.f32.vlgmr.msra.gmra.mrb[0].mxu1 %vm253_vm0, %v897_v42  ;;  %v899_v42 = vld [vmem:[%s14847_s10 + $0x22] sm:$0xff]  ;;  %v17949_v29 = vld [vmem:[#allocation8_spill] sm:$0xff] }
  0x97   : > { %13326 = vmatmul.mubr.msk.f32.gmra.mrb[16].mxu0 %vm253_vm0, %v15513_v38  ;;  %13904 = vmatpush3.bf16.msra.mxu1 %v15227_v11  ;;  %v15552_v11 = vld [vmem:[%s14847_s10 + $0x12c] sm:$0xff] }
  0x98   : > { %12656 = vmatprep.mubr.msk.f32.mxu1 %vm253_vm0, %v898_v27  ;;  %13328 = vmatprep.mubr.msk.f32.mxu0 %vm253_vm0, %v15517_v33  ;;  %v15555_v27 = vld [vmem:[%s14847_s10 + $0x13c] sm:$0xff] }
  0x99   : > { %12705 = vmatprep.subr.mxu1 %v10253_v23 }
  0x9a   : > { %12657 = vmatmul.mubr.msk.f32.gmra.mrb[2].mxu1 %vm253_vm0, %v899_v42  ;;  %v17950_v42 = vld [vmem:[#allocation37_spill] sm:$0xff] }
  0x9b   : > { %13329 = vmatmul.mubr.msk.f32.gmra.mrb[18].mxu0 %vm253_vm0, %v15537_v40  ;;  %12659 = vmatprep.mubr.msk.f32.mxu1 %vm253_vm0, %v14851_v14  ;;  %v15567_v14 = vld [vmem:[%s14847_s10 + $0x144] sm:$0xff] }
  0x9c   : > { %13331 = vmatprep.mubr.msk.f32.mxu0 %vm253_vm0, %v15540_v21  ;;  %12706 = vmatpush3.msra.mxu1 %v10253_v23  ;;  %v10954_v23 = vld [vmem:[%s14847_s10 + $0x19c] sm:$0xff] }
  0x9d   : > { %13906 = vmatprep.subr.bf16.mxu1 %v15542_v18 }
  0x9e   : > { %12660 = vmatmul.mubr.msk.f32.gmra.mrb[4].mxu1 %vm253_vm0, %v14856_v17  ;;  %v15581_v17 = vld [vmem:[%s14847_s10 + $0x15c] sm:$0xff] }
  0x9f   : > { %13332 = vmatmul.mubr.msk.f32.gmra.mrb[20].mxu0 %vm253_vm0, %v15552_v11  ;;  %12662 = vmatprep.mubr.msk.f32.mxu1 %vm253_vm0, %v14866_v20  ;;  %v15584_v20 = vld [vmem:[%s14847_s10 + $0x16c] sm:$0xff] }
  0xa0   : > { %13334 = vmatprep.mubr.msk.f32.mxu0 %vm253_vm0, %v15555_v27 }
  0xa2   : > { %12663 = vmatmul.mubr.msk.f32.gmra.mrb[6].mxu1 %vm253_vm0, %v14878_v24  ;;  %v15595_v24 = vld [vmem:[%s14847_s10 + $0x174] sm:$0xff] }
  0xa3   : > { %13335 = vmatmul.mubr.msk.f32.gmra.mrb[22].mxu0 %vm253_vm0, %v15567_v14  ;;  %12665 = vmatprep.mubr.msk.f32.mxu1 %vm253_vm0, %v14885_v26  ;;  %v10952_v26 = vld [vmem:[%s14847_s10 + $0x184] sm:$0xff] }
  0xa4   : > { %13337 = vmatprep.mubr.msk.f32.mxu0 %vm253_vm0, %v15570_v36 }
  0xa6   : > { %12666 = vmatmul.mubr.msk.f32.gmra.mrb[8].mxu1 %vm253_vm0, %v14906_v32  ;;  %v10953_v32 = vld [vmem:[%s14847_s10 + $0x18c] sm:$0xff] }
  0xa7   : > { %13338 = vmatmul.mubr.msk.f32.gmra.mrb[24].mxu0 %vm253_vm0, %v15581_v17  ;;  %12668 = vmatprep.mubr.msk.f32.mxu1 %vm253_vm0, %v14912_v34  ;;  %v10955_v34 = vld [vmem:[%s14847_s10 + $0x1a4] sm:$0xff] }
  0xa8   : > { %13340 = vmatprep.mubr.msk.f32.mxu0 %vm253_vm0, %v15584_v20 }
  0xaa   : > { %12669 = vmatmul.mubr.msk.f32.gmra.mrb[10].mxu1 %vm253_vm0, %v14928_v37  ;;  %v11092_v37 = vld [vmem:[%s17751_s1 + $0x190] sm:$0xff] }
  0xab   : > { %13341 = vmatmul.mubr.msk.f32.gmra.mrb[26].mxu0 %vm253_vm0, %v15595_v24  ;;  %12671 = vmatprep.mubr.msk.f32.mxu1 %vm253_vm0, %v14934_v39  ;;  %v11157_v39 = vld [vmem:[%s17751_s1 + $0x198] sm:$0xff] }
  0xac   : > { %13343 = vmatprep.mubr.msk.f32.mxu0 %vm253_vm0, %v10952_v26  ;;  %v17951_v26 = vld [vmem:[#allocation9_spill] sm:$0xff] }
  0xae   : > { %12672 = vmatmul.mubr.msk.f32.gmra.mrb[12].mxu1 %vm253_vm0, %v14949_v41  ;;  %v11158_v41 = vld [vmem:[%s17751_s1 + $0x1a0] sm:$0xff] }
  0xaf   : > { %13344 = vmatmul.mubr.msk.f32.gmra.mrb[28].mxu0 %vm253_vm0, %v10953_v32  ;;  %12674 = vmatprep.mubr.msk.f32.mxu1 %vm253_vm0, %v14955_v43  ;;  %v15640_v43 = vld [vmem:[%s14847_s10 + $0xf2] sm:$0xff]  ;;  %v17952_v32 = vld [vmem:[#allocation38_spill] sm:$0xff] }
  0xb0   : > { %13346 = vmatprep.mubr.msk.f32.mxu0 %vm253_vm0, %v10954_v23  ;;  %v17953_v23 = vld [vmem:[#allocation10_spill] sm:$0xff] }
  0xb2   : > { %12675 = vmatmul.mubr.msk.f32.gmra.mrb[14].mxu1 %vm253_vm0, %v14969_v45  ;;  %v15642_v45 = vpack.c.bf16 %v11158_v41, %v11157_v39  ;;  %v17956_v39 = vld [vmem:[#allocation40_spill] sm:$0xff] }
  0xb3   : > { %13347 = vmatmul.mubr.msk.f32.gmra.mrb[30].mxu0 %vm253_vm0, %v10955_v34  ;;  %12677 = vmatprep.mubr.msk.f32.mxu1 %vm253_vm0, %v14975_v47  ;;  %v15651_v47 = vld [vmem:[%s14847_s10 + $0xfa] sm:$0xff]  ;;  %v17954_v34 = vld [vmem:[#allocation39_spill] sm:$0xff]  ;;  %v17957_v41 = vld [vmem:[#allocation12_spill] sm:$0xff] }
  0xb4   : > { %13355 = vmatprep.mubr.msk.f32.mxu0 %vm253_vm0, %v15240_v9  ;;  %v15699_v9 = vld [vmem:[%s14847_s10 + $0x152] sm:$0xff] }
  0xb6   : > { %12678 = vmatmul.mubr.msk.f32.gmra.mrb[16].mxu1 %vm253_vm0, %v14989_v49  ;;  %v15656_v49 = vld [vmem:[%s14847_s10 + $0x10a] sm:$0xff] }
  0xb7   : > { %13356 = vmatmul.mubr.msk.f32.vlgmr.msra.gmra.mrb[0].mxu0 %vm253_vm0, %v15252_v16  ;;  %12680 = vmatprep.mubr.msk.f32.mxu1 %vm253_vm0, %v14995_v51  ;;  %v15666_v51 = vld [vmem:[%s14847_s10 + $0x112] sm:$0xff]  ;;  %v15713_v16 = vld [vmem:[%s14847_s10 + $0x16a] sm:$0xff] }
  0xb8   : > { %13956 = vmatpush3.bf16.msra.mxu0 %v15383_v54  ;;  %13358 = vmatprep.mubr.msk.f32.mxu0 %vm253_vm0, %v15260_v60  ;;  %v10353_v60 = vld [vmem:[%s17751_s1 + $0x78] sm:$0xff]  ;;  %v17944_v54 = vld [vmem:[#allocation34_spill] sm:$0xff] }
  0xb9   : > { %13407 = vmatprep.subr.mxu0 %v11092_v37 }
  0xba   : > { %12681 = vmatmul.mubr.msk.f32.gmra.mrb[18].mxu1 %vm253_vm0, %v15009_v53  ;;  %v15671_v53 = vld [vmem:[%s14847_s10 + $0x122] sm:$0xff] }
  0xbb   : > { %13359 = vmatmul.mubr.msk.f32.gmra.mrb[2].mxu0 %vm253_vm0, %v15272_v35  ;;  %12683 = vmatprep.mubr.msk.f32.mxu1 %vm253_vm0, %v15640_v43  ;;  %v1288_v35 = vld [vmem:[%s14847_s10 + $0x23] sm:$0xff] }
  0xbc   : > { %13361 = vmatprep.mubr.msk.f32.mxu0 %vm253_vm0, %v15280_v4  ;;  %13408 = vmatpush3.msra.mxu0 %v11092_v37  ;;  %v15685_v4 = vld [vmem:[%s14847_s10 + $0x13a] sm:$0xff]  ;;  %v17955_v37 = vld [vmem:[#allocation11_spill] sm:$0xff] }
  0xbd   : > { %13958 = vmatprep.subr.bf16.mxu0 %v15642_v45 }
  0xbe   : > { %12684 = vmatmul.mubr.msk.f32.gmra.mrb[20].mxu1 %vm253_vm0, %v15651_v47 }
  0xbf   : > { %13362 = vmatmul.mubr.msk.f32.gmra.mrb[4].mxu0 %vm253_vm0, %v15292_v63  ;;  %12686 = vmatprep.mubr.msk.f32.mxu1 %vm253_vm0, %v15656_v49  ;;  %v15680_v63 = vld [vmem:[%s14847_s10 + $0x12a] sm:$0xff] }
  0xc0   : > { %13364 = vmatprep.mubr.msk.f32.mxu0 %vm253_vm0, %v15300_v62  ;;  %v10354_v62 = vld [vmem:[%s17751_s1 + $0x80] sm:$0xff] }
  0xc2   : > { %12687 = vmatmul.mubr.msk.f32.gmra.mrb[22].mxu1 %vm253_vm0, %v15666_v51 }
  0xc3   : > { %13365 = vmatmul.mubr.msk.f32.gmra.mrb[6].mxu0 %vm253_vm0, %v15310_v7  ;;  %12689 = vmatprep.mubr.msk.f32.mxu1 %vm253_vm0, %v15671_v53  ;;  %v15694_v7 = vld [vmem:[%s14847_s10 + $0x142] sm:$0xff] }
  0xc4   : > { %13367 = vmatprep.mubr.msk.f32.mxu0 %vm253_vm0, %v15315_v30  ;;  %v1285_v30 = vld [vmem:[%s14847_s10 + $0x3] sm:$0xff] }
  0xc6   : > { %12690 = vmatmul.mubr.msk.f32.gmra.mrb[24].mxu1 %vm253_vm0, %v15680_v63 }
  0xc7   : > { %13368 = vmatmul.mubr.msk.f32.gmra.mrb[8].mxu0 %vm253_vm0, %v15324_v58  ;;  %12692 = vmatprep.mubr.msk.f32.mxu1 %vm253_vm0, %v15685_v4  ;;  %v15708_v58 = vld [vmem:[%s14847_s10 + $0x15a] sm:$0xff] }
  0xc8   : > { %13370 = vmatprep.mubr.msk.f32.mxu0 %vm253_vm0, %v15329_v22  ;;  %v15722_v22 = vld [vmem:[%s14847_s10 + $0x172] sm:$0xff] }
  0xca   : > { %12693 = vmatmul.mubr.msk.f32.gmra.mrb[26].mxu1 %vm253_vm0, %v15694_v7 }
  0xcb   : > { %13371 = vmatmul.mubr.msk.f32.gmra.mrb[10].mxu0 %vm253_vm0, %v15340_v1  ;;  %12695 = vmatprep.mubr.msk.f32.mxu1 %vm253_vm0, %v15699_v9  ;;  %v15753_v1 = vpack.c.bf16 %v10354_v62, %v10353_v60  ;;  %v17963_v60 = vld [vmem:[#allocation15_spill] sm:$0xff]  ;;  %v17964_v62 = vld [vmem:[#allocation44_spill] sm:$0xff] }
  0xcc   : > { %13373 = vmatprep.mubr.msk.f32.mxu0 %vm253_vm0, %v15348_v28  ;;  %v1286_v28 = vld [vmem:[%s14847_s10 + $0xb] sm:$0xff] }
  0xce   : > { %12696 = vmatmul.mubr.msk.f32.gmra.mrb[28].mxu1 %vm253_vm0, %v15708_v58 }
  0xcf   : > { %13374 = vmatmul.mubr.msk.f32.gmra.mrb[12].mxu0 %vm253_vm0, %v15369_v48  ;;  %12698 = vmatprep.mubr.msk.f32.mxu1 %vm253_vm0, %v15713_v16  ;;  %v1287_v48 = vld [vmem:[%s14847_s10 + $0x1b] sm:$0xff] }
  0xd0   : > { %13376 = vmatprep.mubr.msk.f32.mxu0 %vm253_vm0, %v15378_v46  ;;  %v10288_v46 = vld [vmem:[%s17751_s1 + $0x70] sm:$0xff] }
  0xd2   : > { %12699 = vmatmul.mubr.msk.f32.gmra.mrb[30].mxu1 %vm253_vm0, %v15722_v22 }
  0xd3   : > { %13377 = vmatmul.mubr.msk.f32.gmra.mrb[14].mxu0 %vm253_vm0, %v15392_v3  ;;  %12707 = vmatprep.mubr.msk.f32.mxu1 %vm253_vm0, %v1285_v30  ;;  %v17945_v3 = vld [vmem:[#allocation6_spill] sm:$0xff]  ;;  %v17959_v30 = vld [vmem:[#allocation13_spill] sm:$0xff] }
  0xd4   : > { %13379 = vmatprep.mubr.msk.f32.mxu0 %vm253_vm0, %v15400_v52  ;;  %v17946_v52 = vld [vmem:[#allocation35_spill] sm:$0xff] }
  0xd6   : > { %12708 = vmatmul.mubr.msk.f32.vlgmr.msra.gmra.mrb[0].mxu1 %vm253_vm0, %v1286_v28  ;;  %v17960_v28 = vld [vmem:[#allocation42_spill] sm:$0xff] }
  0xd7   : > { %13380 = vmatmul.mubr.msk.f32.gmra.mrb[16].mxu0 %vm253_vm0, %v15413_v25  ;;  %13908 = vmatpush3.bf16.msra.mxu1 %v15542_v18  ;;  %v11225_v18 = vld [vmem:[%s17751_s1 + $0x1b8] sm:$0xff]  ;;  %v17942_v25 = vld [vmem:[#allocation32_spill] sm:$0xff] }
  0xd8   : > { %12710 = vmatprep.mubr.msk.f32.mxu1 %vm253_vm0, %v1287_v48  ;;  %13382 = vmatprep.mubr.msk.f32.mxu0 %vm253_vm0, %v15421_v19  ;;  %v17941_v19 = vld [vmem:[#allocation4_spill] sm:$0xff]  ;;  %v17961_v48 = vld [vmem:[#allocation14_spill] sm:$0xff] }
  0xd9   : > { %12759 = vmatprep.subr.mxu1 %v10288_v46 }
  0xda   : > { %12711 = vmatmul.mubr.msk.f32.gmra.mrb[2].mxu1 %vm253_vm0, %v1288_v35  ;;  %v17965_v35 = vld [vmem:[#allocation16_spill] sm:$0xff] }
  0xdb   : > { %13383 = vmatmul.mubr.msk.f32.gmra.mrb[18].mxu0 %vm253_vm0, %v15433_v50  ;;  %12713 = vmatprep.mubr.msk.f32.mxu1 %vm253_vm0, %v15015_v55  ;;  %v15791_v50 = vld [vmem:[%s14847_s10 + $0x188] sm:$0xff]  ;;  %v11019_v55 = vld [vmem:[%s14847_s10 + $0x198] sm:$0xff] }
  0xdc   : > { %13385 = vmatprep.mubr.msk.f32.mxu0 %vm253_vm0, %v15441_v5  ;;  %12760 = vmatpush3.msra.mxu1 %v10288_v46  ;;  %v15780_v5 = vld [vmem:[%s14847_s10 + $0x180] sm:$0xff]  ;;  %v17962_v46 = vld [vmem:[#allocation43_spill] sm:$0xff] }
  0xdd   : > { %13910 = vmatprep.subr.bf16.mxu1 %v15753_v1 }
  0xde   : > { %12714 = vmatmul.mubr.msk.f32.gmra.mrb[4].mxu1 %vm253_vm0, %v15029_v57  ;;  %v11021_v57 = vld [vmem:[%s14847_s10 + $0x1b0] sm:$0xff] }
  0xdf   : > { %13386 = vmatmul.mubr.msk.f32.gmra.mrb[20].mxu0 %vm253_vm0, %v15453_v56  ;;  %12716 = vmatprep.mubr.msk.f32.mxu1 %vm253_vm0, %v15035_v59  ;;  %v17936_v59 = vld [vmem:[#allocation24_spill] sm:$0xff] }
  0xe0   : > { %13388 = vmatprep.mubr.msk.f32.mxu0 %vm253_vm0, %v15461_v61  ;;  %v17948_v56 = vld [vmem:[#allocation36_spill] sm:$0xff] }
  0xe2   : > { %12717 = vmatmul.mubr.msk.f32.gmra.mrb[6].mxu1 %vm253_vm0, %v15059_v0  ;;  %v11022_v0 = vld [vmem:[%s14847_s10 + $0x1b8] sm:$0xff] }
  0xe3   : > { %13389 = vmatmul.mubr.msk.f32.gmra.mrb[22].mxu0 %vm253_vm0, %v15473_v13  ;;  %12719 = vmatprep.mubr.msk.f32.mxu1 %vm253_vm0, %v15065_v2  ;;  %v17937_v2 = vld [vmem:[#allocation26_spill] sm:$0xff]  ;;  %v17947_v13 = vld [vmem:[#allocation7_spill] sm:$0xff] }
  0xe4   : > { %13391 = vmatprep.mubr.msk.f32.mxu0 %vm253_vm0, %v15481_v31  ;;  %v17943_v31 = vld [vmem:[#allocation5_spill] sm:$0xff] }
  0xe6   : > { %12720 = vmatmul.mubr.msk.f32.gmra.mrb[8].mxu1 %vm253_vm0, %v15081_v6  ;;  %v17938_v6 = vld [vmem:[#allocation28_spill] sm:$0xff] }
  0xe7   : > { %13392 = vmatmul.mubr.msk.f32.gmra.mrb[24].mxu0 %vm253_vm0, %v15493_v44  ;;  %12722 = vmatprep.mubr.msk.f32.mxu1 %vm253_vm0, %v15087_v8  ;;  %v11020_v44 = vld [vmem:[%s14847_s10 + $0x1a0] sm:$0xff]  ;;  %v17939_v8 = vld [vmem:[#allocation3_spill] sm:$0xff] }
  0xe8   : > { %13394 = vmatprep.mubr.msk.f32.mxu0 %vm253_vm0, %v15780_v5 }
  0xea   : > { %12723 = vmatmul.mubr.msk.f32.gmra.mrb[10].mxu1 %vm253_vm0, %v15102_v10  ;;  %v17940_v10 = vld [vmem:[#allocation30_spill] sm:$0xff] }
  0xeb   : > { %13395 = vmatmul.mubr.msk.f32.gmra.mrb[26].mxu0 %vm253_vm0, %v15791_v50  ;;  %12725 = vmatprep.mubr.msk.f32.mxu1 %vm253_vm0, %v15108_v12  ;;  %v11159_v12 = vld [vmem:[%s17751_s1 + $0x1a8] sm:$0xff] }
  0xec   : > { %13397 = vmatprep.mubr.msk.f32.mxu0 %vm253_vm0, %v11019_v55  ;;  %v17966_v55 = vld [vmem:[#allocation45_spill] sm:$0xff] }
  0xee   : > { %12726 = vmatmul.mubr.msk.f32.gmra.mrb[12].mxu1 %vm253_vm0, %v15122_v15  ;;  %v11224_v15 = vld [vmem:[%s17751_s1 + $0x1b0] sm:$0xff] }
  0xef   : > { %13398 = vmatmul.mubr.msk.f32.gmra.mrb[28].mxu0 %vm253_vm0, %v11020_v44  ;;  %12728 = vmatprep.mubr.msk.f32.mxu1 %vm253_vm0, %v17936_v59  ;;  %v15835_v61 = vpack.c.bf16 %v11225_v18, %v11224_v15  ;;  %v17967_v44 = vld [vmem:[#allocation17_spill] sm:$0xff]  ;;  %v17968_v59 = vld [vmem:[#allocation46_spill] sm:$0xff]  ;;  %v17971_v18 = vld [vmem:[#allocation20_spill] sm:$0xff] }
  0xf0   : > { %13400 = vmatprep.mubr.msk.f32.mxu0 %vm253_vm0, %v11021_v57  ;;  %v1674_v57 = vld [vmem:[%s14847_s10 + $0x4] sm:$0xff]  ;;  %v10421_v15 = vld [vmem:[%s17751_s1 + $0x98] sm:$0xff] }
  0xf2   : > { %12729 = vmatmul.mubr.msk.f32.gmra.mrb[14].mxu1 %vm253_vm0, %v17937_v2  ;;  %v1675_v2 = vld [vmem:[%s14847_s10 + $0xc] sm:$0xff] }
  0xf3   : > { %13401 = vmatmul.mubr.msk.f32.gmra.mrb[30].mxu0 %vm253_vm0, %v11022_v0  ;;  %12731 = vmatprep.mubr.msk.f32.mxu1 %vm253_vm0, %v17938_v6  ;;  %v17969_v0 = vld [vmem:[#allocation18_spill] sm:$0xff]  ;;  %v17970_v6 = vld [vmem:[#allocation19_spill] sm:$0xff] }
  0xf4   : > { %13409 = vmatprep.mubr.msk.f32.mxu0 %vm253_vm0, %v17939_v8  ;;  %v1676_v8 = vld [vmem:[%s14847_s10 + $0x1c] sm:$0xff] }
  0xf6   : > { %12732 = vmatmul.mubr.msk.f32.gmra.mrb[16].mxu1 %vm253_vm0, %v17940_v10  ;;  %v10355_v10 = vld [vmem:[%s17751_s1 + $0x88] sm:$0xff] }
  0xf7   : > { %13410 = vmatmul.mubr.msk.f32.vlgmr.msra.gmra.mrb[0].mxu0 %vm253_vm0, %v17941_v19  ;;  %12734 = vmatprep.mubr.msk.f32.mxu1 %vm253_vm0, %v17942_v25  ;;  %v1677_v19 = vld [vmem:[%s14847_s10 + $0x24] sm:$0xff]  ;;  %v17972_v25 = vld [vmem:[#allocation21_spill] sm:$0xff] }
  0xf8   : > { %13960 = vmatpush3.bf16.msra.mxu0 %v15642_v45  ;;  %13412 = vmatprep.mubr.msk.f32.mxu0 %vm253_vm0, %v17943_v31  ;;  %v17958_v45 = vld [vmem:[#allocation41_spill] sm:$0xff] }
  0xf9   : > { %13461 = vmatprep.subr.mxu0 %v11159_v12 }
  0xfa   : > { %12735 = vmatmul.mubr.msk.f32.gmra.mrb[18].mxu1 %vm253_vm0, %v17944_v54  ;;  %v17973_v54 = vld [vmem:[#allocation22_spill] sm:$0xff] }
  0xfb   : > { %13413 = vmatmul.mubr.msk.f32.gmra.mrb[2].mxu0 %vm253_vm0, %v17945_v3  ;;  %12737 = vmatprep.mubr.msk.f32.mxu1 %vm253_vm0, %v17946_v52  ;;  %v17974_v3 = vld [vmem:[#allocation47_spill] sm:$0xff] }
  0xfc   : > { %13415 = vmatprep.mubr.msk.f32.mxu0 %vm253_vm0, %v17947_v13  ;;  %13462 = vmatpush3.msra.mxu0 %v11159_v12  ;;  %v10420_v12 = vld [vmem:[%s17751_s1 + $0x90] sm:$0xff]  ;;  %v17975_v52 = vld [vmem:[#allocation23_spill] sm:$0xff]  ;;  %v17977_v13 = vld [vmem:[#allocation25_spill] sm:$0xff] }
  0xfd   : > { %13962 = vmatprep.subr.bf16.mxu0 %v15835_v61  ;;  %v15913_v31 = vpack.c.bf16 %v10421_v15, %v10420_v12  ;;  %v11292_v12 = vld [vmem:[%s17751_s1 + $0x1d0] sm:$0xff]  ;;  %v17994_v15 = vld [vmem:[#allocation61_spill] sm:$0xff] }
  0xfe   : > { %12738 = vmatmul.mubr.msk.f32.gmra.mrb[20].mxu1 %vm253_vm0, %v17948_v56  ;;  %v17978_v56 = vld [vmem:[#allocation49_spill] sm:$0xff] }
  0xff   : > { %13416 = vmatmul.mubr.msk.f32.gmra.mrb[4].mxu0 %vm253_vm0, %v17949_v29  ;;  %12740 = vmatprep.mubr.msk.f32.mxu1 %vm253_vm0, %v17950_v42  ;;  %v17979_v29 = vld [vmem:[#allocation27_spill] sm:$0xff]  ;;  %v17980_v42 = vld [vmem:[#allocation50_spill] sm:$0xff] }
 0x100   : > { %13418 = vmatprep.mubr.msk.f32.mxu0 %vm253_vm0, %v17951_v26  ;;  %v17981_v26 = vld [vmem:[#allocation29_spill] sm:$0xff] }
 0x102   : > { %12741 = vmatmul.mubr.msk.f32.gmra.mrb[22].mxu1 %vm253_vm0, %v17952_v32  ;;  %v17982_v32 = vld [vmem:[#allocation51_spill] sm:$0xff] }
 0x103   : > { %13419 = vmatmul.mubr.msk.f32.gmra.mrb[6].mxu0 %vm253_vm0, %v17953_v23  ;;  %12743 = vmatprep.mubr.msk.f32.mxu1 %vm253_vm0, %v17954_v34  ;;  %v17983_v23 = vld [vmem:[#allocation31_spill] sm:$0xff] }
 0x104   : > { %13421 = vmatprep.mubr.msk.f32.mxu0 %vm253_vm0, %v17955_v37  ;;  %v15940_v34 = vld [vmem:[%s14847_s10 + $0x181] sm:$0xff]  ;;  %v17984_v37 = vld [vmem:[#allocation52_spill] sm:$0xff] }
 0x106   : > { %12744 = vmatmul.mubr.msk.f32.gmra.mrb[24].mxu1 %vm253_vm0, %v17956_v39  ;;  %v17985_v39 = vld [vmem:[#allocation33_spill] sm:$0xff] }
 0x107   : > { %13422 = vmatmul.mubr.msk.f32.gmra.mrb[8].mxu0 %vm253_vm0, %v17957_v41  ;;  %12746 = vmatprep.mubr.msk.f32.mxu1 %vm253_vm0, %v17958_v45  ;;  %v17986_v41 = vld [vmem:[#allocation53_spill] sm:$0xff]  ;;  %v15951_v45 = vld [vmem:[%s14847_s10 + $0x189] sm:$0xff] }
 0x108   : > { %13424 = vmatprep.mubr.msk.f32.mxu0 %vm253_vm0, %v17959_v30  ;;  %v11086_v30 = vld [vmem:[%s14847_s10 + $0x199] sm:$0xff] }
 0x10a   : > { %12747 = vmatmul.mubr.msk.f32.gmra.mrb[26].mxu1 %vm253_vm0, %v17960_v28  ;;  %v17987_v28 = vld [vmem:[#allocation54_spill] sm:$0xff] }
 0x10b   : > { %13425 = vmatmul.mubr.msk.f32.gmra.mrb[10].mxu0 %vm253_vm0, %v17961_v48  ;;  %12749 = vmatprep.mubr.msk.f32.mxu1 %vm253_vm0, %v17962_v46  ;;  %v17988_v48 = vld [vmem:[#allocation55_spill] sm:$0xff] }
 0x10c   : > { %13427 = vmatprep.mubr.msk.f32.mxu0 %vm253_vm0, %v17963_v60  ;;  %v11087_v46 = vld [vmem:[%s14847_s10 + $0x1a1] sm:$0xff]  ;;  %v11088_v60 = vld [vmem:[%s14847_s10 + $0x1b1] sm:$0xff] }
 0x10e   : > { %12750 = vmatmul.mubr.msk.f32.gmra.mrb[28].mxu1 %vm253_vm0, %v17964_v62  ;;  %v17989_v62 = vld [vmem:[#allocation56_spill] sm:$0xff] }
 0x10f   : > { %13428 = vmatmul.mubr.msk.f32.gmra.mrb[12].mxu0 %vm253_vm0, %v17965_v35  ;;  %12752 = vmatprep.mubr.msk.f32.mxu1 %vm253_vm0, %v17966_v55  ;;  %v17990_v35 = vld [vmem:[#allocation57_spill] sm:$0xff] }
 0x110   : > { %13430 = vmatprep.mubr.msk.f32.mxu0 %vm253_vm0, %v17967_v44  ;;  %v11089_v55 = vld [vmem:[%s14847_s10 + $0x1b9] sm:$0xff]  ;;  %v15971_v44 = vld [vmem:[%s14847_s10 + $0x4a] sm:$0xff] }
 0x112   : > { %12753 = vmatmul.mubr.msk.f32.gmra.mrb[30].mxu1 %vm253_vm0, %v17968_v59  ;;  %v17992_v59 = vld [vmem:[#allocation59_spill] sm:$0xff] }
 0x113   : > { %13431 = vmatmul.mubr.msk.f32.gmra.mrb[14].mxu0 %vm253_vm0, %v17969_v0  ;;  %12761 = vmatprep.mubr.msk.f32.mxu1 %vm253_vm0, %v1674_v57  ;;  %v17991_v57 = vld [vmem:[#allocation58_spill] sm:$0xff]  ;;  %v15981_v0 = vld [vmem:[%s14847_s10 + $0x52] sm:$0xff] }
 0x114   : > { %13433 = vmatprep.mubr.msk.f32.mxu0 %vm253_vm0, %v17970_v6  ;;  %v17993_v6 = vld [vmem:[#allocation60_spill] sm:$0xff] }
 0x116   : > { %12762 = vmatmul.mubr.msk.f32.vlgmr.msra.gmra.mrb[0].mxu1 %vm253_vm0, %v1675_v2  ;;  %v15984_v2 = vld [vmem:[%s14847_s10 + $0x62] sm:$0xff] }
 0x117   : > { %13434 = vmatmul.mubr.msk.f32.gmra.mrb[16].mxu0 %vm253_vm0, %v17971_v18  ;;  %13912 = vmatpush3.bf16.msra.mxu1 %v15753_v1  ;;  %v17976_v1 = vld [vmem:[#allocation48_spill] sm:$0xff] }
 0x118   : > { %12764 = vmatprep.mubr.msk.f32.mxu1 %vm253_vm0, %v1676_v8  ;;  %13436 = vmatprep.mubr.msk.f32.mxu0 %vm253_vm0, %v17972_v25  ;;  %v11226_v8 = vld [vmem:[%s17751_s1 + $0x1c0] sm:$0xff]  ;;  %v16005_v18 = vld [vmem:[%s14847_s10 + $0x6a] sm:$0xff] }
 0x119   : > { %12813 = vmatprep.subr.mxu1 %v10355_v10 }
 0x11a   : > { %12765 = vmatmul.mubr.msk.f32.gmra.mrb[2].mxu1 %vm253_vm0, %v1677_v19  ;;  %v16008_v19 = vld [vmem:[%s14847_s10 + $0x7a] sm:$0xff] }
 0x11b   : > { %13437 = vmatmul.mubr.msk.f32.gmra.mrb[18].mxu0 %vm253_vm0, %v17973_v54  ;;  %12767 = vmatprep.mubr.msk.f32.mxu1 %vm253_vm0, %v17974_v3  ;;  %v17995_v54 = vld [vmem:[#allocation62_spill] sm:$0xff]  ;;  %v17996_v3 = vld [vmem:[#allocation63_spill] sm:$0xff] }
 0x11c   : > { %13439 = vmatprep.mubr.msk.f32.mxu0 %vm253_vm0, %v17975_v52  ;;  %12814 = vmatpush3.msra.mxu1 %v10355_v10  ;;  %v11291_v10 = vld [vmem:[%s17751_s1 + $0x1c8] sm:$0xff]  ;;  %v16024_v52 = vld [vmem:[%s14847_s10 + $0x92] sm:$0xff] }
 0x11d   : > { %13914 = vmatprep.subr.bf16.mxu1 %v15913_v31  ;;  %v16010_v25 = vpack.c.bf16 %v11292_v12, %v11291_v10  ;;  %v16266_v10 = vld [vmem:[%s14847_s10 + $0x110] sm:$0xff]  ;;  %v16271_v12 = vld [vmem:[%s14847_s10 + $0x83] sm:$0xff] }
 0x11e   : > { %12768 = vmatmul.mubr.msk.f32.gmra.mrb[4].mxu1 %vm253_vm0, %v17976_v1  ;;  %v16036_v1 = vld [vmem:[%s14847_s10 + $0x9a] sm:$0xff] }
 0x11f   : > { %13440 = vmatmul.mubr.msk.f32.gmra.mrb[20].mxu0 %vm253_vm0, %v17977_v13  ;;  %12770 = vmatprep.mubr.msk.f32.mxu1 %vm253_vm0, %v17978_v56  ;;  %v16039_v13 = vld [vmem:[%s14847_s10 + $0xaa] sm:$0xff] }
 0x120   : > { %13442 = vmatprep.mubr.msk.f32.mxu0 %vm253_vm0, %v17979_v29  ;;  %v16174_v56 = vld [vmem:[%s14847_s10 + $0xa8] sm:$0xff]  ;;  %v11153_v29 = vld [vmem:[%s14847_s10 + $0x19a] sm:$0xff] }
 0x122   : > { %12771 = vmatmul.mubr.msk.f32.gmra.mrb[6].mxu1 %vm253_vm0, %v17980_v42  ;;  %v11154_v42 = vld [vmem:[%s14847_s10 + $0x1a2] sm:$0xff] }
 0x123   : > { %13443 = vmatmul.mubr.msk.f32.gmra.mrb[22].mxu0 %vm253_vm0, %v17981_v26  ;;  %12773 = vmatprep.mubr.msk.f32.mxu1 %vm253_vm0, %v17982_v32  ;;  %v16189_v26 = vld [vmem:[%s14847_s10 + $0xc0] sm:$0xff]  ;;  %v11155_v32 = vld [vmem:[%s14847_s10 + $0x1b2] sm:$0xff] }
 0x124   : > { %13445 = vmatprep.mubr.msk.f32.mxu0 %vm253_vm0, %v17983_v23  ;;  %v16198_v23 = vld [vmem:[%s14847_s10 + $0xc8] sm:$0xff] }
 0x126   : > { %12774 = vmatmul.mubr.msk.f32.gmra.mrb[8].mxu1 %vm253_vm0, %v17984_v37  ;;  %v11156_v37 = vld [vmem:[%s14847_s10 + $0x1ba] sm:$0xff] }
 0x127   : > { %13446 = vmatmul.mubr.msk.f32.gmra.mrb[24].mxu0 %vm253_vm0, %v17985_v39  ;;  %12776 = vmatprep.mubr.msk.f32.mxu1 %vm253_vm0, %v17986_v41  ;;  %v16203_v39 = vld [vmem:[%s14847_s10 + $0xd8] sm:$0xff]  ;;  %v16206_v41 = vld [vmem:[%s14847_s10 + $0x4b] sm:$0xff] }
 0x128   : > { %13448 = vmatprep.mubr.msk.f32.mxu0 %vm253_vm0, %v15940_v34 }
 0x12a   : > { %12777 = vmatmul.mubr.msk.f32.gmra.mrb[10].mxu1 %vm253_vm0, %v17987_v28  ;;  %v16219_v28 = vld [vmem:[%s14847_s10 + $0x53] sm:$0xff] }
 0x12b   : > { %13449 = vmatmul.mubr.msk.f32.gmra.mrb[26].mxu0 %vm253_vm0, %v15951_v45  ;;  %12779 = vmatprep.mubr.msk.f32.mxu1 %vm253_vm0, %v17988_v48  ;;  %v16222_v48 = vld [vmem:[%s14847_s10 + $0xf0] sm:$0xff] }
 0x12c   : > { %13451 = vmatprep.mubr.msk.f32.mxu0 %vm253_vm0, %v11086_v30  ;;  %v16214_v30 = vld [vmem:[%s14847_s10 + $0xe0] sm:$0xff] }
 0x12e   : > { %12780 = vmatmul.mubr.msk.f32.gmra.mrb[12].mxu1 %vm253_vm0, %v17989_v62  ;;  %v11358_v62 = vld [vmem:[%s17751_s1 + $0x1e0] sm:$0xff] }
 0x12f   : > { %13452 = vmatmul.mubr.msk.f32.gmra.mrb[28].mxu0 %vm253_vm0, %v11087_v46  ;;  %12782 = vmatprep.mubr.msk.f32.mxu1 %vm253_vm0, %v17990_v35  ;;  %v16225_v46 = vld [vmem:[%s14847_s10 + $0x63] sm:$0xff] }
 0x130   : > { %13454 = vmatprep.mubr.msk.f32.mxu0 %vm253_vm0, %v11088_v60  ;;  %v11293_v60 = vld [vmem:[%s17751_s1 + $0x1d8] sm:$0xff]  ;;  %v11359_v35 = vld [vmem:[%s17751_s1 + $0x1e8] sm:$0xff] }
 0x132   : > { %12783 = vmatmul.mubr.msk.f32.gmra.mrb[14].mxu1 %vm253_vm0, %v17991_v57  ;;  %v16249_v57 = vld [vmem:[%s14847_s10 + $0x6b] sm:$0xff] }
 0x133   : > { %13455 = vmatmul.mubr.msk.f32.gmra.mrb[30].mxu0 %vm253_vm0, %v11089_v55  ;;  %12785 = vmatprep.mubr.msk.f32.mxu1 %vm253_vm0, %v17992_v59  ;;  %v16243_v55 = vld [vmem:[%s14847_s10 + $0xf8] sm:$0xff]  ;;  %v16252_v59 = vld [vmem:[%s14847_s10 + $0x108] sm:$0xff] }
 0x134   : > { %13463 = vmatprep.mubr.msk.f32.mxu0 %vm253_vm0, %v15971_v44 }
 0x136   : > { %12786 = vmatmul.mubr.msk.f32.gmra.mrb[16].mxu1 %vm253_vm0, %v17993_v6  ;;  %v16255_v6 = vld [vmem:[%s14847_s10 + $0x7b] sm:$0xff] }
 0x137   : > { %13464 = vmatmul.mubr.msk.f32.vlgmr.msra.gmra.mrb[0].mxu0 %vm253_vm0, %v15981_v0  ;;  %12788 = vmatprep.mubr.msk.f32.mxu1 %vm253_vm0, %v17994_v15  ;;  %v16274_v15 = vld [vmem:[%s14847_s10 + $0x120] sm:$0xff] }
 0x138   : > { %13964 = vmatpush3.bf16.msra.mxu0 %v15835_v61  ;;  %13466 = vmatprep.mubr.msk.f32.mxu0 %vm253_vm0, %v15984_v2  ;;  %v16021_v61 = vld [vmem:[%s14847_s10 + $0x82] sm:$0xff] }
 0x139   : > { %13515 = vmatprep.subr.mxu0 %v11226_v8 }
 0x13a   : > { %12789 = vmatmul.mubr.msk.f32.gmra.mrb[18].mxu1 %vm253_vm0, %v17995_v54  ;;  %v16287_v54 = vld [vmem:[%s14847_s10 + $0x128] sm:$0xff] }
 0x13b   : > { %13467 = vmatmul.mubr.msk.f32.gmra.mrb[2].mxu0 %vm253_vm0, %v16005_v18  ;;  %12791 = vmatprep.mubr.msk.f32.mxu1 %vm253_vm0, %v17996_v3  ;;  %v16292_v3 = vld [vmem:[%s14847_s10 + $0x9b] sm:$0xff] }
 0x13c   : > { %13469 = vmatprep.mubr.msk.f32.mxu0 %vm253_vm0, %v16008_v19  ;;  %13516 = vmatpush3.msra.mxu0 %v11226_v8  ;;  %v16257_v8 = vpack.c.bf16 %v11359_v35, %v11358_v62  ;;  %v10388_v62 = vld [vmem:[%s14847_s10 + $0x19] sm:$0xff]  ;;  %v16370_v35 = vld [vmem:[%s14847_s10 + $0x10b] sm:$0xff] }
 0x13d   : > { %13966 = vmatprep.subr.bf16.mxu0 %v16010_v25  ;;  %18004 = vst [vmem:[#allocation5_spill] sm:$0xff] %v16370_v35 }
 0x13e   : > { %12792 = vmatmul.mubr.msk.f32.gmra.mrb[20].mxu1 %vm253_vm0, %v15513_v38  ;;  %v16053_v38 = vld [vmem:[%s14847_s10 + $0xc2] sm:$0xff] }
 0x13f   : > { %13470 = vmatmul.mubr.msk.f32.gmra.mrb[4].mxu0 %vm253_vm0, %v16021_v61  ;;  %12794 = vmatprep.mubr.msk.f32.mxu1 %vm253_vm0, %v15517_v33  ;;  %v16050_v33 = vld [vmem:[%s14847_s10 + $0xb2] sm:$0xff] }
 0x140   : > { %13472 = vmatprep.mubr.msk.f32.mxu0 %vm253_vm0, %v16024_v52 }
 0x142   : > { %12795 = vmatmul.mubr.msk.f32.gmra.mrb[22].mxu1 %vm253_vm0, %v15537_v40  ;;  %v16064_v40 = vld [vmem:[%s14847_s10 + $0xca] sm:$0xff] }
 0x143   : > { %13473 = vmatmul.mubr.msk.f32.gmra.mrb[6].mxu0 %vm253_vm0, %v16036_v1  ;;  %12797 = vmatprep.mubr.msk.f32.mxu1 %vm253_vm0, %v15540_v21  ;;  %v16067_v21 = vld [vmem:[%s14847_s10 + $0xda] sm:$0xff] }
 0x144   : > { %13475 = vmatprep.mubr.msk.f32.mxu0 %vm253_vm0, %v16039_v13 }
 0x146   : > { %12798 = vmatmul.mubr.msk.f32.gmra.mrb[24].mxu1 %vm253_vm0, %v15552_v11  ;;  %v16078_v11 = vld [vmem:[%s14847_s10 + $0xe2] sm:$0xff] }
 0x147   : > { %13476 = vmatmul.mubr.msk.f32.gmra.mrb[8].mxu0 %vm253_vm0, %v16050_v33  ;;  %12800 = vmatprep.mubr.msk.f32.mxu1 %vm253_vm0, %v15555_v27  ;;  %v10321_v27 = vld [vmem:[%s14847_s10 + $0x18] sm:$0xff] }
 0x148   : > { %13478 = vmatprep.mubr.msk.f32.mxu0 %vm253_vm0, %v16053_v38 }
 0x14a   : > { %12801 = vmatmul.mubr.msk.f32.gmra.mrb[26].mxu1 %vm253_vm0, %v15567_v14  ;;  %v10322_v14 = vld [vmem:[%s14847_s10 + $0x20] sm:$0xff] }
 0x14b   : > { %13479 = vmatmul.mubr.msk.f32.gmra.mrb[10].mxu0 %vm253_vm0, %v16064_v40  ;;  %12803 = vmatprep.mubr.msk.f32.mxu1 %vm253_vm0, %v15570_v36  ;;  %v10323_v36 = vld [vmem:[%s14847_s10 + $0x30] sm:$0xff] }
 0x14c   : > { %13481 = vmatprep.mubr.msk.f32.mxu0 %vm253_vm0, %v16067_v21 }
 0x14e   : > { %12804 = vmatmul.mubr.msk.f32.gmra.mrb[28].mxu1 %vm253_vm0, %v15581_v17  ;;  %v10422_v17 = vld [vmem:[%s17751_s1 + $0xa0] sm:$0xff] }
 0x14f   : > { %13482 = vmatmul.mubr.msk.f32.gmra.mrb[12].mxu0 %vm253_vm0, %v16078_v11  ;;  %12806 = vmatprep.mubr.msk.f32.mxu1 %vm253_vm0, %v15584_v20  ;;  %v10487_v20 = vld [vmem:[%s17751_s1 + $0xa8] sm:$0xff] }
 0x150   : > { %13484 = vmatprep.mubr.msk.f32.mxu0 %vm253_vm0, %v15640_v43  ;;  %v10324_v43 = vld [vmem:[%s14847_s10 + $0x38] sm:$0xff] }
 0x152   : > { %12807 = vmatmul.mubr.msk.f32.gmra.mrb[30].mxu1 %vm253_vm0, %v15595_v24  ;;  %v10488_v24 = vld [vmem:[%s17751_s1 + $0xb0] sm:$0xff] }
 0x153   : > { %13485 = vmatmul.mubr.msk.f32.gmra.mrb[14].mxu0 %vm253_vm0, %v15651_v47  ;;  %12815 = vmatprep.mubr.msk.f32.mxu1 %vm253_vm0, %v10321_v27  ;;  %v10325_v47 = vld [vmem:[%s14847_s10 + $0x48] sm:$0xff]  ;;  %v16295_v27 = vld [vmem:[%s14847_s10 + $0x138] sm:$0xff] }
 0x154   : > { %13487 = vmatprep.mubr.msk.f32.mxu0 %vm253_vm0, %v15656_v49  ;;  %v16116_v49 = vpack.c.bf16 %v10488_v24, %v10487_v20  ;;  %v16315_v20 = vld [vmem:[%s14847_s10 + $0x150] sm:$0xff]  ;;  %v16318_v24 = vld [vmem:[%s14847_s10 + $0xc3] sm:$0xff] }
 0x155   : > { %17998 = vst [vmem:[#allocation26_spill] sm:$0xff] %v16318_v24 }
 0x156   : > { %12816 = vmatmul.mubr.msk.f32.vlgmr.msra.gmra.mrb[0].mxu1 %vm253_vm0, %v10322_v14  ;;  %v16298_v14 = vld [vmem:[%s14847_s10 + $0xab] sm:$0xff] }
 0x157   : > { %13488 = vmatmul.mubr.msk.f32.gmra.mrb[16].mxu0 %vm253_vm0, %v15666_v51  ;;  %13916 = vmatpush3.bf16.msra.mxu1 %v15913_v31  ;;  %v10326_v51 = vld [vmem:[%s14847_s10 + $0x50] sm:$0xff]  ;;  %v16157_v31 = vld [vmem:[%s14847_s10 + $0x182] sm:$0xff] }
 0x158   : > { %12818 = vmatprep.mubr.msk.f32.mxu1 %vm253_vm0, %v10323_v36  ;;  %13490 = vmatprep.mubr.msk.f32.mxu0 %vm253_vm0, %v15671_v53  ;;  %v16126_v53 = vld [vmem:[%s14847_s10 + $0x60] sm:$0xff] }
 0x159   : > { %12867 = vmatprep.subr.mxu1 %v10422_v17  ;;  %v16307_v36 = vld [vmem:[%s14847_s10 + $0x140] sm:$0xff] }
 0x15a   : > { %12819 = vmatmul.mubr.msk.f32.gmra.mrb[2].mxu1 %vm253_vm0, %v10324_v43  ;;  %v16327_v43 = vld [vmem:[%s14847_s10 + $0x158] sm:$0xff] }
 0x15b   : > { %13491 = vmatmul.mubr.msk.f32.gmra.mrb[18].mxu0 %vm253_vm0, %v15680_v63  ;;  %12821 = vmatprep.mubr.msk.f32.mxu1 %vm253_vm0, %v10325_v47  ;;  %v16135_v63 = vld [vmem:[%s14847_s10 + $0x68] sm:$0xff] }
 0x15c   : > { %13493 = vmatprep.mubr.msk.f32.mxu0 %vm253_vm0, %v15685_v4  ;;  %12868 = vmatpush3.msra.mxu1 %v10422_v17  ;;  %v16140_v4 = vld [vmem:[%s14847_s10 + $0x78] sm:$0xff]  ;;  %v16332_v47 = vld [vmem:[%s14847_s10 + $0xcb] sm:$0xff] }
 0x15d   : > { %13918 = vmatprep.subr.bf16.mxu1 %v16116_v49  ;;  %v16312_v17 = vld [vmem:[%s14847_s10 + $0xb3] sm:$0xff]  ;;  %17999 = vst [vmem:[#allocation28_spill] sm:$0xff] %v16332_v47 }
 0x15e   : > { %12822 = vmatmul.mubr.msk.f32.gmra.mrb[4].mxu1 %vm253_vm0, %v10326_v51  ;;  %17997 = vst [vmem:[#allocation24_spill] sm:$0xff] %v16312_v17  ;;  %v16335_v51 = vld [vmem:[%s14847_s10 + $0x168] sm:$0xff] }
 0x15f   : > { %13494 = vmatmul.mubr.msk.f32.gmra.mrb[20].mxu0 %vm253_vm0, %v15694_v7  ;;  %12824 = vmatprep.mubr.msk.f32.mxu1 %vm253_vm0, %v16126_v53  ;;  %v16149_v7 = vld [vmem:[%s14847_s10 + $0x80] sm:$0xff] }
 0x160   : > { %13496 = vmatprep.mubr.msk.f32.mxu0 %vm253_vm0, %v15699_v9  ;;  %v16154_v9 = vld [vmem:[%s14847_s10 + $0x90] sm:$0xff] }
 0x162   : > { %12825 = vmatmul.mubr.msk.f32.gmra.mrb[6].mxu1 %vm253_vm0, %v16135_v63 }
 0x163   : > { %13497 = vmatmul.mubr.msk.f32.gmra.mrb[22].mxu0 %vm253_vm0, %v15708_v58  ;;  %12827 = vmatprep.mubr.msk.f32.mxu1 %vm253_vm0, %v16140_v4  ;;  %v16166_v58 = vld [vmem:[%s14847_s10 + $0x98] sm:$0xff] }
 0x164   : > { %13499 = vmatprep.mubr.msk.f32.mxu0 %vm253_vm0, %v15713_v16  ;;  %v16171_v16 = vld [vmem:[%s14847_s10 + $0x18a] sm:$0xff] }
 0x166   : > { %12828 = vmatmul.mubr.msk.f32.gmra.mrb[8].mxu1 %vm253_vm0, %v16149_v7 }
 0x167   : > { %13500 = vmatmul.mubr.msk.f32.gmra.mrb[24].mxu0 %vm253_vm0, %v15722_v22  ;;  %12830 = vmatprep.mubr.msk.f32.mxu1 %vm253_vm0, %v16154_v9  ;;  %v16184_v22 = vld [vmem:[%s14847_s10 + $0xb0] sm:$0xff] }
 0x168   : > { %13502 = vmatprep.mubr.msk.f32.mxu0 %vm253_vm0, %v16157_v31 }
 0x16a   : > { %12831 = vmatmul.mubr.msk.f32.gmra.mrb[10].mxu1 %vm253_vm0, %v16166_v58 }
 0x16b   : > { %13503 = vmatmul.mubr.msk.f32.gmra.mrb[26].mxu0 %vm253_vm0, %v16171_v16  ;;  %12833 = vmatprep.mubr.msk.f32.mxu1 %vm253_vm0, %v16174_v56 }
 0x16c   : > { %13505 = vmatprep.mubr.msk.f32.mxu0 %vm253_vm0, %v11153_v29  ;;  %v16338_v29 = vld [vmem:[%s14847_s10 + $0xdb] sm:$0xff] }
 0x16d   : > { %18000 = vst [vmem:[#allocation3_spill] sm:$0xff] %v16338_v29 }
 0x16e   : > { %12834 = vmatmul.mubr.msk.f32.gmra.mrb[12].mxu1 %vm253_vm0, %v16184_v22 }
 0x16f   : > { %13506 = vmatmul.mubr.msk.f32.gmra.mrb[28].mxu0 %vm253_vm0, %v11154_v42  ;;  %12836 = vmatprep.mubr.msk.f32.mxu1 %vm253_vm0, %v16189_v26  ;;  %v16347_v42 = vld [vmem:[%s14847_s10 + $0x170] sm:$0xff] }
 0x170   : > { %13508 = vmatprep.mubr.msk.f32.mxu0 %vm253_vm0, %v11155_v32  ;;  %v16352_v32 = vld [vmem:[%s14847_s10 + $0xe3] sm:$0xff] }
 0x171   : > { %18001 = vst [vmem:[#allocation30_spill] sm:$0xff] %v16352_v32 }
 0x172   : > { %12837 = vmatmul.mubr.msk.f32.gmra.mrb[14].mxu1 %vm253_vm0, %v16198_v23 }
 0x173   : > { %13509 = vmatmul.mubr.msk.f32.gmra.mrb[30].mxu0 %vm253_vm0, %v11156_v37  ;;  %12839 = vmatprep.mubr.msk.f32.mxu1 %vm253_vm0, %v16203_v39  ;;  %v16355_v37 = vld [vmem:[%s14847_s10 + $0xf3] sm:$0xff] }
 0x174   : > { %13517 = vmatprep.mubr.msk.f32.mxu0 %vm253_vm0, %v16206_v41  ;;  %18002 = vst [vmem:[#allocation4_spill] sm:$0xff] %v16355_v37 }
 0x176   : > { %12840 = vmatmul.mubr.msk.f32.gmra.mrb[16].mxu1 %vm253_vm0, %v16214_v30 }
 0x177   : > { %13518 = vmatmul.mubr.msk.f32.vlgmr.msra.gmra.mrb[0].mxu0 %vm253_vm0, %v16219_v28  ;;  %12842 = vmatprep.mubr.msk.f32.mxu1 %vm253_vm0, %v16222_v48 }
 0x178   : > { %13968 = vmatpush3.bf16.msra.mxu0 %v16010_v25  ;;  %13520 = vmatprep.mubr.msk.f32.mxu0 %vm253_vm0, %v16225_v46  ;;  %v16277_v25 = vld [vmem:[%s14847_s10 + $0x93] sm:$0xff] }
 0x179   : > { %13569 = vmatprep.subr.mxu0 %v11293_v60 }
 0x17a   : > { %12843 = vmatmul.mubr.msk.f32.gmra.mrb[18].mxu1 %vm253_vm0, %v16243_v55 }
 0x17b   : > { %13521 = vmatmul.mubr.msk.f32.gmra.mrb[2].mxu0 %vm253_vm0, %v16249_v57  ;;  %12845 = vmatprep.mubr.msk.f32.mxu1 %vm253_vm0, %v16252_v59 }
 0x17c   : > { %13523 = vmatprep.mubr.msk.f32.mxu0 %vm253_vm0, %v16255_v6  ;;  %13570 = vmatpush3.msra.mxu0 %v11293_v60  ;;  %v16366_v60 = vld [vmem:[%s14847_s10 + $0xfb] sm:$0xff] }
 0x17d   : > { %13970 = vmatprep.subr.bf16.mxu0 %v16257_v8  ;;  %18003 = vst [vmem:[#allocation32_spill] sm:$0xff] %v16366_v60 }
 0x17e   : > { %12846 = vmatmul.mubr.msk.f32.gmra.mrb[20].mxu1 %vm253_vm0, %v16266_v10 }
 0x17f   : > { %13524 = vmatmul.mubr.msk.f32.gmra.mrb[4].mxu0 %vm253_vm0, %v16271_v12  ;;  %12848 = vmatprep.mubr.msk.f32.mxu1 %vm253_vm0, %v16274_v15 }
 0x180   : > { %13526 = vmatprep.mubr.msk.f32.mxu0 %vm253_vm0, %v16277_v25 }
 0x182   : > { %12849 = vmatmul.mubr.msk.f32.gmra.mrb[22].mxu1 %vm253_vm0, %v16287_v54 }
 0x183   : > { %13527 = vmatmul.mubr.msk.f32.gmra.mrb[6].mxu0 %vm253_vm0, %v16292_v3  ;;  %12851 = vmatprep.mubr.msk.f32.mxu1 %vm253_vm0, %v16295_v27 }
 0x184   : > { %13529 = vmatprep.mubr.msk.f32.mxu0 %vm253_vm0, %v16298_v14 }
 0x186   : > { %12852 = vmatmul.mubr.msk.f32.gmra.mrb[24].mxu1 %vm253_vm0, %v16307_v36 }
 0x187   : > { %13530 = vmatmul.mubr.msk.f32.gmra.mrb[8].mxu0 %vm253_vm0, %v16312_v17  ;;  %12854 = vmatprep.mubr.msk.f32.mxu1 %vm253_vm0, %v16315_v20 }
 0x188   : > { %13532 = vmatprep.mubr.msk.f32.mxu0 %vm253_vm0, %v16318_v24  ;;  %v16409_v24 = vld [vmem:[%s14847_s10 + $0x13b] sm:$0xff] }
 0x189   : > { %18008 = vst [vmem:[#allocation7_spill] sm:$0xff] %v16409_v24 }
 0x18a   : > { %12855 = vmatmul.mubr.msk.f32.gmra.mrb[26].mxu1 %vm253_vm0, %v16327_v43 }
 0x18b   : > { %13533 = vmatmul.mubr.msk.f32.gmra.mrb[10].mxu0 %vm253_vm0, %v16332_v47  ;;  %12857 = vmatprep.mubr.msk.f32.mxu1 %vm253_vm0, %v16335_v51  ;;  %v10392_v47 = vld [vmem:[%s14847_s10 + $0x49] sm:$0xff] }
 0x18c   : > { %13535 = vmatprep.mubr.msk.f32.mxu0 %vm253_vm0, %v16338_v29  ;;  %v16385_v29 = vld [vmem:[%s14847_s10 + $0x123] sm:$0xff] }
 0x18d   : > { %18006 = vst [vmem:[#allocation6_spill] sm:$0xff] %v16385_v29 }
 0x18e   : > { %12858 = vmatmul.mubr.msk.f32.gmra.mrb[28].mxu1 %vm253_vm0, %v16347_v42 }
 0x18f   : > { %13536 = vmatmul.mubr.msk.f32.gmra.mrb[12].mxu0 %vm253_vm0, %v16352_v32  ;;  %12860 = vmatprep.mubr.msk.f32.mxu1 %vm253_vm0, %v15780_v5  ;;  %v10389_v5 = vld [vmem:[%s14847_s10 + $0x21] sm:$0xff]  ;;  %v10390_v32 = vld [vmem:[%s14847_s10 + $0x31] sm:$0xff] }
 0x190   : > { %13538 = vmatprep.mubr.msk.f32.mxu0 %vm253_vm0, %v16355_v37  ;;  %v16381_v37 = vld [vmem:[%s14847_s10 + $0x113] sm:$0xff] }
 0x191   : > { %18005 = vst [vmem:[#allocation34_spill] sm:$0xff] %v16381_v37 }
 0x192   : > { %12861 = vmatmul.mubr.msk.f32.gmra.mrb[30].mxu1 %vm253_vm0, %v15791_v50  ;;  %v10489_v50 = vld [vmem:[%s17751_s1 + $0xb8] sm:$0xff] }
 0x193   : > { %13539 = vmatmul.mubr.msk.f32.gmra.mrb[14].mxu0 %vm253_vm0, %v16366_v60  ;;  %12869 = vmatprep.mubr.msk.f32.mxu1 %vm253_vm0, %v10388_v62  ;;  %v10554_v62 = vld [vmem:[%s17751_s1 + $0xc0] sm:$0xff]  ;;  %v16405_v60 = vld [vmem:[%s14847_s10 + $0x12b] sm:$0xff] }
 0x194   : > { %13541 = vmatprep.mubr.msk.f32.mxu0 %vm253_vm0, %v16370_v35  ;;  %v10555_v35 = vld [vmem:[%s17751_s1 + $0xc8] sm:$0xff]  ;;  %18007 = vst [vmem:[#allocation35_spill] sm:$0xff] %v16405_v60 }
 0x195   : > { %v16411_v17 = vpack.c.bf16 %v10555_v35, %v10554_v62  ;;  %v16427_v35 = vld [vmem:[%s14847_s10 + $0x153] sm:$0xff] }
 0x196   : > { %12870 = vmatmul.mubr.msk.f32.vlgmr.msra.gmra.mrb[0].mxu1 %vm253_vm0, %v10389_v5  ;;  %v10391_v5 = vld [vmem:[%s14847_s10 + $0x39] sm:$0xff]  ;;  %18010 = vst [vmem:[#allocation8_spill] sm:$0xff] %v16427_v35 }
 0x197   : > { %13542 = vmatmul.mubr.msk.f32.gmra.mrb[16].mxu0 %vm253_vm0, %v16381_v37  ;;  %13920 = vmatpush3.bf16.msra.mxu1 %v16116_v49  ;;  %v10393_v49 = vld [vmem:[%s14847_s10 + $0x51] sm:$0xff]  ;;  %v16444_v62 = vld [vmem:[%s14847_s10 + $0x79] sm:$0xff] }
 0x198   : > { %12872 = vmatprep.mubr.msk.f32.mxu1 %vm253_vm0, %v10390_v32  ;;  %13544 = vmatprep.mubr.msk.f32.mxu0 %vm253_vm0, %v16385_v29  ;;  %v16421_v32 = vld [vmem:[%s14847_s10 + $0x143] sm:$0xff]  ;;  %18013 = vst [vmem:[#allocation38_spill] sm:$0xff] %v16444_v62  ;;  %v11220_v37 = vld [vmem:[%s14847_s10 + $0x19b] sm:$0xff] }
 0x199   : > { %12921 = vmatprep.subr.mxu1 %v10489_v50  ;;  %18009 = vst [vmem:[#allocation36_spill] sm:$0xff] %v16421_v32  ;;  %v16424_v29 = vld [vmem:[%s14847_s10 + $0x61] sm:$0xff] }
 0x19a   : > { %12873 = vmatmul.mubr.msk.f32.gmra.mrb[2].mxu1 %vm253_vm0, %v10391_v5  ;;  %v16447_v5 = vld [vmem:[%s14847_s10 + $0x16b] sm:$0xff] }
 0x19b   : > { %13545 = vmatmul.mubr.msk.f32.gmra.mrb[18].mxu0 %vm253_vm0, %v16405_v60  ;;  %12875 = vmatprep.mubr.msk.f32.mxu1 %vm253_vm0, %v10392_v47  ;;  %v16436_v47 = vld [vmem:[%s14847_s10 + $0x69] sm:$0xff]  ;;  %18014 = vst [vmem:[#allocation10_spill] sm:$0xff] %v16447_v5 }
 0x19c   : > { %13547 = vmatprep.mubr.msk.f32.mxu0 %vm253_vm0, %v16409_v24  ;;  %12922 = vmatpush3.msra.mxu1 %v10489_v50  ;;  %18011 = vst [vmem:[#allocation37_spill] sm:$0xff] %v16436_v47  ;;  %v16441_v50 = vld [vmem:[%s14847_s10 + $0x15b] sm:$0xff]  ;;  %v16467_v24 = vld [vmem:[%s14847_s10 + $0x183] sm:$0xff] }
 0x19d   : > { %13922 = vmatprep.subr.bf16.mxu1 %v16411_v17  ;;  %18012 = vst [vmem:[#allocation9_spill] sm:$0xff] %v16441_v50  ;;  %18018 = vst [vmem:[#allocation12_spill] sm:$0xff] %v16467_v24  ;;  %v16484_v60 = vld [vmem:[%s14847_s10 + $0xa9] sm:$0xff] }
 0x19e   : > { %12876 = vmatmul.mubr.msk.f32.gmra.mrb[4].mxu1 %vm253_vm0, %v10393_v49  ;;  %v16456_v49 = vld [vmem:[%s14847_s10 + $0x81] sm:$0xff]  ;;  %18021 = vst [vmem:[#allocation42_spill] sm:$0xff] %v16484_v60 }
 0x19f   : > { %13548 = vmatmul.mubr.msk.f32.gmra.mrb[20].mxu0 %vm253_vm0, %v16421_v32  ;;  %12878 = vmatprep.mubr.msk.f32.mxu1 %vm253_vm0, %v16424_v29  ;;  %18015 = vst [vmem:[#allocation39_spill] sm:$0xff] %v16456_v49  ;;  %v16464_v32 = vld [vmem:[%s14847_s10 + $0x91] sm:$0xff] }
 0x1a0   : > { %13550 = vmatprep.mubr.msk.f32.mxu0 %vm253_vm0, %v16427_v35  ;;  %v16461_v35 = vld [vmem:[%s14847_s10 + $0x173] sm:$0xff]  ;;  %18017 = vst [vmem:[#allocation40_spill] sm:$0xff] %v16464_v32 }
 0x1a1   : > { %18016 = vst [vmem:[#allocation11_spill] sm:$0xff] %v16461_v35 }
 0x1a2   : > { %12879 = vmatmul.mubr.msk.f32.gmra.mrb[6].mxu1 %vm253_vm0, %v16436_v47  ;;  %v16565_v47 = vld [vmem:[%s14847_s10 + $0x7c] sm:$0xff] }
 0x1a3   : > { %13551 = vmatmul.mubr.msk.f32.gmra.mrb[22].mxu0 %vm253_vm0, %v16441_v50  ;;  %12881 = vmatprep.mubr.msk.f32.mxu1 %vm253_vm0, %v16444_v62  ;;  %v16476_v50 = vld [vmem:[%s14847_s10 + $0x99] sm:$0xff]  ;;  %v16562_v62 = vld [vmem:[%s14847_s10 + $0x109] sm:$0xff]  ;;  %18032 = vst [vmem:[#allocation20_spill] sm:$0xff] %v16565_v47 }
 0x1a4   : > { %13553 = vmatprep.mubr.msk.f32.mxu0 %vm253_vm0, %v16447_v5  ;;  %18019 = vst [vmem:[#allocation41_spill] sm:$0xff] %v16476_v50  ;;  %v16481_v5 = vld [vmem:[%s14847_s10 + $0x18b] sm:$0xff]  ;;  %18031 = vst [vmem:[#allocation19_spill] sm:$0xff] %v16562_v62 }
 0x1a5   : > { %18020 = vst [vmem:[#allocation13_spill] sm:$0xff] %v16481_v5 }
 0x1a6   : > { %12882 = vmatmul.mubr.msk.f32.gmra.mrb[8].mxu1 %vm253_vm0, %v16456_v49  ;;  %v11222_v49 = vld [vmem:[%s14847_s10 + $0x1b3] sm:$0xff] }
 0x1a7   : > { %13554 = vmatmul.mubr.msk.f32.gmra.mrb[24].mxu0 %vm253_vm0, %v16461_v35  ;;  %12884 = vmatprep.mubr.msk.f32.mxu1 %vm253_vm0, %v16464_v32  ;;  %v16494_v35 = vld [vmem:[%s14847_s10 + $0xb1] sm:$0xff]  ;;  %v16499_v32 = vld [vmem:[%s14847_s10 + $0xc1] sm:$0xff] }
 0x1a8   : > { %13556 = vmatprep.mubr.msk.f32.mxu0 %vm253_vm0, %v16467_v24  ;;  %18022 = vst [vmem:[#allocation14_spill] sm:$0xff] %v16494_v35  ;;  %v11221_v24 = vld [vmem:[%s14847_s10 + $0x1a3] sm:$0xff]  ;;  %18023 = vst [vmem:[#allocation43_spill] sm:$0xff] %v16499_v32 }
 0x1aa   : > { %12885 = vmatmul.mubr.msk.f32.gmra.mrb[10].mxu1 %vm253_vm0, %v16476_v50  ;;  %v16516_v50 = vld [vmem:[%s14847_s10 + $0x4c] sm:$0xff] }
 0x1ab   : > { %13557 = vmatmul.mubr.msk.f32.gmra.mrb[26].mxu0 %vm253_vm0, %v16481_v5  ;;  %12887 = vmatprep.mubr.msk.f32.mxu1 %vm253_vm0, %v16484_v60  ;;  %v16508_v5 = vld [vmem:[%s14847_s10 + $0xc9] sm:$0xff]  ;;  %v16513_v60 = vld [vmem:[%s14847_s10 + $0xd9] sm:$0xff]  ;;  %18026 = vst [vmem:[#allocation16_spill] sm:$0xff] %v16516_v50 }
 0x1ac   : > { %13559 = vmatprep.mubr.msk.f32.mxu0 %vm253_vm0, %v11220_v37  ;;  %18024 = vst [vmem:[#allocation15_spill] sm:$0xff] %v16508_v5  ;;  %v11223_v37 = vld [vmem:[%s14847_s10 + $0x1bb] sm:$0xff]  ;;  %18025 = vst [vmem:[#allocation44_spill] sm:$0xff] %v16513_v60 }
 0x1ae   : > { %12888 = vmatmul.mubr.msk.f32.gmra.mrb[12].mxu1 %vm253_vm0, %v16494_v35  ;;  %v16535_v35 = vld [vmem:[%s14847_s10 + $0x64] sm:$0xff] }
 0x1af   : > { %13560 = vmatmul.mubr.msk.f32.gmra.mrb[28].mxu0 %vm253_vm0, %v11221_v24  ;;  %12890 = vmatprep.mubr.msk.f32.mxu1 %vm253_vm0, %v16499_v32  ;;  %v16524_v24 = vld [vmem:[%s14847_s10 + $0xe1] sm:$0xff]  ;;  %v16532_v32 = vld [vmem:[%s14847_s10 + $0xf1] sm:$0xff]  ;;  %18029 = vst [vmem:[#allocation46_spill] sm:$0xff] %v16535_v35 }
 0x1b0   : > { %13562 = vmatprep.mubr.msk.f32.mxu0 %vm253_vm0, %v11222_v49  ;;  %18027 = vst [vmem:[#allocation45_spill] sm:$0xff] %v16524_v24  ;;  %v16529_v49 = vld [vmem:[%s14847_s10 + $0x54] sm:$0xff] }
 0x1b1   : > { %18028 = vst [vmem:[#allocation17_spill] sm:$0xff] %v16529_v49 }
 0x1b2   : > { %12891 = vmatmul.mubr.msk.f32.gmra.mrb[14].mxu1 %vm253_vm0, %v16508_v5  ;;  %v16559_v5 = vld [vmem:[%s14847_s10 + $0x6c] sm:$0xff] }
 0x1b3   : > { %13563 = vmatmul.mubr.msk.f32.gmra.mrb[30].mxu0 %vm253_vm0, %v11223_v37  ;;  %12893 = vmatprep.mubr.msk.f32.mxu1 %vm253_vm0, %v16513_v60  ;;  %v11360_v37 = vld [vmem:[%s17751_s1 + $0x1f0] sm:$0xff]  ;;  %v11425_v60 = vld [vmem:[%s17751_s1 + $0x1f8] sm:$0xff]  ;;  %18030 = vst [vmem:[#allocation18_spill] sm:$0xff] %v16559_v5 }
 0x1b4   : > { %13571 = vmatprep.mubr.msk.f32.mxu0 %vm253_vm0, %v16516_v50  ;;  %v11426_v50 = vld [vmem:[%s17751_s1 + $0x200] sm:$0xff] }
 0x1b6   : > { %12894 = vmatmul.mubr.msk.f32.gmra.mrb[16].mxu1 %vm253_vm0, %v16524_v24  ;;  %v16553_v24 = vld [vmem:[%s14847_s10 + $0xf9] sm:$0xff] }
 0x1b7   : > { %13572 = vmatmul.mubr.msk.f32.vlgmr.msra.gmra.mrb[0].mxu0 %vm253_vm0, %v16529_v49  ;;  %12896 = vmatprep.mubr.msk.f32.mxu1 %vm253_vm0, %v16532_v32  ;;  %v16567_v49 = vpack.c.bf16 %v11426_v50, %v11425_v60  ;;  %v16584_v60 = vld [vmem:[%s14847_s10 + $0x121] sm:$0xff]  ;;  %v16587_v50 = vld [vmem:[%s14847_s10 + $0x94] sm:$0xff] }
 0x1b8   : > { %13972 = vmatpush3.bf16.msra.mxu0 %v16257_v8  ;;  %13574 = vmatprep.mubr.msk.f32.mxu0 %vm253_vm0, %v16535_v35  ;;  %v16576_v8 = vld [vmem:[%s14847_s10 + $0x111] sm:$0xff]  ;;  %v16581_v35 = vld [vmem:[%s14847_s10 + $0x84] sm:$0xff]  ;;  %18035 = vst [vmem:[#allocation47_spill] sm:$0xff] %v16584_v60  ;;  %18036 = vst [vmem:[#allocation23_spill] sm:$0xff] %v16587_v50 }
 0x1b9   : > { %13623 = vmatprep.subr.mxu0 %v11360_v37  ;;  %18033 = vst [vmem:[#allocation21_spill] sm:$0xff] %v16576_v8  ;;  %18034 = vst [vmem:[#allocation22_spill] sm:$0xff] %v16581_v35 }
 0x1ba   : > { %12897 = vmatmul.mubr.msk.f32.gmra.mrb[18].mxu1 %vm253_vm0, %v16553_v24 }
 0x1bb   : > { %13575 = vmatmul.mubr.msk.f32.gmra.mrb[2].mxu0 %vm253_vm0, %v16559_v5  ;;  %12899 = vmatprep.mubr.msk.f32.mxu1 %vm253_vm0, %v16562_v62  ;;  %v16605_v5 = vld [vmem:[%s14847_s10 + $0x139] sm:$0xff]  ;;  %v16608_v62 = vld [vmem:[%s14847_s10 + $0xac] sm:$0xff] }
 0x1bc   : > { %13577 = vmatprep.mubr.msk.f32.mxu0 %vm253_vm0, %v16565_v47  ;;  %13624 = vmatpush3.msra.mxu0 %v11360_v37  ;;  %v16597_v47 = vld [vmem:[%s14847_s10 + $0x129] sm:$0xff]  ;;  %v16602_v37 = vld [vmem:[%s14847_s10 + $0x9c] sm:$0xff]  ;;  %18039 = vst [vmem:[#allocation49_spill] sm:$0xff] %v16605_v5  ;;  %18040 = vst [vmem:[#allocation27_spill] sm:$0xff] %v16608_v62 }
 0x1bd   : > { %13974 = vmatprep.subr.bf16.mxu0 %v16567_v49  ;;  %18037 = vst [vmem:[#allocation48_spill] sm:$0xff] %v16597_v47  ;;  %18038 = vst [vmem:[#allocation25_spill] sm:$0xff] %v16602_v37 }
 0x1be   : > { %12900 = vmatmul.mubr.msk.f32.gmra.mrb[20].mxu1 %vm253_vm0, %v16576_v8  ;;  %v16628_v8 = vld [vmem:[%s14847_s10 + $0xc4] sm:$0xff] }
 0x1bf   : > { %13578 = vmatmul.mubr.msk.f32.gmra.mrb[4].mxu0 %vm253_vm0, %v16581_v35  ;;  %12902 = vmatprep.mubr.msk.f32.mxu1 %vm253_vm0, %v16584_v60  ;;  %v16617_v35 = vld [vmem:[%s14847_s10 + $0x141] sm:$0xff]  ;;  %v16625_v60 = vld [vmem:[%s14847_s10 + $0x151] sm:$0xff]  ;;  %18044 = vst [vmem:[#allocation31_spill] sm:$0xff] %v16628_v8 }
 0x1c0   : > { %13580 = vmatprep.mubr.msk.f32.mxu0 %vm253_vm0, %v16587_v50  ;;  %18041 = vst [vmem:[#allocation50_spill] sm:$0xff] %v16617_v35  ;;  %v16622_v50 = vld [vmem:[%s14847_s10 + $0xb4] sm:$0xff]  ;;  %18043 = vst [vmem:[#allocation51_spill] sm:$0xff] %v16625_v60 }
 0x1c1   : > { %18042 = vst [vmem:[#allocation29_spill] sm:$0xff] %v16622_v50 }
 0x1c2   : > { %12903 = vmatmul.mubr.msk.f32.gmra.mrb[22].mxu1 %vm253_vm0, %v16597_v47  ;;  %v16648_v47 = vld [vmem:[%s14847_s10 + $0xdc] sm:$0xff] }
 0x1c3   : > { %13581 = vmatmul.mubr.msk.f32.gmra.mrb[6].mxu0 %vm253_vm0, %v16602_v37  ;;  %12905 = vmatprep.mubr.msk.f32.mxu1 %vm253_vm0, %v16605_v5  ;;  %v16637_v37 = vld [vmem:[%s14847_s10 + $0x159] sm:$0xff]  ;;  %v16645_v5 = vld [vmem:[%s14847_s10 + $0x169] sm:$0xff]  ;;  %18048 = vst [vmem:[#allocation54_spill] sm:$0xff] %v16648_v47 }
 0x1c4   : > { %13583 = vmatprep.mubr.msk.f32.mxu0 %vm253_vm0, %v16608_v62  ;;  %18045 = vst [vmem:[#allocation52_spill] sm:$0xff] %v16637_v37  ;;  %v16642_v62 = vld [vmem:[%s14847_s10 + $0xcc] sm:$0xff]  ;;  %18047 = vst [vmem:[#allocation53_spill] sm:$0xff] %v16645_v5 }
 0x1c5   : > { %18046 = vst [vmem:[#allocation33_spill] sm:$0xff] %v16642_v62 }
 0x1c6   : > { %12906 = vmatmul.mubr.msk.f32.gmra.mrb[24].mxu1 %vm253_vm0, %v16617_v35 }
 0x1c7   : > { %13584 = vmatmul.mubr.msk.f32.gmra.mrb[8].mxu0 %vm253_vm0, %v16622_v50  ;;  %12908 = vmatprep.mubr.msk.f32.mxu1 %vm253_vm0, %v16625_v60  ;;  %v16657_v50 = vld [vmem:[%s14847_s10 + $0x171] sm:$0xff] }
 0x1c8   : > { %13586 = vmatprep.mubr.msk.f32.mxu0 %vm253_vm0, %v16628_v8  ;;  %18049 = vst [vmem:[#allocation55_spill] sm:$0xff] %v16657_v50  ;;  %v16662_v8 = vld [vmem:[%s14847_s10 + $0xe4] sm:$0xff]  ;;  %v16665_v60 = vld [vmem:[%s14847_s10 + $0xf4] sm:$0xff] }
 0x1c9   : > { %18050 = vst [vmem:[#allocation56_spill] sm:$0xff] %v16662_v8  ;;  %18051 = vst [vmem:[#allocation57_spill] sm:$0xff] %v16665_v60 }
 0x1ca   : > { %12909 = vmatmul.mubr.msk.f32.gmra.mrb[26].mxu1 %vm253_vm0, %v16637_v37  ;;  %v16718_v37 = vld [vmem:[%s14847_s10 + $0x13c] sm:$0xff] }
 0x1cb   : > { %13587 = vmatmul.mubr.msk.f32.gmra.mrb[10].mxu0 %vm253_vm0, %v16642_v62  ;;  %12911 = vmatprep.mubr.msk.f32.mxu1 %vm253_vm0, %v16645_v5  ;;  %v16676_v62 = vld [vmem:[%s14847_s10 + $0xfc] sm:$0xff]  ;;  %v16680_v5 = vld [vmem:[%s14847_s10 + $0x10c] sm:$0xff] }
 0x1cc   : > { %13589 = vmatprep.mubr.msk.f32.mxu0 %vm253_vm0, %v16648_v47  ;;  %18052 = vst [vmem:[#allocation58_spill] sm:$0xff] %v16676_v62  ;;  %v10455_v47 = vld [vmem:[%s14847_s10 + $0x1a] sm:$0xff]  ;;  %18053 = vst [vmem:[#allocation59_spill] sm:$0xff] %v16680_v5 }
 0x1ce   : > { %12912 = vmatmul.mubr.msk.f32.gmra.mrb[28].mxu1 %vm253_vm0, %v16657_v50  ;;  %v16695_v50 = vld [vmem:[%s14847_s10 + $0x124] sm:$0xff] }
 0x1cf   : > { %13590 = vmatmul.mubr.msk.f32.gmra.mrb[12].mxu0 %vm253_vm0, %v16662_v8  ;;  %12914 = vmatprep.mubr.msk.f32.mxu1 %vm253_vm0, %v15940_v34  ;;  %v10456_v34 = vld [vmem:[%s14847_s10 + $0x22] sm:$0xff]  ;;  %v10457_v8 = vld [vmem:[%s14847_s10 + $0x32] sm:$0xff] }
 0x1d0   : > { %13592 = vmatprep.mubr.msk.f32.mxu0 %vm253_vm0, %v16665_v60  ;;  %v16691_v60 = vld [vmem:[%s14847_s10 + $0x114] sm:$0xff] }
 0x1d2   : > { %12915 = vmatmul.mubr.msk.f32.gmra.mrb[30].mxu1 %vm253_vm0, %v15951_v45  ;;  %v10556_v45 = vld [vmem:[%s17751_s1 + $0xd0] sm:$0xff] }
 0x1d3   : > { %13593 = vmatmul.mubr.msk.f32.gmra.mrb[14].mxu0 %vm253_vm0, %v16676_v62  ;;  %12923 = vmatprep.mubr.msk.f32.mxu1 %vm253_vm0, %v10455_v47  ;;  %v10621_v47 = vld [vmem:[%s17751_s1 + $0xd8] sm:$0xff]  ;;  %v16715_v62 = vld [vmem:[%s14847_s10 + $0x12c] sm:$0xff] }
 0x1d4   : > { %13595 = vmatprep.mubr.msk.f32.mxu0 %vm253_vm0, %v16680_v5  ;;  %v10622_v5 = vld [vmem:[%s17751_s1 + $0xe0] sm:$0xff] }
 0x1d5   : > { %v16720_v35 = vpack.c.bf16 %v10622_v5, %v10621_v47  ;;  %v16748_v5 = vld [vmem:[%s14847_s10 + $0x16c] sm:$0xff] }
 0x1d6   : > { %12924 = vmatmul.mubr.msk.f32.vlgmr.msra.gmra.mrb[0].mxu1 %vm253_vm0, %v10456_v34  ;;  %v10458_v34 = vld [vmem:[%s14847_s10 + $0x3a] sm:$0xff]  ;;  %v18063_v47 = vld [vmem:[#allocation39_spill] sm:$0xff] }
 0x1d7   : > { %13596 = vmatmul.mubr.msk.f32.gmra.mrb[16].mxu0 %vm253_vm0, %v16691_v60  ;;  %13924 = vmatpush3.bf16.msra.mxu1 %v16411_v17  ;;  %v16730_v17 = vld [vmem:[%s14847_s10 + $0x144] sm:$0xff] }
 0x1d8   : > { %12926 = vmatprep.mubr.msk.f32.mxu1 %vm253_vm0, %v10457_v8  ;;  %13598 = vmatprep.mubr.msk.f32.mxu0 %vm253_vm0, %v16695_v50  ;;  %v16733_v8 = vld [vmem:[%s14847_s10 + $0x154] sm:$0xff] }
 0x1d9   : > { %12975 = vmatprep.subr.mxu1 %v10556_v45 }
 0x1da   : > { %12927 = vmatmul.mubr.msk.f32.gmra.mrb[2].mxu1 %vm253_vm0, %v10458_v34  ;;  %v18064_v34 = vld [vmem:[#allocation5_spill] sm:$0xff] }
 0x1db   : > { %13599 = vmatmul.mubr.msk.f32.gmra.mrb[18].mxu0 %vm253_vm0, %v16715_v62  ;;  %12929 = vmatprep.mubr.msk.f32.mxu1 %vm253_vm0, %v15971_v44  ;;  %v16745_v44 = vld [vmem:[%s14847_s10 + $0x15c] sm:$0xff] }
 0x1dc   : > { %13601 = vmatprep.mubr.msk.f32.mxu0 %vm253_vm0, %v16718_v37  ;;  %12976 = vmatpush3.msra.mxu1 %v10556_v45  ;;  %v18062_v45 = vld [vmem:[#allocation32_spill] sm:$0xff] }
 0x1dd   : > { %13926 = vmatprep.subr.bf16.mxu1 %v16720_v35 }
 0x1de   : > { %12930 = vmatmul.mubr.msk.f32.gmra.mrb[4].mxu1 %vm253_vm0, %v15981_v0  ;;  %v16759_v0 = vld [vmem:[%s14847_s10 + $0x174] sm:$0xff] }
 0x1df   : > { %13602 = vmatmul.mubr.msk.f32.gmra.mrb[20].mxu0 %vm253_vm0, %v16730_v17  ;;  %12932 = vmatprep.mubr.msk.f32.mxu1 %vm253_vm0, %v15984_v2  ;;  %v16762_v2 = vld [vmem:[%s14847_s10 + $0x184] sm:$0xff] }
 0x1e0   : > { %13604 = vmatprep.mubr.msk.f32.mxu0 %vm253_vm0, %v16733_v8 }
 0x1e2   : > { %12933 = vmatmul.mubr.msk.f32.gmra.mrb[6].mxu1 %vm253_vm0, %v16005_v18  ;;  %v16773_v18 = vld [vmem:[%s14847_s10 + $0x18c] sm:$0xff] }
 0x1e3   : > { %13605 = vmatmul.mubr.msk.f32.gmra.mrb[22].mxu0 %vm253_vm0, %v16745_v44  ;;  %12935 = vmatprep.mubr.msk.f32.mxu1 %vm253_vm0, %v16008_v19  ;;  %v11287_v19 = vld [vmem:[%s14847_s10 + $0x19c] sm:$0xff] }
 0x1e4   : > { %13607 = vmatprep.mubr.msk.f32.mxu0 %vm253_vm0, %v16748_v5 }
 0x1e6   : > { %12936 = vmatmul.mubr.msk.f32.gmra.mrb[8].mxu1 %vm253_vm0, %v16021_v61  ;;  %v11288_v61 = vld [vmem:[%s14847_s10 + $0x1a4] sm:$0xff] }
 0x1e7   : > { %13608 = vmatmul.mubr.msk.f32.gmra.mrb[24].mxu0 %vm253_vm0, %v16759_v0  ;;  %12938 = vmatprep.mubr.msk.f32.mxu1 %vm253_vm0, %v16024_v52  ;;  %v11289_v52 = vld [vmem:[%s14847_s10 + $0x1b4] sm:$0xff] }
 0x1e8   : > { %13610 = vmatprep.mubr.msk.f32.mxu0 %vm253_vm0, %v16762_v2 }
 0x1ea   : > { %12939 = vmatmul.mubr.msk.f32.gmra.mrb[10].mxu1 %vm253_vm0, %v16036_v1  ;;  %v11290_v1 = vld [vmem:[%s14847_s10 + $0x1bc] sm:$0xff] }
 0x1eb   : > { %13611 = vmatmul.mubr.msk.f32.gmra.mrb[26].mxu0 %vm253_vm0, %v16773_v18  ;;  %12941 = vmatprep.mubr.msk.f32.mxu1 %vm253_vm0, %v16039_v13  ;;  %v16800_v13 = vld [vmem:[%s14847_s10 + $0xf2] sm:$0xff] }
 0x1ec   : > { %13613 = vmatprep.mubr.msk.f32.mxu0 %vm253_vm0, %v11287_v19  ;;  %v18065_v19 = vld [vmem:[#allocation40_spill] sm:$0xff] }
 0x1ee   : > { %12942 = vmatmul.mubr.msk.f32.gmra.mrb[12].mxu1 %vm253_vm0, %v16050_v33  ;;  %v11427_v33 = vld [vmem:[%s17751_s1 + $0x208] sm:$0xff] }
 0x1ef   : > { %13614 = vmatmul.mubr.msk.f32.gmra.mrb[28].mxu0 %vm253_vm0, %v11288_v61  ;;  %12944 = vmatprep.mubr.msk.f32.mxu1 %vm253_vm0, %v16053_v38  ;;  %v11492_v38 = vld [vmem:[%s17751_s1 + $0x210] sm:$0xff]  ;;  %v18066_v61 = vld [vmem:[#allocation34_spill] sm:$0xff] }
 0x1f0   : > { %13616 = vmatprep.mubr.msk.f32.mxu0 %vm253_vm0, %v11289_v52  ;;  %v18067_v52 = vld [vmem:[#allocation41_spill] sm:$0xff] }
 0x1f2   : > { %12945 = vmatmul.mubr.msk.f32.gmra.mrb[14].mxu1 %vm253_vm0, %v16064_v40  ;;  %v11493_v40 = vld [vmem:[%s17751_s1 + $0x218] sm:$0xff] }
 0x1f3   : > { %13617 = vmatmul.mubr.msk.f32.gmra.mrb[30].mxu0 %vm253_vm0, %v11290_v1  ;;  %12947 = vmatprep.mubr.msk.f32.mxu1 %vm253_vm0, %v16067_v21  ;;  %v16818_v21 = vld [vmem:[%s14847_s10 + $0xfa] sm:$0xff] }
 0x1f4   : > { %13625 = vmatprep.mubr.msk.f32.mxu0 %vm253_vm0, %v16126_v53  ;;  %v16826_v53 = vpack.c.bf16 %v11493_v40, %v11492_v38  ;;  %v18068_v1 = vld [vmem:[#allocation6_spill] sm:$0xff]  ;;  %v18070_v38 = vld [vmem:[#allocation35_spill] sm:$0xff] }
 0x1f5   : > { %v18071_v40 = vld [vmem:[#allocation14_spill] sm:$0xff] }
 0x1f6   : > { %12948 = vmatmul.mubr.msk.f32.gmra.mrb[16].mxu1 %vm253_vm0, %v16078_v11  ;;  %v16824_v11 = vld [vmem:[%s14847_s10 + $0x10a] sm:$0xff] }
 0x1f7   : > { %13626 = vmatmul.mubr.msk.f32.vlgmr.msra.gmra.mrb[0].mxu0 %vm253_vm0, %v16135_v63  ;;  %12950 = vmatprep.mubr.msk.f32.mxu1 %vm253_vm0, %v16800_v13  ;;  %v16835_v63 = vld [vmem:[%s14847_s10 + $0x112] sm:$0xff] }
 0x1f8   : > { %13976 = vmatpush3.bf16.msra.mxu0 %v16567_v49  ;;  %13628 = vmatprep.mubr.msk.f32.mxu0 %vm253_vm0, %v16140_v4  ;;  %v16840_v4 = vld [vmem:[%s14847_s10 + $0x122] sm:$0xff]  ;;  %v16869_v49 = vld [vmem:[%s14847_s10 + $0x152] sm:$0xff] }
 0x1f9   : > { %13677 = vmatprep.subr.mxu0 %v11427_v33 }
 0x1fa   : > { %12951 = vmatmul.mubr.msk.f32.gmra.mrb[18].mxu1 %vm253_vm0, %v16818_v21 }
 0x1fb   : > { %13629 = vmatmul.mubr.msk.f32.gmra.mrb[2].mxu0 %vm253_vm0, %v16149_v7  ;;  %12953 = vmatprep.mubr.msk.f32.mxu1 %vm253_vm0, %v16824_v11  ;;  %v16850_v7 = vld [vmem:[%s14847_s10 + $0x12a] sm:$0xff] }
 0x1fc   : > { %13631 = vmatprep.mubr.msk.f32.mxu0 %vm253_vm0, %v16154_v9  ;;  %13678 = vmatpush3.msra.mxu0 %v11427_v33  ;;  %v16855_v9 = vld [vmem:[%s14847_s10 + $0x13a] sm:$0xff] }
 0x1fd   : > { %13978 = vmatprep.subr.bf16.mxu0 %v16826_v53  ;;  %v18069_v33 = vld [vmem:[#allocation42_spill] sm:$0xff] }
 0x1fe   : > { %12954 = vmatmul.mubr.msk.f32.gmra.mrb[20].mxu1 %vm253_vm0, %v16835_v63 }
 0x1ff   : > { %13632 = vmatmul.mubr.msk.f32.gmra.mrb[4].mxu0 %vm253_vm0, %v16166_v58  ;;  %12956 = vmatprep.mubr.msk.f32.mxu1 %vm253_vm0, %v16840_v4  ;;  %v16864_v58 = vld [vmem:[%s14847_s10 + $0x142] sm:$0xff] }
 0x200   : > { %13634 = vmatprep.mubr.msk.f32.mxu0 %vm253_vm0, %v16174_v56  ;;  %v16878_v56 = vld [vmem:[%s14847_s10 + $0x15a] sm:$0xff] }
 0x202   : > { %12957 = vmatmul.mubr.msk.f32.gmra.mrb[22].mxu1 %vm253_vm0, %v16850_v7 }
 0x203   : > { %13635 = vmatmul.mubr.msk.f32.gmra.mrb[6].mxu0 %vm253_vm0, %v16184_v22  ;;  %12959 = vmatprep.mubr.msk.f32.mxu1 %vm253_vm0, %v16855_v9  ;;  %v16883_v22 = vld [vmem:[%s14847_s10 + $0x16a] sm:$0xff] }
 0x204   : > { %13637 = vmatprep.mubr.msk.f32.mxu0 %vm253_vm0, %v16189_v26  ;;  %v16892_v26 = vld [vmem:[%s14847_s10 + $0x172] sm:$0xff] }
 0x206   : > { %12960 = vmatmul.mubr.msk.f32.gmra.mrb[24].mxu1 %vm253_vm0, %v16864_v58 }
 0x207   : > { %13638 = vmatmul.mubr.msk.f32.gmra.mrb[8].mxu0 %vm253_vm0, %v16198_v23  ;;  %12962 = vmatprep.mubr.msk.f32.mxu1 %vm253_vm0, %v16869_v49  ;;  %v10522_v23 = vld [vmem:[%s14847_s10 + $0x1b] sm:$0xff] }
 0x208   : > { %13640 = vmatprep.mubr.msk.f32.mxu0 %vm253_vm0, %v16203_v39  ;;  %v10523_v39 = vld [vmem:[%s14847_s10 + $0x23] sm:$0xff] }
 0x20a   : > { %12963 = vmatmul.mubr.msk.f32.gmra.mrb[26].mxu1 %vm253_vm0, %v16878_v56 }
 0x20b   : > { %13641 = vmatmul.mubr.msk.f32.gmra.mrb[10].mxu0 %vm253_vm0, %v16214_v30  ;;  %12965 = vmatprep.mubr.msk.f32.mxu1 %vm253_vm0, %v16883_v22  ;;  %v10524_v30 = vld [vmem:[%s14847_s10 + $0x33] sm:$0xff] }
 0x20c   : > { %13643 = vmatprep.mubr.msk.f32.mxu0 %vm253_vm0, %v16222_v48  ;;  %v10689_v48 = vld [vmem:[%s17751_s1 + $0xf8] sm:$0xff] }
 0x20e   : > { %12966 = vmatmul.mubr.msk.f32.gmra.mrb[28].mxu1 %vm253_vm0, %v16892_v26 }
 0x20f   : > { %13644 = vmatmul.mubr.msk.f32.gmra.mrb[12].mxu0 %vm253_vm0, %v16243_v55  ;;  %12968 = vmatprep.mubr.msk.f32.mxu1 %vm253_vm0, %v16157_v31  ;;  %v10623_v31 = vld [vmem:[%s17751_s1 + $0xe8] sm:$0xff]  ;;  %v10525_v55 = vld [vmem:[%s14847_s10 + $0x3b] sm:$0xff] }
 0x210   : > { %13646 = vmatprep.mubr.msk.f32.mxu0 %vm253_vm0, %v16252_v59 }
 0x212   : > { %12969 = vmatmul.mubr.msk.f32.gmra.mrb[30].mxu1 %vm253_vm0, %v16171_v16  ;;  %v10688_v16 = vld [vmem:[%s17751_s1 + $0xf0] sm:$0xff] }
 0x213   : > { %13647 = vmatmul.mubr.msk.f32.gmra.mrb[14].mxu0 %vm253_vm0, %v16266_v10  ;;  %12977 = vmatprep.mubr.msk.f32.mxu1 %vm253_vm0, %v10522_v23  ;;  %v16931_v59 = vpack.c.bf16 %v10689_v48, %v10688_v16  ;;  %v11355_v10 = vld [vmem:[%s14847_s10 + $0x1b8] sm:$0xff]  ;;  %v18073_v23 = vld [vmem:[#allocation43_spill] sm:$0xff]  ;;  %v18077_v16 = vld [vmem:[#allocation44_spill] sm:$0xff] }
 0x214   : > { %13649 = vmatprep.mubr.msk.f32.mxu0 %vm253_vm0, %v16274_v15  ;;  %v18054_v15 = vld [vmem:[#allocation24_spill] sm:$0xff]  ;;  %v18078_v48 = vld [vmem:[#allocation9_spill] sm:$0xff] }
 0x216   : > { %12978 = vmatmul.mubr.msk.f32.vlgmr.msra.gmra.mrb[0].mxu1 %vm253_vm0, %v10523_v39  ;;  %v18074_v39 = vld [vmem:[#allocation36_spill] sm:$0xff] }
 0x217   : > { %13650 = vmatmul.mubr.msk.f32.gmra.mrb[16].mxu0 %vm253_vm0, %v16287_v54  ;;  %13928 = vmatpush3.bf16.msra.mxu1 %v16720_v35  ;;  %v11357_v54 = vld [vmem:[%s14847_s10 + $0x1d0] sm:$0xff] }
 0x218   : > { %12980 = vmatprep.mubr.msk.f32.mxu1 %vm253_vm0, %v10524_v30  ;;  %13652 = vmatprep.mubr.msk.f32.mxu0 %vm253_vm0, %v16295_v27  ;;  %v18057_v27 = vld [vmem:[#allocation3_spill] sm:$0xff] }
 0x219   : > { %13029 = vmatprep.subr.mxu1 %v10623_v31  ;;  %v18075_v30 = vld [vmem:[#allocation15_spill] sm:$0xff] }
 0x21a   : > { %12981 = vmatmul.mubr.msk.f32.gmra.mrb[2].mxu1 %vm253_vm0, %v10525_v55  ;;  %v18079_v55 = vld [vmem:[#allocation45_spill] sm:$0xff] }
 0x21b   : > { %13653 = vmatmul.mubr.msk.f32.gmra.mrb[18].mxu0 %vm253_vm0, %v16307_v36  ;;  %12983 = vmatprep.mubr.msk.f32.mxu1 %vm253_vm0, %v16206_v41  ;;  %v16950_v41 = vld [vmem:[%s14847_s10 + $0x180] sm:$0xff] }
 0x21c   : > { %13655 = vmatprep.mubr.msk.f32.mxu0 %vm253_vm0, %v16315_v20  ;;  %13030 = vmatpush3.msra.mxu1 %v10623_v31  ;;  %v11494_v36 = vld [vmem:[%s17751_s1 + $0x220] sm:$0xff]  ;;  %v11559_v20 = vld [vmem:[%s17751_s1 + $0x228] sm:$0xff]  ;;  %v18076_v31 = vld [vmem:[#allocation8_spill] sm:$0xff] }
 0x21d   : > { %13930 = vmatprep.subr.bf16.mxu1 %v16931_v59 }
 0x21e   : > { %12984 = vmatmul.mubr.msk.f32.gmra.mrb[4].mxu1 %vm253_vm0, %v16219_v28  ;;  %v16961_v28 = vld [vmem:[%s14847_s10 + $0x188] sm:$0xff] }
 0x21f   : > { %13656 = vmatmul.mubr.msk.f32.gmra.mrb[20].mxu0 %vm253_vm0, %v16327_v43  ;;  %12986 = vmatprep.mubr.msk.f32.mxu1 %vm253_vm0, %v16225_v46  ;;  %v16964_v46 = vld [vmem:[%s14847_s10 + $0x198] sm:$0xff]  ;;  %v11560_v43 = vld [vmem:[%s17751_s1 + $0x230] sm:$0xff] }
 0x220   : > { %13658 = vmatprep.mubr.msk.f32.mxu0 %vm253_vm0, %v16335_v51  ;;  %v18059_v51 = vld [vmem:[#allocation37_spill] sm:$0xff]  ;;  %v17019_v35 = vpack.c.bf16 %v11560_v43, %v11559_v20  ;;  %v10756_v20 = vld [vmem:[%s17751_s1 + $0x110] sm:$0xff] }
 0x221   : > { %v18087_v43 = vld [vmem:[#allocation48_spill] sm:$0xff] }
 0x222   : > { %12987 = vmatmul.mubr.msk.f32.gmra.mrb[6].mxu1 %vm253_vm0, %v16249_v57  ;;  %v16975_v57 = vld [vmem:[%s14847_s10 + $0x1a0] sm:$0xff] }
 0x223   : > { %13659 = vmatmul.mubr.msk.f32.gmra.mrb[22].mxu0 %vm253_vm0, %v16347_v42  ;;  %12989 = vmatprep.mubr.msk.f32.mxu1 %vm253_vm0, %v16255_v6  ;;  %v11354_v6 = vld [vmem:[%s14847_s10 + $0x1b0] sm:$0xff] }
 0x224   : > { %13661 = vmatprep.mubr.msk.f32.mxu0 %vm253_vm0, %v16950_v41  ;;  %v18060_v42 = vld [vmem:[#allocation4_spill] sm:$0xff] }
 0x226   : > { %12990 = vmatmul.mubr.msk.f32.gmra.mrb[8].mxu1 %vm253_vm0, %v16271_v12  ;;  %v11356_v12 = vld [vmem:[%s14847_s10 + $0x1c8] sm:$0xff] }
 0x227   : > { %13662 = vmatmul.mubr.msk.f32.gmra.mrb[24].mxu0 %vm253_vm0, %v16961_v28  ;;  %12992 = vmatprep.mubr.msk.f32.mxu1 %vm253_vm0, %v16277_v25  ;;  %v18055_v25 = vld [vmem:[#allocation26_spill] sm:$0xff] }
 0x228   : > { %13664 = vmatprep.mubr.msk.f32.mxu0 %vm253_vm0, %v16964_v46 }
 0x22a   : > { %12993 = vmatmul.mubr.msk.f32.gmra.mrb[10].mxu1 %vm253_vm0, %v16292_v3  ;;  %v18056_v3 = vld [vmem:[#allocation28_spill] sm:$0xff] }
 0x22b   : > { %13665 = vmatmul.mubr.msk.f32.gmra.mrb[26].mxu0 %vm253_vm0, %v16975_v57  ;;  %12995 = vmatprep.mubr.msk.f32.mxu1 %vm253_vm0, %v16298_v14  ;;  %v18058_v14 = vld [vmem:[#allocation30_spill] sm:$0xff] }
 0x22c   : > { %13667 = vmatprep.mubr.msk.f32.mxu0 %vm253_vm0, %v11354_v6  ;;  %v18080_v6 = vld [vmem:[#allocation10_spill] sm:$0xff] }
 0x22e   : > { %12996 = vmatmul.mubr.msk.f32.gmra.mrb[12].mxu1 %vm253_vm0, %v18054_v15  ;;  %v18083_v15 = vld [vmem:[#allocation19_spill] sm:$0xff] }
 0x22f   : > { %13668 = vmatmul.mubr.msk.f32.gmra.mrb[28].mxu0 %vm253_vm0, %v11355_v10  ;;  %12998 = vmatprep.mubr.msk.f32.mxu1 %vm253_vm0, %v18055_v25  ;;  %v18081_v10 = vld [vmem:[#allocation11_spill] sm:$0xff]  ;;  %v10589_v25 = vld [vmem:[%s14847_s10 + $0x1c] sm:$0xff] }
 0x230   : > { %13670 = vmatprep.mubr.msk.f32.mxu0 %vm253_vm0, %v11356_v12  ;;  %v18082_v12 = vld [vmem:[#allocation12_spill] sm:$0xff] }
 0x232   : > { %12999 = vmatmul.mubr.msk.f32.gmra.mrb[14].mxu1 %vm253_vm0, %v18056_v3  ;;  %v18085_v3 = vld [vmem:[#allocation21_spill] sm:$0xff] }
 0x233   : > { %13671 = vmatmul.mubr.msk.f32.gmra.mrb[30].mxu0 %vm253_vm0, %v11357_v54  ;;  %13001 = vmatprep.mubr.msk.f32.mxu1 %vm253_vm0, %v18057_v27  ;;  %v18084_v54 = vld [vmem:[#allocation13_spill] sm:$0xff]  ;;  %v18086_v27 = vld [vmem:[#allocation47_spill] sm:$0xff] }
 0x234   : > { %13679 = vmatprep.mubr.msk.f32.mxu0 %vm253_vm0, %v16424_v29  ;;  %v18061_v29 = vld [vmem:[#allocation38_spill] sm:$0xff] }
 0x236   : > { %13002 = vmatmul.mubr.msk.f32.gmra.mrb[16].mxu1 %vm253_vm0, %v18058_v14  ;;  %v10690_v14 = vld [vmem:[%s17751_s1 + $0x100] sm:$0xff] }
 0x237   : > { %13680 = vmatmul.mubr.msk.f32.vlgmr.msra.gmra.mrb[0].mxu0 %vm253_vm0, %v18059_v51  ;;  %13004 = vmatprep.mubr.msk.f32.mxu1 %vm253_vm0, %v18060_v42  ;;  %v10592_v51 = vld [vmem:[%s14847_s10 + $0x3c] sm:$0xff] }
 0x238   : > { %13980 = vmatpush3.bf16.msra.mxu0 %v16826_v53  ;;  %13682 = vmatprep.mubr.msk.f32.mxu0 %vm253_vm0, %v18061_v29  ;;  %v18072_v53 = vld [vmem:[#allocation7_spill] sm:$0xff]  ;;  %v18088_v42 = vld [vmem:[#allocation49_spill] sm:$0xff] }
 0x239   : > { %13731 = vmatprep.subr.mxu0 %v11494_v36 }
 0x23a   : > { %13005 = vmatmul.mubr.msk.f32.gmra.mrb[18].mxu1 %vm253_vm0, %v18062_v45  ;;  %v18089_v45 = vld [vmem:[#allocation50_spill] sm:$0xff] }
 0x23b   : > { %13683 = vmatmul.mubr.msk.f32.gmra.mrb[2].mxu0 %vm253_vm0, %v18063_v47  ;;  %13007 = vmatprep.mubr.msk.f32.mxu1 %vm253_vm0, %v18064_v34  ;;  %v18090_v47 = vld [vmem:[#allocation16_spill] sm:$0xff]  ;;  %v18092_v34 = vld [vmem:[#allocation17_spill] sm:$0xff] }
 0x23c   : > { %13685 = vmatprep.mubr.msk.f32.mxu0 %vm253_vm0, %v18065_v19  ;;  %13732 = vmatpush3.msra.mxu0 %v11494_v36  ;;  %v10755_v36 = vld [vmem:[%s17751_s1 + $0x108] sm:$0xff]  ;;  %v18093_v19 = vld [vmem:[#allocation52_spill] sm:$0xff] }
 0x23d   : > { %13982 = vmatprep.subr.bf16.mxu0 %v17019_v35  ;;  %v17097_v29 = vpack.c.bf16 %v10756_v20, %v10755_v36  ;;  %v11561_v36 = vld [vmem:[%s17751_s1 + $0x238] sm:$0xff]  ;;  %v11626_v20 = vld [vmem:[%s17751_s1 + $0x240] sm:$0xff] }
 0x23e   : > { %13008 = vmatmul.mubr.msk.f32.gmra.mrb[20].mxu1 %vm253_vm0, %v18066_v61  ;;  %v18094_v61 = vld [vmem:[#allocation46_spill] sm:$0xff] }
 0x23f   : > { %13686 = vmatmul.mubr.msk.f32.gmra.mrb[4].mxu0 %vm253_vm0, %v18067_v52  ;;  %13010 = vmatprep.mubr.msk.f32.mxu1 %vm253_vm0, %v18068_v1  ;;  %v18095_v52 = vld [vmem:[#allocation53_spill] sm:$0xff]  ;;  %v17116_v1 = vld [vmem:[%s14847_s10 + $0x181] sm:$0xff] }
 0x240   : > { %13688 = vmatprep.mubr.msk.f32.mxu0 %vm253_vm0, %v18069_v33  ;;  %v18096_v33 = vld [vmem:[#allocation18_spill] sm:$0xff] }
 0x242   : > { %13011 = vmatmul.mubr.msk.f32.gmra.mrb[22].mxu1 %vm253_vm0, %v18070_v38  ;;  %v18097_v38 = vld [vmem:[#allocation55_spill] sm:$0xff] }
 0x243   : > { %13689 = vmatmul.mubr.msk.f32.gmra.mrb[6].mxu0 %vm253_vm0, %v18071_v40  ;;  %13013 = vmatprep.mubr.msk.f32.mxu1 %vm253_vm0, %v18072_v53  ;;  %v18098_v40 = vld [vmem:[#allocation20_spill] sm:$0xff] }
 0x244   : > { %13691 = vmatprep.mubr.msk.f32.mxu0 %vm253_vm0, %v18073_v23  ;;  %v17127_v53 = vld [vmem:[%s14847_s10 + $0x189] sm:$0xff]  ;;  %v17130_v23 = vld [vmem:[%s14847_s10 + $0x199] sm:$0xff] }
 0x246   : > { %13014 = vmatmul.mubr.msk.f32.gmra.mrb[24].mxu1 %vm253_vm0, %v18074_v39  ;;  %v18099_v39 = vld [vmem:[#allocation22_spill] sm:$0xff] }
 0x247   : > { %13692 = vmatmul.mubr.msk.f32.gmra.mrb[8].mxu0 %vm253_vm0, %v18075_v30  ;;  %13016 = vmatprep.mubr.msk.f32.mxu1 %vm253_vm0, %v18076_v31  ;;  %v18100_v30 = vld [vmem:[#allocation23_spill] sm:$0xff] }
 0x248   : > { %13694 = vmatprep.mubr.msk.f32.mxu0 %vm253_vm0, %v18077_v16  ;;  %v17141_v31 = vld [vmem:[%s14847_s10 + $0x1a1] sm:$0xff]  ;;  %v11421_v16 = vld [vmem:[%s14847_s10 + $0x1b1] sm:$0xff] }
 0x24a   : > { %13017 = vmatmul.mubr.msk.f32.gmra.mrb[26].mxu1 %vm253_vm0, %v18078_v48  ;;  %v18101_v48 = vld [vmem:[#allocation25_spill] sm:$0xff] }
 0x24b   : > { %13695 = vmatmul.mubr.msk.f32.gmra.mrb[10].mxu0 %vm253_vm0, %v18079_v55  ;;  %13019 = vmatprep.mubr.msk.f32.mxu1 %vm253_vm0, %v18080_v6  ;;  %v18102_v55 = vld [vmem:[#allocation27_spill] sm:$0xff]  ;;  %v11422_v6 = vld [vmem:[%s14847_s10 + $0x1b9] sm:$0xff] }
 0x24c   : > { %13697 = vmatprep.mubr.msk.f32.mxu0 %vm253_vm0, %v16532_v32  ;;  %v10590_v32 = vld [vmem:[%s14847_s10 + $0x24] sm:$0xff] }
 0x24e   : > { %13020 = vmatmul.mubr.msk.f32.gmra.mrb[28].mxu1 %vm253_vm0, %v18081_v10  ;;  %v11423_v10 = vld [vmem:[%s14847_s10 + $0x1c9] sm:$0xff] }
 0x24f   : > { %13698 = vmatmul.mubr.msk.f32.gmra.mrb[12].mxu0 %vm253_vm0, %v16553_v24  ;;  %13022 = vmatprep.mubr.msk.f32.mxu1 %vm253_vm0, %v18082_v12  ;;  %v10591_v24 = vld [vmem:[%s14847_s10 + $0x34] sm:$0xff] }
 0x250   : > { %13700 = vmatprep.mubr.msk.f32.mxu0 %vm253_vm0, %v18083_v15  ;;  %v18103_v12 = vld [vmem:[#allocation29_spill] sm:$0xff]  ;;  %v18104_v15 = vld [vmem:[#allocation31_spill] sm:$0xff] }
 0x252   : > { %13023 = vmatmul.mubr.msk.f32.gmra.mrb[30].mxu1 %vm253_vm0, %v18084_v54  ;;  %v11460_v54 = vld [vmem:[%s14847_s10 + $0x62] sm:$0xff] }
 0x253   : > { %13701 = vmatmul.mubr.msk.f32.gmra.mrb[14].mxu0 %vm253_vm0, %v18085_v3  ;;  %13031 = vmatprep.mubr.msk.f32.mxu1 %vm253_vm0, %v10589_v25  ;;  %v11424_v25 = vld [vmem:[%s14847_s10 + $0x1d1] sm:$0xff] }
 0x254   : > { %13703 = vmatprep.mubr.msk.f32.mxu0 %vm253_vm0, %v18086_v27  ;;  %v18105_v3 = vld [vmem:[#allocation33_spill] sm:$0xff]  ;;  %v11461_v27 = vld [vmem:[%s14847_s10 + $0x6a] sm:$0xff] }
 0x256   : > { %13032 = vmatmul.mubr.msk.f32.vlgmr.msra.gmra.mrb[0].mxu1 %vm253_vm0, %v10590_v32  ;;  %v18106_v32 = vld [vmem:[#allocation54_spill] sm:$0xff] }
 0x257   : > { %13704 = vmatmul.mubr.msk.f32.gmra.mrb[16].mxu0 %vm253_vm0, %v18087_v43  ;;  %13932 = vmatpush3.bf16.msra.mxu1 %v16931_v59  ;;  %v18091_v59 = vld [vmem:[#allocation51_spill] sm:$0xff] }
 0x258   : > { %13034 = vmatprep.mubr.msk.f32.mxu1 %vm253_vm0, %v10591_v24  ;;  %13706 = vmatprep.mubr.msk.f32.mxu0 %vm253_vm0, %v18088_v42  ;;  %v11462_v24 = vld [vmem:[%s14847_s10 + $0x7a] sm:$0xff]  ;;  %v11627_v43 = vld [vmem:[%s17751_s1 + $0x248] sm:$0xff] }
 0x259   : > { %13083 = vmatprep.subr.mxu1 %v10690_v14  ;;  %v11463_v42 = vld [vmem:[%s14847_s10 + $0x82] sm:$0xff] }
 0x25a   : > { %13035 = vmatmul.mubr.msk.f32.gmra.mrb[2].mxu1 %vm253_vm0, %v10592_v51  ;;  %v18108_v51 = vld [vmem:[#allocation57_spill] sm:$0xff] }
 0x25b   : > { %13707 = vmatmul.mubr.msk.f32.gmra.mrb[18].mxu0 %vm253_vm0, %v18089_v45  ;;  %13037 = vmatprep.mubr.msk.f32.mxu1 %vm253_vm0, %v18090_v47  ;;  %v11464_v45 = vld [vmem:[%s14847_s10 + $0x92] sm:$0xff]  ;;  %v17187_v47 = vpack.c.bf16 %v11627_v43, %v11626_v20  ;;  %v10679_v20 = vld [vmem:[%s14847_s10 + $0x140] sm:$0xff] }
 0x25c   : > { %13709 = vmatprep.mubr.msk.f32.mxu0 %vm253_vm0, %v18091_v59  ;;  %13084 = vmatpush3.msra.mxu1 %v10690_v14  ;;  %v18107_v14 = vld [vmem:[#allocation56_spill] sm:$0xff]  ;;  %v18109_v59 = vld [vmem:[#allocation58_spill] sm:$0xff] }
 0x25d   : > { %13934 = vmatprep.subr.bf16.mxu1 %v17097_v29  ;;  %v11534_v43 = vld [vmem:[%s14847_s10 + $0xb3] sm:$0xff] }
 0x25e   : > { %13038 = vmatmul.mubr.msk.f32.gmra.mrb[4].mxu1 %vm253_vm0, %v18092_v34  ;;  %v18110_v34 = vld [vmem:[#allocation59_spill] sm:$0xff] }
 0x25f   : > { %13710 = vmatmul.mubr.msk.f32.gmra.mrb[20].mxu0 %vm253_vm0, %v18093_v19  ;;  %13040 = vmatprep.mubr.msk.f32.mxu1 %vm253_vm0, %v18094_v61  ;;  %v11466_v19 = vld [vmem:[%s14847_s10 + $0xaa] sm:$0xff]  ;;  %v11467_v61 = vld [vmem:[%s14847_s10 + $0xb2] sm:$0xff] }
 0x260   : > { %13712 = vmatprep.mubr.msk.f32.mxu0 %vm253_vm0, %v18095_v52  ;;  %v11468_v52 = vld [vmem:[%s14847_s10 + $0xc2] sm:$0xff] }
 0x262   : > { %13041 = vmatmul.mubr.msk.f32.gmra.mrb[6].mxu1 %vm253_vm0, %v18096_v33  ;;  %v11470_v33 = vld [vmem:[%s14847_s10 + $0xda] sm:$0xff] }
 0x263   : > { %13713 = vmatmul.mubr.msk.f32.gmra.mrb[22].mxu0 %vm253_vm0, %v18097_v38  ;;  %13043 = vmatprep.mubr.msk.f32.mxu1 %vm253_vm0, %v18098_v40  ;;  %v10670_v38 = vld [vmem:[%s14847_s10 + $0xd8] sm:$0xff]  ;;  %v11490_v40 = vld [vmem:[%s14847_s10 + $0x1ca] sm:$0xff] }
 0x264   : > { %13715 = vmatprep.mubr.msk.f32.mxu0 %vm253_vm0, %v17116_v1 }
 0x266   : > { %13044 = vmatmul.mubr.msk.f32.gmra.mrb[8].mxu1 %vm253_vm0, %v18099_v39  ;;  %v10671_v39 = vld [vmem:[%s14847_s10 + $0xe0] sm:$0xff] }
 0x267   : > { %13716 = vmatmul.mubr.msk.f32.gmra.mrb[24].mxu0 %vm253_vm0, %v17127_v53  ;;  %13046 = vmatprep.mubr.msk.f32.mxu1 %vm253_vm0, %v18100_v30  ;;  %v11491_v30 = vld [vmem:[%s14847_s10 + $0x1d2] sm:$0xff] }
 0x268   : > { %13718 = vmatprep.mubr.msk.f32.mxu0 %vm253_vm0, %v17130_v23 }
 0x26a   : > { %13047 = vmatmul.mubr.msk.f32.gmra.mrb[10].mxu1 %vm253_vm0, %v18101_v48  ;;  %v11527_v48 = vld [vmem:[%s14847_s10 + $0x63] sm:$0xff] }
 0x26b   : > { %13719 = vmatmul.mubr.msk.f32.gmra.mrb[26].mxu0 %vm253_vm0, %v17141_v31  ;;  %13049 = vmatprep.mubr.msk.f32.mxu1 %vm253_vm0, %v18102_v55  ;;  %v10673_v55 = vld [vmem:[%s14847_s10 + $0xf8] sm:$0xff] }
 0x26c   : > { %13721 = vmatprep.mubr.msk.f32.mxu0 %vm253_vm0, %v11421_v16  ;;  %v10672_v16 = vld [vmem:[%s14847_s10 + $0xf0] sm:$0xff] }
 0x26e   : > { %13050 = vmatmul.mubr.msk.f32.gmra.mrb[12].mxu1 %vm253_vm0, %v18103_v12  ;;  %v11529_v12 = vld [vmem:[%s14847_s10 + $0x7b] sm:$0xff] }
 0x26f   : > { %13722 = vmatmul.mubr.msk.f32.gmra.mrb[28].mxu0 %vm253_vm0, %v11422_v6  ;;  %13052 = vmatprep.mubr.msk.f32.mxu1 %vm253_vm0, %v18104_v15  ;;  %v11528_v6 = vld [vmem:[%s14847_s10 + $0x6b] sm:$0xff] }
 0x270   : > { %13724 = vmatprep.mubr.msk.f32.mxu0 %vm253_vm0, %v11423_v10  ;;  %v10674_v10 = vld [vmem:[%s14847_s10 + $0x108] sm:$0xff]  ;;  %v11628_v15 = vld [vmem:[%s17751_s1 + $0x250] sm:$0xff] }
 0x272   : > { %13053 = vmatmul.mubr.msk.f32.gmra.mrb[14].mxu1 %vm253_vm0, %v18105_v3  ;;  %v10676_v3 = vld [vmem:[%s14847_s10 + $0x120] sm:$0xff] }
 0x273   : > { %13725 = vmatmul.mubr.msk.f32.gmra.mrb[30].mxu0 %vm253_vm0, %v11424_v25  ;;  %13055 = vmatprep.mubr.msk.f32.mxu1 %vm253_vm0, %v18106_v32  ;;  %v10675_v25 = vld [vmem:[%s14847_s10 + $0x110] sm:$0xff] }
 0x274   : > { %13733 = vmatprep.mubr.msk.f32.mxu0 %vm253_vm0, %v11460_v54  ;;  %v11530_v54 = vld [vmem:[%s14847_s10 + $0x83] sm:$0xff]  ;;  %v11531_v32 = vld [vmem:[%s14847_s10 + $0x93] sm:$0xff] }
 0x276   : > { %13056 = vmatmul.mubr.msk.f32.gmra.mrb[16].mxu1 %vm253_vm0, %v18107_v14  ;;  %v10678_v14 = vld [vmem:[%s14847_s10 + $0x138] sm:$0xff] }
 0x277   : > { %13734 = vmatmul.mubr.msk.f32.vlgmr.msra.gmra.mrb[0].mxu0 %vm253_vm0, %v11461_v27  ;;  %13058 = vmatprep.mubr.msk.f32.mxu1 %vm253_vm0, %v18108_v51  ;;  %v10677_v27 = vld [vmem:[%s14847_s10 + $0x128] sm:$0xff]  ;;  %v10680_v51 = vld [vmem:[%s14847_s10 + $0x150] sm:$0xff] }
 0x278   : > { %13984 = vmatpush3.bf16.msra.mxu0 %v17019_v35  ;;  %13736 = vmatprep.mubr.msk.f32.mxu0 %vm253_vm0, %v11462_v24  ;;  %v11465_v35 = vld [vmem:[%s14847_s10 + $0x9a] sm:$0xff] }
 0x279   : > { %13785 = vmatprep.subr.mxu0 %v11561_v36  ;;  %v11532_v24 = vld [vmem:[%s14847_s10 + $0x9b] sm:$0xff] }
 0x27a   : > { %13059 = vmatmul.mubr.msk.f32.gmra.mrb[18].mxu1 %vm253_vm0, %v18109_v59  ;;  %v10682_v59 = vld [vmem:[%s14847_s10 + $0x168] sm:$0xff] }
 0x27b   : > { %13737 = vmatmul.mubr.msk.f32.gmra.mrb[2].mxu0 %vm253_vm0, %v11463_v42  ;;  %13061 = vmatprep.mubr.msk.f32.mxu1 %vm253_vm0, %v18110_v34  ;;  %v11535_v42 = vld [vmem:[%s14847_s10 + $0xc3] sm:$0xff]  ;;  %v11537_v34 = vld [vmem:[%s14847_s10 + $0xdb] sm:$0xff] }
 0x27c   : > { %13739 = vmatprep.mubr.msk.f32.mxu0 %vm253_vm0, %v11464_v45  ;;  %13786 = vmatpush3.msra.mxu0 %v11561_v36  ;;  %v11533_v36 = vld [vmem:[%s14847_s10 + $0xab] sm:$0xff]  ;;  %v10681_v45 = vld [vmem:[%s14847_s10 + $0x158] sm:$0xff] }
 0x27d   : > { %13986 = vmatprep.subr.bf16.mxu0 %v17187_v47 }
 0x27e   : > { %13062 = vmatmul.mubr.msk.f32.gmra.mrb[20].mxu1 %vm253_vm0, %v16691_v60  ;;  %v11469_v60 = vld [vmem:[%s14847_s10 + $0xca] sm:$0xff] }
 0x27f   : > { %13740 = vmatmul.mubr.msk.f32.gmra.mrb[4].mxu0 %vm253_vm0, %v11465_v35  ;;  %13064 = vmatprep.mubr.msk.f32.mxu1 %vm253_vm0, %v16695_v50  ;;  %v10656_v50 = vld [vmem:[%s14847_s10 + $0x30] sm:$0xff] }
 0x280   : > { %13742 = vmatprep.mubr.msk.f32.mxu0 %vm253_vm0, %v11466_v19  ;;  %v10683_v35 = vld [vmem:[%s14847_s10 + $0x170] sm:$0xff]  ;;  %v11538_v19 = vld [vmem:[%s14847_s10 + $0xe3] sm:$0xff] }
 0x282   : > { %13065 = vmatmul.mubr.msk.f32.gmra.mrb[22].mxu1 %vm253_vm0, %v16715_v62  ;;  %v11471_v62 = vld [vmem:[%s14847_s10 + $0xe2] sm:$0xff] }
 0x283   : > { %13743 = vmatmul.mubr.msk.f32.gmra.mrb[6].mxu0 %vm253_vm0, %v11467_v61  ;;  %13067 = vmatprep.mubr.msk.f32.mxu1 %vm253_vm0, %v16718_v37  ;;  %v10657_v37 = vld [vmem:[%s14847_s10 + $0x38] sm:$0xff] }
 0x284   : > { %13745 = vmatprep.mubr.msk.f32.mxu0 %vm253_vm0, %v11468_v52  ;;  %v11539_v61 = vld [vmem:[%s14847_s10 + $0xf3] sm:$0xff]  ;;  %v11540_v52 = vld [vmem:[%s14847_s10 + $0xfb] sm:$0xff] }
 0x286   : > { %13068 = vmatmul.mubr.msk.f32.gmra.mrb[24].mxu1 %vm253_vm0, %v16730_v17  ;;  %v10658_v17 = vld [vmem:[%s14847_s10 + $0x48] sm:$0xff] }
 0x287   : > { %13746 = vmatmul.mubr.msk.f32.gmra.mrb[8].mxu0 %vm253_vm0, %v11469_v60  ;;  %13070 = vmatprep.mubr.msk.f32.mxu1 %vm253_vm0, %v16733_v8  ;;  %v10757_v8 = vld [vmem:[%s17751_s1 + $0x118] sm:$0xff]  ;;  %v11541_v60 = vld [vmem:[%s14847_s10 + $0x10b] sm:$0xff] }
 0x288   : > { %13748 = vmatprep.mubr.msk.f32.mxu0 %vm253_vm0, %v11470_v33  ;;  %v11542_v33 = vld [vmem:[%s14847_s10 + $0x113] sm:$0xff] }
 0x28a   : > { %13071 = vmatmul.mubr.msk.f32.gmra.mrb[26].mxu1 %vm253_vm0, %v16745_v44  ;;  %v10659_v44 = vld [vmem:[%s14847_s10 + $0x50] sm:$0xff] }
 0x28b   : > { %13749 = vmatmul.mubr.msk.f32.gmra.mrb[10].mxu0 %vm253_vm0, %v11471_v62  ;;  %13073 = vmatprep.mubr.msk.f32.mxu1 %vm253_vm0, %v16748_v5  ;;  %v10660_v5 = vld [vmem:[%s14847_s10 + $0x60] sm:$0xff] }
 0x28c   : > { %13751 = vmatprep.mubr.msk.f32.mxu0 %vm253_vm0, %v16800_v13  ;;  %v10663_v13 = vld [vmem:[%s14847_s10 + $0x80] sm:$0xff] }
 0x28d   : > { %v11543_v62 = vld [vmem:[%s14847_s10 + $0x123] sm:$0xff] }
 0x28e   : > { %13074 = vmatmul.mubr.msk.f32.gmra.mrb[28].mxu1 %vm253_vm0, %v16759_v0  ;;  %v10661_v0 = vld [vmem:[%s14847_s10 + $0x68] sm:$0xff] }
 0x28f   : > { %13752 = vmatmul.mubr.msk.f32.gmra.mrb[12].mxu0 %vm253_vm0, %v16818_v21  ;;  %13076 = vmatprep.mubr.msk.f32.mxu1 %vm253_vm0, %v16762_v2  ;;  %v10662_v2 = vld [vmem:[%s14847_s10 + $0x78] sm:$0xff]  ;;  %v10664_v21 = vld [vmem:[%s14847_s10 + $0x90] sm:$0xff] }
 0x290   : > { %13754 = vmatprep.mubr.msk.f32.mxu0 %vm253_vm0, %v16824_v11  ;;  %v17276_v11 = vld [vmem:[%s14847_s10 + $0x182] sm:$0xff] }
 0x292   : > { %13077 = vmatmul.mubr.msk.f32.gmra.mrb[30].mxu1 %vm253_vm0, %v16773_v18  ;;  %v18111_v18 = vld [vmem:[#allocation2_spill] sm:$0xff] }
 0x293   : > { %13755 = vmatmul.mubr.msk.f32.gmra.mrb[14].mxu0 %vm253_vm0, %v16835_v63  ;;  %13085 = vmatprep.mubr.msk.f32.mxu1 %vm253_vm0, %v10656_v50  ;;  %v10665_v63 = vld [vmem:[%s14847_s10 + $0x98] sm:$0xff]  ;;  %v10725_v50 = vld [vmem:[%s14847_s10 + $0x49] sm:$0xff] }
 0x294   : > { %13757 = vmatprep.mubr.msk.f32.mxu0 %vm253_vm0, %v16840_v4  ;;  %v17286_v4 = vld [vmem:[%s14847_s10 + $0x18a] sm:$0xff] }
 0x296   : > { %13086 = vmatmul.mubr.msk.f32.vlgmr.msra.gmra.mrb[0].mxu1 %vm253_vm0, %v10657_v37  ;;  %v11545_v37 = vld [vmem:[%s14847_s10 + $0x13b] sm:$0xff] }
 0x297   : > { %13758 = vmatmul.mubr.msk.f32.gmra.mrb[16].mxu0 %vm253_vm0, %v16850_v7  ;;  %13936 = vmatpush3.bf16.msra.mxu1 %v17097_v29  ;;  %v10666_v7 = vld [vmem:[%s14847_s10 + $0xa8] sm:$0xff]  ;;  %v11489_v29 = vld [vmem:[%s14847_s10 + $0x1ba] sm:$0xff] }
 0x298   : > { %13088 = vmatprep.mubr.msk.f32.mxu1 %vm253_vm0, %v10658_v17  ;;  %13760 = vmatprep.mubr.msk.f32.mxu0 %vm253_vm0, %v16855_v9  ;;  %v17290_v9 = vld [vmem:[%s14847_s10 + $0x19a] sm:$0xff]  ;;  %v11546_v17 = vld [vmem:[%s14847_s10 + $0x143] sm:$0xff] }
 0x299   : > { %13137 = vmatprep.subr.mxu1 %v10757_v8 }
 0x29a   : > { %13089 = vmatmul.mubr.msk.f32.gmra.mrb[2].mxu1 %vm253_vm0, %v10659_v44  ;;  %v11547_v44 = vld [vmem:[%s14847_s10 + $0x153] sm:$0xff] }
 0x29b   : > { %13761 = vmatmul.mubr.msk.f32.gmra.mrb[18].mxu0 %vm253_vm0, %v16864_v58  ;;  %13091 = vmatprep.mubr.msk.f32.mxu1 %vm253_vm0, %v10660_v5  ;;  %v10667_v58 = vld [vmem:[%s14847_s10 + $0xb0] sm:$0xff] }
 0x29c   : > { %13763 = vmatprep.mubr.msk.f32.mxu0 %vm253_vm0, %v16869_v49  ;;  %13138 = vmatpush3.msra.mxu1 %v10757_v8  ;;  %v17300_v49 = vld [vmem:[%s14847_s10 + $0x1a2] sm:$0xff]  ;;  %v14770_v5 = vld [vmem:[%s17751_s1 + $0x130] sm:$0xff] }
 0x29d   : > { %13989 = vmatprep.subr.bf16.mxu1 %v18111_v18  ;;  %v10727_v8 = vld [vmem:[%s14847_s10 + $0x61] sm:$0xff] }
 0x29e   : > { %13092 = vmatmul.mubr.msk.f32.gmra.mrb[4].mxu1 %vm253_vm0, %v10661_v0  ;;  %v10728_v0 = vld [vmem:[%s14847_s10 + $0x69] sm:$0xff] }
 0x29f   : > { %13764 = vmatmul.mubr.msk.f32.gmra.mrb[20].mxu0 %vm253_vm0, %v16878_v56  ;;  %13094 = vmatprep.mubr.msk.f32.mxu1 %vm253_vm0, %v10662_v2  ;;  %v10668_v56 = vld [vmem:[%s14847_s10 + $0xc0] sm:$0xff] }
 0x2a0   : > { %13766 = vmatprep.mubr.msk.f32.mxu0 %vm253_vm0, %v16883_v22  ;;  %v11488_v22 = vld [vmem:[%s14847_s10 + $0x1b2] sm:$0xff]  ;;  %v11548_v2 = vld [vmem:[%s14847_s10 + $0x15b] sm:$0xff] }
 0x2a2   : > { %13095 = vmatmul.mubr.msk.f32.gmra.mrb[6].mxu1 %vm253_vm0, %v10663_v13  ;;  %v11549_v13 = vld [vmem:[%s14847_s10 + $0x16b] sm:$0xff] }
 0x2a3   : > { %13767 = vmatmul.mubr.msk.f32.gmra.mrb[22].mxu0 %vm253_vm0, %v16892_v26  ;;  %13097 = vmatprep.mubr.msk.f32.mxu1 %vm253_vm0, %v10664_v21  ;;  %v10669_v26 = vld [vmem:[%s14847_s10 + $0xc8] sm:$0xff] }
 0x2a4   : > { %13769 = vmatprep.mubr.msk.f32.mxu0 %vm253_vm0, %v17276_v11  ;;  %v10730_v21 = vld [vmem:[%s14847_s10 + $0x81] sm:$0xff] }
 0x2a6   : > { %13098 = vmatmul.mubr.msk.f32.gmra.mrb[8].mxu1 %vm253_vm0, %v10665_v63  ;;  %v11550_v63 = vld [vmem:[%s14847_s10 + $0x173] sm:$0xff] }
 0x2a7   : > { %13770 = vmatmul.mubr.msk.f32.gmra.mrb[24].mxu0 %vm253_vm0, %v17286_v4  ;;  %13100 = vmatprep.mubr.msk.f32.mxu1 %vm253_vm0, %v10666_v7  ;;  %v10731_v7 = vld [vmem:[%s14847_s10 + $0x91] sm:$0xff] }
 0x2a8   : > { %13772 = vmatprep.mubr.msk.f32.mxu0 %vm253_vm0, %v17290_v9 }
 0x2aa   : > { %13101 = vmatmul.mubr.msk.f32.gmra.mrb[10].mxu1 %vm253_vm0, %v10667_v58  ;;  %v11551_v58 = vld [vmem:[%s14847_s10 + $0x183] sm:$0xff] }
 0x2ab   : > { %13773 = vmatmul.mubr.msk.f32.gmra.mrb[26].mxu0 %vm253_vm0, %v17300_v49  ;;  %13103 = vmatprep.mubr.msk.f32.mxu1 %vm253_vm0, %v10668_v56  ;;  %v10732_v56 = vld [vmem:[%s14847_s10 + $0x99] sm:$0xff] }
 0x2ac   : > { %13775 = vmatprep.mubr.msk.f32.mxu0 %vm253_vm0, %v11488_v22  ;;  %v11552_v22 = vld [vmem:[%s14847_s10 + $0x18b] sm:$0xff] }
 0x2ae   : > { %13104 = vmatmul.mubr.msk.f32.gmra.mrb[12].mxu1 %vm253_vm0, %v10669_v26  ;;  %v10733_v26 = vld [vmem:[%s14847_s10 + $0xa9] sm:$0xff] }
 0x2af   : > { %13776 = vmatmul.mubr.msk.f32.gmra.mrb[28].mxu0 %vm253_vm0, %v11489_v29  ;;  %13106 = vmatprep.mubr.msk.f32.mxu1 %vm253_vm0, %v10670_v38  ;;  %v11553_v29 = vld [vmem:[%s14847_s10 + $0x19b] sm:$0xff]  ;;  %v10734_v38 = vld [vmem:[%s14847_s10 + $0xb1] sm:$0xff] }
 0x2b0   : > { %13778 = vmatprep.mubr.msk.f32.mxu0 %vm253_vm0, %v11490_v40  ;;  %v11554_v40 = vld [vmem:[%s14847_s10 + $0x1a3] sm:$0xff] }
 0x2b2   : > { %13107 = vmatmul.mubr.msk.f32.gmra.mrb[14].mxu1 %vm253_vm0, %v10671_v39  ;;  %v10735_v39 = vld [vmem:[%s14847_s10 + $0xc1] sm:$0xff] }
 0x2b3   : > { %13779 = vmatmul.mubr.msk.f32.gmra.mrb[30].mxu0 %vm253_vm0, %v11491_v30  ;;  %13109 = vmatprep.mubr.msk.f32.mxu1 %vm253_vm0, %v10672_v16  ;;  %v11555_v30 = vld [vmem:[%s14847_s10 + $0x1b3] sm:$0xff]  ;;  %v10736_v16 = vld [vmem:[%s14847_s10 + $0xc9] sm:$0xff] }
 0x2b4   : > { %13787 = vmatprep.mubr.msk.f32.mxu0 %vm253_vm0, %v11527_v48  ;;  %v11556_v48 = vld [vmem:[%s14847_s10 + $0x1bb] sm:$0xff] }
 0x2b6   : > { %13110 = vmatmul.mubr.msk.f32.gmra.mrb[16].mxu1 %vm253_vm0, %v10673_v55  ;;  %v10737_v55 = vld [vmem:[%s14847_s10 + $0xd9] sm:$0xff] }
 0x2b7   : > { %13788 = vmatmul.mubr.msk.f32.vlgmr.msra.gmra.mrb[0].mxu0 %vm253_vm0, %v11528_v6  ;;  %13112 = vmatprep.mubr.msk.f32.mxu1 %vm253_vm0, %v10674_v10  ;;  %v11557_v6 = vld [vmem:[%s14847_s10 + $0x1cb] sm:$0xff]  ;;  %v10738_v10 = vld [vmem:[%s14847_s10 + $0xe1] sm:$0xff] }
 0x2b8   : > { %13988 = vmatpush3.bf16.msra.mxu0 %v17187_v47  ;;  %13790 = vmatprep.mubr.msk.f32.mxu0 %vm253_vm0, %v11529_v12  ;;  %v11536_v47 = vld [vmem:[%s14847_s10 + $0xcb] sm:$0xff]  ;;  %v11558_v12 = vld [vmem:[%s14847_s10 + $0x1d3] sm:$0xff] }
 0x2b9   : > { %13839 = vmatprep.subr.mxu0 %v11628_v15 }
 0x2ba   : > { %13113 = vmatmul.mubr.msk.f32.gmra.mrb[18].mxu1 %vm253_vm0, %v10675_v25  ;;  %v11594_v25 = vld [vmem:[%s14847_s10 + $0x64] sm:$0xff] }
 0x2bb   : > { %13791 = vmatmul.mubr.msk.f32.gmra.mrb[2].mxu0 %vm253_vm0, %v11530_v54  ;;  %13115 = vmatprep.mubr.msk.f32.mxu1 %vm253_vm0, %v10676_v3  ;;  %v10740_v54 = vld [vmem:[%s14847_s10 + $0xf9] sm:$0xff]  ;;  %v11595_v3 = vld [vmem:[%s14847_s10 + $0x6c] sm:$0xff] }
 0x2bc   : > { %13793 = vmatprep.mubr.msk.f32.mxu0 %vm253_vm0, %v11531_v32  ;;  %13840 = vmatpush3.msra.mxu0 %v11628_v15  ;;  %v10739_v15 = vld [vmem:[%s14847_s10 + $0xf1] sm:$0xff]  ;;  %v10741_v32 = vld [vmem:[%s14847_s10 + $0x109] sm:$0xff] }
 0x2be   : > { %13116 = vmatmul.mubr.msk.f32.gmra.mrb[20].mxu1 %vm253_vm0, %v10677_v27  ;;  %v11596_v27 = vld [vmem:[%s14847_s10 + $0x7c] sm:$0xff] }
 0x2bf   : > { %13794 = vmatmul.mubr.msk.f32.gmra.mrb[4].mxu0 %vm253_vm0, %v11532_v24  ;;  %13118 = vmatprep.mubr.msk.f32.mxu1 %vm253_vm0, %v10678_v14  ;;  %v10742_v24 = vld [vmem:[%s14847_s10 + $0x111] sm:$0xff]  ;;  %v11597_v14 = vld [vmem:[%s14847_s10 + $0x84] sm:$0xff] }
 0x2c0   : > { %13796 = vmatprep.mubr.msk.f32.mxu0 %vm253_vm0, %v11533_v36  ;;  %v10743_v36 = vld [vmem:[%s14847_s10 + $0x121] sm:$0xff] }
 0x2c2   : > { %13119 = vmatmul.mubr.msk.f32.gmra.mrb[22].mxu1 %vm253_vm0, %v10679_v20  ;;  %v11598_v20 = vld [vmem:[%s14847_s10 + $0x94] sm:$0xff] }
 0x2c3   : > { %13797 = vmatmul.mubr.msk.f32.gmra.mrb[6].mxu0 %vm253_vm0, %v11534_v43  ;;  %13121 = vmatprep.mubr.msk.f32.mxu1 %vm253_vm0, %v10680_v51  ;;  %v10744_v43 = vld [vmem:[%s14847_s10 + $0x129] sm:$0xff]  ;;  %v11599_v51 = vld [vmem:[%s14847_s10 + $0x9c] sm:$0xff] }
 0x2c4   : > { %13799 = vmatprep.mubr.msk.f32.mxu0 %vm253_vm0, %v11535_v42  ;;  %v10745_v42 = vld [vmem:[%s14847_s10 + $0x139] sm:$0xff] }
 0x2c6   : > { %13122 = vmatmul.mubr.msk.f32.gmra.mrb[24].mxu1 %vm253_vm0, %v10681_v45  ;;  %v11600_v45 = vld [vmem:[%s14847_s10 + $0xac] sm:$0xff] }
 0x2c7   : > { %13800 = vmatmul.mubr.msk.f32.gmra.mrb[8].mxu0 %vm253_vm0, %v11536_v47  ;;  %13124 = vmatprep.mubr.msk.f32.mxu1 %vm253_vm0, %v10682_v59  ;;  %v10746_v47 = vld [vmem:[%s14847_s10 + $0x141] sm:$0xff]  ;;  %v11601_v59 = vld [vmem:[%s14847_s10 + $0xb4] sm:$0xff] }
 0x2c8   : > { %13802 = vmatprep.mubr.msk.f32.mxu0 %vm253_vm0, %v11537_v34  ;;  %v10747_v34 = vld [vmem:[%s14847_s10 + $0x151] sm:$0xff] }
 0x2ca   : > { %13125 = vmatmul.mubr.msk.f32.gmra.mrb[26].mxu1 %vm253_vm0, %v10683_v35  ;;  %v11602_v35 = vld [vmem:[%s14847_s10 + $0xc4] sm:$0xff] }
 0x2cb   : > { %13803 = vmatmul.mubr.msk.f32.gmra.mrb[10].mxu0 %vm253_vm0, %v11538_v19  ;;  %13127 = vmatprep.mubr.msk.f32.mxu1 %vm253_vm0, %v16950_v41  ;;  %v10723_v41 = vld [vmem:[%s14847_s10 + $0x31] sm:$0xff]  ;;  %v10748_v19 = vld [vmem:[%s14847_s10 + $0x159] sm:$0xff] }
 0x2cc   : > { %13805 = vmatprep.mubr.msk.f32.mxu0 %vm253_vm0, %v11539_v61  ;;  %v11603_v61 = vld [vmem:[%s14847_s10 + $0xcc] sm:$0xff] }
 0x2ce   : > { %13128 = vmatmul.mubr.msk.f32.gmra.mrb[28].mxu1 %vm253_vm0, %v16961_v28  ;;  %v10724_v28 = vld [vmem:[%s14847_s10 + $0x39] sm:$0xff] }
 0x2cf   : > { %13806 = vmatmul.mubr.msk.f32.gmra.mrb[12].mxu0 %vm253_vm0, %v11540_v52  ;;  %13130 = vmatprep.mubr.msk.f32.mxu1 %vm253_vm0, %v16964_v46  ;;  %v11544_v46 = vld [vmem:[%s14847_s10 + $0x12b] sm:$0xff] }
 0x2d0   : > { %13808 = vmatprep.mubr.msk.f32.mxu0 %vm253_vm0, %v11541_v60  ;;  %v10749_v52 = vld [vmem:[%s14847_s10 + $0x169] sm:$0xff]  ;;  %v11604_v60 = vld [vmem:[%s14847_s10 + $0xdc] sm:$0xff] }
 0x2d2   : > { %13131 = vmatmul.mubr.msk.f32.gmra.mrb[30].mxu1 %vm253_vm0, %v16975_v57  ;;  %v10726_v57 = vld [vmem:[%s14847_s10 + $0x51] sm:$0xff] }
 0x2d3   : > { %13809 = vmatmul.mubr.msk.f32.gmra.mrb[14].mxu0 %vm253_vm0, %v11542_v33  ;;  %13139 = vmatprep.mubr.msk.f32.mxu1 %vm253_vm0, %v10723_v41  ;;  %v10750_v33 = vld [vmem:[%s14847_s10 + $0x171] sm:$0xff]  ;;  %v11605_v41 = vld [vmem:[%s14847_s10 + $0xe4] sm:$0xff] }
 0x2d4   : > { %13811 = vmatprep.mubr.msk.f32.mxu0 %vm253_vm0, %v11543_v62  ;;  %v11606_v62 = vld [vmem:[%s14847_s10 + $0xf4] sm:$0xff] }
 0x2d6   : > { %13140 = vmatmul.mubr.msk.f32.vlgmr.msra.gmra.mrb[0].mxu1 %vm253_vm0, %v10724_v28  ;;  %v11607_v28 = vld [vmem:[%s14847_s10 + $0xfc] sm:$0xff] }
 0x2d7   : > { %13812 = vmatmul.mubr.msk.f32.gmra.mrb[16].mxu0 %vm253_vm0, %v11544_v46  ;;  %13991 = vmatpush3.bf16.msra.mxu1 %v18111_v18  ;;  %v10729_v18 = vld [vmem:[%s14847_s10 + $0x79] sm:$0xff]  ;;  %v11608_v46 = vld [vmem:[%s14847_s10 + $0x10c] sm:$0xff] }
 0x2d8   : > { %13142 = vmatprep.mubr.msk.f32.mxu1 %vm253_vm0, %v10725_v50  ;;  %13814 = vmatprep.mubr.msk.f32.mxu0 %vm253_vm0, %v11545_v37  ;;  %v11609_v50 = vld [vmem:[%s14847_s10 + $0x114] sm:$0xff]  ;;  %v11610_v37 = vld [vmem:[%s14847_s10 + $0x124] sm:$0xff] }
 0x2d9   : > { %13990 = vmatprep.subr.mxu1 %v14770_v5 }
 0x2da   : > { %13143 = vmatmul.mubr.msk.f32.gmra.mrb[2].mxu1 %vm253_vm0, %v10726_v57  ;;  %v10808_v57 = vld [vmem:[%s14847_s10 + $0x10a] sm:$0xff] }
 0x2db   : > { %13815 = vmatmul.mubr.msk.f32.gmra.mrb[18].mxu0 %vm253_vm0, %v11546_v17  ;;  %13145 = vmatprep.mubr.msk.f32.mxu1 %vm253_vm0, %v10727_v8  ;;  %v11612_v17 = vld [vmem:[%s14847_s10 + $0x13c] sm:$0xff]  ;;  %v11613_v8 = vld [vmem:[%s14847_s10 + $0x144] sm:$0xff] }
 0x2dc   : > { %13817 = vmatprep.mubr.msk.f32.mxu0 %vm253_vm0, %v11547_v44  ;;  %13992 = vmatpush3.msra.mxu1 %v14770_v5  ;;  %v10810_v44 = vld [vmem:[%s14847_s10 + $0x122] sm:$0xff]  ;;  %v11614_v5 = vld [vmem:[%s14847_s10 + $0x154] sm:$0xff] }
 0x2de   : > { %13146 = vmatmul.mubr.msk.f32.gmra.mrb[4].mxu1 %vm253_vm0, %v10728_v0  ;;  %v10811_v0 = vld [vmem:[%s14847_s10 + $0x12a] sm:$0xff] }
 0x2df   : > { %13818 = vmatmul.mubr.msk.f32.gmra.mrb[20].mxu0 %vm253_vm0, %v11548_v2  ;;  %13148 = vmatprep.mubr.msk.f32.mxu1 %vm253_vm0, %v10729_v18  ;;  %v11615_v2 = vld [vmem:[%s14847_s10 + $0x15c] sm:$0xff] }
 0x2e0   : > { %13820 = vmatprep.mubr.msk.f32.mxu0 %vm253_vm0, %v11549_v13  ;;  %v10812_v18 = vld [vmem:[%s14847_s10 + $0x13a] sm:$0xff]  ;;  %v11616_v13 = vld [vmem:[%s14847_s10 + $0x16c] sm:$0xff] }
 0x2e2   : > { %13149 = vmatmul.mubr.msk.f32.gmra.mrb[6].mxu1 %vm253_vm0, %v10730_v21  ;;  %v10813_v21 = vld [vmem:[%s14847_s10 + $0x142] sm:$0xff] }
 0x2e3   : > { %13821 = vmatmul.mubr.msk.f32.gmra.mrb[22].mxu0 %vm253_vm0, %v11550_v63  ;;  %13151 = vmatprep.mubr.msk.f32.mxu1 %vm253_vm0, %v10731_v7  ;;  %v11617_v63 = vld [vmem:[%s14847_s10 + $0x174] sm:$0xff] }
 0x2e4   : > { %13823 = vmatprep.mubr.msk.f32.mxu0 %vm253_vm0, %v11551_v58  ;;  %v10814_v7 = vld [vmem:[%s14847_s10 + $0x152] sm:$0xff]  ;;  %v11618_v58 = vld [vmem:[%s14847_s10 + $0x184] sm:$0xff] }
 0x2e6   : > { %13152 = vmatmul.mubr.msk.f32.gmra.mrb[8].mxu1 %vm253_vm0, %v10732_v56  ;;  %v10815_v56 = vld [vmem:[%s14847_s10 + $0x15a] sm:$0xff] }
 0x2e7   : > { %13824 = vmatmul.mubr.msk.f32.gmra.mrb[24].mxu0 %vm253_vm0, %v11552_v22  ;;  %13154 = vmatprep.mubr.msk.f32.mxu1 %vm253_vm0, %v10733_v26  ;;  %v11619_v22 = vld [vmem:[%s14847_s10 + $0x18c] sm:$0xff] }
 0x2e8   : > { %13826 = vmatprep.mubr.msk.f32.mxu0 %vm253_vm0, %v11553_v29  ;;  %v10816_v26 = vld [vmem:[%s14847_s10 + $0x16a] sm:$0xff]  ;;  %v11620_v29 = vld [vmem:[%s14847_s10 + $0x19c] sm:$0xff] }
 0x2ea   : > { %13155 = vmatmul.mubr.msk.f32.gmra.mrb[10].mxu1 %vm253_vm0, %v10734_v38  ;;  %v10817_v38 = vld [vmem:[%s14847_s10 + $0x172] sm:$0xff] }
 0x2eb   : > { %13827 = vmatmul.mubr.msk.f32.gmra.mrb[26].mxu0 %vm253_vm0, %v11554_v40  ;;  %13157 = vmatprep.mubr.msk.f32.mxu1 %vm253_vm0, %v10735_v39  ;;  %v11621_v40 = vld [vmem:[%s14847_s10 + $0x1a4] sm:$0xff]  ;;  %v11622_v39 = vld [vmem:[%s14847_s10 + $0x1b4] sm:$0xff] }
 0x2ec   : > { %13829 = vmatprep.mubr.msk.f32.mxu0 %vm253_vm0, %v11555_v30  ;;  %v11623_v30 = vld [vmem:[%s14847_s10 + $0x1bc] sm:$0xff] }
 0x2ee   : > { %13158 = vmatmul.mubr.msk.f32.gmra.mrb[12].mxu1 %vm253_vm0, %v10736_v16  ;;  %v11624_v16 = vld [vmem:[%s14847_s10 + $0x1cc] sm:$0xff] }
 0x2ef   : > { %13830 = vmatmul.mubr.msk.f32.gmra.mrb[28].mxu0 %vm253_vm0, %v11556_v48  ;;  %13160 = vmatprep.mubr.msk.f32.mxu1 %vm253_vm0, %v10737_v55  ;;  %v11625_v48 = vld [vmem:[%s14847_s10 + $0x1d4] sm:$0xff] }
 0x2f0   : > { %13832 = vmatprep.mubr.msk.f32.mxu0 %vm253_vm0, %v11557_v6 }
 0x2f2   : > { %13161 = vmatmul.mubr.msk.f32.gmra.mrb[14].mxu1 %vm253_vm0, %v10738_v10 }
 0x2f3   : > { %13833 = vmatmul.mubr.msk.f32.gmra.mrb[30].mxu0 %vm253_vm0, %v11558_v12  ;;  %13163 = vmatprep.mubr.msk.f32.mxu1 %vm253_vm0, %v10739_v15 }
 0x2f4   : > { %13841 = vmatprep.mubr.msk.f32.mxu0 %vm253_vm0, %v11594_v25 }
 0x2f6   : > { %13164 = vmatmul.mubr.msk.f32.gmra.mrb[16].mxu1 %vm253_vm0, %v10740_v54 }
 0x2f7   : > { %13842 = vmatmul.mubr.msk.f32.vlgmr.msra.gmra.mrb[0].mxu0 %vm253_vm0, %v11595_v3  ;;  %13166 = vmatprep.mubr.msk.f32.mxu1 %vm253_vm0, %v10741_v32 }
 0x2f8   : > { %13844 = vmatprep.mubr.msk.f32.mxu0 %vm253_vm0, %v11596_v27 }
 0x2fa   : > { %13167 = vmatmul.mubr.msk.f32.gmra.mrb[18].mxu1 %vm253_vm0, %v10742_v24 }
 0x2fb   : > { %13845 = vmatmul.mubr.msk.f32.gmra.mrb[2].mxu0 %vm253_vm0, %v11597_v14  ;;  %13169 = vmatprep.mubr.msk.f32.mxu1 %vm253_vm0, %v10743_v36 }
 0x2fc   : > { %13847 = vmatprep.mubr.msk.f32.mxu0 %vm253_vm0, %v11598_v20 }
 0x2fe   : > { %13170 = vmatmul.mubr.msk.f32.gmra.mrb[20].mxu1 %vm253_vm0, %v10744_v43 }
 0x2ff   : > { %13848 = vmatmul.mubr.msk.f32.gmra.mrb[4].mxu0 %vm253_vm0, %v11599_v51  ;;  %13172 = vmatprep.mubr.msk.f32.mxu1 %vm253_vm0, %v10745_v42 }
 0x300   : > { %13850 = vmatprep.mubr.msk.f32.mxu0 %vm253_vm0, %v11600_v45 }
 0x302   : > { %13173 = vmatmul.mubr.msk.f32.gmra.mrb[22].mxu1 %vm253_vm0, %v10746_v47 }
 0x303   : > { %13851 = vmatmul.mubr.msk.f32.gmra.mrb[6].mxu0 %vm253_vm0, %v11601_v59  ;;  %13175 = vmatprep.mubr.msk.f32.mxu1 %vm253_vm0, %v10747_v34 }
 0x304   : > { %13853 = vmatprep.mubr.msk.f32.mxu0 %vm253_vm0, %v11602_v35 }
 0x306   : > { %13176 = vmatmul.mubr.msk.f32.gmra.mrb[24].mxu1 %vm253_vm0, %v10748_v19 }
 0x307   : > { %13854 = vmatmul.mubr.msk.f32.gmra.mrb[8].mxu0 %vm253_vm0, %v11603_v61  ;;  %13178 = vmatprep.mubr.msk.f32.mxu1 %vm253_vm0, %v10749_v52 }
 0x308   : > { %13856 = vmatprep.mubr.msk.f32.mxu0 %vm253_vm0, %v11604_v60 }
 0x30a   : > { %13179 = vmatmul.mubr.msk.f32.gmra.mrb[26].mxu1 %vm253_vm0, %v10750_v33 }
 0x30b   : > { %13857 = vmatmul.mubr.msk.f32.gmra.mrb[10].mxu0 %vm253_vm0, %v11605_v41  ;;  %13181 = vmatprep.mubr.msk.f32.mxu1 %vm253_vm0, %v17116_v1  ;;  %v10806_v1 = vld [vmem:[%s14847_s10 + $0xf2] sm:$0xff] }
 0x30c   : > { %13859 = vmatprep.mubr.msk.f32.mxu0 %vm253_vm0, %v11606_v62 }
 0x30e   : > { %13182 = vmatmul.mubr.msk.f32.gmra.mrb[28].mxu1 %vm253_vm0, %v17127_v53  ;;  %v10807_v53 = vld [vmem:[%s14847_s10 + $0xfa] sm:$0xff] }
 0x30f   : > { %13860 = vmatmul.mubr.msk.f32.gmra.mrb[12].mxu0 %vm253_vm0, %v11607_v28  ;;  %13184 = vmatprep.mubr.msk.f32.mxu1 %vm253_vm0, %v17130_v23  ;;  %v11611_v23 = vld [vmem:[%s14847_s10 + $0x12c] sm:$0xff] }
 0x310   : > { %13862 = vmatprep.mubr.msk.f32.mxu0 %vm253_vm0, %v11608_v46 }
 0x312   : > { %13185 = vmatmul.mubr.msk.f32.gmra.mrb[30].mxu1 %vm253_vm0, %v17141_v31  ;;  %v10809_v31 = vld [vmem:[%s14847_s10 + $0x112] sm:$0xff]  ;;  %s11663_s10 = sshll.u32 %s18113_s13, 8 }
 0x313   : > { %13863 = vmatmul.mubr.msk.f32.gmra.mrb[14].mxu0 %vm253_vm0, %v11609_v50  ;;  %13217 = vmatprep.mubr.msk.f32.mxu1 %vm253_vm0, %v10806_v1  ;;  %s17605_s27 = scalar_lea.vmem %s17752_s2, %s11663_s10 }
 0x314   : > { %13865 = vmatprep.mubr.msk.f32.mxu0 %vm253_vm0, %v11610_v37 }
 0x316   : > { %13218 = vmatmul.mubr.msk.f32.vlgmr.msra.gmra.mrb[16].mxu1 %vm253_vm0, %v10807_v53 }
 0x317   : > { %13866 = vmatmul.mubr.msk.f32.gmra.mrb[16].mxu0 %vm253_vm0, %v11611_v23  ;;  %13220 = vmatprep.mubr.msk.f32.mxu1 %vm253_vm0, %v10808_v57 }
 0x318   : > { %13868 = vmatprep.mubr.msk.f32.mxu0 %vm253_vm0, %v11612_v17 }
 0x31a   : > { %13221 = vmatmul.mubr.msk.f32.gmra.mrb[18].mxu1 %vm253_vm0, %v10809_v31 }
 0x31b   : > { %13869 = vmatmul.mubr.msk.f32.gmra.mrb[18].mxu0 %vm253_vm0, %v11613_v8  ;;  %13223 = vmatprep.mubr.msk.f32.mxu1 %vm253_vm0, %v10810_v44 }
 0x31c   : > { %13871 = vmatprep.mubr.msk.f32.mxu0 %vm253_vm0, %v11614_v5 }
 0x31e   : > { %13224 = vmatmul.mubr.msk.f32.gmra.mrb[20].mxu1 %vm253_vm0, %v10811_v0 }
 0x31f   : > { %13872 = vmatmul.mubr.msk.f32.gmra.mrb[20].mxu0 %vm253_vm0, %v11615_v2  ;;  %13226 = vmatprep.mubr.msk.f32.mxu1 %vm253_vm0, %v10812_v18 }
 0x320   : > { %13874 = vmatprep.mubr.msk.f32.mxu0 %vm253_vm0, %v11616_v13 }
 0x322   : > { %13227 = vmatmul.mubr.msk.f32.gmra.mrb[22].mxu1 %vm253_vm0, %v10813_v21 }
 0x323   : > { %13875 = vmatmul.mubr.msk.f32.gmra.mrb[22].mxu0 %vm253_vm0, %v11617_v63  ;;  %13229 = vmatprep.mubr.msk.f32.mxu1 %vm253_vm0, %v10814_v7 }
 0x324   : > { %13877 = vmatprep.mubr.msk.f32.mxu0 %vm253_vm0, %v11618_v58 }
 0x326   : > { %13230 = vmatmul.mubr.msk.f32.gmra.mrb[24].mxu1 %vm253_vm0, %v10815_v56 }
 0x327   : > { %13878 = vmatmul.mubr.msk.f32.gmra.mrb[24].mxu0 %vm253_vm0, %v11619_v22  ;;  %13232 = vmatprep.mubr.msk.f32.mxu1 %vm253_vm0, %v10816_v26 }
 0x328   : > { %13880 = vmatprep.mubr.msk.f32.mxu0 %vm253_vm0, %v11620_v29 }
 0x32a   : > { %13233 = vmatmul.mubr.msk.f32.gmra.mrb[26].mxu1 %vm253_vm0, %v10817_v38 }
 0x32b   : > { %13881 = vmatmul.mubr.msk.f32.gmra.mrb[26].mxu0 %vm253_vm0, %v11621_v40  ;;  %13235 = vmatprep.mubr.msk.f32.mxu1 %vm253_vm0, %v17276_v11 }
 0x32c   : > { %13883 = vmatprep.mubr.msk.f32.mxu0 %vm253_vm0, %v11622_v39 }
 0x32e   : > { %13236 = vmatmul.mubr.msk.f32.gmra.mrb[28].mxu1 %vm253_vm0, %v17286_v4 }
 0x32f   : > { %13884 = vmatmul.mubr.msk.f32.gmra.mrb[28].mxu0 %vm253_vm0, %v11623_v30  ;;  %13238 = vmatprep.mubr.msk.f32.mxu1 %vm253_vm0, %v17290_v9 }
 0x330   : > { %13886 = vmatprep.mubr.msk.f32.mxu0 %vm253_vm0, %v11624_v16 }
 0x332   : > { %13239 = vmatmul.mubr.msk.f32.gmra.mrb[30].mxu1 %vm253_vm0, %v17300_v49 }
 0x333   : > { %13887 = vmatmul.mubr.msk.f32.gmra.mrb[30].mxu0 %vm253_vm0, %v11625_v48 }
 0x3a9   : > { %v13141_v11 = vpop.f32.mrb[0].mxu1 }
 0x3aa   : > { %v4597_v55 = vpop.f32.mrb[1].mxu1 }
 0x3ad   : > { %v13144_v6 = vpop.f32.mrb[2].mxu1 }
 0x3ae   : > { %v4607_v10 = vpop.f32.mrb[3].mxu1 }
 0x3b1   : > { %v13147_v12 = vpop.f32.mrb[4].mxu1 }
 0x3b2   : > { %v4617_v4 = vpop.f32.mrb[5].mxu1 }
 0x3b5   : > { %v13150_v15 = vpop.f32.mrb[6].mxu1 }
 0x3b6   : > { %v4627_v25 = vpop.f32.mrb[7].mxu1 }
 0x3b9   : > { %v17585_v54 = vpop.f32.mrb[8].mxu1 }
 0x3ba   : > { %v17587_v9 = vpop.f32.mrb[9].mxu1 }
 0x3bd   : > { %v17589_v3 = vpop.f32.mrb[10].mxu1 }
 0x3be   : > { %v17591_v32 = vpop.f32.mrb[11].mxu1 }
 0x3c1   : > { %v17593_v49 = vpop.f32.mrb[12].mxu1 }
 0x3c2   : > { %v17595_v27 = vpop.f32.mrb[13].mxu1 }
 0x3c5   : > { %v17597_v24 = vpop.f32.mrb[14].mxu1 }
 0x3c6   : > { %v17599_v14 = vpop.f32.mrb[15].mxu1 }
 0x3ca   : > { %v13843_v36 = vpop.f32.mrb[0].mxu0 }
 0x3cb   : > { %v13993_v20 = vadd.f32 %v13843_v36, %v13141_v11  ;;  %v9656_v43 = vpop.f32.mrb[1].mxu0 }
 0x3cc   : > { %v13994_v51 = vadd.f32 %v9656_v43, %v4597_v55 }
 0x3cd   : > { %9849 = vst.msk [vmem:[%s17605_s27 + $0x8] sm:$0xff] %vm9847_vm1, %v13993_v20  ;;  %v9881_v42 = vsel %vm9847_vm1, %v13993_v20, 0.0  ;;  %v9950_v45 = vmul.f32 %v13993_v20, %v13993_v20 }
 0x3ce   : > { %9848 = vst.msk [vmem:[%s17605_s27] sm:$0xff] %vm9847_vm1, %v13994_v51  ;;  %v9880_v47 = vsel %vm9847_vm1, %v13994_v51, 0.0  ;;  %v9949_v59 = vmul.f32 %v13994_v51, %v13994_v51  ;;  %v13846_v34 = vpop.f32.mrb[2].mxu0 }
 0x3cf   : > { %v9982_v35 = vsel %vm9847_vm1, %v9950_v45, 0.0  ;;  %v9882_v19 = vadd.f32 %v9881_v42, %v9880_v47  ;;  %v13995_v61 = vadd.f32 %v13846_v34, %v13144_v6  ;;  %v9666_v52 = vpop.f32.mrb[3].mxu0 }
 0x3d0   : > { %v9981_v60 = vsel %vm9847_vm1, %v9949_v59, 0.0  ;;  %v13996_v33 = vadd.f32 %v9666_v52, %v4607_v10 }
 0x3d1   : > { %v9983_v41 = vadd.f32 %v9982_v35, %v9981_v60  ;;  %9851 = vst.msk [vmem:[%s17605_s27 + $0x18] sm:$0xff] %vm9847_vm1, %v13995_v61  ;;  %v9952_v62 = vmul.f32 %v13995_v61, %v13995_v61  ;;  %v9885_v23 = vsel %vm9847_vm1, %v13995_v61, 0.0 }
 0x3d2   : > { %9850 = vst.msk [vmem:[%s17605_s27 + $0x10] sm:$0xff] %vm9847_vm1, %v13996_v33  ;;  %v9883_v28 = vsel %vm9847_vm1, %v13996_v33, 0.0  ;;  %v9951_v46 = vmul.f32 %v13996_v33, %v13996_v33  ;;  %v13849_v50 = vpop.f32.mrb[4].mxu0 }
 0x3d3   : > { %v9884_v1 = vadd.f32 %v9883_v28, %v9882_v19  ;;  %v13997_v37 = vadd.f32 %v13849_v50, %v13147_v12  ;;  %v9676_v53 = vpop.f32.mrb[5].mxu0  ;;  %v9986_v44 = vsel %vm9847_vm1, %v9952_v62, 0.0 }
 0x3d4   : > { %v9984_v57 = vsel %vm9847_vm1, %v9951_v46, 0.0  ;;  %v13998_v17 = vadd.f32 %v9676_v53, %v4617_v4 }
 0x3d5   : > { %v9985_v31 = vadd.f32 %v9984_v57, %v9983_v41  ;;  %9853 = vst.msk [vmem:[%s17605_s27 + $0x28] sm:$0xff] %vm9847_vm1, %v13997_v37  ;;  %v9886_v8 = vadd.f32 %v9885_v23, %v9884_v1  ;;  %v9954_v5 = vmul.f32 %v13997_v37, %v13997_v37  ;;  %v9889_v58 = vsel %vm9847_vm1, %v13997_v37, 0.0 }
 0x3d6   : > { %9852 = vst.msk [vmem:[%s17605_s27 + $0x20] sm:$0xff] %vm9847_vm1, %v13998_v17  ;;  %v9887_v0 = vsel %vm9847_vm1, %v13998_v17, 0.0  ;;  %v9953_v2 = vmul.f32 %v13998_v17, %v13998_v17  ;;  %v13852_v18 = vpop.f32.mrb[6].mxu0 }
 0x3d7   : > { %v9888_v13 = vadd.f32 %v9887_v0, %v9886_v8  ;;  %v9987_v21 = vadd.f32 %v9986_v44, %v9985_v31  ;;  %v13999_v63 = vadd.f32 %v13852_v18, %v13150_v15  ;;  %v9686_v7 = vpop.f32.mrb[7].mxu0  ;;  %v9990_v38 = vsel %vm9847_vm1, %v9954_v5, 0.0 }
 0x3d8   : > { %v9988_v56 = vsel %vm9847_vm1, %v9953_v2, 0.0  ;;  %v14000_v22 = vadd.f32 %v9686_v7, %v4627_v25 }
 0x3d9   : > { %v9989_v26 = vadd.f32 %v9988_v56, %v9987_v21  ;;  %9855 = vst.msk [vmem:[%s17605_s27 + $0x38] sm:$0xff] %vm9847_vm1, %v13999_v63  ;;  %v9890_v29 = vadd.f32 %v9889_v58, %v9888_v13  ;;  %v9956_v40 = vmul.f32 %v13999_v63, %v13999_v63  ;;  %v9893_v10 = vsel %vm9847_vm1, %v13999_v63, 0.0 }
 0x3da   : > { %9854 = vst.msk [vmem:[%s17605_s27 + $0x30] sm:$0xff] %vm9847_vm1, %v14000_v22  ;;  %v9891_v39 = vsel %vm9847_vm1, %v14000_v22, 0.0  ;;  %v9955_v30 = vmul.f32 %v14000_v22, %v14000_v22  ;;  %v13855_v16 = vpop.f32.mrb[8].mxu0 }
 0x3db   : > { %v9892_v48 = vadd.f32 %v9891_v39, %v9890_v29  ;;  %v9991_v11 = vadd.f32 %v9990_v38, %v9989_v26  ;;  %v14001_v55 = vadd.f32 %v13855_v16, %v17585_v54  ;;  %v9696_v6 = vpop.f32.mrb[9].mxu0  ;;  %v9994_v36 = vsel %vm9847_vm1, %v9956_v40, 0.0 }
 0x3dc   : > { %v9992_v12 = vsel %vm9847_vm1, %v9955_v30, 0.0  ;;  %v14002_v4 = vadd.f32 %v9696_v6, %v17587_v9 }
 0x3dd   : > { %v9993_v15 = vadd.f32 %v9992_v12, %v9991_v11  ;;  %9857 = vst.msk [vmem:[%s17605_s27 + $0x48] sm:$0xff] %vm9847_vm1, %v14001_v55  ;;  %v9894_v25 = vadd.f32 %v9893_v10, %v9892_v48  ;;  %v9958_v20 = vmul.f32 %v14001_v55, %v14001_v55  ;;  %v9897_v59 = vsel %vm9847_vm1, %v14001_v55, 0.0 }
 0x3de   : > { %9856 = vst.msk [vmem:[%s17605_s27 + $0x40] sm:$0xff] %vm9847_vm1, %v14002_v4  ;;  %v9895_v54 = vsel %vm9847_vm1, %v14002_v4, 0.0  ;;  %v9957_v43 = vmul.f32 %v14002_v4, %v14002_v4  ;;  %v13858_v51 = vpop.f32.mrb[10].mxu0 }
 0x3df   : > { %v9896_v42 = vadd.f32 %v9895_v54, %v9894_v25  ;;  %v9995_v45 = vadd.f32 %v9994_v36, %v9993_v15  ;;  %v14003_v47 = vadd.f32 %v13858_v51, %v17589_v3  ;;  %v9706_v9 = vpop.f32.mrb[11].mxu0  ;;  %v9998_v52 = vsel %vm9847_vm1, %v9958_v20, 0.0 }
 0x3e0   : > { %v9996_v34 = vsel %vm9847_vm1, %v9957_v43, 0.0  ;;  %v14004_v35 = vadd.f32 %v9706_v9, %v17591_v32 }
 0x3e1   : > { %v9997_v19 = vadd.f32 %v9996_v34, %v9995_v45  ;;  %9859 = vst.msk [vmem:[%s17605_s27 + $0x58] sm:$0xff] %vm9847_vm1, %v14003_v47  ;;  %v9898_v61 = vadd.f32 %v9897_v59, %v9896_v42  ;;  %v9960_v60 = vmul.f32 %v14003_v47, %v14003_v47  ;;  %v9901_v50 = vsel %vm9847_vm1, %v14003_v47, 0.0 }
 0x3e2   : > { %9858 = vst.msk [vmem:[%s17605_s27 + $0x50] sm:$0xff] %vm9847_vm1, %v14004_v35  ;;  %v9899_v3 = vsel %vm9847_vm1, %v14004_v35, 0.0  ;;  %v9959_v33 = vmul.f32 %v14004_v35, %v14004_v35  ;;  %v13861_v41 = vpop.f32.mrb[12].mxu0 }
 0x3e3   : > { %v9900_v62 = vadd.f32 %v9899_v3, %v9898_v61  ;;  %v9999_v28 = vadd.f32 %v9998_v52, %v9997_v19  ;;  %v14005_v46 = vadd.f32 %v13861_v41, %v17593_v49  ;;  %v9716_v32 = vpop.f32.mrb[13].mxu0  ;;  %v10002_v57 = vsel %vm9847_vm1, %v9960_v60, 0.0 }
 0x3e4   : > { %v10000_v1 = vsel %vm9847_vm1, %v9959_v33, 0.0  ;;  %v14006_v37 = vadd.f32 %v9716_v32, %v17595_v27 }
 0x3e5   : > { %v10001_v53 = vadd.f32 %v10000_v1, %v9999_v28  ;;  %9861 = vst.msk [vmem:[%s17605_s27 + $0x68] sm:$0xff] %vm9847_vm1, %v14005_v46  ;;  %v9902_v23 = vadd.f32 %v9901_v50, %v9900_v62  ;;  %v9962_v17 = vmul.f32 %v14005_v46, %v14005_v46  ;;  %v9905_v2 = vsel %vm9847_vm1, %v14005_v46, 0.0 }
 0x3e6   : > { %9860 = vst.msk [vmem:[%s17605_s27 + $0x60] sm:$0xff] %vm9847_vm1, %v14006_v37  ;;  %v9903_v31 = vsel %vm9847_vm1, %v14006_v37, 0.0  ;;  %v9961_v49 = vmul.f32 %v14006_v37, %v14006_v37  ;;  %v13864_v8 = vpop.f32.mrb[14].mxu0 }
 0x3e7   : > { %v9904_v44 = vadd.f32 %v9903_v31, %v9902_v23  ;;  %v10003_v5 = vadd.f32 %v10002_v57, %v10001_v53  ;;  %v14007_v0 = vadd.f32 %v13864_v8, %v17597_v24  ;;  %v9726_v27 = vpop.f32.mrb[15].mxu0  ;;  %v10006_v58 = vsel %vm9847_vm1, %v9962_v17, 0.0 }
 0x3e8   : > { %v10004_v18 = vsel %vm9847_vm1, %v9961_v49, 0.0  ;;  %v14008_v13 = vadd.f32 %v9726_v27, %v17599_v14 }
 0x3e9   : > { %v10005_v21 = vadd.f32 %v10004_v18, %v10003_v5  ;;  %9863 = vst.msk [vmem:[%s17605_s27 + $0x78] sm:$0xff] %vm9847_vm1, %v14007_v0  ;;  %v9906_v63 = vadd.f32 %v9905_v2, %v9904_v44  ;;  %v13219_v7 = vpop.f32.mrb[16].mxu1  ;;  %v9964_v56 = vmul.f32 %v14007_v0, %v14007_v0  ;;  %v9909_v30 = vsel %vm9847_vm1, %v14007_v0, 0.0 }
 0x3ea   : > { %9862 = vst.msk [vmem:[%s17605_s27 + $0x70] sm:$0xff] %vm9847_vm1, %v14008_v13  ;;  %v9907_v24 = vsel %vm9847_vm1, %v14008_v13, 0.0  ;;  %v9963_v22 = vmul.f32 %v14008_v13, %v14008_v13  ;;  %v13867_v26 = vpop.f32.mrb[16].mxu0  ;;  %v5066_v29 = vpop.f32.mrb[17].mxu1 }
 0x3eb   : > { %v9908_v38 = vadd.f32 %v9907_v24, %v9906_v63  ;;  %v10007_v40 = vadd.f32 %v10006_v58, %v10005_v21  ;;  %v14009_v14 = vadd.f32 %v13867_v26, %v13219_v7  ;;  %v9736_v39 = vpop.f32.mrb[17].mxu0  ;;  %v10010_v10 = vsel %vm9847_vm1, %v9964_v56, 0.0 }
 0x3ec   : > { %v10008_v16 = vsel %vm9847_vm1, %v9963_v22, 0.0  ;;  %v14010_v48 = vadd.f32 %v9736_v39, %v5066_v29 }
 0x3ed   : > { %v10009_v11 = vadd.f32 %v10008_v16, %v10007_v40  ;;  %9865 = vst.msk [vmem:[%s17605_s27 + $0x88] sm:$0xff] %vm9847_vm1, %v14009_v14  ;;  %v9910_v55 = vadd.f32 %v9909_v30, %v9908_v38  ;;  %v13222_v6 = vpop.f32.mrb[18].mxu1  ;;  %v9966_v12 = vmul.f32 %v14009_v14, %v14009_v14  ;;  %v9913_v42 = vsel %vm9847_vm1, %v14009_v14, 0.0 }
 0x3ee   : > { %9864 = vst.msk [vmem:[%s17605_s27 + $0x80] sm:$0xff] %vm9847_vm1, %v14010_v48  ;;  %v9911_v4 = vsel %vm9847_vm1, %v14010_v48, 0.0  ;;  %v9965_v15 = vmul.f32 %v14010_v48, %v14010_v48  ;;  %v13870_v25 = vpop.f32.mrb[18].mxu0  ;;  %v5076_v36 = vpop.f32.mrb[19].mxu1 }
 0x3ef   : > { %v9912_v20 = vadd.f32 %v9911_v4, %v9910_v55  ;;  %v10011_v54 = vadd.f32 %v10010_v10, %v10009_v11  ;;  %v14011_v43 = vadd.f32 %v13870_v25, %v13222_v6  ;;  %v9746_v51 = vpop.f32.mrb[19].mxu0  ;;  %v10014_v35 = vsel %vm9847_vm1, %v9966_v12, 0.0 }
 0x3f0   : > { %v10012_v45 = vsel %vm9847_vm1, %v9965_v15, 0.0  ;;  %v14012_v47 = vadd.f32 %v9746_v51, %v5076_v36 }
 0x3f1   : > { %v10013_v9 = vadd.f32 %v10012_v45, %v10011_v54  ;;  %9867 = vst.msk [vmem:[%s17605_s27 + $0x98] sm:$0xff] %vm9847_vm1, %v14011_v43  ;;  %v9914_v59 = vadd.f32 %v9913_v42, %v9912_v20  ;;  %v13225_v34 = vpop.f32.mrb[20].mxu1  ;;  %v9968_v19 = vmul.f32 %v14011_v43, %v14011_v43  ;;  %v9917_v46 = vsel %vm9847_vm1, %v14011_v43, 0.0 }
 0x3f2   : > { %9866 = vst.msk [vmem:[%s17605_s27 + $0x90] sm:$0xff] %vm9847_vm1, %v14012_v47  ;;  %v9915_v61 = vsel %vm9847_vm1, %v14012_v47, 0.0  ;;  %v9967_v52 = vmul.f32 %v14012_v47, %v14012_v47  ;;  %v13873_v60 = vpop.f32.mrb[20].mxu0  ;;  %v5086_v3 = vpop.f32.mrb[21].mxu1 }
 0x3f3   : > { %v9916_v33 = vadd.f32 %v9915_v61, %v9914_v59  ;;  %v10015_v41 = vadd.f32 %v10014_v35, %v10013_v9  ;;  %v14013_v62 = vadd.f32 %v13873_v60, %v13225_v34  ;;  %v9756_v28 = vpop.f32.mrb[21].mxu0  ;;  %v10018_v23 = vsel %vm9847_vm1, %v9968_v19, 0.0 }
 0x3f4   : > { %v10016_v32 = vsel %vm9847_vm1, %v9967_v52, 0.0  ;;  %v14014_v50 = vadd.f32 %v9756_v28, %v5086_v3 }
 0x3f5   : > { %v10017_v1 = vadd.f32 %v10016_v32, %v10015_v41  ;;  %9869 = vst.msk [vmem:[%s17605_s27 + $0xa8] sm:$0xff] %vm9847_vm1, %v14013_v62  ;;  %v9918_v37 = vadd.f32 %v9917_v46, %v9916_v33  ;;  %v13228_v53 = vpop.f32.mrb[22].mxu1  ;;  %v9970_v57 = vmul.f32 %v14013_v62, %v14013_v62  ;;  %v9921_v2 = vsel %vm9847_vm1, %v14013_v62, 0.0 }
 0x3f6   : > { %9868 = vst.msk [vmem:[%s17605_s27 + $0xa0] sm:$0xff] %vm9847_vm1, %v14014_v50  ;;  %v9919_v17 = vsel %vm9847_vm1, %v14014_v50, 0.0  ;;  %v9969_v31 = vmul.f32 %v14014_v50, %v14014_v50  ;;  %v13876_v49 = vpop.f32.mrb[22].mxu0  ;;  %v5096_v8 = vpop.f32.mrb[23].mxu1 }
 0x3f7   : > { %v9920_v44 = vadd.f32 %v9919_v17, %v9918_v37  ;;  %v10019_v5 = vadd.f32 %v10018_v23, %v10017_v1  ;;  %v14015_v0 = vadd.f32 %v13876_v49, %v13228_v53  ;;  %v9766_v27 = vpop.f32.mrb[23].mxu0  ;;  %v10022_v58 = vsel %vm9847_vm1, %v9970_v57, 0.0 }
 0x3f8   : > { %v10020_v18 = vsel %vm9847_vm1, %v9969_v31, 0.0  ;;  %v14016_v13 = vadd.f32 %v9766_v27, %v5096_v8 }
 0x3f9   : > { %v10021_v21 = vadd.f32 %v10020_v18, %v10019_v5  ;;  %9871 = vst.msk [vmem:[%s17605_s27 + $0xb8] sm:$0xff] %vm9847_vm1, %v14015_v0  ;;  %v9922_v63 = vadd.f32 %v9921_v2, %v9920_v44  ;;  %v13231_v7 = vpop.f32.mrb[24].mxu1  ;;  %v9972_v56 = vmul.f32 %v14015_v0, %v14015_v0  ;;  %v9925_v30 = vsel %vm9847_vm1, %v14015_v0, 0.0 }
 0x3fa   : > { %9870 = vst.msk [vmem:[%s17605_s27 + $0xb0] sm:$0xff] %vm9847_vm1, %v14016_v13  ;;  %v9923_v24 = vsel %vm9847_vm1, %v14016_v13, 0.0  ;;  %v9971_v22 = vmul.f32 %v14016_v13, %v14016_v13  ;;  %v13879_v26 = vpop.f32.mrb[24].mxu0  ;;  %v5106_v29 = vpop.f32.mrb[25].mxu1 }
 0x3fb   : > { %v9924_v38 = vadd.f32 %v9923_v24, %v9922_v63  ;;  %v10023_v40 = vadd.f32 %v10022_v58, %v10021_v21  ;;  %v14017_v14 = vadd.f32 %v13879_v26, %v13231_v7  ;;  %v9776_v39 = vpop.f32.mrb[25].mxu0  ;;  %v10026_v10 = vsel %vm9847_vm1, %v9972_v56, 0.0 }
 0x3fc   : > { %v10024_v16 = vsel %vm9847_vm1, %v9971_v22, 0.0  ;;  %v14018_v48 = vadd.f32 %v9776_v39, %v5106_v29 }
 0x3fd   : > { %v10025_v11 = vadd.f32 %v10024_v16, %v10023_v40  ;;  %9873 = vst.msk [vmem:[%s17605_s27 + $0xc8] sm:$0xff] %vm9847_vm1, %v14017_v14  ;;  %v9926_v55 = vadd.f32 %v9925_v30, %v9924_v38  ;;  %v13234_v6 = vpop.f32.mrb[26].mxu1  ;;  %v9974_v12 = vmul.f32 %v14017_v14, %v14017_v14  ;;  %v9929_v42 = vsel %vm9847_vm1, %v14017_v14, 0.0 }
 0x3fe   : > { %9872 = vst.msk [vmem:[%s17605_s27 + $0xc0] sm:$0xff] %vm9847_vm1, %v14018_v48  ;;  %v9927_v4 = vsel %vm9847_vm1, %v14018_v48, 0.0  ;;  %v9973_v15 = vmul.f32 %v14018_v48, %v14018_v48  ;;  %v13882_v25 = vpop.f32.mrb[26].mxu0  ;;  %v5116_v36 = vpop.f32.mrb[27].mxu1 }
 0x3ff   : > { %v9928_v20 = vadd.f32 %v9927_v4, %v9926_v55  ;;  %v10027_v54 = vadd.f32 %v10026_v10, %v10025_v11  ;;  %v14019_v43 = vadd.f32 %v13882_v25, %v13234_v6  ;;  %v9786_v51 = vpop.f32.mrb[27].mxu0  ;;  %v10030_v35 = vsel %vm9847_vm1, %v9974_v12, 0.0 }
 0x400   : > { %v10028_v45 = vsel %vm9847_vm1, %v9973_v15, 0.0  ;;  %v14020_v47 = vadd.f32 %v9786_v51, %v5116_v36 }
 0x401   : > { %v10029_v9 = vadd.f32 %v10028_v45, %v10027_v54  ;;  %9875 = vst.msk [vmem:[%s17605_s27 + $0xd8] sm:$0xff] %vm9847_vm1, %v14019_v43  ;;  %v9930_v59 = vadd.f32 %v9929_v42, %v9928_v20  ;;  %v13237_v34 = vpop.f32.mrb[28].mxu1  ;;  %v9976_v19 = vmul.f32 %v14019_v43, %v14019_v43  ;;  %v9933_v46 = vsel %vm9847_vm1, %v14019_v43, 0.0 }
 0x402   : > { %9874 = vst.msk [vmem:[%s17605_s27 + $0xd0] sm:$0xff] %vm9847_vm1, %v14020_v47  ;;  %v9931_v61 = vsel %vm9847_vm1, %v14020_v47, 0.0  ;;  %v9975_v52 = vmul.f32 %v14020_v47, %v14020_v47  ;;  %v13885_v60 = vpop.f32.mrb[28].mxu0  ;;  %v5126_v3 = vpop.f32.mrb[29].mxu1 }
 0x403   : > { %v9932_v33 = vadd.f32 %v9931_v61, %v9930_v59  ;;  %v10031_v41 = vadd.f32 %v10030_v35, %v10029_v9  ;;  %v14021_v62 = vadd.f32 %v13885_v60, %v13237_v34  ;;  %v9796_v28 = vpop.f32.mrb[29].mxu0  ;;  %v10034_v23 = vsel %vm9847_vm1, %v9976_v19, 0.0 }
 0x404   : > { %v10032_v32 = vsel %vm9847_vm1, %v9975_v52, 0.0  ;;  %v14022_v50 = vadd.f32 %v9796_v28, %v5126_v3 }
 0x405   : > { %v10033_v1 = vadd.f32 %v10032_v32, %v10031_v41  ;;  %9877 = vst.msk [vmem:[%s17605_s27 + $0xe8] sm:$0xff] %vm9847_vm1, %v14021_v62  ;;  %v9934_v37 = vadd.f32 %v9933_v46, %v9932_v33  ;;  %v13240_v53 = vpop.f32.mrb[30].mxu1  ;;  %v9978_v57 = vmul.f32 %v14021_v62, %v14021_v62  ;;  %v9937_v2 = vsel %vm9847_vm1, %v14021_v62, 0.0 }
 0x406   : > { %9876 = vst.msk [vmem:[%s17605_s27 + $0xe0] sm:$0xff] %vm9847_vm1, %v14022_v50  ;;  %v9935_v17 = vsel %vm9847_vm1, %v14022_v50, 0.0  ;;  %v9977_v31 = vmul.f32 %v14022_v50, %v14022_v50  ;;  %v13888_v49 = vpop.f32.mrb[30].mxu0  ;;  %v5136_v8 = vpop.f32.mrb[31].mxu1 }
 0x407   : > { %v9936_v44 = vadd.f32 %v9935_v17, %v9934_v37  ;;  %v10035_v5 = vadd.f32 %v10034_v23, %v10033_v1  ;;  %v14023_v0 = vadd.f32 %v13888_v49, %v13240_v53  ;;  %v9806_v27 = vpop.f32.mrb[31].mxu0  ;;  %v10038_v56 = vsel %vm9847_vm1, %v9978_v57, 0.0 }
 0x408   : > { %v10036_v18 = vsel %vm9847_vm1, %v9977_v31, 0.0  ;;  %v14024_v13 = vadd.f32 %v9806_v27, %v5136_v8 }
 0x409   : > { %v10037_v21 = vadd.f32 %v10036_v18, %v10035_v5  ;;  %9879 = vst.msk [vmem:[%s17605_s27 + $0xf8] sm:$0xff] %vm9847_vm1, %v14023_v0  ;;  %v9941_v63 = vsel %vm9847_vm1, %v14023_v0, 0.0  ;;  %v9980_v7 = vmul.f32 %v14023_v0, %v14023_v0  ;;  %v9938_v58 = vadd.f32 %v9937_v2, %v9936_v44 }
 0x40a   : > { %9878 = vst.msk [vmem:[%s17605_s27 + $0xf0] sm:$0xff] %vm9847_vm1, %v14024_v13  ;;  %v9939_v24 = vsel %vm9847_vm1, %v14024_v13, 0.0  ;;  %v9979_v22 = vmul.f32 %v14024_v13, %v14024_v13 }
 0x40b   : > { %v10042_v26 = vsel %vm9847_vm1, %v9980_v7, 0.0  ;;  %v9940_v29 = vadd.f32 %v9939_v24, %v9938_v58  ;;  %v10039_v38 = vadd.f32 %v10038_v56, %v10037_v21 }
 0x40c   : > { %v10040_v40 = vsel %vm9847_vm1, %v9979_v22, 0.0 }
 0x40d   : > { %v9942_v14 = vadd.f32 %v9941_v63, %v9940_v29  ;;  %v10041_v39 = vadd.f32 %v10040_v40, %v10039_v38 }
 0x40f   : > { %v9943_v30 = vrot.slane %v9942_v14, 4  ;;  %v10043_v16 = vadd.f32 %v10042_v26, %v10041_v39 }
 0x411   : > { %v9944_v48 = vadd.f32 %v9943_v30, %v9942_v14  ;;  %v10044_v11 = vrot.slane %v10043_v16, 4 }
 0x413   : > { %v9945_v55 = vrot.slane %v9944_v48, 2  ;;  %v10045_v6 = vadd.f32 %v10044_v11, %v10043_v16 }
 0x415   : > { %v9946_v10 = vadd.f32 %v9945_v55, %v9944_v48  ;;  %v10046_v12 = vrot.slane %v10045_v6, 2 }
 0x417   : > { %v9947_v4 = vrot.slane %v9946_v10, 1  ;;  %v10047_v15 = vadd.f32 %v10046_v12, %v10045_v6 }
 0x419   : > { %v10048_v25 = vrot.slane %v10047_v15, 1  ;;  %v9948_v36 = vadd.f32 %v9947_v4, %v9946_v10 }
 0x41b   : > { %v10049_v20 = vadd.f32 %v10048_v25, %v10047_v15 }
 0x41d   : > { %v10051_v54 = vsel %vm10050_vm2, %v9948_v36, %v10049_v20 }
 0x41e   : > { %10053 = vst.msk [vmem:[%s181_s4] sm:$0x3] %vm10052_vm3, %v10051_v54 }
 0x41f PF: > { %s14_s12 = sadd.s32 1, %s14777_s12  }
 0x420   : > { %p11_p4 = scmp.ge.s32.totalorder %s14_s12, 4  }
 0x422   :  { %13 = sbr.rel (!%p11_p4) target bundleno = 1 (0x1), region = 98 }

</bundles_post_ra>
